<compile_context>
chip_gen: v6e
topology: v6e:2x2x1
jax: 0.10.0
libtpu: 0.0.40
codegen_flags: <defaults>
</compile_context>

<pallas_src>
import numpy as np
import jax
import jax.numpy as jnp
from jax.experimental import pallas as pl
from jax.experimental.pallas import tpu as pltpu


# ----------------------------- fused kernel --------------------------------


def _fused_kernel(x_ref,
                  w1_ref, w2_ref, w3_ref, sp_ref,
                  b1_ref, b2_ref, b3_ref,
                  w4_ref, b4_ref, f1_ref, fb1_ref, f2_ref, fb2_ref,
                  o_ref,
                  pad2_ref, pad3_ref):
    """Whole network for one batch tile.

    x_ref  : (BT, 34, 96)  H-padded input, lanes = (w, c) fused
    wK_ref : (3, K, 512)   block-band conv weights (one matrix per dy tap)
    sp_ref : (6, 512, 256) even/odd W-pool lane-selection matrices per stage
    o_ref  : (1, BT, 10)   logits
    padK   : VMEM scratch holding the (relu'd, W-pooled) previous stage with
             zero H-border rows; H-pool happens at read time (row dilation).
    """
    bt = x_ref.shape[0]
    f32 = jnp.float32

    def conv3x3(read_band, n_lanes, w_ref, b_ref):
        # 3 band matmuls (one per dy), accumulate in f32, then bias + ReLU.
        acc = None
        for dy in range(3):
            lhs = read_band(dy).reshape(bt * 32, n_lanes)
            part = jnp.dot(lhs, w_ref[dy], preferred_element_type=f32)
            acc = part if acc is None else acc + part
        return jnp.maximum(acc + b_ref[...], 0.0)          # (bt*32, 512)

    def w_pool(y, s_idx):
        # max over adjacent W positions via two 0/1 selection matmuls.
        return jnp.maximum(
            jnp.dot(y, sp_ref[s_idx], preferred_element_type=f32),
            jnp.dot(y, sp_ref[s_idx + 1], preferred_element_type=f32))

    # ---- stage 1: conv1 (3 -> 16) + ReLU, W half of the 2x2 pool -----------
    y = conv3x3(lambda dy: x_ref[:, dy:dy + 32, :], 96, w1_ref, b1_ref)
    wp = w_pool(y, 0)                                      # (bt*32, 256)

    # stage-2 pad scratch: zero H borders (tiny), write 32 data rows (dil. 1).
    pad2_ref[:, 0:2, :] = jnp.zeros((bt, 2, 256), f32)
    pad2_ref[:, 2:34, :] = wp.reshape(bt, 32, 256)
    pad2_ref[:, 34:40, :] = jnp.zeros((bt, 6, 256), f32)

    # ---- stage 2: conv2 (16 -> 32); stage-1 H-pool fused into band reads ---
    def band2(dy):
        a = 2 * dy
        return jnp.maximum(pad2_ref[:, a:a + 32, :], pad2_ref[:, a + 1:a + 33, :])

    y = conv3x3(band2, 256, w2_ref, b2_ref)                # valid rows m = 2*r
    wp = w_pool(y, 2)                                      # (bt*32, 256)

    pad3_ref[:, 0:4, :] = jnp.zeros((bt, 4, 256), f32)
    pad3_ref[:, 4:36, :] = wp.reshape(bt, 32, 256)
    pad3_ref[:, 36:48, :] = jnp.zeros((bt, 12, 256), f32)

    # ---- stage 3: conv3 (32 -> 64); stage-2 H-pool fused into band reads ---
    def band3(dy):
        a = 4 * dy
        return jnp.maximum(pad3_ref[:, a:a + 32, :], pad3_ref[:, a + 2:a + 34, :])

    y = conv3x3(band3, 256, w3_ref, b3_ref)                # valid rows n = 4*q
    wp = w_pool(y, 4).reshape(bt, 32, 256)                 # lanes = (w4, c64)

    # ---- stage-3 H-pool + conv4 (1x1) + flatten + fc1, per output row h ----
    hacc = None
    for h in range(4):
        row = jnp.maximum(wp[:, 8 * h, :], wp[:, 8 * h + 4, :])      # (bt, 256)
        z = jnp.maximum(jnp.dot(row, w4_ref[...], preferred_element_type=f32)
                        + b4_ref[...], 0.0)                          # (bt, 128)
        part = jnp.dot(z, f1_ref[h], preferred_element_type=f32)
        hacc = part if hacc is None else hacc + part
    hfc = jnp.maximum(hacc + fb1_ref[...], 0.0)                      # (bt, 128)

    o_ref[0] = (jnp.dot(hfc, f2_ref[...], preferred_element_type=f32)
                + fb2_ref[...])                                      # (bt, 10)


# ----------------------------- weight packing --------------------------------


def _band_onehot(n):
    # A[dx, p, j] = 1 iff input column p == output column j + dx - 1.
    dx = np.arange(3)[:, None, None]
    p = np.arange(n)[None, :, None]
    j = np.arange(n)[None, None, :]
    return (p == j + dx - 1).astype(np.float32)


def _pool_select(w, c):
    # even/odd 0/1 selection matrices for the W half of a 2x2 max-pool.
    se = np.zeros((w * c, (w // 2) * c), np.float32)
    so = np.zeros((w * c, (w // 2) * c), np.float32)
    for k in range(w // 2):
        for ch in range(c):
            se[(2 * k) * c + ch, k * c + ch] = 1.0
            so[(2 * k + 1) * c + ch, k * c + ch] = 1.0
    return se, so


_SP = np.stack([*_pool_select(32, 16), *_pool_select(16, 32),
                *_pool_select(8, 64)], axis=0)             # (6, 512, 256)


def _prepare(p):
    """One-time repacking of the tiny weights (wrapper-side XLA, outside kernel)."""
    f32 = jnp.float32

    def band(w, width):
        # (3,3,Cin,Cout) HWIO -> (3, width*Cin, width*Cout) block-band matrices.
        a = jnp.asarray(_band_onehot(width))
        ci, co = w.shape[2], w.shape[3]
        wb = jnp.einsum("xpj,yxio->ypijo", a, w)
        return wb.reshape(3, width * ci, width * co).astype(f32)

    w1b = band(p["w1"], 32)                                # (3,  96, 512)
    w2b = band(p["w2"], 16)                                # (3, 256, 512)
    w3b = band(p["w3"], 8)                                 # (3, 256, 512)
    sp = jnp.asarray(_SP)                                  # (6, 512, 256)
    b1f = jnp.tile(p["b1"], (1, 32))                       # (1, 512)
    b2f = jnp.tile(p["b2"], (1, 16))
    b3f = jnp.tile(p["b3"], (1, 8))
    # 1x1 conv as block-diagonal matmul over fused (w, cin) -> (w, cout) lanes.
    w4b = jnp.einsum("jk,io->jiko", jnp.eye(4, dtype=f32),
                     p["w4"]).reshape(256, 128)
    b4f = jnp.tile(p["b4"], (1, 4))                        # (1, 128)
    # fc1 rows regrouped per spatial row h: fw1b[h, w*32+c, f], torch flatten
    # order of the in-axis is (c, h, w).
    fw1b = (p["fw1"].reshape(32, 4, 4, 128)
            .transpose(1, 2, 0, 3).reshape(4, 128, 128))
    return w1b, w2b, w3b, sp, b1f, b2f, b3f, w4b, b4f, fw1b


# ----------------------------- wrapper ---------------------------------------


def my_model_forward(x_nchw, params):
    B = x_nchw.shape[0]
    BT = max(1, min(16, (B + 1) // 2))      # >= 2 grid steps when B >= 2 (v7x)
    G = -(-B // BT)
    Bp = G * BT

    x = jnp.transpose(x_nchw, (0, 2, 3, 1))                      # NCHW -> NHWC
    x = jnp.pad(x, ((0, Bp - B), (1, 1), (0, 0), (0, 0)))        # batch + H pad
    x = x.reshape(Bp, 34, 96)                                    # fuse (W, C)

    w1b, w2b, w3b, sp, b1f, b2f, b3f, w4b, b4f, fw1b = _prepare(params)

    def full(shape):  # whole-array block, resident every grid step
        return pl.BlockSpec(shape, lambda i, _n=len(shape): (0,) * _n)

    out = pl.pallas_call(
        _fused_kernel,
        out_shape=jax.ShapeDtypeStruct((G, BT, 10), jnp.float32),
        grid=(G,),
        in_specs=[
            pl.BlockSpec((BT, 34, 96), lambda i: (i, 0, 0)),
            full((3, 96, 512)), full((3, 256, 512)), full((3, 256, 512)),
            full((6, 512, 256)),
            full((1, 512)), full((1, 512)), full((1, 512)),
            full((256, 128)), full((1, 128)),
            full((4, 128, 128)), full((1, 128)),
            full((128, 10)), full((1, 10)),
        ],
        out_specs=pl.BlockSpec((1, BT, 10), lambda i: (i, 0, 0)),
        scratch_shapes=[
            pltpu.VMEM((BT, 40, 256), jnp.float32),   # stage-2 padded rows
            pltpu.VMEM((BT, 48, 256), jnp.float32),   # stage-3 padded rows
        ],
        compiler_params=pltpu.CompilerParams(
            dimension_semantics=("parallel",),
            vmem_limit_bytes=32 * 1024 * 1024,
        ),
    )(x, w1b, w2b, w3b, sp, b1f, b2f, b3f, w4b, b4f, fw1b,
      params["fb1"], params["fw2"], params["fb2"])
    return out.reshape(Bp, 10)[:B]


# ----------------------------- setup ---------------------------------------


def init_params(key):
    ks = jax.random.split(key, 6)
    s = 0.05

    def w(k, shape):
        return (s * jax.random.normal(k, shape)).astype(jnp.float32)

    return {
        # Conv weights in HWIO layout (kh, kw, Cin, Cout); torch OIHW weights
        # map here via transpose(2, 3, 1, 0). 1x1 conv stored as (Cin, Cout).
        "w1": w(ks[0], (3, 3, 3, 16)),   "b1": jnp.zeros((1, 16), jnp.float32),
        "w2": w(ks[1], (3, 3, 16, 32)),  "b2": jnp.zeros((1, 32), jnp.float32),
        "w3": w(ks[2], (3, 3, 32, 64)),  "b3": jnp.zeros((1, 64), jnp.float32),
        "w4": w(ks[3], (64, 32)),        "b4": jnp.zeros((1, 32), jnp.float32),
        # fc weights as (in, out) — transpose of torch's (out, in); fc1's "in"
        # axis follows torch's flatten order (C, H, W).
        "fw1": w(ks[4], (512, 128)),     "fb1": jnp.zeros((1, 128), jnp.float32),
        "fw2": w(ks[5], (128, 10)),      "fb2": jnp.zeros((1, 10), jnp.float32),
    }


if __name__ == "__main__":
    key = jax.random.PRNGKey(0)
    pkey, xkey = jax.random.split(key)
    params = init_params(pkey)

    # fc1 = Linear(32*4*4, ...) with three /2 pools implies 32x32 spatial input.
    x = jax.random.normal(xkey, (2, 3, 32, 32), dtype=jnp.float32)  # NCHW

    out = jax.jit(my_model_forward)(x, params)
    out = jax.block_until_ready(out)
    assert out.shape == (2, 10) and out.dtype == jnp.float32
    assert bool(jnp.all(jnp.isfinite(out)))
    print("KERNEL_OK")
</pallas_src>

<mosaic_0001>
module attributes {stable_mosaic.version = 11 : i64} {
  func.func @_fused_kernel(%arg0: i32, %arg1: memref<1x34x96xf32, #tpu.memory_space<vmem>>, %arg2: memref<3x96x512xf32, #tpu.memory_space<vmem>>, %arg3: memref<3x256x512xf32, #tpu.memory_space<vmem>>, %arg4: memref<3x256x512xf32, #tpu.memory_space<vmem>>, %arg5: memref<6x512x256xf32, #tpu.memory_space<vmem>>, %arg6: memref<1x512xf32, #tpu.memory_space<vmem>>, %arg7: memref<1x512xf32, #tpu.memory_space<vmem>>, %arg8: memref<1x512xf32, #tpu.memory_space<vmem>>, %arg9: memref<256x128xf32, #tpu.memory_space<vmem>>, %arg10: memref<1x128xf32, #tpu.memory_space<vmem>>, %arg11: memref<4x128x128xf32, #tpu.memory_space<vmem>>, %arg12: memref<1x128xf32, #tpu.memory_space<vmem>>, %arg13: memref<128x10xf32, #tpu.memory_space<vmem>>, %arg14: memref<1x10xf32, #tpu.memory_space<vmem>>, %arg15: memref<1x1x10xf32, #tpu.memory_space<vmem>>, %arg16: memref<1x40x256xf32, #tpu.memory_space<vmem>>, %arg17: memref<1x48x256xf32, #tpu.memory_space<vmem>>) attributes {dimension_semantics = [#tpu.dimension_semantics<parallel>], iteration_bounds = array<i64: 2>, scalar_prefetch = 0 : i64, scratch_operands = 2 : i64, tpu.core_type = #tpu.core_type<tc>, window_params = [{transform_indices = @transform_0, window_bounds = array<i64: 1, 34, 96>}, {pipeline_mode = #tpu.pipeline_mode<synchronous>, transform_indices = @transform_1, window_bounds = array<i64: 3, 96, 512>}, {pipeline_mode = #tpu.pipeline_mode<synchronous>, transform_indices = @transform_2, window_bounds = array<i64: 3, 256, 512>}, {pipeline_mode = #tpu.pipeline_mode<synchronous>, transform_indices = @transform_3, window_bounds = array<i64: 3, 256, 512>}, {pipeline_mode = #tpu.pipeline_mode<synchronous>, transform_indices = @transform_4, window_bounds = array<i64: 6, 512, 256>}, {pipeline_mode = #tpu.pipeline_mode<synchronous>, transform_indices = @transform_5, window_bounds = array<i64: 1, 512>}, {pipeline_mode = #tpu.pipeline_mode<synchronous>, transform_indices = @transform_6, window_bounds = array<i64: 1, 512>}, {pipeline_mode = #tpu.pipeline_mode<synchronous>, transform_indices = @transform_7, window_bounds = array<i64: 1, 512>}, {pipeline_mode = #tpu.pipeline_mode<synchronous>, transform_indices = @transform_8, window_bounds = array<i64: 256, 128>}, {pipeline_mode = #tpu.pipeline_mode<synchronous>, transform_indices = @transform_9, window_bounds = array<i64: 1, 128>}, {pipeline_mode = #tpu.pipeline_mode<synchronous>, transform_indices = @transform_10, window_bounds = array<i64: 4, 128, 128>}, {pipeline_mode = #tpu.pipeline_mode<synchronous>, transform_indices = @transform_11, window_bounds = array<i64: 1, 128>}, {pipeline_mode = #tpu.pipeline_mode<synchronous>, transform_indices = @transform_12, window_bounds = array<i64: 128, 10>}, {pipeline_mode = #tpu.pipeline_mode<synchronous>, transform_indices = @transform_13, window_bounds = array<i64: 1, 10>}, {transform_indices = @transform_14, window_bounds = array<i64: 1, 1, 10>}]} {
    %c0 = arith.constant 0 : index
    %c0_0 = arith.constant 0 : index
    %c0_1 = arith.constant 0 : index
    %0 = vector.load %arg1[%c0, %c0_0, %c0_1] : memref<1x34x96xf32, #tpu.memory_space<vmem>>, vector<1x32x96xf32>
    %1 = vector.shape_cast %0 : vector<1x32x96xf32> to vector<32x96xf32>
    %c0_2 = arith.constant 0 : index
    %c0_3 = arith.constant 0 : index
    %c0_4 = arith.constant 0 : index
    %2 = vector.load %arg2[%c0_2, %c0_3, %c0_4] : memref<3x96x512xf32, #tpu.memory_space<vmem>>, vector<1x96x512xf32>
    %3 = vector.shape_cast %2 : vector<1x96x512xf32> to vector<96x512xf32>
    %cst = arith.constant dense<0.000000e+00> : vector<32x512xf32>
    %4 = tpu.matmul %1, %3, %cst {dimension_numbers = #tpu.dot_dimension_numbers<[1], [0], [0], [1], [0, 0, 1, 1], [], []>} : vector<32x96xf32>, vector<96x512xf32>, vector<32x512xf32> -> vector<32x512xf32>
    %c0_5 = arith.constant 0 : index
    %c1 = arith.constant 1 : index
    %c0_6 = arith.constant 0 : index
    %5 = vector.load %arg1[%c0_5, %c1, %c0_6] : memref<1x34x96xf32, #tpu.memory_space<vmem>>, vector<1x32x96xf32>
    %6 = vector.shape_cast %5 : vector<1x32x96xf32> to vector<32x96xf32>
    %c1_7 = arith.constant 1 : index
    %c0_8 = arith.constant 0 : index
    %c0_9 = arith.constant 0 : index
    %7 = vector.load %arg2[%c1_7, %c0_8, %c0_9] : memref<3x96x512xf32, #tpu.memory_space<vmem>>, vector<1x96x512xf32>
    %8 = vector.shape_cast %7 : vector<1x96x512xf32> to vector<96x512xf32>
    %cst_10 = arith.constant dense<0.000000e+00> : vector<32x512xf32>
    %9 = tpu.matmul %6, %8, %cst_10 {dimension_numbers = #tpu.dot_dimension_numbers<[1], [0], [0], [1], [0, 0, 1, 1], [], []>} : vector<32x96xf32>, vector<96x512xf32>, vector<32x512xf32> -> vector<32x512xf32>
    %10 = arith.addf %4, %9 : vector<32x512xf32>
    %c0_11 = arith.constant 0 : index
    %c2 = arith.constant 2 : index
    %c0_12 = arith.constant 0 : index
    %11 = vector.load %arg1[%c0_11, %c2, %c0_12] : memref<1x34x96xf32, #tpu.memory_space<vmem>>, vector<1x32x96xf32>
    %12 = vector.shape_cast %11 : vector<1x32x96xf32> to vector<32x96xf32>
    %c2_13 = arith.constant 2 : index
    %c0_14 = arith.constant 0 : index
    %c0_15 = arith.constant 0 : index
    %13 = vector.load %arg2[%c2_13, %c0_14, %c0_15] : memref<3x96x512xf32, #tpu.memory_space<vmem>>, vector<1x96x512xf32>
    %14 = vector.shape_cast %13 : vector<1x96x512xf32> to vector<96x512xf32>
    %cst_16 = arith.constant dense<0.000000e+00> : vector<32x512xf32>
    %15 = tpu.matmul %12, %14, %cst_16 {dimension_numbers = #tpu.dot_dimension_numbers<[1], [0], [0], [1], [0, 0, 1, 1], [], []>} : vector<32x96xf32>, vector<96x512xf32>, vector<32x512xf32> -> vector<32x512xf32>
    %16 = arith.addf %10, %15 : vector<32x512xf32>
    %c0_17 = arith.constant 0 : index
    %c0_18 = arith.constant 0 : index
    %17 = vector.load %arg6[%c0_17, %c0_18] : memref<1x512xf32, #tpu.memory_space<vmem>>, vector<1x512xf32>
    %18 = vector.broadcast %17 : vector<1x512xf32> to vector<32x512xf32>
    %19 = arith.addf %16, %18 : vector<32x512xf32>
    %cst_19 = arith.constant 0.000000e+00 : f32
    %20 = vector.broadcast %cst_19 : f32 to vector<32x512xf32>
    %21 = arith.maximumf %19, %20 : vector<32x512xf32>
    %c0_20 = arith.constant 0 : index
    %c0_21 = arith.constant 0 : index
    %c0_22 = arith.constant 0 : index
    %22 = vector.load %arg5[%c0_20, %c0_21, %c0_22] : memref<6x512x256xf32, #tpu.memory_space<vmem>>, vector<1x512x256xf32>
    %23 = vector.shape_cast %22 : vector<1x512x256xf32> to vector<512x256xf32>
    %cst_23 = arith.constant dense<0.000000e+00> : vector<32x256xf32>
    %24 = tpu.matmul %21, %23, %cst_23 {dimension_numbers = #tpu.dot_dimension_numbers<[1], [0], [0], [1], [0, 0, 1, 1], [], []>} : vector<32x512xf32>, vector<512x256xf32>, vector<32x256xf32> -> vector<32x256xf32>
    %c1_24 = arith.constant 1 : index
    %c0_25 = arith.constant 0 : index
    %c0_26 = arith.constant 0 : index
    %25 = vector.load %arg5[%c1_24, %c0_25, %c0_26] : memref<6x512x256xf32, #tpu.memory_space<vmem>>, vector<1x512x256xf32>
    %26 = vector.shape_cast %25 : vector<1x512x256xf32> to vector<512x256xf32>
    %cst_27 = arith.constant dense<0.000000e+00> : vector<32x256xf32>
    %27 = tpu.matmul %21, %26, %cst_27 {dimension_numbers = #tpu.dot_dimension_numbers<[1], [0], [0], [1], [0, 0, 1, 1], [], []>} : vector<32x512xf32>, vector<512x256xf32>, vector<32x256xf32> -> vector<32x256xf32>
    %28 = arith.maximumf %24, %27 : vector<32x256xf32>
    %cst_28 = arith.constant 0.000000e+00 : f32
    %29 = vector.broadcast %cst_28 : f32 to vector<1x2x256xf32>
    %c0_29 = arith.constant 0 : index
    %c0_30 = arith.constant 0 : index
    %c0_31 = arith.constant 0 : index
    %30 = vector.load %arg16[%c0_29, %c0_30, %c0_31] : memref<1x40x256xf32, #tpu.memory_space<vmem>>, vector<1x2x256xf32>
    tpu.vector_store %arg16[%c0_29, %c0_30, %c0_31], %29 {strides = array<i32>} : memref<1x40x256xf32, #tpu.memory_space<vmem>>, vector<1x2x256xf32>,
    %31 = vector.shape_cast %28 : vector<32x256xf32> to vector<1x32x256xf32>
    %c0_32 = arith.constant 0 : index
    %c2_33 = arith.constant 2 : index
    %c0_34 = arith.constant 0 : index
    %32 = vector.load %arg16[%c0_32, %c2_33, %c0_34] : memref<1x40x256xf32, #tpu.memory_space<vmem>>, vector<1x32x256xf32>
    tpu.vector_store %arg16[%c0_32, %c2_33, %c0_34], %31 {strides = array<i32>} : memref<1x40x256xf32, #tpu.memory_space<vmem>>, vector<1x32x256xf32>,
    %cst_35 = arith.constant 0.000000e+00 : f32
    %33 = vector.broadcast %cst_35 : f32 to vector<1x6x256xf32>
    %c0_36 = arith.constant 0 : index
    %c34 = arith.constant 34 : index
    %c0_37 = arith.constant 0 : index
    %34 = vector.load %arg16[%c0_36, %c34, %c0_37] : memref<1x40x256xf32, #tpu.memory_space<vmem>>, vector<1x6x256xf32>
    tpu.vector_store %arg16[%c0_36, %c34, %c0_37], %33 {strides = array<i32>} : memref<1x40x256xf32, #tpu.memory_space<vmem>>, vector<1x6x256xf32>,
    %c0_38 = arith.constant 0 : index
    %c0_39 = arith.constant 0 : index
    %c0_40 = arith.constant 0 : index
    %35 = vector.load %arg16[%c0_38, %c0_39, %c0_40] : memref<1x40x256xf32, #tpu.memory_space<vmem>>, vector<1x32x256xf32>
    %c0_41 = arith.constant 0 : index
    %c1_42 = arith.constant 1 : index
    %c0_43 = arith.constant 0 : index
    %36 = vector.load %arg16[%c0_41, %c1_42, %c0_43] : memref<1x40x256xf32, #tpu.memory_space<vmem>>, vector<1x32x256xf32>
    %37 = arith.maximumf %35, %36 : vector<1x32x256xf32>
    %38 = vector.shape_cast %37 : vector<1x32x256xf32> to vector<32x256xf32>
    %c0_44 = arith.constant 0 : index
    %c0_45 = arith.constant 0 : index
    %c0_46 = arith.constant 0 : index
    %39 = vector.load %arg3[%c0_44, %c0_45, %c0_46] : memref<3x256x512xf32, #tpu.memory_space<vmem>>, vector<1x256x512xf32>
    %40 = vector.shape_cast %39 : vector<1x256x512xf32> to vector<256x512xf32>
    %cst_47 = arith.constant dense<0.000000e+00> : vector<32x512xf32>
    %41 = tpu.matmul %38, %40, %cst_47 {dimension_numbers = #tpu.dot_dimension_numbers<[1], [0], [0], [1], [0, 0, 1, 1], [], []>} : vector<32x256xf32>, vector<256x512xf32>, vector<32x512xf32> -> vector<32x512xf32>
    %c0_48 = arith.constant 0 : index
    %c2_49 = arith.constant 2 : index
    %c0_50 = arith.constant 0 : index
    %42 = vector.load %arg16[%c0_48, %c2_49, %c0_50] : memref<1x40x256xf32, #tpu.memory_space<vmem>>, vector<1x32x256xf32>
    %c0_51 = arith.constant 0 : index
    %c3 = arith.constant 3 : index
    %c0_52 = arith.constant 0 : index
    %43 = vector.load %arg16[%c0_51, %c3, %c0_52] : memref<1x40x256xf32, #tpu.memory_space<vmem>>, vector<1x32x256xf32>
    %44 = arith.maximumf %42, %43 : vector<1x32x256xf32>
    %45 = vector.shape_cast %44 : vector<1x32x256xf32> to vector<32x256xf32>
    %c1_53 = arith.constant 1 : index
    %c0_54 = arith.constant 0 : index
    %c0_55 = arith.constant 0 : index
    %46 = vector.load %arg3[%c1_53, %c0_54, %c0_55] : memref<3x256x512xf32, #tpu.memory_space<vmem>>, vector<1x256x512xf32>
    %47 = vector.shape_cast %46 : vector<1x256x512xf32> to vector<256x512xf32>
    %cst_56 = arith.constant dense<0.000000e+00> : vector<32x512xf32>
    %48 = tpu.matmul %45, %47, %cst_56 {dimension_numbers = #tpu.dot_dimension_numbers<[1], [0], [0], [1], [0, 0, 1, 1], [], []>} : vector<32x256xf32>, vector<256x512xf32>, vector<32x512xf32> -> vector<32x512xf32>
    %49 = arith.addf %41, %48 : vector<32x512xf32>
    %c0_57 = arith.constant 0 : index
    %c4 = arith.constant 4 : index
    %c0_58 = arith.constant 0 : index
    %50 = vector.load %arg16[%c0_57, %c4, %c0_58] : memref<1x40x256xf32, #tpu.memory_space<vmem>>, vector<1x32x256xf32>
    %c0_59 = arith.constant 0 : index
    %c5 = arith.constant 5 : index
    %c0_60 = arith.constant 0 : index
    %51 = vector.load %arg16[%c0_59, %c5, %c0_60] : memref<1x40x256xf32, #tpu.memory_space<vmem>>, vector<1x32x256xf32>
    %52 = arith.maximumf %50, %51 : vector<1x32x256xf32>
    %53 = vector.shape_cast %52 : vector<1x32x256xf32> to vector<32x256xf32>
    %c2_61 = arith.constant 2 : index
    %c0_62 = arith.constant 0 : index
    %c0_63 = arith.constant 0 : index
    %54 = vector.load %arg3[%c2_61, %c0_62, %c0_63] : memref<3x256x512xf32, #tpu.memory_space<vmem>>, vector<1x256x512xf32>
    %55 = vector.shape_cast %54 : vector<1x256x512xf32> to vector<256x512xf32>
    %cst_64 = arith.constant dense<0.000000e+00> : vector<32x512xf32>
    %56 = tpu.matmul %53, %55, %cst_64 {dimension_numbers = #tpu.dot_dimension_numbers<[1], [0], [0], [1], [0, 0, 1, 1], [], []>} : vector<32x256xf32>, vector<256x512xf32>, vector<32x512xf32> -> vector<32x512xf32>
    %57 = arith.addf %49, %56 : vector<32x512xf32>
    %c0_65 = arith.constant 0 : index
    %c0_66 = arith.constant 0 : index
    %58 = vector.load %arg7[%c0_65, %c0_66] : memref<1x512xf32, #tpu.memory_space<vmem>>, vector<1x512xf32>
    %59 = vector.broadcast %58 : vector<1x512xf32> to vector<32x512xf32>
    %60 = arith.addf %57, %59 : vector<32x512xf32>
    %cst_67 = arith.constant 0.000000e+00 : f32
    %61 = vector.broadcast %cst_67 : f32 to vector<32x512xf32>
    %62 = arith.maximumf %60, %61 : vector<32x512xf32>
    %c2_68 = arith.constant 2 : index
    %c0_69 = arith.constant 0 : index
    %c0_70 = arith.constant 0 : index
    %63 = vector.load %arg5[%c2_68, %c0_69, %c0_70] : memref<6x512x256xf32, #tpu.memory_space<vmem>>, vector<1x512x256xf32>
    %64 = vector.shape_cast %63 : vector<1x512x256xf32> to vector<512x256xf32>
    %cst_71 = arith.constant dense<0.000000e+00> : vector<32x256xf32>
    %65 = tpu.matmul %62, %64, %cst_71 {dimension_numbers = #tpu.dot_dimension_numbers<[1], [0], [0], [1], [0, 0, 1, 1], [], []>} : vector<32x512xf32>, vector<512x256xf32>, vector<32x256xf32> -> vector<32x256xf32>
    %c3_72 = arith.constant 3 : index
    %c0_73 = arith.constant 0 : index
    %c0_74 = arith.constant 0 : index
    %66 = vector.load %arg5[%c3_72, %c0_73, %c0_74] : memref<6x512x256xf32, #tpu.memory_space<vmem>>, vector<1x512x256xf32>
    %67 = vector.shape_cast %66 : vector<1x512x256xf32> to vector<512x256xf32>
    %cst_75 = arith.constant dense<0.000000e+00> : vector<32x256xf32>
    %68 = tpu.matmul %62, %67, %cst_75 {dimension_numbers = #tpu.dot_dimension_numbers<[1], [0], [0], [1], [0, 0, 1, 1], [], []>} : vector<32x512xf32>, vector<512x256xf32>, vector<32x256xf32> -> vector<32x256xf32>
    %69 = arith.maximumf %65, %68 : vector<32x256xf32>
    %cst_76 = arith.constant 0.000000e+00 : f32
    %70 = vector.broadcast %cst_76 : f32 to vector<1x4x256xf32>
    %c0_77 = arith.constant 0 : index
    %c0_78 = arith.constant 0 : index
    %c0_79 = arith.constant 0 : index
    %71 = vector.load %arg17[%c0_77, %c0_78, %c0_79] : memref<1x48x256xf32, #tpu.memory_space<vmem>>, vector<1x4x256xf32>
    tpu.vector_store %arg17[%c0_77, %c0_78, %c0_79], %70 {strides = array<i32>} : memref<1x48x256xf32, #tpu.memory_space<vmem>>, vector<1x4x256xf32>,
    %72 = vector.shape_cast %69 : vector<32x256xf32> to vector<1x32x256xf32>
    %c0_80 = arith.constant 0 : index
    %c4_81 = arith.constant 4 : index
    %c0_82 = arith.constant 0 : index
    %73 = vector.load %arg17[%c0_80, %c4_81, %c0_82] : memref<1x48x256xf32, #tpu.memory_space<vmem>>, vector<1x32x256xf32>
    tpu.vector_store %arg17[%c0_80, %c4_81, %c0_82], %72 {strides = array<i32>} : memref<1x48x256xf32, #tpu.memory_space<vmem>>, vector<1x32x256xf32>,
    %cst_83 = arith.constant 0.000000e+00 : f32
    %74 = vector.broadcast %cst_83 : f32 to vector<1x12x256xf32>
    %c0_84 = arith.constant 0 : index
    %c36 = arith.constant 36 : index
    %c0_85 = arith.constant 0 : index
    %75 = vector.load %arg17[%c0_84, %c36, %c0_85] : memref<1x48x256xf32, #tpu.memory_space<vmem>>, vector<1x12x256xf32>
    tpu.vector_store %arg17[%c0_84, %c36, %c0_85], %74 {strides = array<i32>} : memref<1x48x256xf32, #tpu.memory_space<vmem>>, vector<1x12x256xf32>,
    %c0_86 = arith.constant 0 : index
    %c0_87 = arith.constant 0 : index
    %c0_88 = arith.constant 0 : index
    %76 = vector.load %arg17[%c0_86, %c0_87, %c0_88] : memref<1x48x256xf32, #tpu.memory_space<vmem>>, vector<1x32x256xf32>
    %c0_89 = arith.constant 0 : index
    %c2_90 = arith.constant 2 : index
    %c0_91 = arith.constant 0 : index
    %77 = vector.load %arg17[%c0_89, %c2_90, %c0_91] : memref<1x48x256xf32, #tpu.memory_space<vmem>>, vector<1x32x256xf32>
    %78 = arith.maximumf %76, %77 : vector<1x32x256xf32>
    %79 = vector.shape_cast %78 : vector<1x32x256xf32> to vector<32x256xf32>
    %c0_92 = arith.constant 0 : index
    %c0_93 = arith.constant 0 : index
    %c0_94 = arith.constant 0 : index
    %80 = vector.load %arg4[%c0_92, %c0_93, %c0_94] : memref<3x256x512xf32, #tpu.memory_space<vmem>>, vector<1x256x512xf32>
    %81 = vector.shape_cast %80 : vector<1x256x512xf32> to vector<256x512xf32>
    %cst_95 = arith.constant dense<0.000000e+00> : vector<32x512xf32>
    %82 = tpu.matmul %79, %81, %cst_95 {dimension_numbers = #tpu.dot_dimension_numbers<[1], [0], [0], [1], [0, 0, 1, 1], [], []>} : vector<32x256xf32>, vector<256x512xf32>, vector<32x512xf32> -> vector<32x512xf32>
    %c0_96 = arith.constant 0 : index
    %c4_97 = arith.constant 4 : index
    %c0_98 = arith.constant 0 : index
    %83 = vector.load %arg17[%c0_96, %c4_97, %c0_98] : memref<1x48x256xf32, #tpu.memory_space<vmem>>, vector<1x32x256xf32>
    %c0_99 = arith.constant 0 : index
    %c6 = arith.constant 6 : index
    %c0_100 = arith.constant 0 : index
    %84 = vector.load %arg17[%c0_99, %c6, %c0_100] : memref<1x48x256xf32, #tpu.memory_space<vmem>>, vector<1x32x256xf32>
    %85 = arith.maximumf %83, %84 : vector<1x32x256xf32>
    %86 = vector.shape_cast %85 : vector<1x32x256xf32> to vector<32x256xf32>
    %c1_101 = arith.constant 1 : index
    %c0_102 = arith.constant 0 : index
    %c0_103 = arith.constant 0 : index
    %87 = vector.load %arg4[%c1_101, %c0_102, %c0_103] : memref<3x256x512xf32, #tpu.memory_space<vmem>>, vector<1x256x512xf32>
    %88 = vector.shape_cast %87 : vector<1x256x512xf32> to vector<256x512xf32>
    %cst_104 = arith.constant dense<0.000000e+00> : vector<32x512xf32>
    %89 = tpu.matmul %86, %88, %cst_104 {dimension_numbers = #tpu.dot_dimension_numbers<[1], [0], [0], [1], [0, 0, 1, 1], [], []>} : vector<32x256xf32>, vector<256x512xf32>, vector<32x512xf32> -> vector<32x512xf32>
    %90 = arith.addf %82, %89 : vector<32x512xf32>
    %c0_105 = arith.constant 0 : index
    %c8 = arith.constant 8 : index
    %c0_106 = arith.constant 0 : index
    %91 = vector.load %arg17[%c0_105, %c8, %c0_106] : memref<1x48x256xf32, #tpu.memory_space<vmem>>, vector<1x32x256xf32>
    %c0_107 = arith.constant 0 : index
    %c10 = arith.constant 10 : index
    %c0_108 = arith.constant 0 : index
    %92 = vector.load %arg17[%c0_107, %c10, %c0_108] : memref<1x48x256xf32, #tpu.memory_space<vmem>>, vector<1x32x256xf32>
    %93 = arith.maximumf %91, %92 : vector<1x32x256xf32>
    %94 = vector.shape_cast %93 : vector<1x32x256xf32> to vector<32x256xf32>
    %c2_109 = arith.constant 2 : index
    %c0_110 = arith.constant 0 : index
    %c0_111 = arith.constant 0 : index
    %95 = vector.load %arg4[%c2_109, %c0_110, %c0_111] : memref<3x256x512xf32, #tpu.memory_space<vmem>>, vector<1x256x512xf32>
    %96 = vector.shape_cast %95 : vector<1x256x512xf32> to vector<256x512xf32>
    %cst_112 = arith.constant dense<0.000000e+00> : vector<32x512xf32>
    %97 = tpu.matmul %94, %96, %cst_112 {dimension_numbers = #tpu.dot_dimension_numbers<[1], [0], [0], [1], [0, 0, 1, 1], [], []>} : vector<32x256xf32>, vector<256x512xf32>, vector<32x512xf32> -> vector<32x512xf32>
    %98 = arith.addf %90, %97 : vector<32x512xf32>
    %c0_113 = arith.constant 0 : index
    %c0_114 = arith.constant 0 : index
    %99 = vector.load %arg8[%c0_113, %c0_114] : memref<1x512xf32, #tpu.memory_space<vmem>>, vector<1x512xf32>
    %100 = vector.broadcast %99 : vector<1x512xf32> to vector<32x512xf32>
    %101 = arith.addf %98, %100 : vector<32x512xf32>
    %cst_115 = arith.constant 0.000000e+00 : f32
    %102 = vector.broadcast %cst_115 : f32 to vector<32x512xf32>
    %103 = arith.maximumf %101, %102 : vector<32x512xf32>
    %c4_116 = arith.constant 4 : index
    %c0_117 = arith.constant 0 : index
    %c0_118 = arith.constant 0 : index
    %104 = vector.load %arg5[%c4_116, %c0_117, %c0_118] : memref<6x512x256xf32, #tpu.memory_space<vmem>>, vector<1x512x256xf32>
    %105 = vector.shape_cast %104 : vector<1x512x256xf32> to vector<512x256xf32>
    %cst_119 = arith.constant dense<0.000000e+00> : vector<32x256xf32>
    %106 = tpu.matmul %103, %105, %cst_119 {dimension_numbers = #tpu.dot_dimension_numbers<[1], [0], [0], [1], [0, 0, 1, 1], [], []>} : vector<32x512xf32>, vector<512x256xf32>, vector<32x256xf32> -> vector<32x256xf32>
    %c5_120 = arith.constant 5 : index
    %c0_121 = arith.constant 0 : index
    %c0_122 = arith.constant 0 : index
    %107 = vector.load %arg5[%c5_120, %c0_121, %c0_122] : memref<6x512x256xf32, #tpu.memory_space<vmem>>, vector<1x512x256xf32>
    %108 = vector.shape_cast %107 : vector<1x512x256xf32> to vector<512x256xf32>
    %cst_123 = arith.constant dense<0.000000e+00> : vector<32x256xf32>
    %109 = tpu.matmul %103, %108, %cst_123 {dimension_numbers = #tpu.dot_dimension_numbers<[1], [0], [0], [1], [0, 0, 1, 1], [], []>} : vector<32x512xf32>, vector<512x256xf32>, vector<32x256xf32> -> vector<32x256xf32>
    %110 = arith.maximumf %106, %109 : vector<32x256xf32>
    %111 = vector.shape_cast %110 : vector<32x256xf32> to vector<1x32x256xf32>
    %112 = vector.extract_strided_slice %111 {offsets = [0, 0, 0], sizes = [1, 1, 256], strides = [1, 1, 1]} : vector<1x32x256xf32> to vector<1x1x256xf32>
    %113 = vector.shape_cast %112 : vector<1x1x256xf32> to vector<1x256xf32>
    %114 = vector.extract_strided_slice %111 {offsets = [0, 4, 0], sizes = [1, 1, 256], strides = [1, 1, 1]} : vector<1x32x256xf32> to vector<1x1x256xf32>
    %115 = vector.shape_cast %114 : vector<1x1x256xf32> to vector<1x256xf32>
    %116 = arith.maximumf %113, %115 : vector<1x256xf32>
    %c0_124 = arith.constant 0 : index
    %c0_125 = arith.constant 0 : index
    %117 = vector.load %arg9[%c0_124, %c0_125] : memref<256x128xf32, #tpu.memory_space<vmem>>, vector<256x128xf32>
    %cst_126 = arith.constant dense<0.000000e+00> : vector<1x128xf32>
    %118 = tpu.matmul %116, %117, %cst_126 {dimension_numbers = #tpu.dot_dimension_numbers<[1], [0], [0], [1], [0, 0, 1, 1], [], []>} : vector<1x256xf32>, vector<256x128xf32>, vector<1x128xf32> -> vector<1x128xf32>
    %c0_127 = arith.constant 0 : index
    %c0_128 = arith.constant 0 : index
    %119 = vector.load %arg10[%c0_127, %c0_128] : memref<1x128xf32, #tpu.memory_space<vmem>>, vector<1x128xf32>
    %120 = arith.addf %118, %119 : vector<1x128xf32>
    %cst_129 = arith.constant 0.000000e+00 : f32
    %121 = vector.broadcast %cst_129 : f32 to vector<1x128xf32>
    %122 = arith.maximumf %120, %121 : vector<1x128xf32>
    %c0_130 = arith.constant 0 : index
    %c0_131 = arith.constant 0 : index
    %c0_132 = arith.constant 0 : index
    %123 = vector.load %arg11[%c0_130, %c0_131, %c0_132] : memref<4x128x128xf32, #tpu.memory_space<vmem>>, vector<1x128x128xf32>
    %124 = vector.shape_cast %123 : vector<1x128x128xf32> to vector<128x128xf32>
    %cst_133 = arith.constant dense<0.000000e+00> : vector<1x128xf32>
    %125 = tpu.matmul %122, %124, %cst_133 {dimension_numbers = #tpu.dot_dimension_numbers<[1], [0], [0], [1], [0, 0, 1, 1], [], []>} : vector<1x128xf32>, vector<128x128xf32>, vector<1x128xf32> -> vector<1x128xf32>
    %126 = vector.extract_strided_slice %111 {offsets = [0, 8, 0], sizes = [1, 1, 256], strides = [1, 1, 1]} : vector<1x32x256xf32> to vector<1x1x256xf32>
    %127 = vector.shape_cast %126 : vector<1x1x256xf32> to vector<1x256xf32>
    %128 = vector.extract_strided_slice %111 {offsets = [0, 12, 0], sizes = [1, 1, 256], strides = [1, 1, 1]} : vector<1x32x256xf32> to vector<1x1x256xf32>
    %129 = vector.shape_cast %128 : vector<1x1x256xf32> to vector<1x256xf32>
    %130 = arith.maximumf %127, %129 : vector<1x256xf32>
    %c0_134 = arith.constant 0 : index
    %c0_135 = arith.constant 0 : index
    %131 = vector.load %arg9[%c0_134, %c0_135] : memref<256x128xf32, #tpu.memory_space<vmem>>, vector<256x128xf32>
    %cst_136 = arith.constant dense<0.000000e+00> : vector<1x128xf32>
    %132 = tpu.matmul %130, %131, %cst_136 {dimension_numbers = #tpu.dot_dimension_numbers<[1], [0], [0], [1], [0, 0, 1, 1], [], []>} : vector<1x256xf32>, vector<256x128xf32>, vector<1x128xf32> -> vector<1x128xf32>
    %c0_137 = arith.constant 0 : index
    %c0_138 = arith.constant 0 : index
    %133 = vector.load %arg10[%c0_137, %c0_138] : memref<1x128xf32, #tpu.memory_space<vmem>>, vector<1x128xf32>
    %134 = arith.addf %132, %133 : vector<1x128xf32>
    %cst_139 = arith.constant 0.000000e+00 : f32
    %135 = vector.broadcast %cst_139 : f32 to vector<1x128xf32>
    %136 = arith.maximumf %134, %135 : vector<1x128xf32>
    %c1_140 = arith.constant 1 : index
    %c0_141 = arith.constant 0 : index
    %c0_142 = arith.constant 0 : index
    %137 = vector.load %arg11[%c1_140, %c0_141, %c0_142] : memref<4x128x128xf32, #tpu.memory_space<vmem>>, vector<1x128x128xf32>
    %138 = vector.shape_cast %137 : vector<1x128x128xf32> to vector<128x128xf32>
    %cst_143 = arith.constant dense<0.000000e+00> : vector<1x128xf32>
    %139 = tpu.matmul %136, %138, %cst_143 {dimension_numbers = #tpu.dot_dimension_numbers<[1], [0], [0], [1], [0, 0, 1, 1], [], []>} : vector<1x128xf32>, vector<128x128xf32>, vector<1x128xf32> -> vector<1x128xf32>
    %140 = arith.addf %125, %139 : vector<1x128xf32>
    %141 = vector.extract_strided_slice %111 {offsets = [0, 16, 0], sizes = [1, 1, 256], strides = [1, 1, 1]} : vector<1x32x256xf32> to vector<1x1x256xf32>
    %142 = vector.shape_cast %141 : vector<1x1x256xf32> to vector<1x256xf32>
    %143 = vector.extract_strided_slice %111 {offsets = [0, 20, 0], sizes = [1, 1, 256], strides = [1, 1, 1]} : vector<1x32x256xf32> to vector<1x1x256xf32>
    %144 = vector.shape_cast %143 : vector<1x1x256xf32> to vector<1x256xf32>
    %145 = arith.maximumf %142, %144 : vector<1x256xf32>
    %c0_144 = arith.constant 0 : index
    %c0_145 = arith.constant 0 : index
    %146 = vector.load %arg9[%c0_144, %c0_145] : memref<256x128xf32, #tpu.memory_space<vmem>>, vector<256x128xf32>
    %cst_146 = arith.constant dense<0.000000e+00> : vector<1x128xf32>
    %147 = tpu.matmul %145, %146, %cst_146 {dimension_numbers = #tpu.dot_dimension_numbers<[1], [0], [0], [1], [0, 0, 1, 1], [], []>} : vector<1x256xf32>, vector<256x128xf32>, vector<1x128xf32> -> vector<1x128xf32>
    %c0_147 = arith.constant 0 : index
    %c0_148 = arith.constant 0 : index
    %148 = vector.load %arg10[%c0_147, %c0_148] : memref<1x128xf32, #tpu.memory_space<vmem>>, vector<1x128xf32>
    %149 = arith.addf %147, %148 : vector<1x128xf32>
    %cst_149 = arith.constant 0.000000e+00 : f32
    %150 = vector.broadcast %cst_149 : f32 to vector<1x128xf32>
    %151 = arith.maximumf %149, %150 : vector<1x128xf32>
    %c2_150 = arith.constant 2 : index
    %c0_151 = arith.constant 0 : index
    %c0_152 = arith.constant 0 : index
    %152 = vector.load %arg11[%c2_150, %c0_151, %c0_152] : memref<4x128x128xf32, #tpu.memory_space<vmem>>, vector<1x128x128xf32>
    %153 = vector.shape_cast %152 : vector<1x128x128xf32> to vector<128x128xf32>
    %cst_153 = arith.constant dense<0.000000e+00> : vector<1x128xf32>
    %154 = tpu.matmul %151, %153, %cst_153 {dimension_numbers = #tpu.dot_dimension_numbers<[1], [0], [0], [1], [0, 0, 1, 1], [], []>} : vector<1x128xf32>, vector<128x128xf32>, vector<1x128xf32> -> vector<1x128xf32>
    %155 = arith.addf %140, %154 : vector<1x128xf32>
    %156 = vector.extract_strided_slice %111 {offsets = [0, 24, 0], sizes = [1, 1, 256], strides = [1, 1, 1]} : vector<1x32x256xf32> to vector<1x1x256xf32>
    %157 = vector.shape_cast %156 : vector<1x1x256xf32> to vector<1x256xf32>
    %158 = vector.extract_strided_slice %111 {offsets = [0, 28, 0], sizes = [1, 1, 256], strides = [1, 1, 1]} : vector<1x32x256xf32> to vector<1x1x256xf32>
    %159 = vector.shape_cast %158 : vector<1x1x256xf32> to vector<1x256xf32>
    %160 = arith.maximumf %157, %159 : vector<1x256xf32>
    %c0_154 = arith.constant 0 : index
    %c0_155 = arith.constant 0 : index
    %161 = vector.load %arg9[%c0_154, %c0_155] : memref<256x128xf32, #tpu.memory_space<vmem>>, vector<256x128xf32>
    %cst_156 = arith.constant dense<0.000000e+00> : vector<1x128xf32>
    %162 = tpu.matmul %160, %161, %cst_156 {dimension_numbers = #tpu.dot_dimension_numbers<[1], [0], [0], [1], [0, 0, 1, 1], [], []>} : vector<1x256xf32>, vector<256x128xf32>, vector<1x128xf32> -> vector<1x128xf32>
    %c0_157 = arith.constant 0 : index
    %c0_158 = arith.constant 0 : index
    %163 = vector.load %arg10[%c0_157, %c0_158] : memref<1x128xf32, #tpu.memory_space<vmem>>, vector<1x128xf32>
    %164 = arith.addf %162, %163 : vector<1x128xf32>
    %cst_159 = arith.constant 0.000000e+00 : f32
    %165 = vector.broadcast %cst_159 : f32 to vector<1x128xf32>
    %166 = arith.maximumf %164, %165 : vector<1x128xf32>
    %c3_160 = arith.constant 3 : index
    %c0_161 = arith.constant 0 : index
    %c0_162 = arith.constant 0 : index
    %167 = vector.load %arg11[%c3_160, %c0_161, %c0_162] : memref<4x128x128xf32, #tpu.memory_space<vmem>>, vector<1x128x128xf32>
    %168 = vector.shape_cast %167 : vector<1x128x128xf32> to vector<128x128xf32>
    %cst_163 = arith.constant dense<0.000000e+00> : vector<1x128xf32>
    %169 = tpu.matmul %166, %168, %cst_163 {dimension_numbers = #tpu.dot_dimension_numbers<[1], [0], [0], [1], [0, 0, 1, 1], [], []>} : vector<1x128xf32>, vector<128x128xf32>, vector<1x128xf32> -> vector<1x128xf32>
    %170 = arith.addf %155, %169 : vector<1x128xf32>
    %c0_164 = arith.constant 0 : index
    %c0_165 = arith.constant 0 : index
    %171 = vector.load %arg12[%c0_164, %c0_165] : memref<1x128xf32, #tpu.memory_space<vmem>>, vector<1x128xf32>
    %172 = arith.addf %170, %171 : vector<1x128xf32>
    %cst_166 = arith.constant 0.000000e+00 : f32
    %173 = vector.broadcast %cst_166 : f32 to vector<1x128xf32>
    %174 = arith.maximumf %172, %173 : vector<1x128xf32>
    %c0_167 = arith.constant 0 : index
    %c0_168 = arith.constant 0 : index
    %175 = vector.load %arg13[%c0_167, %c0_168] : memref<128x10xf32, #tpu.memory_space<vmem>>, vector<128x10xf32>
    %cst_169 = arith.constant dense<0.000000e+00> : vector<1x10xf32>
    %176 = tpu.matmul %174, %175, %cst_169 {dimension_numbers = #tpu.dot_dimension_numbers<[1], [0], [0], [1], [0, 0, 1, 1], [], []>} : vector<1x128xf32>, vector<128x10xf32>, vector<1x10xf32> -> vector<1x10xf32>
    %c0_170 = arith.constant 0 : index
    %c0_171 = arith.constant 0 : index
    %177 = vector.load %arg14[%c0_170, %c0_171] : memref<1x10xf32, #tpu.memory_space<vmem>>, vector<1x10xf32>
    %178 = arith.addf %176, %177 : vector<1x10xf32>
    %c0_172 = arith.constant 0 : index
    %c0_173 = arith.constant 0 : index
    %c0_174 = arith.constant 0 : index
    %179 = vector.load %arg15[%c0_172, %c0_173, %c0_174] : memref<1x1x10xf32, #tpu.memory_space<vmem>>, vector<1x1x10xf32>
    %180 = vector.shape_cast %179 : vector<1x1x10xf32> to vector<1x10xf32>
    %181 = vector.shape_cast %178 : vector<1x10xf32> to vector<1x1x10xf32>
    tpu.vector_store %arg15[%c0_172, %c0_173, %c0_174], %181 {strides = array<i32>} : memref<1x1x10xf32, #tpu.memory_space<vmem>>, vector<1x1x10xf32>,
    return
  }
  func.func @transform_0(%arg0: i32) -> (i32, i32, i32) {
    %c0_i32 = arith.constant 0 : i32
    %c0_i32_0 = arith.constant 0 : i32
    %c0_i32_1 = arith.constant 0 : i32
    return %arg0, %c0_i32, %c0_i32_0 : i32, i32, i32
  }
  func.func @transform_1(%arg0: i32) -> (i32, i32, i32) {
    %c0_i32 = arith.constant 0 : i32
    %c0_i32_0 = arith.constant 0 : i32
    %c0_i32_1 = arith.constant 0 : i32
    %c0_i32_2 = arith.constant 0 : i32
    return %c0_i32, %c0_i32_0, %c0_i32_1 : i32, i32, i32
  }
  func.func @transform_2(%arg0: i32) -> (i32, i32, i32) {
    %c0_i32 = arith.constant 0 : i32
    %c0_i32_0 = arith.constant 0 : i32
    %c0_i32_1 = arith.constant 0 : i32
    %c0_i32_2 = arith.constant 0 : i32
    return %c0_i32, %c0_i32_0, %c0_i32_1 : i32, i32, i32
  }
  func.func @transform_3(%arg0: i32) -> (i32, i32, i32) {
    %c0_i32 = arith.constant 0 : i32
    %c0_i32_0 = arith.constant 0 : i32
    %c0_i32_1 = arith.constant 0 : i32
    %c0_i32_2 = arith.constant 0 : i32
    return %c0_i32, %c0_i32_0, %c0_i32_1 : i32, i32, i32
  }
  func.func @transform_4(%arg0: i32) -> (i32, i32, i32) {
    %c0_i32 = arith.constant 0 : i32
    %c0_i32_0 = arith.constant 0 : i32
    %c0_i32_1 = arith.constant 0 : i32
    %c0_i32_2 = arith.constant 0 : i32
    return %c0_i32, %c0_i32_0, %c0_i32_1 : i32, i32, i32
  }
  func.func @transform_5(%arg0: i32) -> (i32, i32) {
    %c0_i32 = arith.constant 0 : i32
    %c0_i32_0 = arith.constant 0 : i32
    %c0_i32_1 = arith.constant 0 : i32
    return %c0_i32, %c0_i32_0 : i32, i32
  }
  func.func @transform_6(%arg0: i32) -> (i32, i32) {
    %c0_i32 = arith.constant 0 : i32
    %c0_i32_0 = arith.constant 0 : i32
    %c0_i32_1 = arith.constant 0 : i32
    return %c0_i32, %c0_i32_0 : i32, i32
  }
  func.func @transform_7(%arg0: i32) -> (i32, i32) {
    %c0_i32 = arith.constant 0 : i32
    %c0_i32_0 = arith.constant 0 : i32
    %c0_i32_1 = arith.constant 0 : i32
    return %c0_i32, %c0_i32_0 : i32, i32
  }
  func.func @transform_8(%arg0: i32) -> (i32, i32) {
    %c0_i32 = arith.constant 0 : i32
    %c0_i32_0 = arith.constant 0 : i32
    %c0_i32_1 = arith.constant 0 : i32
    return %c0_i32, %c0_i32_0 : i32, i32
  }
  func.func @transform_9(%arg0: i32) -> (i32, i32) {
    %c0_i32 = arith.constant 0 : i32
    %c0_i32_0 = arith.constant 0 : i32
    %c0_i32_1 = arith.constant 0 : i32
    return %c0_i32, %c0_i32_0 : i32, i32
  }
  func.func @transform_10(%arg0: i32) -> (i32, i32, i32) {
    %c0_i32 = arith.constant 0 : i32
    %c0_i32_0 = arith.constant 0 : i32
    %c0_i32_1 = arith.constant 0 : i32
    %c0_i32_2 = arith.constant 0 : i32
    return %c0_i32, %c0_i32_0, %c0_i32_1 : i32, i32, i32
  }
  func.func @transform_11(%arg0: i32) -> (i32, i32) {
    %c0_i32 = arith.constant 0 : i32
    %c0_i32_0 = arith.constant 0 : i32
    %c0_i32_1 = arith.constant 0 : i32
    return %c0_i32, %c0_i32_0 : i32, i32
  }
  func.func @transform_12(%arg0: i32) -> (i32, i32) {
    %c0_i32 = arith.constant 0 : i32
    %c0_i32_0 = arith.constant 0 : i32
    %c0_i32_1 = arith.constant 0 : i32
    return %c0_i32, %c0_i32_0 : i32, i32
  }
  func.func @transform_13(%arg0: i32) -> (i32, i32) {
    %c0_i32 = arith.constant 0 : i32
    %c0_i32_0 = arith.constant 0 : i32
    %c0_i32_1 = arith.constant 0 : i32
    return %c0_i32, %c0_i32_0 : i32, i32
  }
  func.func @transform_14(%arg0: i32) -> (i32, i32, i32) {
    %c0_i32 = arith.constant 0 : i32
    %c0_i32_0 = arith.constant 0 : i32
    %c0_i32_1 = arith.constant 0 : i32
    return %arg0, %c0_i32, %c0_i32_0 : i32, i32, i32
  }
}

</mosaic_0001>

<bundles_post_ra>
// kernel: my_model_forward.1
= control target key start
LH: loop header
LB: loop body
LE: loop exit
PB: predicated region body
PF: predicated region fallthrough
CT: control target
= control target key end

     0   :  { %19 = vsyncpa [#allocation5], 0  ;;  %s15087_s0 = inlined_call_operand.vmem [shape: f32[2,34,96], index: 0, kind: input, shape index: {}]   ;;  %s15088_s1 = inlined_call_operand.vmem [shape: f32[3,96,512], index: 1, kind: input, shape index: {}]   ;;  %s15089_s2 = inlined_call_operand.vmem [shape: f32[3,256,512], index: 2, kind: input, shape index: {}]   ;;  %s15090_s3 = inlined_call_operand.vmem [shape: f32[3,256,512], index: 3, kind: input, shape index: {}]   ;;  %s15091_s4 = inlined_call_operand.vmem [shape: f32[6,512,256], index: 4, kind: input, shape index: {}]   ;;  %s15092_s5 = inlined_call_operand.vmem [shape: f32[1,512], index: 5, kind: input, shape index: {}]   ;;  %s15093_s6 = inlined_call_operand.vmem [shape: f32[1,512], index: 6, kind: input, shape index: {}]   ;;  %s15094_s7 = inlined_call_operand.vmem [shape: f32[1,512], index: 7, kind: input, shape index: {}]   ;;  %s15095_s8 = inlined_call_operand.vmem [shape: f32[256,128], index: 8, kind: input, shape index: {}]   ;;  %s15096_s9 = inlined_call_operand.vmem [shape: f32[1,128], index: 9, kind: input, shape index: {}]   ;;  %s15097_s10 = inlined_call_operand.vmem [shape: f32[4,128,128], index: 10, kind: input, shape index: {}]   ;;  %s15098_s11 = inlined_call_operand.vmem [shape: f32[1,128], index: 11, kind: input, shape index: {}]   ;;  %s15099_s12 = inlined_call_operand.vmem [shape: f32[128,10], index: 12, kind: input, shape index: {}]   ;;  %s15100_s13 = inlined_call_operand.vmem [shape: f32[1,10], index: 13, kind: input, shape index: {}]   ;;  %s15101_s14 = inlined_call_operand.hbm [shape: f32[2,1,10], index: 14, kind: output, shape index: {}]  }
   0x1   :  { %21 = vsyncpa [#allocation5 + $0x1], 0  ;;  %s8359_s29 = smov 0   ;;  %s8361_s30 = smov 0  }
   0x2   :  { %s8363_s15 = smov 0   ;;  %s8365_s16 = smov 0  }
   0x3 LB: > { %15113 = sst [smem:[#allocation7_spill]] %s8267_s29  ;;  %s8380_s17 = sadd.s32 4294967295, %s8279_s16   ;;  %s8279_s16 = sphi %s8365_s16, %s15128_s16   ;;  %s8275_s15 = sphi %s8363_s15, %s15130_s15   ;;  %s8271_s30 = sphi %s8361_s30, %s15132_s30   ;;  %s8267_s29 = sphi %s8359_s29, %s15131_s29  }
   0x4   : > { %15114 = sst [smem:[#allocation8_spill]] %s8275_s15  ;;  %s6443_s18 = sadd.s32 4294967294, %s8279_s16  }
   0x5   : > { %s8384_s19 = sadd.s32 1, %s8279_s16   ;;  %s333_s20 = sadd.s32 1, %s8275_s15 }
   0x6   : > { %15115 = sst [smem:[#allocation9_spill]] %s8384_s19  ;;  %s330_s21 = ssub.s32 %s8279_s16, %s8384_s19 }
   0x7   : > { %p343_p0 = scmp.ne.s32.totalorder %s8275_s15, %s8271_s30  ;;  %p331_p1 = scmp.eq.s32.totalorder %s330_s21, 0 }
   0x8   : > { %p344_p2 = scmp.eq.s32.totalorder %s8380_s17, 1  ;;  %p349_p3 = scmp.ne.s32.totalorder %s8271_s30, %s8267_s29 }
   0x9   : > { %p350_p4 = scmp.eq.s32.totalorder %s6443_s18, 1  ;;  %p6446_p7 = scmp.ge.s32.totalorder %s8279_s16, 1 }
   0xa   : > { %s8395_s22 = scalar_select %p331_p1, %s8275_s15, %s333_s20  }
   0xb   : > { %p8397_p5 = por %p344_p2, %p343_p0  ;;  %p8401_p6 = por %p350_p4, %p349_p3 }
   0xc   : > { %15116 = sst [smem:[#allocation10_spill]] %s8395_s22  ;;  %p415_p8 = scmp.lt.s32.totalorder %s8279_s16, 3 }
   0xd   : > { %s15118_s24 = scalar_select %p8401_p6, 1, 0 }
   0xe   : > { %p416_p9 = pnand %p6446_p7, %p415_p8 }
   0xf   : > { %15119 = sst [smem:[#allocation11_spill]] %s15118_s24 }
  0x10   : > { %419 = sbr.rel (%p416_p9) target bundleno = 2748 (0xabc), region = 76 }
  0x15   : > { %v6493_v0 = vld [vmem:[%s15088_s1 + $0x2e8] sm:$0xff]  ;;  %v6492_v2 = vld [vmem:[%s15088_s1 + $0x2e0] sm:$0xff]  ;;  %v8281_v6 = vmov 0.0   ;;  %p460_p10 = scmp.lt.s32.totalorder %s8380_s17, 1  ;;  %vm570_vm0 = vcmask 785408   ;;  %v6495_v50 = vld [vmem:[%s15088_s1 + $0x2f8] sm:$0xff] }
  0x16   : > { %v514_v1 = vld [vmem:[%s15088_s1 + $0x168] sm:$0xff]  ;;  %591 = vmatprep.subr.mxu1 %v6493_v0  ;;  %v513_v3 = vld [vmem:[%s15088_s1 + $0x160] sm:$0xff]  ;;  %1885 = vst [vmem:[#allocation2 + $0x30] sm:$0x3] %v8281_v6  ;;  %1886 = vst [vmem:[#allocation2] sm:$0x3] %v8281_v6  ;;  %647 = vmatprep.mubr.f32.mxu1 %v8281_v6 }
  0x17   : > { %781 = vmatprep.subr.mxu0 %v514_v1  ;;  %v6489_v4 = vld [vmem:[%s15088_s1 + $0x2c8] sm:$0xff]  ;;  %1930 = vst [vmem:[#allocation2 + $0x40] sm:$0xfc] %v8281_v6  ;;  %1931 = vst [vmem:[#allocation2 + $0x38] sm:$0xfc] %v8281_v6  ;;  %592 = vmatpush1.msra.mxu1 %v6492_v2  ;;  %v6488_v7 = vld [vmem:[%s15088_s1 + $0x2c0] sm:$0xff] }
  0x18   : > { %v510_v5 = vld [vmem:[%s15088_s1 + $0x148] sm:$0xff]  ;;  %3745 = vst [vmem:[#allocation3 + $0x48] sm:$0xf] %v8281_v6  ;;  %3746 = vst [vmem:[#allocation3 + $0x50] sm:$0xf] %v8281_v6  ;;  %782 = vmatpush1.msra.mxu0 %v513_v3  ;;  %v509_v8 = vld [vmem:[%s15088_s1 + $0x140] sm:$0xff]  ;;  %593 = vmatprep.subr.mxu1 %v6489_v4 }
  0x19   : > { %3789 = vst [vmem:[#allocation3 + $0x28] sm:$0xf0] %v8281_v6  ;;  %3790 = vst [vmem:[#allocation3 + $0x10] sm:$0xf0] %v8281_v6  ;;  %v6485_v9 = vld [vmem:[%s15088_s1 + $0x2a8] sm:$0xff]  ;;  %783 = vmatprep.subr.mxu0 %v510_v5  ;;  %v6484_v11 = vld [vmem:[%s15088_s1 + $0x2a0] sm:$0xff]  ;;  %594 = vmatpush1.msra.mxu1 %v6488_v7 }
  0x1a   : > { %3791 = vst [vmem:[#allocation3 + $0x38] sm:$0xff] %v8281_v6  ;;  %3792 = vst [vmem:[#allocation3 + $0x20] sm:$0xff] %v8281_v6  ;;  %v506_v10 = vld [vmem:[%s15088_s1 + $0x128] sm:$0xff]  ;;  %v505_v12 = vld [vmem:[%s15088_s1 + $0x120] sm:$0xff]  ;;  %784 = vmatpush1.msra.mxu0 %v509_v8  ;;  %595 = vmatprep.subr.mxu1 %v6485_v9  ;;  %s8511_s25 = scalar_select %p460_p10, %s8380_s17, 1  ;;  %vm1895_vm1 = vcmask 1041408  }
  0x1b   : > { %v6481_v13 = vld [vmem:[%s15088_s1 + $0x288] sm:$0xff]  ;;  %785 = vmatprep.subr.mxu0 %v506_v10  ;;  %v6480_v15 = vld [vmem:[%s15088_s1 + $0x280] sm:$0xff]  ;;  %596 = vmatpush1.msra.mxu1 %v6484_v11  ;;  %v6494_v53 = vld [vmem:[%s15088_s1 + $0x2f0] sm:$0xff]  ;;  %vm1960_vm2 = vcmask 1046528   ;;  %vm2298_vm3 = vcmask 1045504   ;;  %vm2848_vm4 = vcmask 1043456  }
  0x1c   : > { %v502_v14 = vld [vmem:[%s15088_s1 + $0x108] sm:$0xff]  ;;  %v501_v16 = vld [vmem:[%s15088_s1 + $0x100] sm:$0xff]  ;;  %786 = vmatpush1.msra.mxu0 %v505_v12  ;;  %597 = vmatprep.subr.mxu1 %v6481_v13  ;;  %s8171_s18 = smul.u32 40, %s8511_s25  ;;  %v6491_v55 = vld [vmem:[%s15088_s1 + $0x2d8] sm:$0xff]  ;;  %vm8282_vm5 = vmmov 0   ;;  %s458_s22 = sand.u32 1, %s8271_s30  }
  0x1d   : > { %v6477_v17 = vld [vmem:[%s15088_s1 + $0x268] sm:$0xff]  ;;  %787 = vmatprep.subr.mxu0 %v502_v14  ;;  %v6476_v19 = vld [vmem:[%s15088_s1 + $0x260] sm:$0xff]  ;;  %598 = vmatpush1.msra.mxu1 %v6480_v15  ;;  %v6490_v57 = vld [vmem:[%s15088_s1 + $0x2d0] sm:$0xff]  ;;  %s7768_s25 = sshll.u32 %s8380_s17, 4  ;;  %s459_s28 = scalar_lea.vmem [#allocation4], %s458_s22  ;;  %vm6373_vm6 = vcmask 73728  }
  0x1e   : > { %v498_v18 = vld [vmem:[%s15088_s1 + $0xe8] sm:$0xff]  ;;  %v497_v20 = vld [vmem:[%s15088_s1 + $0xe0] sm:$0xff]  ;;  %788 = vmatpush1.msra.mxu0 %v501_v16  ;;  %599 = vmatprep.subr.mxu1 %v6477_v17  ;;  %s8565_s29 = scalar_lea.vmem %s15087_s0, %s8171_s18  ;;  %v6487_v59 = vld [vmem:[%s15088_s1 + $0x2b8] sm:$0xff]  ;;  %s6388_s20 = sshll.u32 %s459_s28, 4  ;;  %s6389_s20 = int_to_ptr.vmem [resolvable:$true] %s6388_s20 }
  0x1f   : > { %v6473_v21 = vld [vmem:[%s15088_s1 + $0x248] sm:$0xff]  ;;  %789 = vmatprep.subr.mxu0 %v498_v18  ;;  %v6472_v23 = vld [vmem:[%s15088_s1 + $0x240] sm:$0xff]  ;;  %600 = vmatpush1.msra.mxu1 %v6476_v19  ;;  %v6486_v61 = vld [vmem:[%s15088_s1 + $0x2b0] sm:$0xff]  ;;  %s15052_s21 = scalar_lea.hbm %s15101_s14, %s7768_s25  ;;  %s6376_s26 = scalar_lea.sflag [#allocation5], %s458_s22 }
  0x20   : > { %v494_v22 = vld [vmem:[%s15088_s1 + $0xc8] sm:$0xff]  ;;  %v493_v24 = vld [vmem:[%s15088_s1 + $0xc0] sm:$0xff]  ;;  %790 = vmatpush1.msra.mxu0 %v497_v20  ;;  %601 = vmatprep.subr.mxu1 %v6473_v21  ;;  %v6483_v63 = vld [vmem:[%s15088_s1 + $0x298] sm:$0xff]  ;;  %s8219_s15 = scalar_lea.vmem %s6389_s20, 16  ;;  %s8283_s17 = smov [#allocation4]  }
  0x21   : > { %v6469_v25 = vld [vmem:[%s15088_s1 + $0x228] sm:$0xff]  ;;  %791 = vmatprep.subr.mxu0 %v494_v22  ;;  %v6468_v27 = vld [vmem:[%s15088_s1 + $0x220] sm:$0xff]  ;;  %602 = vmatpush1.msra.mxu1 %v6472_v23  ;;  %v6482_v1 = vld [vmem:[%s15088_s1 + $0x290] sm:$0xff]  ;;  %p8220_p11 = scmp.ne.s32.totalorder %s6389_s20, %s8219_s15  ;;  %s8223_s19 = sshll.u32 %s8283_s17, 4  ;;  %s8224_s19 = int_to_ptr.vmem [resolvable:$false] %s8223_s19 }
  0x22   : > { %v490_v26 = vld [vmem:[%s15088_s1 + $0xa8] sm:$0xff]  ;;  %v489_v28 = vld [vmem:[%s15088_s1 + $0xa0] sm:$0xff]  ;;  %792 = vmatpush1.msra.mxu0 %v493_v24  ;;  %603 = vmatprep.subr.mxu1 %v6469_v25  ;;  %v6479_v3 = vld [vmem:[%s15088_s1 + $0x278] sm:$0xff]  ;;  %s8225_s27 = scalar_lea.vmem %s8224_s19, 32  ;;  %p8226_p0 = scmp.lt.s32.totalorder %s6389_s20, %s8224_s19 }
  0x23   : > { %v6465_v29 = vld [vmem:[%s15088_s1 + $0x208] sm:$0xff]  ;;  %793 = vmatprep.subr.mxu0 %v490_v26  ;;  %v6464_v31 = vld [vmem:[%s15088_s1 + $0x200] sm:$0xff]  ;;  %604 = vmatpush1.msra.mxu1 %v6468_v27  ;;  %v6478_v5 = vld [vmem:[%s15088_s1 + $0x270] sm:$0xff]  ;;  %p8221_p12 = pnand %p8220_p11, %p8397_p5  ;;  %p8227_p1 = scmp.lt.s32.totalorder %s8225_s27, %s8219_s15 }
  0x24   : > { %v486_v30 = vld [vmem:[%s15088_s1 + $0x88] sm:$0xff]  ;;  %v485_v32 = vld [vmem:[%s15088_s1 + $0x80] sm:$0xff]  ;;  %794 = vmatpush1.msra.mxu0 %v489_v28  ;;  %605 = vmatprep.subr.mxu1 %v6465_v29  ;;  %v6475_v8 = vld [vmem:[%s15088_s1 + $0x258] sm:$0xff] }
  0x25   : > { %v6461_v33 = vld [vmem:[%s15088_s1 + $0x1e8] sm:$0xff]  ;;  %795 = vmatprep.subr.mxu0 %v486_v30  ;;  %v6460_v35 = vld [vmem:[%s15088_s1 + $0x1e0] sm:$0xff]  ;;  %606 = vmatpush1.msra.mxu1 %v6464_v31  ;;  %v6474_v12 = vld [vmem:[%s15088_s1 + $0x250] sm:$0xff]  ;;  %p8222_p13 = pneg %p8221_p12  ;;  %p8228_p2 = por %p8227_p1, %p8226_p0 }
  0x26   : > { %v482_v34 = vld [vmem:[%s15088_s1 + $0x68] sm:$0xff]  ;;  %v481_v36 = vld [vmem:[%s15088_s1 + $0x60] sm:$0xff]  ;;  %796 = vmatpush1.msra.mxu0 %v485_v32  ;;  %607 = vmatprep.subr.mxu1 %v6461_v33  ;;  %v6471_v14 = vld [vmem:[%s15088_s1 + $0x238] sm:$0xff] }
  0x27   : > { %v6457_v37 = vld [vmem:[%s15088_s1 + $0x1c8] sm:$0xff]  ;;  %797 = vmatprep.subr.mxu0 %v482_v34  ;;  %v6456_v39 = vld [vmem:[%s15088_s1 + $0x1c0] sm:$0xff]  ;;  %608 = vmatpush1.msra.mxu1 %v6460_v35  ;;  %v6470_v16 = vld [vmem:[%s15088_s1 + $0x230] sm:$0xff]  ;;  %p8229_p3 = pnand %p8228_p2, %p8222_p13 }
  0x28   : > { %v478_v38 = vld [vmem:[%s15088_s1 + $0x48] sm:$0xff]  ;;  %v477_v40 = vld [vmem:[%s15088_s1 + $0x40] sm:$0xff]  ;;  %798 = vmatpush1.msra.mxu0 %v481_v36  ;;  %609 = vmatprep.subr.mxu1 %v6457_v37  ;;  %v6467_v18 = vld [vmem:[%s15088_s1 + $0x218] sm:$0xff] }
  0x29   : > { %v6453_v41 = vld [vmem:[%s15088_s1 + $0x1a8] sm:$0xff]  ;;  %799 = vmatprep.subr.mxu0 %v478_v38  ;;  %v6452_v43 = vld [vmem:[%s15088_s1 + $0x1a0] sm:$0xff]  ;;  %610 = vmatpush1.msra.mxu1 %v6456_v39  ;;  %v8688_v20 = vld [vmem:[%s8565_s29 + $0x11] sm:$0xff] }
  0x2a   : > { %v474_v42 = vld [vmem:[%s15088_s1 + $0x28] sm:$0xff]  ;;  %v473_v44 = vld [vmem:[%s15088_s1 + $0x20] sm:$0xff]  ;;  %800 = vmatpush1.msra.mxu0 %v477_v40  ;;  %611 = vmatprep.subr.mxu1 %v6453_v41  ;;  %v8691_v21 = vld [vmem:[%s8565_s29 + $0x10] sm:$0xff] }
  0x2b   : > { %v6449_v45 = vld [vmem:[%s15088_s1 + $0x188] sm:$0xff]  ;;  %801 = vmatprep.subr.mxu0 %v474_v42  ;;  %v6448_v47 = vld [vmem:[%s15088_s1 + $0x180] sm:$0xff]  ;;  %612 = vmatpush1.msra.mxu1 %v6452_v43  ;;  %v6466_v22 = vld [vmem:[%s15088_s1 + $0x210] sm:$0xff] }
  0x2c   : > { %v470_v46 = vld [vmem:[%s15088_s1 + $0x8] sm:$0xff]  ;;  %802 = vmatpush1.msra.mxu0 %v473_v44  ;;  %v469_v48 = vld [vmem:[%s15088_s1] sm:$0xff]  ;;  %613 = vmatprep.subr.mxu1 %v6449_v45  ;;  %v6463_v24 = vld [vmem:[%s15088_s1 + $0x1f8] sm:$0xff] }
  0x2d   : > { %803 = vmatprep.subr.mxu0 %v470_v46  ;;  %v8574_v49 = vld [vmem:[%s8565_s29 + $0x1] sm:$0xff]  ;;  %614 = vmatpush1.msra.mxu1 %v6448_v47  ;;  %v8652_v10 = vld [vmem:[%s8565_s29 + $0x9] sm:$0xff]  ;;  %v6459_v28 = vld [vmem:[%s15088_s1 + $0x1d8] sm:$0xff] }
  0x2e   : > { %v8581_v51 = vld [vmem:[%s8565_s29] sm:$0xff]  ;;  %v6557_v52 = vld [vmem:[%s15088_s1 + $0x468] sm:$0xff]  ;;  %804 = vmatpush1.msra.mxu0 %v469_v48  ;;  %837 = vmatprep.mubr.f32.mxu0 %v8281_v6  ;;  %v6462_v26 = vld [vmem:[%s15088_s1 + $0x1f0] sm:$0xff] }
  0x2f   : > { %v6556_v54 = vld [vmem:[%s15088_s1 + $0x460] sm:$0xff]  ;;  %6496 = vmatmul.mubr.msk.f32.vlgmr.msra.gmra.mxu1 %vm570_vm0, %v8574_v49  ;;  %680 = vmatprep.subr.mxu1 %v6495_v50  ;;  %v6553_v56 = vld [vmem:[%s15088_s1 + $0x448] sm:$0xff]  ;;  %v8727_v31 = vld [vmem:[%s8565_s29 + $0x18] sm:$0xff] }
  0x30   : > { %6504 = vmatmul.mubr.msk.f32.vlgmr.msra.gmra.mxu0 %vm570_vm0, %v8581_v51  ;;  %1024 = vmatprep.subr.mxu0 %v6557_v52  ;;  %v6552_v58 = vld [vmem:[%s15088_s1 + $0x440] sm:$0xff]  ;;  %v6549_v60 = vld [vmem:[%s15088_s1 + $0x428] sm:$0xff]  ;;  %v6458_v32 = vld [vmem:[%s15088_s1 + $0x1d0] sm:$0xff] }
  0x31   : > { %681 = vmatpush1.msra.mxu1 %v6494_v53  ;;  %1025 = vmatpush1.msra.mxu0 %v6556_v54  ;;  %v6548_v62 = vld [vmem:[%s15088_s1 + $0x420] sm:$0xff]  ;;  %v6545_v0 = vld [vmem:[%s15088_s1 + $0x408] sm:$0xff]  ;;  %v6455_v34 = vld [vmem:[%s15088_s1 + $0x1b8] sm:$0xff] }
  0x32   : > { %682 = vmatprep.subr.mxu1 %v6491_v55  ;;  %1026 = vmatprep.subr.mxu0 %v6553_v56  ;;  %v6544_v2 = vld [vmem:[%s15088_s1 + $0x400] sm:$0xff]  ;;  %v6541_v4 = vld [vmem:[%s15088_s1 + $0x3e8] sm:$0xff]  ;;  %v6454_v36 = vld [vmem:[%s15088_s1 + $0x1b0] sm:$0xff] }
  0x33   : > { %683 = vmatpush1.msra.mxu1 %v6490_v57  ;;  %1027 = vmatpush1.msra.mxu0 %v6552_v58  ;;  %v6540_v7 = vld [vmem:[%s15088_s1 + $0x3e0] sm:$0xff]  ;;  %v6537_v9 = vld [vmem:[%s15088_s1 + $0x3c8] sm:$0xff]  ;;  %v6451_v38 = vld [vmem:[%s15088_s1 + $0x198] sm:$0xff] }
  0x34   : > { %684 = vmatprep.subr.mxu1 %v6487_v59  ;;  %1028 = vmatprep.subr.mxu0 %v6549_v60  ;;  %v8655_v11 = vld [vmem:[%s8565_s29 + $0x8] sm:$0xff]  ;;  %v6536_v13 = vld [vmem:[%s15088_s1 + $0x3c0] sm:$0xff]  ;;  %v6450_v40 = vld [vmem:[%s15088_s1 + $0x190] sm:$0xff] }
  0x35   : > { %685 = vmatpush1.msra.mxu1 %v6486_v61  ;;  %1029 = vmatpush1.msra.mxu0 %v6548_v62  ;;  %v6533_v15 = vld [vmem:[%s15088_s1 + $0x3a8] sm:$0xff]  ;;  %v6532_v17 = vld [vmem:[%s15088_s1 + $0x3a0] sm:$0xff]  ;;  %v516_v42 = vld [vmem:[%s15088_s1 + $0x178] sm:$0xff] }
  0x36   : > { %686 = vmatprep.subr.mxu1 %v6483_v63  ;;  %1030 = vmatprep.subr.mxu0 %v6545_v0  ;;  %v6529_v19 = vld [vmem:[%s15088_s1 + $0x388] sm:$0xff]  ;;  %v6528_v23 = vld [vmem:[%s15088_s1 + $0x380] sm:$0xff]  ;;  %v515_v44 = vld [vmem:[%s15088_s1 + $0x170] sm:$0xff] }
  0x37   : > { %687 = vmatpush1.msra.mxu1 %v6482_v1  ;;  %1031 = vmatpush1.msra.mxu0 %v6544_v2  ;;  %v6525_v25 = vld [vmem:[%s15088_s1 + $0x368] sm:$0xff]  ;;  %v6524_v27 = vld [vmem:[%s15088_s1 + $0x360] sm:$0xff]  ;;  %v512_v45 = vld [vmem:[%s15088_s1 + $0x158] sm:$0xff] }
  0x38   : > { %688 = vmatprep.subr.mxu1 %v6479_v3  ;;  %1032 = vmatprep.subr.mxu0 %v6541_v4  ;;  %v6521_v29 = vld [vmem:[%s15088_s1 + $0x348] sm:$0xff]  ;;  %v8724_v30 = vld [vmem:[%s8565_s29 + $0x19] sm:$0xff]  ;;  %v511_v46 = vld [vmem:[%s15088_s1 + $0x150] sm:$0xff] }
  0x39   : > { %689 = vmatpush1.msra.mxu1 %v6478_v5  ;;  %1033 = vmatpush1.msra.mxu0 %v6540_v7  ;;  %v6520_v33 = vld [vmem:[%s15088_s1 + $0x340] sm:$0xff]  ;;  %v6517_v35 = vld [vmem:[%s15088_s1 + $0x328] sm:$0xff]  ;;  %v508_v47 = vld [vmem:[%s15088_s1 + $0x138] sm:$0xff] }
  0x3a   : > { %653 = vmatprep.mubr.f32.mxu1 %v8281_v6  ;;  %690 = vmatprep.subr.mxu1 %v6475_v8  ;;  %v6516_v37 = vld [vmem:[%s15088_s1 + $0x320] sm:$0xff]  ;;  %v6513_v39 = vld [vmem:[%s15088_s1 + $0x308] sm:$0xff]  ;;  %v504_v50 = vld [vmem:[%s15088_s1 + $0x118] sm:$0xff] }
  0x3b   : > { %843 = vmatprep.mubr.f32.mxu0 %v8281_v6  ;;  %1034 = vmatprep.subr.mxu0 %v6537_v9  ;;  %v6512_v41 = vld [vmem:[%s15088_s1 + $0x300] sm:$0xff]  ;;  %v8791_v48 = vld [vmem:[%s8565_s29 + $0xa] sm:$0xff]  ;;  %v500_v53 = vld [vmem:[%s15088_s1 + $0xf8] sm:$0xff] }
  0x3c   : > { %6497 = vmatmul.mubr.msk.f32.gmra.mxu1 %vm570_vm0, %v8652_v10  ;;  %6505 = vmatmul.mubr.msk.f32.gmra.mxu0 %vm570_vm0, %v8655_v11  ;;  %v8770_v43 = vld [vmem:[%s8565_s29 + $0x2] sm:$0xff]  ;;  %v503_v52 = vld [vmem:[%s15088_s1 + $0x110] sm:$0xff]  ;;  %v496_v56 = vld [vmem:[%s15088_s1 + $0xd8] sm:$0xff] }
  0x3d   : > { %691 = vmatpush1.msra.mxu1 %v6474_v12  ;;  %1035 = vmatpush1.msra.mxu0 %v6536_v13  ;;  %v8812_v54 = vld [vmem:[%s8565_s29 + $0x12] sm:$0xff]  ;;  %v8833_v59 = vld [vmem:[%s8565_s29 + $0x1a] sm:$0xff]  ;;  %v1293_v3 = vld [vmem:[%s15091_s4 + $0xe8] sm:$0xff] }
  0x3e   : > { %692 = vmatprep.subr.mxu1 %v6471_v14  ;;  %1036 = vmatprep.subr.mxu0 %v6533_v15  ;;  %v499_v55 = vld [vmem:[%s15088_s1 + $0xf0] sm:$0xff]  ;;  %v492_v58 = vld [vmem:[%s15088_s1 + $0xb8] sm:$0xff]  ;;  %v1292_v5 = vld [vmem:[%s15091_s4 + $0xe0] sm:$0xff] }
  0x3f   : > { %693 = vmatpush1.msra.mxu1 %v6470_v16  ;;  %1037 = vmatpush1.msra.mxu0 %v6532_v17  ;;  %v495_v57 = vld [vmem:[%s15088_s1 + $0xd0] sm:$0xff]  ;;  %v488_v61 = vld [vmem:[%s15088_s1 + $0x98] sm:$0xff]  ;;  %v1289_v13 = vld [vmem:[%s15091_s4 + $0xc8] sm:$0xff] }
  0x40   : > { %659 = vmatprep.mubr.f32.mxu1 %v8281_v6  ;;  %694 = vmatprep.subr.mxu1 %v6467_v18  ;;  %v491_v60 = vld [vmem:[%s15088_s1 + $0xb0] sm:$0xff]  ;;  %v1295_v63 = vld [vmem:[%s15091_s4 + $0xf8] sm:$0xff]  ;;  %v1288_v15 = vld [vmem:[%s15091_s4 + $0xc0] sm:$0xff] }
  0x41   : > { %849 = vmatprep.mubr.f32.mxu0 %v8281_v6  ;;  %1038 = vmatprep.subr.mxu0 %v6529_v19  ;;  %v487_v62 = vld [vmem:[%s15088_s1 + $0x90] sm:$0xff]  ;;  %v484_v0 = vld [vmem:[%s15088_s1 + $0x78] sm:$0xff] }
  0x42   : > { %6498 = vmatmul.mubr.msk.f32.gmra.mxu1 %vm570_vm0, %v8688_v20  ;;  %6506 = vmatmul.mubr.msk.f32.gmra.mxu0 %vm570_vm0, %v8691_v21  ;;  %v1294_v1 = vld [vmem:[%s15091_s4 + $0xf0] sm:$0xff]  ;;  %v480_v4 = vld [vmem:[%s15088_s1 + $0x58] sm:$0xff] }
  0x43   : > { %695 = vmatpush1.msra.mxu1 %v6466_v22  ;;  %1039 = vmatpush1.msra.mxu0 %v6528_v23  ;;  %v483_v2 = vld [vmem:[%s15088_s1 + $0x70] sm:$0xff]  ;;  %v1291_v8 = vld [vmem:[%s15091_s4 + $0xd8] sm:$0xff] }
  0x44   : > { %696 = vmatprep.subr.mxu1 %v6463_v24  ;;  %1040 = vmatprep.subr.mxu0 %v6525_v25  ;;  %v479_v7 = vld [vmem:[%s15088_s1 + $0x50] sm:$0xff]  ;;  %v476_v9 = vld [vmem:[%s15088_s1 + $0x38] sm:$0xff]  ;;  %v1285_v24 = vld [vmem:[%s15091_s4 + $0xa8] sm:$0xff] }
  0x45   : > { %697 = vmatpush1.msra.mxu1 %v6462_v26  ;;  %1041 = vmatpush1.msra.mxu0 %v6524_v27  ;;  %v475_v12 = vld [vmem:[%s15088_s1 + $0x30] sm:$0xff]  ;;  %v472_v14 = vld [vmem:[%s15088_s1 + $0x18] sm:$0xff]  ;;  %v1284_v27 = vld [vmem:[%s15091_s4 + $0xa0] sm:$0xff] }
  0x46   : > { %665 = vmatprep.mubr.f32.mxu1 %v8281_v6  ;;  %698 = vmatprep.subr.mxu1 %v6459_v28  ;;  %v471_v16 = vld [vmem:[%s15088_s1 + $0x10] sm:$0xff]  ;;  %v1287_v17 = vld [vmem:[%s15091_s4 + $0xb8] sm:$0xff] }
  0x47   : > { %855 = vmatprep.mubr.f32.mxu0 %v8281_v6  ;;  %1042 = vmatprep.subr.mxu0 %v6521_v29  ;;  %v6559_v18 = vld [vmem:[%s15088_s1 + $0x478] sm:$0xff]  ;;  %v6558_v19 = vld [vmem:[%s15088_s1 + $0x470] sm:$0xff] }
  0x48   : > { %6499 = vmatmul.mubr.msk.f32.gmra.mxu1 %vm570_vm0, %v8724_v30  ;;  %6507 = vmatmul.mubr.msk.f32.gmra.mxu0 %vm570_vm0, %v8727_v31  ;;  %v1286_v22 = vld [vmem:[%s15091_s4 + $0xb0] sm:$0xff]  ;;  %v6551_v25 = vld [vmem:[%s15088_s1 + $0x438] sm:$0xff] }
  0x49   : > { %699 = vmatpush1.msra.mxu1 %v6458_v32  ;;  %1043 = vmatpush1.msra.mxu0 %v6520_v33  ;;  %v6554_v23 = vld [vmem:[%s15088_s1 + $0x450] sm:$0xff]  ;;  %v6547_v26 = vld [vmem:[%s15088_s1 + $0x418] sm:$0xff] }
  0x4a   : > { %700 = vmatprep.subr.mxu1 %v6455_v34  ;;  %1044 = vmatprep.subr.mxu0 %v6517_v35  ;;  %v6546_v28 = vld [vmem:[%s15088_s1 + $0x410] sm:$0xff]  ;;  %v1283_v29 = vld [vmem:[%s15091_s4 + $0x98] sm:$0xff]  ;;  %v1281_v35 = vld [vmem:[%s15091_s4 + $0x88] sm:$0xff] }
  0x4b   : > { %701 = vmatpush1.msra.mxu1 %v6454_v36  ;;  %1045 = vmatpush1.msra.mxu0 %v6516_v37  ;;  %v6539_v32 = vld [vmem:[%s15088_s1 + $0x3d8] sm:$0xff]  ;;  %v1282_v33 = vld [vmem:[%s15091_s4 + $0x90] sm:$0xff] }
  0x4c   : > { %702 = vmatprep.subr.mxu1 %v6451_v38  ;;  %1046 = vmatprep.subr.mxu0 %v6513_v39  ;;  %v6538_v34 = vld [vmem:[%s15088_s1 + $0x3d0] sm:$0xff]  ;;  %v6535_v36 = vld [vmem:[%s15088_s1 + $0x3b8] sm:$0xff]  ;;  %v1280_v38 = vld [vmem:[%s15091_s4 + $0x80] sm:$0xff] }
  0x4d   : > { %703 = vmatpush1.msra.mxu1 %v6450_v40  ;;  %736 = vmatprep.mubr.f32.mxu1 %v8281_v6  ;;  %v6531_v37 = vld [vmem:[%s15088_s1 + $0x398] sm:$0xff]  ;;  %v6530_v39 = vld [vmem:[%s15088_s1 + $0x390] sm:$0xff] }
  0x4e   : > { %1047 = vmatpush1.msra.mxu0 %v6512_v41  ;;  %1080 = vmatprep.mubr.f32.mxu0 %v8281_v6  ;;  %v1279_v40 = vld [vmem:[%s15091_s4 + $0x78] sm:$0xff] }
  0x4f   : > { %6500 = vmatmul.mubr.msk.f32.vlgmr.msra.gmra.mxu1 %vm570_vm0, %v8574_v49  ;;  %870 = vmatprep.subr.mxu1 %v516_v42  ;;  %v507_v49 = vld [vmem:[%s15088_s1 + $0x130] sm:$0xff]  ;;  %v6527_v41 = vld [vmem:[%s15088_s1 + $0x378] sm:$0xff] }
  0x50   : > { %6560 = vmatmul.mubr.msk.f32.vlgmr.msra.gmra.mxu0 %vm570_vm0, %v8770_v43  ;;  %871 = vmatpush1.msra.mxu1 %v515_v44  ;;  %v6526_v42 = vld [vmem:[%s15088_s1 + $0x370] sm:$0xff]  ;;  %v1277_v44 = vld [vmem:[%s15091_s4 + $0x68] sm:$0xff] }
  0x51   : > { %872 = vmatprep.subr.mxu1 %v512_v45  ;;  %1086 = vmatprep.mubr.f32.mxu0 %v8281_v6  ;;  %v6523_v45 = vld [vmem:[%s15088_s1 + $0x358] sm:$0xff] }
  0x52   : > { %873 = vmatpush1.msra.mxu1 %v511_v46  ;;  %742 = vmatprep.mubr.f32.mxu1 %v8281_v6  ;;  %v1276_v46 = vld [vmem:[%s15091_s4 + $0x60] sm:$0xff] }
  0x53   : > { %874 = vmatprep.subr.mxu1 %v508_v47  ;;  %6501 = vmatmul.mubr.msk.f32.gmra.mxu1 %vm570_vm0, %v8652_v10  ;;  %v1290_v10 = vld [vmem:[%s15091_s4 + $0xd0] sm:$0xff] }
  0x54   : > { %6561 = vmatmul.mubr.msk.f32.gmra.mxu0 %vm570_vm0, %v8791_v48  ;;  %875 = vmatpush1.msra.mxu1 %v507_v49  ;;  %v6522_v47 = vld [vmem:[%s15088_s1 + $0x350] sm:$0xff]  ;;  %v1275_v49 = vld [vmem:[%s15091_s4 + $0x58] sm:$0xff] }
  0x55   : > { %876 = vmatprep.subr.mxu1 %v504_v50  ;;  %1092 = vmatprep.mubr.f32.mxu0 %v8281_v6  ;;  %v6519_v50 = vld [vmem:[%s15088_s1 + $0x338] sm:$0xff] }
  0x56   : > { %877 = vmatpush1.msra.mxu1 %v503_v52  ;;  %748 = vmatprep.mubr.f32.mxu1 %v8281_v6  ;;  %v1274_v52 = vld [vmem:[%s15091_s4 + $0x50] sm:$0xff] }
  0x57   : > { %878 = vmatprep.subr.mxu1 %v500_v53  ;;  %6502 = vmatmul.mubr.msk.f32.gmra.mxu1 %vm570_vm0, %v8688_v20  ;;  %v6555_v20 = vld [vmem:[%s15088_s1 + $0x458] sm:$0xff]  ;;  %v6518_v53 = vld [vmem:[%s15088_s1 + $0x330] sm:$0xff] }
  0x58   : > { %6562 = vmatmul.mubr.msk.f32.gmra.mxu0 %vm570_vm0, %v8812_v54  ;;  %879 = vmatpush1.msra.mxu1 %v499_v55  ;;  %v1273_v55 = vld [vmem:[%s15091_s4 + $0x48] sm:$0xff] }
  0x59   : > { %880 = vmatprep.subr.mxu1 %v496_v56  ;;  %1098 = vmatprep.mubr.f32.mxu0 %v8281_v6  ;;  %v6515_v56 = vld [vmem:[%s15088_s1 + $0x318] sm:$0xff] }
  0x5a   : > { %881 = vmatpush1.msra.mxu1 %v495_v57  ;;  %754 = vmatprep.mubr.f32.mxu1 %v8281_v6  ;;  %v1272_v57 = vld [vmem:[%s15091_s4 + $0x40] sm:$0xff] }
  0x5b   : > { %882 = vmatprep.subr.mxu1 %v492_v58  ;;  %6503 = vmatmul.mubr.msk.f32.gmra.mxu1 %vm570_vm0, %v8724_v30  ;;  %v6543_v30 = vld [vmem:[%s15088_s1 + $0x3f8] sm:$0xff]  ;;  %v6514_v58 = vld [vmem:[%s15088_s1 + $0x310] sm:$0xff] }
  0x5c   : > { %6563 = vmatmul.mubr.msk.f32.gmra.mxu0 %vm570_vm0, %v8833_v59  ;;  %883 = vmatpush1.msra.mxu1 %v491_v60  ;;  %v1271_v60 = vld [vmem:[%s15091_s4 + $0x38] sm:$0xff] }
  0x5d   : > { %884 = vmatprep.subr.mxu1 %v488_v61  ;;  %926 = vmatprep.mubr.f32.mxu1 %v8281_v6  ;;  %v1270_v61 = vld [vmem:[%s15091_s4 + $0x30] sm:$0xff] }
  0x5e   : > { %885 = vmatpush1.msra.mxu1 %v487_v62  ;;  %1392 = vmatprep.subr.mxu0 %v1295_v63  ;;  %v1269_v62 = vld [vmem:[%s15091_s4 + $0x28] sm:$0xff]  ;;  %v1268_v63 = vld [vmem:[%s15091_s4 + $0x20] sm:$0xff] }
  0x5f   : > { %886 = vmatprep.subr.mxu1 %v484_v0  ;;  %1393 = vmatpush1.msra.mxu0 %v1294_v1  ;;  %v1267_v0 = vld [vmem:[%s15091_s4 + $0x18] sm:$0xff]  ;;  %v1266_v1 = vld [vmem:[%s15091_s4 + $0x10] sm:$0xff] }
  0x60   : > { %887 = vmatpush1.msra.mxu1 %v483_v2  ;;  %1394 = vmatprep.subr.mxu0 %v1293_v3  ;;  %v1265_v2 = vld [vmem:[%s15091_s4 + $0x8] sm:$0xff]  ;;  %v1327_v3 = vld [vmem:[%s15091_s4 + $0x1f8] sm:$0xff] }
  0x61   : > { %888 = vmatprep.subr.mxu1 %v480_v4  ;;  %1395 = vmatpush1.msra.mxu0 %v1292_v5  ;;  %v1326_v4 = vld [vmem:[%s15091_s4 + $0x1f0] sm:$0xff]  ;;  %v1325_v5 = vld [vmem:[%s15091_s4 + $0x1e8] sm:$0xff] }
  0x62   : > { %889 = vmatpush1.msra.mxu1 %v479_v7  ;;  %1396 = vmatprep.subr.mxu0 %v1291_v8  ;;  %v1324_v7 = vld [vmem:[%s15091_s4 + $0x1e0] sm:$0xff]  ;;  %v1358_v8 = vld [vmem:[%s15091_s4 + $0x2f0] sm:$0xff] }
  0x63   : > { %890 = vmatprep.subr.mxu1 %v476_v9  ;;  %1397 = vmatpush1.msra.mxu0 %v1290_v10  ;;  %v1323_v9 = vld [vmem:[%s15091_s4 + $0x1d8] sm:$0xff]  ;;  %v1322_v10 = vld [vmem:[%s15091_s4 + $0x1d0] sm:$0xff] }
  0x64   : > { %891 = vmatpush1.msra.mxu1 %v475_v12  ;;  %1398 = vmatprep.subr.mxu0 %v1289_v13  ;;  %v1321_v12 = vld [vmem:[%s15091_s4 + $0x1c8] sm:$0xff]  ;;  %v1356_v13 = vld [vmem:[%s15091_s4 + $0x2e0] sm:$0xff] }
  0x65   : > { %892 = vmatprep.subr.mxu1 %v472_v14  ;;  %1399 = vmatpush1.msra.mxu0 %v1288_v15  ;;  %v1319_v14 = vld [vmem:[%s15091_s4 + $0x1b8] sm:$0xff] }
  0x66   : > { %893 = vmatpush1.msra.mxu1 %v471_v16  ;;  %1400 = vmatprep.subr.mxu0 %v1287_v17  ;;  %v1355_v15 = vld [vmem:[%s15091_s4 + $0x2d8] sm:$0xff]  ;;  %v1318_v16 = vld [vmem:[%s15091_s4 + $0x1b0] sm:$0xff] }
  0x67   : > { %6508 = vmatmul.mubr.msk.f32.vlgmr.msra.gmra.mxu1 %vm570_vm0, %v8581_v51  ;;  %1113 = vmatprep.subr.mxu1 %v6559_v18  ;;  %v6550_v51 = vld [vmem:[%s15088_s1 + $0x430] sm:$0xff]  ;;  %v1317_v18 = vld [vmem:[%s15091_s4 + $0x1a8] sm:$0xff] }
  0x68   : > { %1114 = vmatpush1.msra.mxu1 %v6558_v19  ;;  %932 = vmatprep.mubr.f32.mxu1 %v8281_v6  ;;  %v1354_v17 = vld [vmem:[%s15091_s4 + $0x2d0] sm:$0xff]  ;;  %v1316_v19 = vld [vmem:[%s15091_s4 + $0x1a0] sm:$0xff] }
  0x69   : > { %1115 = vmatprep.subr.mxu1 %v6555_v20  ;;  %1401 = vmatpush1.msra.mxu0 %v1286_v22  ;;  %v1315_v20 = vld [vmem:[%s15091_s4 + $0x198] sm:$0xff]  ;;  %v1352_v22 = vld [vmem:[%s15091_s4 + $0x2c0] sm:$0xff] }
  0x6a   : > { %1116 = vmatpush1.msra.mxu1 %v6554_v23  ;;  %1402 = vmatprep.subr.mxu0 %v1285_v24  ;;  %v1314_v23 = vld [vmem:[%s15091_s4 + $0x190] sm:$0xff]  ;;  %v1351_v24 = vld [vmem:[%s15091_s4 + $0x2b8] sm:$0xff] }
  0x6b   : > { %6509 = vmatmul.mubr.msk.f32.gmra.mxu1 %vm570_vm0, %v8655_v11  ;;  %1117 = vmatprep.subr.mxu1 %v6551_v25  ;;  %v6542_v11 = vld [vmem:[%s15088_s1 + $0x3f0] sm:$0xff]  ;;  %v1313_v25 = vld [vmem:[%s15091_s4 + $0x188] sm:$0xff] }
  0x6c   : > { %1118 = vmatpush1.msra.mxu1 %v6550_v51  ;;  %938 = vmatprep.mubr.f32.mxu1 %v8281_v6  ;;  %v1350_v51 = vld [vmem:[%s15091_s4 + $0x2b0] sm:$0xff] }
  0x6d   : > { %1119 = vmatprep.subr.mxu1 %v6547_v26  ;;  %1403 = vmatpush1.msra.mxu0 %v1284_v27  ;;  %v1312_v26 = vld [vmem:[%s15091_s4 + $0x180] sm:$0xff]  ;;  %v1349_v27 = vld [vmem:[%s15091_s4 + $0x2a8] sm:$0xff] }
  0x6e   : > { %1120 = vmatpush1.msra.mxu1 %v6546_v28  ;;  %1404 = vmatprep.subr.mxu0 %v1283_v29  ;;  %v1311_v28 = vld [vmem:[%s15091_s4 + $0x178] sm:$0xff]  ;;  %v1348_v29 = vld [vmem:[%s15091_s4 + $0x2a0] sm:$0xff] }
  0x6f   : > { %6510 = vmatmul.mubr.msk.f32.gmra.mxu1 %vm570_vm0, %v8691_v21  ;;  %1121 = vmatprep.subr.mxu1 %v6543_v30  ;;  %v6534_v21 = vld [vmem:[%s15088_s1 + $0x3b0] sm:$0xff] }
  0x70   : > { %1122 = vmatpush1.msra.mxu1 %v6542_v11  ;;  %944 = vmatprep.mubr.f32.mxu1 %v8281_v6  ;;  %v1310_v30 = vld [vmem:[%s15091_s4 + $0x170] sm:$0xff]  ;;  %v1347_v11 = vld [vmem:[%s15091_s4 + $0x298] sm:$0xff] }
  0x71   : > { %1123 = vmatprep.subr.mxu1 %v6539_v32  ;;  %1405 = vmatpush1.msra.mxu0 %v1282_v33  ;;  %v1309_v32 = vld [vmem:[%s15091_s4 + $0x168] sm:$0xff]  ;;  %v1346_v33 = vld [vmem:[%s15091_s4 + $0x290] sm:$0xff] }
  0x72   : > { %1124 = vmatpush1.msra.mxu1 %v6538_v34  ;;  %1406 = vmatprep.subr.mxu0 %v1281_v35  ;;  %v1308_v34 = vld [vmem:[%s15091_s4 + $0x160] sm:$0xff]  ;;  %v1345_v35 = vld [vmem:[%s15091_s4 + $0x288] sm:$0xff] }
  0x73   : > { %6511 = vmatmul.mubr.msk.f32.gmra.mxu1 %vm570_vm0, %v8727_v31  ;;  %1125 = vmatprep.subr.mxu1 %v6535_v36  ;;  %v1278_v31 = vld [vmem:[%s15091_s4 + $0x70] sm:$0xff]  ;;  %v1307_v36 = vld [vmem:[%s15091_s4 + $0x158] sm:$0xff] }
  0x74   : > { %1126 = vmatpush1.msra.mxu1 %v6534_v21  ;;  %1169 = vmatprep.mubr.f32.mxu1 %v8281_v6  ;;  %v1344_v21 = vld [vmem:[%s15091_s4 + $0x280] sm:$0xff] }
  0x75   : > { %1127 = vmatprep.subr.mxu1 %v6531_v37  ;;  %1407 = vmatpush1.msra.mxu0 %v1280_v38  ;;  %v1306_v37 = vld [vmem:[%s15091_s4 + $0x150] sm:$0xff]  ;;  %v1343_v38 = vld [vmem:[%s15091_s4 + $0x278] sm:$0xff] }
  0x76   : > { %1128 = vmatpush1.msra.mxu1 %v6530_v39  ;;  %1408 = vmatprep.subr.mxu0 %v1279_v40  ;;  %v1305_v39 = vld [vmem:[%s15091_s4 + $0x148] sm:$0xff]  ;;  %v1342_v40 = vld [vmem:[%s15091_s4 + $0x270] sm:$0xff] }
  0x77   : > { %1129 = vmatprep.subr.mxu1 %v6527_v41  ;;  %1409 = vmatpush1.msra.mxu0 %v1278_v31  ;;  %v1304_v41 = vld [vmem:[%s15091_s4 + $0x140] sm:$0xff]  ;;  %v1303_v31 = vld [vmem:[%s15091_s4 + $0x138] sm:$0xff] }
  0x78   : > { %1130 = vmatpush1.msra.mxu1 %v6526_v42  ;;  %1410 = vmatprep.subr.mxu0 %v1277_v44  ;;  %v1341_v42 = vld [vmem:[%s15091_s4 + $0x268] sm:$0xff]  ;;  %v1302_v44 = vld [vmem:[%s15091_s4 + $0x130] sm:$0xff] }
  0x79   : > { %1131 = vmatprep.subr.mxu1 %v6523_v45  ;;  %1411 = vmatpush1.msra.mxu0 %v1276_v46  ;;  %v1340_v45 = vld [vmem:[%s15091_s4 + $0x260] sm:$0xff]  ;;  %v1301_v46 = vld [vmem:[%s15091_s4 + $0x128] sm:$0xff] }
  0x7a   : > { %1132 = vmatpush1.msra.mxu1 %v6522_v47  ;;  %1412 = vmatprep.subr.mxu0 %v1275_v49  ;;  %v1339_v47 = vld [vmem:[%s15091_s4 + $0x258] sm:$0xff]  ;;  %v1300_v49 = vld [vmem:[%s15091_s4 + $0x120] sm:$0xff] }
  0x7b   : > { %1133 = vmatprep.subr.mxu1 %v6519_v50  ;;  %1413 = vmatpush1.msra.mxu0 %v1274_v52  ;;  %v1338_v50 = vld [vmem:[%s15091_s4 + $0x250] sm:$0xff]  ;;  %v1299_v52 = vld [vmem:[%s15091_s4 + $0x118] sm:$0xff] }
  0x7c   : > { %1134 = vmatpush1.msra.mxu1 %v6518_v53  ;;  %1414 = vmatprep.subr.mxu0 %v1273_v55  ;;  %v1337_v53 = vld [vmem:[%s15091_s4 + $0x248] sm:$0xff]  ;;  %v1298_v55 = vld [vmem:[%s15091_s4 + $0x110] sm:$0xff] }
  0x7d   : > { %1135 = vmatprep.subr.mxu1 %v6515_v56  ;;  %1415 = vmatpush1.msra.mxu0 %v1272_v57  ;;  %v1336_v56 = vld [vmem:[%s15091_s4 + $0x240] sm:$0xff]  ;;  %v1297_v57 = vld [vmem:[%s15091_s4 + $0x108] sm:$0xff] }
  0x7e   : > { %1136 = vmatpush1.msra.mxu1 %v6514_v58  ;;  %1416 = vmatprep.subr.mxu0 %v1271_v60  ;;  %v1335_v58 = vld [vmem:[%s15091_s4 + $0x238] sm:$0xff]  ;;  %v1296_v60 = vld [vmem:[%s15091_s4 + $0x100] sm:$0xff] }
  0x7f   : > { %6564 = vmatmul.mubr.msk.f32.vlgmr.msra.gmra.mxu1 %vm570_vm0, %v8770_v43  ;;  %1417 = vmatpush1.msra.mxu0 %v1270_v61  ;;  %v1264_v43 = vld [vmem:[%s15091_s4] sm:$0xff]  ;;  %v1334_v61 = vld [vmem:[%s15091_s4 + $0x230] sm:$0xff] }
  0x80   : > { %1175 = vmatprep.mubr.f32.mxu1 %v8281_v6  ;;  %1418 = vmatprep.subr.mxu0 %v1269_v62  ;;  %v6599_v62 = vld [vmem:[%s15091_s4 + $0x4f8] sm:$0xff] }
  0x81   : > { %1419 = vmatpush1.msra.mxu0 %v1268_v63  ;;  %v1333_v63 = vld [vmem:[%s15091_s4 + $0x228] sm:$0xff] }
  0x82   : > { %1420 = vmatprep.subr.mxu0 %v1267_v0  ;;  %v1332_v0 = vld [vmem:[%s15091_s4 + $0x220] sm:$0xff] }
  0x83   : > { %6565 = vmatmul.mubr.msk.f32.gmra.mxu1 %vm570_vm0, %v8791_v48  ;;  %1421 = vmatpush1.msra.mxu0 %v1266_v1  ;;  %v1359_v48 = vld [vmem:[%s15091_s4 + $0x2f8] sm:$0xff] }
  0x84   : > { %1181 = vmatprep.mubr.f32.mxu1 %v8281_v6  ;;  %1422 = vmatprep.subr.mxu0 %v1265_v2  ;;  %v1331_v1 = vld [vmem:[%s15091_s4 + $0x218] sm:$0xff]  ;;  %v1330_v2 = vld [vmem:[%s15091_s4 + $0x210] sm:$0xff] }
  0x85   : > { %1423 = vmatpush1.msra.mxu0 %v1264_v43  ;;  %1481 = vmatprep.subr.mxu1 %v1359_v48  ;;  %v1329_v43 = vld [vmem:[%s15091_s4 + $0x208] sm:$0xff] }
  0x86   : > { %1424 = vmatprep.subr.mxu0 %v1327_v3  ;;  %1482 = vmatpush1.msra.mxu1 %v1358_v8  ;;  %v1328_v3 = vld [vmem:[%s15091_s4 + $0x200] sm:$0xff]  ;;  %v1389_v48 = vld [vmem:[%s15091_s4 + $0x3e8] sm:$0xff]  ;;  %v1387_v8 = vld [vmem:[%s15091_s4 + $0x3d8] sm:$0xff] }
  0x87   : > { %6566 = vmatmul.mubr.msk.f32.gmra.mxu1 %vm570_vm0, %v8812_v54  ;;  %1425 = vmatpush2.msra.mxu0 %v1326_v4  ;;  %v1357_v54 = vld [vmem:[%s15091_s4 + $0x2e8] sm:$0xff]  ;;  %v1391_v4 = vld [vmem:[%s15091_s4 + $0x3f8] sm:$0xff] }
  0x88   : > { %1187 = vmatprep.mubr.f32.mxu1 %v8281_v6  ;;  %1426 = vmatprep.subr.mxu0 %v1325_v5  ;;  %v1320_v6 = vld [vmem:[%s15091_s4 + $0x1c0] sm:$0xff]  ;;  %v1390_v5 = vld [vmem:[%s15091_s4 + $0x3f0] sm:$0xff] }
  0x89   : > { %1427 = vmatpush2.msra.mxu0 %v1324_v7  ;;  %1483 = vmatprep.subr.mxu1 %v1357_v54  ;;  %v1388_v7 = vld [vmem:[%s15091_s4 + $0x3e0] sm:$0xff]  ;;  %v1383_v54 = vld [vmem:[%s15091_s4 + $0x3b8] sm:$0xff] }
  0x8a   : > { %1428 = vmatprep.subr.mxu0 %v1323_v9  ;;  %1484 = vmatpush1.msra.mxu1 %v1356_v13  ;;  %v1386_v9 = vld [vmem:[%s15091_s4 + $0x3d0] sm:$0xff]  ;;  %v1381_v13 = vld [vmem:[%s15091_s4 + $0x3a8] sm:$0xff] }
  0x8b   : > { %6567 = vmatmul.mubr.msk.f32.gmra.mxu1 %vm570_vm0, %v8833_v59  ;;  %1429 = vmatpush2.msra.mxu0 %v1322_v10  ;;  %v1353_v59 = vld [vmem:[%s15091_s4 + $0x2c8] sm:$0xff] }
  0x8c   : > { %1430 = vmatprep.subr.mxu0 %v1321_v12  ;;  %1485 = vmatprep.subr.mxu1 %v1355_v15  ;;  %v1385_v10 = vld [vmem:[%s15091_s4 + $0x3c8] sm:$0xff]  ;;  %v1384_v12 = vld [vmem:[%s15091_s4 + $0x3c0] sm:$0xff]  ;;  %v1379_v15 = vld [vmem:[%s15091_s4 + $0x398] sm:$0xff] }
  0x8d   : > { %1431 = vmatpush2.msra.mxu0 %v1320_v6  ;;  %1486 = vmatpush1.msra.mxu1 %v1354_v17  ;;  %v1382_v6 = vld [vmem:[%s15091_s4 + $0x3b0] sm:$0xff]  ;;  %v1377_v17 = vld [vmem:[%s15091_s4 + $0x388] sm:$0xff] }
  0x8e   : > { %1432 = vmatprep.subr.mxu0 %v1319_v14  ;;  %1487 = vmatprep.subr.mxu1 %v1353_v59  ;;  %v1380_v14 = vld [vmem:[%s15091_s4 + $0x3a0] sm:$0xff] }
  0x8f   : > { %1433 = vmatpush2.msra.mxu0 %v1318_v16  ;;  %1488 = vmatpush1.msra.mxu1 %v1352_v22  ;;  %v1378_v16 = vld [vmem:[%s15091_s4 + $0x390] sm:$0xff]  ;;  %v1376_v59 = vld [vmem:[%s15091_s4 + $0x380] sm:$0xff] }
  0x90   : > { %1434 = vmatprep.subr.mxu0 %v1317_v18  ;;  %1489 = vmatprep.subr.mxu1 %v1351_v24  ;;  %v1375_v18 = vld [vmem:[%s15091_s4 + $0x378] sm:$0xff]  ;;  %v1372_v22 = vld [vmem:[%s15091_s4 + $0x360] sm:$0xff]  ;;  %v1370_v24 = vld [vmem:[%s15091_s4 + $0x350] sm:$0xff] }
  0x91   : > { %1435 = vmatpush2.msra.mxu0 %v1316_v19  ;;  %1490 = vmatpush1.msra.mxu1 %v1350_v51  ;;  %v1374_v19 = vld [vmem:[%s15091_s4 + $0x370] sm:$0xff]  ;;  %v1368_v51 = vld [vmem:[%s15091_s4 + $0x340] sm:$0xff] }
  0x92   : > { %1436 = vmatprep.subr.mxu0 %v1315_v20  ;;  %1491 = vmatprep.subr.mxu1 %v1349_v27  ;;  %v1373_v20 = vld [vmem:[%s15091_s4 + $0x368] sm:$0xff]  ;;  %v1366_v27 = vld [vmem:[%s15091_s4 + $0x330] sm:$0xff] }
  0x93   : > { %1437 = vmatpush2.msra.mxu0 %v1314_v23  ;;  %1492 = vmatpush1.msra.mxu1 %v1348_v29  ;;  %v1371_v23 = vld [vmem:[%s15091_s4 + $0x358] sm:$0xff]  ;;  %v1364_v29 = vld [vmem:[%s15091_s4 + $0x320] sm:$0xff] }
  0x94   : > { %1438 = vmatprep.subr.mxu0 %v1313_v25  ;;  %1493 = vmatprep.subr.mxu1 %v1347_v11  ;;  %v1369_v25 = vld [vmem:[%s15091_s4 + $0x348] sm:$0xff]  ;;  %v1362_v11 = vld [vmem:[%s15091_s4 + $0x310] sm:$0xff] }
  0x95   : > { %1439 = vmatpush2.msra.mxu0 %v1312_v26  ;;  %1494 = vmatpush1.msra.mxu1 %v1346_v33  ;;  %v1367_v26 = vld [vmem:[%s15091_s4 + $0x338] sm:$0xff]  ;;  %v1360_v33 = vld [vmem:[%s15091_s4 + $0x300] sm:$0xff] }
  0x96   : > { %1440 = vmatprep.subr.mxu0 %v1311_v28  ;;  %1495 = vmatprep.subr.mxu1 %v1345_v35  ;;  %v1365_v28 = vld [vmem:[%s15091_s4 + $0x328] sm:$0xff] }
  0x97   : > { %1441 = vmatpush2.msra.mxu0 %v1310_v30  ;;  %1496 = vmatpush1.msra.mxu1 %v1344_v21  ;;  %v1363_v30 = vld [vmem:[%s15091_s4 + $0x318] sm:$0xff] }
  0x98   : > { %1442 = vmatprep.subr.mxu0 %v1309_v32  ;;  %1497 = vmatprep.subr.mxu1 %v1343_v38  ;;  %v1361_v32 = vld [vmem:[%s15091_s4 + $0x308] sm:$0xff] }
  0x99   : > { %1443 = vmatpush2.msra.mxu0 %v1308_v34  ;;  %1498 = vmatpush1.msra.mxu1 %v1342_v40  ;;  %v6663_v34 = vld [vmem:[%s15091_s4 + $0x6f8] sm:$0xff] }
  0x9a   : > { %1444 = vmatprep.subr.mxu0 %v1307_v36  ;;  %1499 = vmatprep.subr.mxu1 %v1341_v42 }
  0x9b   : > { %1445 = vmatpush2.msra.mxu0 %v1306_v37  ;;  %1500 = vmatpush1.msra.mxu1 %v1340_v45 }
  0x9c   : > { %1446 = vmatprep.subr.mxu0 %v1305_v39  ;;  %1501 = vmatprep.subr.mxu1 %v1339_v47 }
  0x9d   : > { %1447 = vmatpush2.msra.mxu0 %v1304_v41  ;;  %1502 = vmatpush1.msra.mxu1 %v1338_v50 }
  0x9e   : > { %1448 = vmatprep.subr.mxu0 %v1303_v31  ;;  %1503 = vmatprep.subr.mxu1 %v1337_v53 }
  0x9f   : > { %1449 = vmatpush2.msra.mxu0 %v1302_v44  ;;  %1504 = vmatpush1.msra.mxu1 %v1336_v56  ;;  %v9367_v56 = vld [vmem:[%s15092_s5] sm:$0xf] }
  0xa0   : > { %1450 = vmatprep.subr.mxu0 %v1301_v46  ;;  %1505 = vmatprep.subr.mxu1 %v1335_v58  ;;  %v1212_v46 = vlaneseq }
  0xa1   : > { %1451 = vmatpush2.msra.mxu0 %v1300_v49  ;;  %1506 = vmatpush1.msra.mxu1 %v1334_v61 }
  0xa2   : > { %1452 = vmatprep.subr.mxu0 %v1299_v52  ;;  %1507 = vmatprep.subr.mxu1 %v1333_v63  ;;  %v9359_v50 = vshrl.u32 %v1212_v46, 7 }
  0xa3   : > { %1453 = vmatpush2.msra.mxu0 %v1298_v55  ;;  %1508 = vmatpush1.msra.mxu1 %v1332_v0 }
  0xa4   : > { %1454 = vmatprep.subr.mxu0 %v1297_v57  ;;  %1509 = vmatprep.subr.mxu1 %v1331_v1  ;;  %v9362_v55 = vsub.s32 0, %v9359_v50  ;;  %v9370_v57 = vsub.s32 1, %v9359_v50 }
  0xa5   : > { %1455 = vmatpush2.msra.mxu0 %v1296_v60  ;;  %1510 = vmatpush1.msra.mxu1 %v1330_v2 }
  0xa6   : > { %1699 = vmatprep.subr.mxu0 %v6599_v62  ;;  %1511 = vmatprep.subr.mxu1 %v1329_v43  ;;  %v1215_v62 = vrot.slane %v9367_v56, %v9362_v55  ;;  %v1219_v2 = vrot.slane %v9367_v56, %v9370_v57 }
  0xa7   : > { %1512 = vmatpush1.msra.mxu1 %v1328_v3 }
  0xa8   : > { %1513 = vmatprep.subr.mxu1 %v1391_v4 }
  0xa9   : > { %1514 = vmatpush2.msra.mxu1 %v1390_v5 }
  0xaa   : > { %1515 = vmatprep.subr.mxu1 %v1389_v48 }
  0xab   : > { %1516 = vmatpush2.msra.mxu1 %v1388_v7 }
  0xac   : > { %1517 = vmatprep.subr.mxu1 %v1387_v8 }
  0xad   : > { %1518 = vmatpush2.msra.mxu1 %v1386_v9 }
  0xae   : > { %1519 = vmatprep.subr.mxu1 %v1385_v10 }
  0xaf   : > { %1520 = vmatpush2.msra.mxu1 %v1384_v12 }
  0xb0   : > { %1521 = vmatprep.subr.mxu1 %v1383_v54 }
  0xb1   : > { %1522 = vmatpush2.msra.mxu1 %v1382_v6 }
  0xb2   : > { %1523 = vmatprep.subr.mxu1 %v1381_v13 }
  0xb3   : > { %1524 = vmatpush2.msra.mxu1 %v1380_v14 }
  0xb4   : > { %1525 = vmatprep.subr.mxu1 %v1379_v15 }
  0xb5   : > { %1526 = vmatpush2.msra.mxu1 %v1378_v16 }
  0xb6   : > { %1527 = vmatprep.subr.mxu1 %v1377_v17 }
  0xb7   : > { %1528 = vmatpush2.msra.mxu1 %v1376_v59 }
  0xb8   : > { %1529 = vmatprep.subr.mxu1 %v1375_v18  ;;  %v6598_v18 = vld [vmem:[%s15091_s4 + $0x4f0] sm:$0xff] }
  0xb9   : > { %1530 = vmatpush2.msra.mxu1 %v1374_v19 }
  0xba   : > { %1531 = vmatprep.subr.mxu1 %v1373_v20 }
  0xbb   : > { %1532 = vmatpush2.msra.mxu1 %v1372_v22 }
  0xbc   : > { %1533 = vmatprep.subr.mxu1 %v1371_v23  ;;  %v6597_v23 = vld [vmem:[%s15091_s4 + $0x4e8] sm:$0xff] }
  0xbd   : > { %1534 = vmatpush2.msra.mxu1 %v1370_v24 }
  0xbe   : > { %1535 = vmatprep.subr.mxu1 %v1369_v25  ;;  %v6596_v25 = vld [vmem:[%s15091_s4 + $0x4e0] sm:$0xff] }
  0xbf   : > { %1536 = vmatpush2.msra.mxu1 %v1368_v51 }
  0xc0   : > { %1537 = vmatprep.subr.mxu1 %v1367_v26 }
  0xc1   : > { %1538 = vmatpush2.msra.mxu1 %v1366_v27 }
  0xc2   : > { %1539 = vmatprep.subr.mxu1 %v1365_v28  ;;  %v6595_v28 = vld [vmem:[%s15091_s4 + $0x4d8] sm:$0xff] }
  0xc3   : > { %1540 = vmatpush2.msra.mxu1 %v1364_v29 }
  0xc4   : > { %1541 = vmatprep.subr.mxu1 %v1363_v30 }
  0xc5   : > { %1542 = vmatpush2.msra.mxu1 %v1362_v11 }
  0xc6   : > { %1543 = vmatprep.subr.mxu1 %v1361_v32 }
  0xc7   : > { %1544 = vmatpush2.msra.mxu1 %v1360_v33  ;;  %v6594_v33 = vld [vmem:[%s15091_s4 + $0x4d0] sm:$0xff] }
  0xc8   : > { %1788 = vmatprep.subr.mxu1 %v6663_v34 }
  0xef   : > { %v649_v35 = vpop.f32.mrf.mxu1 }
  0xf0   : > { %v839_v36 = vpop.f32.mrf.mxu0 }
  0xf1   : > { %v651_v21 = vpop.f32.mrf.mxu1  ;;  %v840_v58 = vadd.f32 %v839_v36, %v649_v35 }
  0xf2   : > { %v841_v37 = vpop.f32.mrf.mxu0 }
  0xf3   : > { %v842_v63 = vadd.f32 %v841_v37, %v651_v21  ;;  %v6593_v21 = vld [vmem:[%s15091_s4 + $0x4c8] sm:$0xff] }
  0xfc   : > { %v655_v38 = vpop.f32.mrf.mxu1  ;;  %v845_v39 = vpop.f32.mrf.mxu0 }
  0xfd   : > { %v846_v3 = vadd.f32 %v845_v39, %v655_v38  ;;  %v6592_v38 = vld [vmem:[%s15091_s4 + $0x4c0] sm:$0xff] }
  0xfe   : > { %v657_v40 = vpop.f32.mrf.mxu1  ;;  %v847_v41 = vpop.f32.mrf.mxu0 }
  0xff   : > { %v848_v8 = vadd.f32 %v847_v41, %v657_v40  ;;  %v6591_v41 = vld [vmem:[%s15091_s4 + $0x4b8] sm:$0xff] }
 0x102   : > { %v661_v31 = vpop.f32.mrf.mxu1  ;;  %v851_v42 = vpop.f32.mrf.mxu0 }
 0x103   : > { %v852_v6 = vadd.f32 %v851_v42, %v661_v31 }
 0x104   : > { %v663_v44 = vpop.f32.mrf.mxu1  ;;  %v853_v45 = vpop.f32.mrf.mxu0 }
 0x105   : > { %v854_v19 = vadd.f32 %v853_v45, %v663_v44  ;;  %v6590_v45 = vld [vmem:[%s15091_s4 + $0x4b0] sm:$0xff] }
 0x108   : > { %v667_v47 = vpop.f32.mrf.mxu1  ;;  %v857_v49 = vpop.f32.mrf.mxu0 }
 0x109   : > { %v858_v51 = vadd.f32 %v857_v49, %v667_v47  ;;  %v6589_v47 = vld [vmem:[%s15091_s4 + $0x4a8] sm:$0xff]  ;;  %v6588_v49 = vld [vmem:[%s15091_s4 + $0x4a0] sm:$0xff] }
 0x10a   : > { %v669_v52 = vpop.f32.mrf.mxu1  ;;  %v859_v53 = vpop.f32.mrf.mxu0 }
 0x10b   : > { %v860_v34 = vadd.f32 %v859_v53, %v669_v52 }
 0x10f   : > { %v9372_v60 = vpop.f32.mrf.mxu1 }
 0x110   : > { %v1082_v61 = vpop.f32.mrf.mxu0 }
 0x111   : > { %v1194_v0 = vadd.f32 %v1082_v61, %v840_v58  ;;  %v9376_v1 = vpop.f32.mrf.mxu1  ;;  %v6587_v58 = vld [vmem:[%s15091_s4 + $0x498] sm:$0xff] }
 0x112   : > { %v1084_v43 = vpop.f32.mrf.mxu0 }
 0x113   : > { %v1195_v4 = vadd.f32 %v1084_v43, %v842_v63  ;;  %v9380_v5 = vpop.f32.mrf.mxu1  ;;  %v9382_v48 = vadd.f32 %v1215_v62, %v1194_v0  ;;  %v6585_v63 = vld [vmem:[%s15091_s4 + $0x488] sm:$0xff]  ;;  %v6584_v0 = vld [vmem:[%s15091_s4 + $0x480] sm:$0xff]  ;;  %v6583_v43 = vld [vmem:[%s15091_s4 + $0x478] sm:$0xff] }
 0x114   : > { %v1088_v7 = vpop.f32.mrf.mxu0 }
 0x115   : > { %v9384_v9 = vadd.f32 %v1219_v2, %v1195_v4  ;;  %v1198_v10 = vadd.f32 %v1088_v7, %v846_v3  ;;  %v9386_v12 = vpop.f32.mrf.mxu1  ;;  %v1248_v16 = vmax.f32 %v9382_v48, 0.0  ;;  %v6582_v3 = vld [vmem:[%s15091_s4 + $0x470] sm:$0xff]  ;;  %v6581_v7 = vld [vmem:[%s15091_s4 + $0x468] sm:$0xff] }
 0x116   : > { %v1090_v54 = vpop.f32.mrf.mxu0  ;;  %v6641_v48 = vld [vmem:[%s15091_s4 + $0x648] sm:$0xff] }
 0x117   : > { %v1199_v13 = vadd.f32 %v1090_v54, %v848_v8  ;;  %v1249_v14 = vmax.f32 %v9384_v9, 0.0  ;;  %v9389_v15 = vpop.f32.mrf.mxu1  ;;  %v9392_v17 = vadd.f32 %v1215_v62, %v1198_v10  ;;  %v6580_v8 = vld [vmem:[%s15091_s4 + $0x460] sm:$0xff]  ;;  %v6579_v10 = vld [vmem:[%s15091_s4 + $0x458] sm:$0xff]  ;;  %v6578_v54 = vld [vmem:[%s15091_s4 + $0x450] sm:$0xff] }
 0x118   : > { %v1094_v59 = vpop.f32.mrf.mxu0 }
 0x119   : > { %v9397_v20 = vadd.f32 %v1219_v2, %v1199_v13  ;;  %v1202_v22 = vadd.f32 %v1094_v59, %v852_v6  ;;  %1456 = vmatprep.mubr.f32.mxu0 %v1249_v14  ;;  %v9413_v29 = vpop.f32.mrf.mxu1  ;;  %v1252_v30 = vmax.f32 %v9392_v17, 0.0  ;;  %v6577_v13 = vld [vmem:[%s15091_s4 + $0x448] sm:$0xff]  ;;  %v6575_v59 = vld [vmem:[%s15091_s4 + $0x438] sm:$0xff] }
 0x11a   : > { %v1096_v24 = vpop.f32.mrf.mxu0  ;;  %1457 = vmatmul.mubr.f32.vlgmr.msra.gmra.mxu0 %v1248_v16  ;;  %v6637_v17 = vld [vmem:[%s15091_s4 + $0x628] sm:$0xff] }
 0x11b   : > { %v1253_v26 = vmax.f32 %v9397_v20, 0.0  ;;  %v1203_v27 = vadd.f32 %v1096_v24, %v854_v19  ;;  %1700 = vmatpush1.msra.mxu0 %v6598_v18  ;;  %v9416_v11 = vadd.f32 %v1215_v62, %v1202_v22  ;;  %v9437_v31 = vpop.f32.mrf.mxu1  ;;  %v6574_v18 = vld [vmem:[%s15091_s4 + $0x430] sm:$0xff]  ;;  %v6573_v22 = vld [vmem:[%s15091_s4 + $0x428] sm:$0xff]  ;;  %v6571_v24 = vld [vmem:[%s15091_s4 + $0x418] sm:$0xff] }
 0x11c   : > { %1701 = vmatprep.subr.mxu0 %v6597_v23  ;;  %v1100_v32 = vpop.f32.mrf.mxu0  ;;  %v6572_v23 = vld [vmem:[%s15091_s4 + $0x420] sm:$0xff]  ;;  %v6639_v20 = vld [vmem:[%s15091_s4 + $0x638] sm:$0xff] }
 0x11d   : > { %v9421_v35 = vadd.f32 %v1219_v2, %v1203_v27  ;;  %v1206_v36 = vadd.f32 %v1100_v32, %v858_v51  ;;  %1702 = vmatpush1.msra.mxu0 %v6596_v25  ;;  %1462 = vmatprep.mubr.f32.mxu0 %v1253_v26  ;;  %v1256_v42 = vmax.f32 %v9416_v11, 0.0  ;;  %v9458_v53 = vpop.f32.mrf.mxu1  ;;  %v6570_v25 = vld [vmem:[%s15091_s4 + $0x410] sm:$0xff]  ;;  %v6569_v27 = vld [vmem:[%s15091_s4 + $0x408] sm:$0xff]  ;;  %v6631_v32 = vld [vmem:[%s15091_s4 + $0x5f8] sm:$0xff] }
 0x11e   : > { %1703 = vmatprep.subr.mxu0 %v6595_v28  ;;  %v1102_v37 = vpop.f32.mrf.mxu0  ;;  %1463 = vmatmul.mubr.f32.gmra.mxu0 %v1252_v30  ;;  %v6568_v28 = vld [vmem:[%s15091_s4 + $0x400] sm:$0xff]  ;;  %v6633_v11 = vld [vmem:[%s15091_s4 + $0x608] sm:$0xff] }
 0x11f   : > { %v1257_v39 = vmax.f32 %v9421_v35, 0.0  ;;  %v1207_v40 = vadd.f32 %v1102_v37, %v860_v34  ;;  %1704 = vmatpush1.msra.mxu0 %v6594_v33  ;;  %v9440_v44 = vadd.f32 %v1215_v62, %v1206_v36  ;;  %v6586_v62 = vld [vmem:[%s15091_s4 + $0x490] sm:$0xff]  ;;  %v6629_v36 = vld [vmem:[%s15091_s4 + $0x5e8] sm:$0xff]  ;;  %v6627_v37 = vld [vmem:[%s15091_s4 + $0x5d8] sm:$0xff] }
 0x120   : > { %1705 = vmatprep.subr.mxu0 %v6593_v21  ;;  %v6630_v33 = vld [vmem:[%s15091_s4 + $0x5f0] sm:$0xff]  ;;  %v6628_v21 = vld [vmem:[%s15091_s4 + $0x5e0] sm:$0xff]  ;;  %v6635_v35 = vld [vmem:[%s15091_s4 + $0x618] sm:$0xff] }
 0x121   : > { %v9445_v46 = vadd.f32 %v1219_v2, %v1207_v40  ;;  %1706 = vmatpush1.msra.mxu0 %v6592_v38  ;;  %1468 = vmatprep.mubr.f32.mxu0 %v1257_v39  ;;  %v1260_v61 = vmax.f32 %v9440_v44, 0.0  ;;  %v9553_v38 = vsub.s32 2, %v9359_v50  ;;  %v6626_v40 = vld [vmem:[%s15091_s4 + $0x5d0] sm:$0xff]  ;;  %v6693_v44 = vld [vmem:[%s15091_s4 + $0x7e8] sm:$0xff] }
 0x122   : > { %1707 = vmatprep.subr.mxu0 %v6591_v41  ;;  %1469 = vmatmul.mubr.f32.gmra.mxu0 %v1256_v42  ;;  %v9559_v41 = vsub.s32 3, %v9359_v50 }
 0x123   : > { %v1261_v52 = vmax.f32 %v9445_v46, 0.0  ;;  %1708 = vmatpush1.msra.mxu0 %v6590_v45  ;;  %v9572_v50 = vrot.slane %v9367_v56, %v9553_v38  ;;  %v6695_v46 = vld [vmem:[%s15091_s4 + $0x7f8] sm:$0xff] }
 0x124   : > { %1709 = vmatprep.subr.mxu0 %v6589_v47  ;;  %v6625_v47 = vld [vmem:[%s15091_s4 + $0x5c8] sm:$0xff] }
 0x125   : > { %1710 = vmatpush1.msra.mxu0 %v6588_v49  ;;  %1474 = vmatprep.mubr.f32.mxu0 %v1261_v52 }
 0x126   : > { %1711 = vmatprep.subr.mxu0 %v6587_v58  ;;  %1475 = vmatmul.mubr.f32.gmra.mxu0 %v1260_v61  ;;  %v6624_v58 = vld [vmem:[%s15091_s4 + $0x5c0] sm:$0xff] }
 0x127   : > { %1712 = vmatpush1.msra.mxu0 %v6586_v62  ;;  %1763 = vmatprep.mubr.f32.mxu0 %v1249_v14  ;;  %v928_v2 = vpop.f32.mrf.mxu1  ;;  %v6576_v14 = vld [vmem:[%s15091_s4 + $0x440] sm:$0xff] }
 0x128   : > { %1713 = vmatprep.subr.mxu0 %v6585_v63  ;;  %v929_v49 = vadd.f32 %v928_v2, %v9372_v60  ;;  %v6623_v63 = vld [vmem:[%s15091_s4 + $0x5b8] sm:$0xff]  ;;  %v9580_v60 = vrot.slane %v9367_v56, %v9559_v41  ;;  %v6622_v2 = vld [vmem:[%s15091_s4 + $0x5b0] sm:$0xff] }
 0x129   : > { %1714 = vmatpush1.msra.mxu0 %v6584_v0  ;;  %v930_v4 = vpop.f32.mrf.mxu1 }
 0x12a   : > { %1715 = vmatprep.subr.mxu0 %v6583_v43  ;;  %v931_v0 = vadd.f32 %v930_v4, %v9376_v1  ;;  %v6620_v1 = vld [vmem:[%s15091_s4 + $0x5a0] sm:$0xff] }
 0x12b   : > { %1716 = vmatpush1.msra.mxu0 %v6582_v3  ;;  %v9491_v9 = vpop.f32.mrf.mxu1 }
 0x12c   : > { %1717 = vmatprep.subr.mxu0 %v6581_v7  ;;  %v6621_v7 = vld [vmem:[%s15091_s4 + $0x5a8] sm:$0xff]  ;;  %v935_v56 = vadd.f32 %v9491_v9, %v9380_v5  ;;  %v6618_v5 = vld [vmem:[%s15091_s4 + $0x590] sm:$0xff] }
 0x12d   : > { %1718 = vmatpush1.msra.mxu0 %v6580_v8  ;;  %v9499_v6 = vpop.f32.mrf.mxu1 }
 0x12e   : > { %1719 = vmatprep.subr.mxu0 %v6579_v10 }
 0x12f   : > { %1720 = vmatpush1.msra.mxu0 %v6578_v54  ;;  %v9513_v19 = vpop.f32.mrf.mxu1  ;;  %v6619_v54 = vld [vmem:[%s15091_s4 + $0x598] sm:$0xff] }
 0x130   : > { %1721 = vmatprep.subr.mxu0 %v6577_v13  ;;  %v937_v13 = vadd.f32 %v9499_v6, %v9386_v12  ;;  %v6616_v12 = vld [vmem:[%s15091_s4 + $0x580] sm:$0xff] }
 0x131   : > { %1722 = vmatpush1.msra.mxu0 %v6576_v14  ;;  %v9527_v51 = vpop.f32.mrf.mxu1 }
 0x132   : > { %1723 = vmatprep.subr.mxu0 %v6575_v59 }
 0x133   : > { %1724 = vmatpush1.msra.mxu0 %v6574_v18  ;;  %v9541_v34 = vpop.f32.mrf.mxu1  ;;  %v6617_v18 = vld [vmem:[%s15091_s4 + $0x588] sm:$0xff] }
 0x134   : > { %1725 = vmatprep.subr.mxu0 %v6573_v22 }
 0x135   : > { %1726 = vmatpush1.msra.mxu0 %v6572_v23  ;;  %v9561_v45 = vpop.f32.mrf.mxu1 }
 0x136   : > { %1727 = vmatprep.subr.mxu0 %v6571_v24 }
 0x137   : > { %1728 = vmatpush1.msra.mxu0 %v6570_v25  ;;  %v6615_v25 = vld [vmem:[%s15091_s4 + $0x578] sm:$0xff] }
 0x138   : > { %1729 = vmatprep.subr.mxu0 %v6569_v27  ;;  %v6662_v27 = vld [vmem:[%s15091_s4 + $0x6f0] sm:$0xff] }
 0x139   : > { %1730 = vmatpush1.msra.mxu0 %v6568_v28  ;;  %v941_v28 = vadd.f32 %v9513_v19, %v9389_v15  ;;  %v6613_v19 = vld [vmem:[%s15091_s4 + $0x568] sm:$0xff] }
 0x13a   : > { %1731 = vmatprep.subr.mxu0 %v6631_v32  ;;  %v943_v32 = vadd.f32 %v9527_v51, %v9413_v29  ;;  %v6660_v51 = vld [vmem:[%s15091_s4 + $0x6e0] sm:$0xff] }
 0x13b   : > { %1732 = vmatpush2.msra.mxu0 %v6630_v33 }
 0x13c   : > { %1733 = vmatprep.subr.mxu0 %v6629_v36  ;;  %v6614_v36 = vld [vmem:[%s15091_s4 + $0x570] sm:$0xff] }
 0x13d   : > { %1734 = vmatpush2.msra.mxu0 %v6628_v21  ;;  %v6661_v21 = vld [vmem:[%s15091_s4 + $0x6e8] sm:$0xff] }
 0x13e   : > { %1735 = vmatprep.subr.mxu0 %v6627_v37 }
 0x13f   : > { %1736 = vmatpush2.msra.mxu0 %v6626_v40  ;;  %v1171_v62 = vpop.f32.mrf.mxu1 }
 0x140   : > { %1737 = vmatprep.subr.mxu0 %v6625_v47  ;;  %v1196_v43 = vadd.f32 %v1171_v62, %v929_v49  ;;  %v6612_v49 = vld [vmem:[%s15091_s4 + $0x560] sm:$0xff]  ;;  %v6611_v62 = vld [vmem:[%s15091_s4 + $0x558] sm:$0xff] }
 0x141   : > { %1738 = vmatpush2.msra.mxu0 %v6624_v58  ;;  %v1173_v3 = vpop.f32.mrf.mxu1 }
 0x142   : > { %1739 = vmatprep.subr.mxu0 %v6623_v63  ;;  %v1197_v8 = vadd.f32 %v1173_v3, %v931_v0  ;;  %v9594_v4 = vadd.f32 %v9572_v50, %v1196_v43  ;;  %v6659_v63 = vld [vmem:[%s15091_s4 + $0x6d8] sm:$0xff]  ;;  %v949_v0 = vadd.f32 %v9561_v45, %v9458_v53  ;;  %v947_v3 = vadd.f32 %v9541_v34, %v9437_v31  ;;  %v6658_v53 = vld [vmem:[%s15091_s4 + $0x6d0] sm:$0xff]  ;;  %v6609_v45 = vld [vmem:[%s15091_s4 + $0x548] sm:$0xff] }
 0x143   : > { %1740 = vmatpush2.msra.mxu0 %v6622_v2  ;;  %v1177_v10 = vpop.f32.mrf.mxu1  ;;  %v6610_v2 = vld [vmem:[%s15091_s4 + $0x550] sm:$0xff] }
 0x144   : > { %v9602_v14 = vadd.f32 %v9580_v60, %v1197_v8  ;;  %1741 = vmatprep.subr.mxu0 %v6621_v7  ;;  %v1200_v9 = vadd.f32 %v1177_v10, %v935_v56  ;;  %v1250_v6 = vmax.f32 %v9594_v4, 0.0  ;;  %v6657_v56 = vld [vmem:[%s15091_s4 + $0x6c8] sm:$0xff]  ;;  %v6608_v10 = vld [vmem:[%s15091_s4 + $0x540] sm:$0xff] }
 0x145   : > { %1742 = vmatpush2.msra.mxu0 %v6620_v1  ;;  %v1179_v59 = vpop.f32.mrf.mxu1  ;;  %v6757_v4 = vld [vmem:[%s15089_s2 + $0x5e8] sm:$0xff] }
 0x146   : > { %v1251_v22 = vmax.f32 %v9602_v14, 0.0  ;;  %1743 = vmatprep.subr.mxu0 %v6619_v54  ;;  %v1201_v23 = vadd.f32 %v1179_v59, %v937_v13  ;;  %v9637_v15 = vadd.f32 %v9572_v50, %v1200_v9  ;;  %v6656_v13 = vld [vmem:[%s15091_s4 + $0x6c0] sm:$0xff]  ;;  %v6607_v9 = vld [vmem:[%s15091_s4 + $0x538] sm:$0xff] }
 0x147   : > { %1744 = vmatpush2.msra.mxu0 %v6618_v5  ;;  %v1183_v24 = vpop.f32.mrf.mxu1  ;;  %v6655_v59 = vld [vmem:[%s15091_s4 + $0x6b8] sm:$0xff] }
 0x148   : > { %v9626_v33 = vadd.f32 %v9580_v60, %v1201_v23  ;;  %1745 = vmatprep.subr.mxu0 %v6617_v18  ;;  %1545 = vmatprep.mubr.f32.mxu1 %v1251_v22  ;;  %v1204_v40 = vadd.f32 %v1183_v24, %v941_v28  ;;  %v1254_v7 = vmax.f32 %v9637_v15, 0.0  ;;  %v6606_v18 = vld [vmem:[%s15091_s4 + $0x530] sm:$0xff]  ;;  %v6604_v28 = vld [vmem:[%s15091_s4 + $0x520] sm:$0xff]  ;;  %v6643_v14 = vld [vmem:[%s15091_s4 + $0x658] sm:$0xff] }
 0x149   : > { %1746 = vmatpush2.msra.mxu0 %v6616_v12  ;;  %v1185_v29 = vpop.f32.mrf.mxu1  ;;  %1546 = vmatmul.mubr.f32.vlgmr.msra.gmra.mxu1 %v1250_v6  ;;  %v6605_v12 = vld [vmem:[%s15091_s4 + $0x528] sm:$0xff]  ;;  %v6758_v15 = vld [vmem:[%s15089_s2 + $0x5f0] sm:$0xff] }
 0x14a   : > { %v1255_v37 = vmax.f32 %v9626_v33, 0.0  ;;  %1747 = vmatprep.subr.mxu0 %v6615_v25  ;;  %v1205_v47 = vadd.f32 %v1185_v29, %v943_v32  ;;  %1789 = vmatpush1.msra.mxu1 %v6662_v27  ;;  %v9677_v1 = vadd.f32 %v9572_v50, %v1204_v40  ;;  %v6653_v27 = vld [vmem:[%s15091_s4 + $0x6a8] sm:$0xff]  ;;  %v6603_v32 = vld [vmem:[%s15091_s4 + $0x518] sm:$0xff]  ;;  %v6756_v33 = vld [vmem:[%s15089_s2 + $0x5e0] sm:$0xff] }
 0x14b   : > { %1748 = vmatpush2.msra.mxu0 %v6614_v36  ;;  %1790 = vmatprep.subr.mxu1 %v6661_v21  ;;  %v1189_v58 = vpop.f32.mrf.mxu1  ;;  %v6651_v36 = vld [vmem:[%s15091_s4 + $0x698] sm:$0xff]  ;;  %v6602_v21 = vld [vmem:[%s15091_s4 + $0x510] sm:$0xff]  ;;  %v6649_v40 = vld [vmem:[%s15091_s4 + $0x688] sm:$0xff] }
 0x14c   : > { %v9660_v43 = vadd.f32 %v9580_v60, %v1205_v47  ;;  %1749 = vmatprep.subr.mxu0 %v6613_v19  ;;  %1791 = vmatpush1.msra.mxu1 %v6660_v51  ;;  %v1208_v54 = vadd.f32 %v1189_v58, %v947_v3  ;;  %v1258_v23 = vmax.f32 %v9677_v1, 0.0  ;;  %v6650_v19 = vld [vmem:[%s15091_s4 + $0x690] sm:$0xff]  ;;  %v6601_v51 = vld [vmem:[%s15091_s4 + $0x508] sm:$0xff]  ;;  %v6600_v47 = vld [vmem:[%s15091_s4 + $0x500] sm:$0xff] }
 0x14d   : > { %1750 = vmatpush2.msra.mxu0 %v6612_v49  ;;  %1551 = vmatprep.mubr.f32.mxu1 %v1255_v37  ;;  %v1191_v8 = vpop.f32.mrf.mxu1  ;;  %v6648_v49 = vld [vmem:[%s15091_s4 + $0x680] sm:$0xff]  ;;  %v6647_v58 = vld [vmem:[%s15091_s4 + $0x678] sm:$0xff]  ;;  %v6690_v3 = vld [vmem:[%s15091_s4 + $0x7d0] sm:$0xff] }
 0x14e   : > { %v1259_v31 = vmax.f32 %v9660_v43, 0.0  ;;  %1751 = vmatprep.subr.mxu0 %v6611_v62  ;;  %1792 = vmatprep.subr.mxu1 %v6659_v63  ;;  %v1209_v34 = vadd.f32 %v1191_v8, %v949_v0  ;;  %v9713_v24 = vadd.f32 %v9572_v50, %v1208_v54  ;;  %v6652_v50 = vld [vmem:[%s15091_s4 + $0x6a0] sm:$0xff]  ;;  %v6646_v62 = vld [vmem:[%s15091_s4 + $0x670] sm:$0xff]  ;;  %v6645_v63 = vld [vmem:[%s15091_s4 + $0x668] sm:$0xff] }
 0x14f   : > { %1552 = vmatmul.mubr.f32.gmra.mxu1 %v1254_v7  ;;  %1752 = vmatpush2.msra.mxu0 %v6610_v2  ;;  %v6644_v0 = vld [vmem:[%s15091_s4 + $0x660] sm:$0xff]  ;;  %v6691_v2 = vld [vmem:[%s15091_s4 + $0x7d8] sm:$0xff]  ;;  %v6689_v8 = vld [vmem:[%s15091_s4 + $0x7c8] sm:$0xff] }
 0x150   : > { %v9692_v5 = vadd.f32 %v9580_v60, %v1209_v34  ;;  %1793 = vmatpush1.msra.mxu1 %v6658_v53  ;;  %1753 = vmatprep.subr.mxu0 %v6609_v45  ;;  %v6654_v60 = vld [vmem:[%s15091_s4 + $0x6b0] sm:$0xff]  ;;  %v1262_v29 = vmax.f32 %v9713_v24, 0.0  ;;  %v6688_v53 = vld [vmem:[%s15091_s4 + $0x7c0] sm:$0xff]  ;;  %v6687_v45 = vld [vmem:[%s15091_s4 + $0x7b8] sm:$0xff] }
 0x151   : > { %1794 = vmatprep.subr.mxu1 %v6657_v56  ;;  %1754 = vmatpush2.msra.mxu0 %v6608_v10  ;;  %v6686_v34 = vld [vmem:[%s15091_s4 + $0x7b0] sm:$0xff]  ;;  %v6685_v56 = vld [vmem:[%s15091_s4 + $0x7a8] sm:$0xff]  ;;  %v6684_v10 = vld [vmem:[%s15091_s4 + $0x7a0] sm:$0xff] }
 0x152   : > { %1795 = vmatpush1.msra.mxu1 %v6656_v13  ;;  %1557 = vmatprep.mubr.f32.mxu1 %v1259_v31  ;;  %v1263_v25 = vmax.f32 %v9692_v5, 0.0  ;;  %v6683_v54 = vld [vmem:[%s15091_s4 + $0x798] sm:$0xff]  ;;  %v6682_v13 = vld [vmem:[%s15091_s4 + $0x790] sm:$0xff] }
 0x153   : > { %1755 = vmatprep.subr.mxu0 %v6607_v9  ;;  %1796 = vmatprep.subr.mxu1 %v6655_v59  ;;  %v6681_v9 = vld [vmem:[%s15091_s4 + $0x788] sm:$0xff]  ;;  %v6680_v59 = vld [vmem:[%s15091_s4 + $0x780] sm:$0xff]  ;;  %v6755_v43 = vld [vmem:[%s15089_s2 + $0x5d8] sm:$0xff] }
 0x154   : > { %1558 = vmatmul.mubr.f32.gmra.mxu1 %v1258_v23  ;;  %1756 = vmatpush2.msra.mxu0 %v6606_v18  ;;  %v6679_v18 = vld [vmem:[%s15091_s4 + $0x778] sm:$0xff]  ;;  %v6754_v1 = vld [vmem:[%s15089_s2 + $0x5d0] sm:$0xff] }
 0x155   : > { %1797 = vmatpush1.msra.mxu1 %v6654_v60  ;;  %1757 = vmatprep.subr.mxu0 %v6605_v12  ;;  %v6678_v60 = vld [vmem:[%s15091_s4 + $0x770] sm:$0xff]  ;;  %v6677_v12 = vld [vmem:[%s15091_s4 + $0x768] sm:$0xff]  ;;  %v6751_v5 = vld [vmem:[%s15089_s2 + $0x5b8] sm:$0xff] }
 0x156   : > { %1798 = vmatprep.subr.mxu1 %v6653_v27  ;;  %1758 = vmatpush2.msra.mxu0 %v6604_v28  ;;  %v6676_v27 = vld [vmem:[%s15091_s4 + $0x760] sm:$0xff]  ;;  %v6675_v28 = vld [vmem:[%s15091_s4 + $0x758] sm:$0xff]  ;;  %v6750_v24 = vld [vmem:[%s15089_s2 + $0x5b0] sm:$0xff] }
 0x157   : > { %1799 = vmatpush1.msra.mxu1 %v6652_v50  ;;  %1563 = vmatprep.mubr.f32.mxu1 %v1263_v25  ;;  %v6674_v50 = vld [vmem:[%s15091_s4 + $0x750] sm:$0xff] }
 0x158   : > { %1759 = vmatprep.subr.mxu0 %v6603_v32  ;;  %1800 = vmatprep.subr.mxu1 %v6651_v36  ;;  %v6673_v32 = vld [vmem:[%s15091_s4 + $0x748] sm:$0xff]  ;;  %v6672_v36 = vld [vmem:[%s15091_s4 + $0x740] sm:$0xff] }
 0x159   : > { %1564 = vmatmul.mubr.f32.gmra.mxu1 %v1262_v29  ;;  %1760 = vmatpush2.msra.mxu0 %v6602_v21  ;;  %v6671_v21 = vld [vmem:[%s15091_s4 + $0x738] sm:$0xff] }
 0x15a   : > { %1801 = vmatpush1.msra.mxu1 %v6650_v19  ;;  %1761 = vmatprep.subr.mxu0 %v6601_v51  ;;  %v6670_v19 = vld [vmem:[%s15091_s4 + $0x730] sm:$0xff]  ;;  %v6669_v51 = vld [vmem:[%s15091_s4 + $0x728] sm:$0xff] }
 0x15b   : > { %1802 = vmatprep.subr.mxu1 %v6649_v40  ;;  %1852 = vmatprep.mubr.f32.mxu1 %v1251_v22  ;;  %v6642_v22 = vld [vmem:[%s15091_s4 + $0x650] sm:$0xff]  ;;  %v6668_v40 = vld [vmem:[%s15091_s4 + $0x720] sm:$0xff] }
 0x15c   : > { %1762 = vmatpush2.msra.mxu0 %v6600_v47  ;;  %1803 = vmatpush1.msra.mxu1 %v6648_v49  ;;  %v6667_v47 = vld [vmem:[%s15091_s4 + $0x718] sm:$0xff]  ;;  %v6666_v49 = vld [vmem:[%s15091_s4 + $0x710] sm:$0xff] }
 0x15d   : > { %1764 = vmatmul.mubr.f32.vlgmr.msra.gmra.mxu0 %v1248_v16  ;;  %1804 = vmatprep.subr.mxu1 %v6647_v58  ;;  %v6640_v16 = vld [vmem:[%s15091_s4 + $0x640] sm:$0xff]  ;;  %v6665_v58 = vld [vmem:[%s15091_s4 + $0x708] sm:$0xff] }
 0x15e   : > { %1769 = vmatprep.mubr.f32.mxu0 %v1253_v26  ;;  %1805 = vmatpush1.msra.mxu1 %v6646_v62  ;;  %v6638_v26 = vld [vmem:[%s15091_s4 + $0x630] sm:$0xff]  ;;  %v6664_v62 = vld [vmem:[%s15091_s4 + $0x700] sm:$0xff] }
 0x15f   : > { %1806 = vmatprep.subr.mxu1 %v6645_v63  ;;  %2325 = vmatprep.subr.mxu0 %v6757_v4  ;;  %v6744_v63 = vld [vmem:[%s15089_s2 + $0x580] sm:$0xff]  ;;  %v6697_v4 = vld [vmem:[%s15089_s2 + $0x408] sm:$0xff] }
 0x160   : > { %1807 = vmatpush1.msra.mxu1 %v6644_v0  ;;  %2326 = vmatpush1.msra.mxu0 %v6756_v33  ;;  %v6746_v0 = vld [vmem:[%s15089_s2 + $0x590] sm:$0xff]  ;;  %v6696_v33 = vld [vmem:[%s15089_s2 + $0x400] sm:$0xff] }
 0x161   : > { %1770 = vmatmul.mubr.f32.gmra.mxu0 %v1252_v30  ;;  %1808 = vmatprep.subr.mxu1 %v6643_v14  ;;  %v6636_v30 = vld [vmem:[%s15091_s4 + $0x620] sm:$0xff]  ;;  %v6741_v14 = vld [vmem:[%s15089_s2 + $0x568] sm:$0xff] }
 0x162   : > { %1775 = vmatprep.mubr.f32.mxu0 %v1257_v39  ;;  %1809 = vmatpush1.msra.mxu1 %v6642_v22  ;;  %v6634_v39 = vld [vmem:[%s15091_s4 + $0x610] sm:$0xff]  ;;  %v6743_v22 = vld [vmem:[%s15089_s2 + $0x578] sm:$0xff] }
 0x163   : > { %1810 = vmatprep.subr.mxu1 %v6641_v48  ;;  %v6740_v48 = vld [vmem:[%s15089_s2 + $0x560] sm:$0xff] }
 0x164   : > { %1811 = vmatpush1.msra.mxu1 %v6640_v16  ;;  %v6742_v16 = vld [vmem:[%s15089_s2 + $0x570] sm:$0xff] }
 0x165   : > { %1776 = vmatmul.mubr.f32.gmra.mxu0 %v1256_v42  ;;  %1812 = vmatprep.subr.mxu1 %v6639_v20  ;;  %v6632_v42 = vld [vmem:[%s15091_s4 + $0x600] sm:$0xff]  ;;  %v6737_v20 = vld [vmem:[%s15089_s2 + $0x548] sm:$0xff] }
 0x166   : > { %1781 = vmatprep.mubr.f32.mxu0 %v1261_v52  ;;  %1813 = vmatpush1.msra.mxu1 %v6638_v26  ;;  %v6694_v52 = vld [vmem:[%s15091_s4 + $0x7f0] sm:$0xff]  ;;  %v6739_v26 = vld [vmem:[%s15089_s2 + $0x558] sm:$0xff] }
 0x167   : > { %1814 = vmatprep.subr.mxu1 %v6637_v17  ;;  %v6736_v17 = vld [vmem:[%s15089_s2 + $0x540] sm:$0xff] }
 0x168   : > { %1815 = vmatpush1.msra.mxu1 %v6636_v30  ;;  %v6738_v30 = vld [vmem:[%s15089_s2 + $0x550] sm:$0xff] }
 0x169   : > { %1782 = vmatmul.mubr.f32.gmra.mxu0 %v1260_v61  ;;  %1816 = vmatprep.subr.mxu1 %v6635_v35  ;;  %v6692_v61 = vld [vmem:[%s15091_s4 + $0x7e0] sm:$0xff]  ;;  %v6733_v35 = vld [vmem:[%s15089_s2 + $0x528] sm:$0xff] }
 0x16a   : > { %1817 = vmatpush1.msra.mxu1 %v6634_v39  ;;  %v6735_v39 = vld [vmem:[%s15089_s2 + $0x538] sm:$0xff] }
 0x16b   : > { %1818 = vmatprep.subr.mxu1 %v6633_v11  ;;  %v6732_v11 = vld [vmem:[%s15089_s2 + $0x520] sm:$0xff] }
 0x16c   : > { %1819 = vmatpush1.msra.mxu1 %v6632_v42  ;;  %v6734_v42 = vld [vmem:[%s15089_s2 + $0x530] sm:$0xff] }
 0x16d   : > { %1820 = vmatprep.subr.mxu1 %v6695_v46  ;;  %v6729_v46 = vld [vmem:[%s15089_s2 + $0x508] sm:$0xff] }
 0x16e   : > { %1821 = vmatpush2.msra.mxu1 %v6694_v52  ;;  %v6731_v52 = vld [vmem:[%s15089_s2 + $0x518] sm:$0xff] }
 0x16f   : > { %1822 = vmatprep.subr.mxu1 %v6693_v44  ;;  %v6728_v44 = vld [vmem:[%s15089_s2 + $0x500] sm:$0xff] }
 0x170   : > { %1823 = vmatpush2.msra.mxu1 %v6692_v61  ;;  %v6730_v61 = vld [vmem:[%s15089_s2 + $0x510] sm:$0xff] }
 0x171   : > { %1824 = vmatprep.subr.mxu1 %v6691_v2  ;;  %v6725_v2 = vld [vmem:[%s15089_s2 + $0x4e8] sm:$0xff] }
 0x172   : > { %1825 = vmatpush2.msra.mxu1 %v6690_v3  ;;  %v6727_v3 = vld [vmem:[%s15089_s2 + $0x4f8] sm:$0xff] }
 0x173   : > { %1826 = vmatprep.subr.mxu1 %v6689_v8  ;;  %v6724_v8 = vld [vmem:[%s15089_s2 + $0x4e0] sm:$0xff] }
 0x174   : > { %1827 = vmatpush2.msra.mxu1 %v6688_v53  ;;  %v6726_v53 = vld [vmem:[%s15089_s2 + $0x4f0] sm:$0xff] }
 0x175   : > { %1828 = vmatprep.subr.mxu1 %v6687_v45  ;;  %v6721_v45 = vld [vmem:[%s15089_s2 + $0x4c8] sm:$0xff] }
 0x176   : > { %1829 = vmatpush2.msra.mxu1 %v6686_v34  ;;  %v6723_v34 = vld [vmem:[%s15089_s2 + $0x4d8] sm:$0xff] }
 0x177   : > { %1830 = vmatprep.subr.mxu1 %v6685_v56  ;;  %v6720_v56 = vld [vmem:[%s15089_s2 + $0x4c0] sm:$0xff] }
 0x178   : > { %1831 = vmatpush2.msra.mxu1 %v6684_v10  ;;  %v6722_v10 = vld [vmem:[%s15089_s2 + $0x4d0] sm:$0xff] }
 0x179   : > { %1832 = vmatprep.subr.mxu1 %v6683_v54  ;;  %v6717_v54 = vld [vmem:[%s15089_s2 + $0x4a8] sm:$0xff] }
 0x17a   : > { %1833 = vmatpush2.msra.mxu1 %v6682_v13  ;;  %v6719_v13 = vld [vmem:[%s15089_s2 + $0x4b8] sm:$0xff] }
 0x17b   : > { %1834 = vmatprep.subr.mxu1 %v6681_v9  ;;  %v6716_v9 = vld [vmem:[%s15089_s2 + $0x4a0] sm:$0xff] }
 0x17c   : > { %1835 = vmatpush2.msra.mxu1 %v6680_v59  ;;  %v6718_v59 = vld [vmem:[%s15089_s2 + $0x4b0] sm:$0xff] }
 0x17d   : > { %1836 = vmatprep.subr.mxu1 %v6679_v18  ;;  %v6713_v18 = vld [vmem:[%s15089_s2 + $0x488] sm:$0xff] }
 0x17e   : > { %1837 = vmatpush2.msra.mxu1 %v6678_v60  ;;  %v6715_v60 = vld [vmem:[%s15089_s2 + $0x498] sm:$0xff] }
 0x17f   : > { %1838 = vmatprep.subr.mxu1 %v6677_v12  ;;  %v6712_v12 = vld [vmem:[%s15089_s2 + $0x480] sm:$0xff] }
 0x180   : > { %1839 = vmatpush2.msra.mxu1 %v6676_v27  ;;  %v6714_v27 = vld [vmem:[%s15089_s2 + $0x490] sm:$0xff] }
 0x181   : > { %1840 = vmatprep.subr.mxu1 %v6675_v28  ;;  %v6709_v28 = vld [vmem:[%s15089_s2 + $0x468] sm:$0xff] }
 0x182   : > { %1841 = vmatpush2.msra.mxu1 %v6674_v50  ;;  %v6711_v50 = vld [vmem:[%s15089_s2 + $0x478] sm:$0xff] }
 0x183   : > { %1842 = vmatprep.subr.mxu1 %v6673_v32  ;;  %v6708_v32 = vld [vmem:[%s15089_s2 + $0x460] sm:$0xff] }
 0x184   : > { %1843 = vmatpush2.msra.mxu1 %v6672_v36  ;;  %v6710_v36 = vld [vmem:[%s15089_s2 + $0x470] sm:$0xff] }
 0x185   : > { %1844 = vmatprep.subr.mxu1 %v6671_v21  ;;  %v6705_v21 = vld [vmem:[%s15089_s2 + $0x448] sm:$0xff] }
 0x186   : > { %1845 = vmatpush2.msra.mxu1 %v6670_v19  ;;  %v6707_v19 = vld [vmem:[%s15089_s2 + $0x458] sm:$0xff] }
 0x187   : > { %1846 = vmatprep.subr.mxu1 %v6669_v51  ;;  %v6704_v51 = vld [vmem:[%s15089_s2 + $0x440] sm:$0xff] }
 0x188   : > { %1847 = vmatpush2.msra.mxu1 %v6668_v40  ;;  %v6706_v40 = vld [vmem:[%s15089_s2 + $0x450] sm:$0xff] }
 0x189   : > { %1848 = vmatprep.subr.mxu1 %v6667_v47  ;;  %v6701_v47 = vld [vmem:[%s15089_s2 + $0x428] sm:$0xff] }
 0x18a   : > { %1849 = vmatpush2.msra.mxu1 %v6666_v49  ;;  %v6703_v49 = vld [vmem:[%s15089_s2 + $0x438] sm:$0xff] }
 0x18b   : > { %1850 = vmatprep.subr.mxu1 %v6665_v58  ;;  %v6700_v58 = vld [vmem:[%s15089_s2 + $0x420] sm:$0xff] }
 0x18c   : > { %1851 = vmatpush2.msra.mxu1 %v6664_v62  ;;  %v6702_v62 = vld [vmem:[%s15089_s2 + $0x430] sm:$0xff] }
 0x18d   : > { %1853 = vmatmul.mubr.f32.vlgmr.msra.gmra.mxu1 %v1250_v6  ;;  %v6759_v6 = vld [vmem:[%s15089_s2 + $0x5f8] sm:$0xff] }
 0x18e   : > { %1858 = vmatprep.mubr.f32.mxu1 %v1255_v37  ;;  %2414 = vmatprep.subr.mxu1 %v6759_v6  ;;  %v6753_v37 = vld [vmem:[%s15089_s2 + $0x5c8] sm:$0xff]  ;;  %v6699_v6 = vld [vmem:[%s15089_s2 + $0x418] sm:$0xff] }
 0x18f   : > { %2415 = vmatpush1.msra.mxu1 %v6758_v15  ;;  %2327 = vmatprep.subr.mxu0 %v6753_v37  ;;  %v6698_v15 = vld [vmem:[%s15089_s2 + $0x410] sm:$0xff]  ;;  %v6821_v37 = vld [vmem:[%s15089_s2 + $0x7e8] sm:$0xff] }
 0x190   : > { %2416 = vmatprep.subr.mxu1 %v6755_v43  ;;  %v6823_v43 = vld [vmem:[%s15089_s2 + $0x7f8] sm:$0xff] }
 0x191   : > { %1859 = vmatmul.mubr.f32.gmra.mxu1 %v1254_v7  ;;  %v6752_v7 = vld [vmem:[%s15089_s2 + $0x5c0] sm:$0xff] }
 0x192   : > { %1864 = vmatprep.mubr.f32.mxu1 %v1259_v31  ;;  %2328 = vmatpush1.msra.mxu0 %v6752_v7  ;;  %v6749_v31 = vld [vmem:[%s15089_s2 + $0x5a8] sm:$0xff]  ;;  %v6820_v7 = vld [vmem:[%s15089_s2 + $0x7e0] sm:$0xff] }
 0x193   : > { %2417 = vmatpush1.msra.mxu1 %v6754_v1  ;;  %2329 = vmatprep.subr.mxu0 %v6749_v31  ;;  %v6822_v1 = vld [vmem:[%s15089_s2 + $0x7f0] sm:$0xff]  ;;  %v6817_v31 = vld [vmem:[%s15089_s2 + $0x7c8] sm:$0xff] }
 0x194   : > { %2418 = vmatprep.subr.mxu1 %v6751_v5  ;;  %v6819_v5 = vld [vmem:[%s15089_s2 + $0x7d8] sm:$0xff] }
 0x195   : > { %1865 = vmatmul.mubr.f32.gmra.mxu1 %v1258_v23  ;;  %v6748_v23 = vld [vmem:[%s15089_s2 + $0x5a0] sm:$0xff] }
 0x196   : > { %1870 = vmatprep.mubr.f32.mxu1 %v1263_v25  ;;  %v6745_v25 = vld [vmem:[%s15089_s2 + $0x588] sm:$0xff]  ;;  %2330 = vmatpush1.msra.mxu0 %v6748_v23  ;;  %v6816_v23 = vld [vmem:[%s15089_s2 + $0x7c0] sm:$0xff] }
 0x197   : > { %2419 = vmatpush1.msra.mxu1 %v6750_v24  ;;  %2331 = vmatprep.subr.mxu0 %v6745_v25  ;;  %v6818_v24 = vld [vmem:[%s15089_s2 + $0x7d0] sm:$0xff]  ;;  %v6813_v25 = vld [vmem:[%s15089_s2 + $0x7a8] sm:$0xff] }
 0x198   : > { %2332 = vmatpush1.msra.mxu0 %v6744_v63  ;;  %v6812_v63 = vld [vmem:[%s15089_s2 + $0x7a0] sm:$0xff] }
 0x199   : > { %1871 = vmatmul.mubr.f32.gmra.mxu1 %v1262_v29  ;;  %v6747_v29 = vld [vmem:[%s15089_s2 + $0x598] sm:$0xff]  ;;  %2333 = vmatprep.subr.mxu0 %v6741_v14  ;;  %v6809_v14 = vld [vmem:[%s15089_s2 + $0x788] sm:$0xff] }
 0x19a   : > { %2420 = vmatprep.subr.mxu1 %v6747_v29  ;;  %2334 = vmatpush1.msra.mxu0 %v6740_v48  ;;  %v6815_v29 = vld [vmem:[%s15089_s2 + $0x7b8] sm:$0xff]  ;;  %v6808_v48 = vld [vmem:[%s15089_s2 + $0x780] sm:$0xff] }
 0x19b   : > { %2421 = vmatpush1.msra.mxu1 %v6746_v0  ;;  %2335 = vmatprep.subr.mxu0 %v6737_v20  ;;  %v6814_v0 = vld [vmem:[%s15089_s2 + $0x7b0] sm:$0xff]  ;;  %v6805_v20 = vld [vmem:[%s15089_s2 + $0x768] sm:$0xff] }
 0x19c   : > { %2422 = vmatprep.subr.mxu1 %v6743_v22  ;;  %2336 = vmatpush1.msra.mxu0 %v6736_v17  ;;  %v6811_v22 = vld [vmem:[%s15089_s2 + $0x798] sm:$0xff]  ;;  %v6804_v17 = vld [vmem:[%s15089_s2 + $0x760] sm:$0xff] }
 0x19d   : > { %2423 = vmatpush1.msra.mxu1 %v6742_v16  ;;  %2337 = vmatprep.subr.mxu0 %v6733_v35  ;;  %v6810_v16 = vld [vmem:[%s15089_s2 + $0x790] sm:$0xff]  ;;  %v6801_v35 = vld [vmem:[%s15089_s2 + $0x748] sm:$0xff] }
 0x19e   : > { %2424 = vmatprep.subr.mxu1 %v6739_v26  ;;  %2338 = vmatpush1.msra.mxu0 %v6732_v11  ;;  %v6807_v26 = vld [vmem:[%s15089_s2 + $0x778] sm:$0xff]  ;;  %v6800_v11 = vld [vmem:[%s15089_s2 + $0x740] sm:$0xff] }
 0x19f   : > { %2425 = vmatpush1.msra.mxu1 %v6738_v30  ;;  %2339 = vmatprep.subr.mxu0 %v6729_v46  ;;  %v6806_v30 = vld [vmem:[%s15089_s2 + $0x770] sm:$0xff]  ;;  %v6797_v46 = vld [vmem:[%s15089_s2 + $0x728] sm:$0xff] }
 0x1a0   : > { %2426 = vmatprep.subr.mxu1 %v6735_v39  ;;  %2340 = vmatpush1.msra.mxu0 %v6728_v44  ;;  %v6803_v39 = vld [vmem:[%s15089_s2 + $0x758] sm:$0xff]  ;;  %v6796_v44 = vld [vmem:[%s15089_s2 + $0x720] sm:$0xff] }
 0x1a1   : > { %2427 = vmatpush1.msra.mxu1 %v6734_v42  ;;  %2341 = vmatprep.subr.mxu0 %v6725_v2  ;;  %v6802_v42 = vld [vmem:[%s15089_s2 + $0x750] sm:$0xff]  ;;  %v6793_v2 = vld [vmem:[%s15089_s2 + $0x708] sm:$0xff] }
 0x1a2   : > { %2428 = vmatprep.subr.mxu1 %v6731_v52  ;;  %2342 = vmatpush1.msra.mxu0 %v6724_v8  ;;  %v6799_v52 = vld [vmem:[%s15089_s2 + $0x738] sm:$0xff]  ;;  %v6792_v8 = vld [vmem:[%s15089_s2 + $0x700] sm:$0xff] }
 0x1a3   : > { %2429 = vmatpush1.msra.mxu1 %v6730_v61  ;;  %2343 = vmatprep.subr.mxu0 %v6721_v45  ;;  %v6798_v61 = vld [vmem:[%s15089_s2 + $0x730] sm:$0xff]  ;;  %v6789_v45 = vld [vmem:[%s15089_s2 + $0x6e8] sm:$0xff] }
 0x1a4   : > { %2430 = vmatprep.subr.mxu1 %v6727_v3  ;;  %2344 = vmatpush1.msra.mxu0 %v6720_v56  ;;  %v6795_v3 = vld [vmem:[%s15089_s2 + $0x718] sm:$0xff]  ;;  %v6788_v56 = vld [vmem:[%s15089_s2 + $0x6e0] sm:$0xff] }
 0x1a5   : > { %2431 = vmatpush1.msra.mxu1 %v6726_v53  ;;  %2345 = vmatprep.subr.mxu0 %v6717_v54  ;;  %v6794_v53 = vld [vmem:[%s15089_s2 + $0x710] sm:$0xff]  ;;  %v6785_v54 = vld [vmem:[%s15089_s2 + $0x6c8] sm:$0xff] }
 0x1a6   : > { %2432 = vmatprep.subr.mxu1 %v6723_v34  ;;  %2346 = vmatpush1.msra.mxu0 %v6716_v9  ;;  %v6791_v34 = vld [vmem:[%s15089_s2 + $0x6f8] sm:$0xff]  ;;  %v6784_v9 = vld [vmem:[%s15089_s2 + $0x6c0] sm:$0xff] }
 0x1a7   : > { %2433 = vmatpush1.msra.mxu1 %v6722_v10  ;;  %2347 = vmatprep.subr.mxu0 %v6713_v18  ;;  %v6790_v10 = vld [vmem:[%s15089_s2 + $0x6f0] sm:$0xff]  ;;  %v6781_v18 = vld [vmem:[%s15089_s2 + $0x6a8] sm:$0xff] }
 0x1a8   : > { %2434 = vmatprep.subr.mxu1 %v6719_v13  ;;  %2348 = vmatpush1.msra.mxu0 %v6712_v12  ;;  %v6787_v13 = vld [vmem:[%s15089_s2 + $0x6d8] sm:$0xff]  ;;  %v6780_v12 = vld [vmem:[%s15089_s2 + $0x6a0] sm:$0xff] }
 0x1a9   : > { %2435 = vmatpush1.msra.mxu1 %v6718_v59  ;;  %2349 = vmatprep.subr.mxu0 %v6709_v28  ;;  %v6786_v59 = vld [vmem:[%s15089_s2 + $0x6d0] sm:$0xff]  ;;  %v6777_v28 = vld [vmem:[%s15089_s2 + $0x688] sm:$0xff] }
 0x1aa   : > { %2436 = vmatprep.subr.mxu1 %v6715_v60  ;;  %2350 = vmatpush1.msra.mxu0 %v6708_v32  ;;  %v6783_v60 = vld [vmem:[%s15089_s2 + $0x6b8] sm:$0xff]  ;;  %v6776_v32 = vld [vmem:[%s15089_s2 + $0x680] sm:$0xff] }
 0x1ab   : > { %2437 = vmatpush1.msra.mxu1 %v6714_v27  ;;  %2351 = vmatprep.subr.mxu0 %v6705_v21  ;;  %v6782_v27 = vld [vmem:[%s15089_s2 + $0x6b0] sm:$0xff]  ;;  %v6773_v21 = vld [vmem:[%s15089_s2 + $0x668] sm:$0xff] }
 0x1ac   : > { %2438 = vmatprep.subr.mxu1 %v6711_v50  ;;  %2352 = vmatpush1.msra.mxu0 %v6704_v51  ;;  %v6779_v50 = vld [vmem:[%s15089_s2 + $0x698] sm:$0xff]  ;;  %v6772_v51 = vld [vmem:[%s15089_s2 + $0x660] sm:$0xff] }
 0x1ad   : > { %2439 = vmatpush1.msra.mxu1 %v6710_v36  ;;  %2353 = vmatprep.subr.mxu0 %v6701_v47  ;;  %v6778_v36 = vld [vmem:[%s15089_s2 + $0x690] sm:$0xff]  ;;  %v6769_v47 = vld [vmem:[%s15089_s2 + $0x648] sm:$0xff] }
 0x1ae   : > { %2440 = vmatprep.subr.mxu1 %v6707_v19  ;;  %2354 = vmatpush1.msra.mxu0 %v6700_v58  ;;  %v6775_v19 = vld [vmem:[%s15089_s2 + $0x678] sm:$0xff]  ;;  %v6768_v58 = vld [vmem:[%s15089_s2 + $0x640] sm:$0xff] }
 0x1af   : > { %2441 = vmatpush1.msra.mxu1 %v6706_v40  ;;  %2355 = vmatprep.subr.mxu0 %v6697_v4  ;;  %v6774_v40 = vld [vmem:[%s15089_s2 + $0x670] sm:$0xff]  ;;  %v6765_v4 = vld [vmem:[%s15089_s2 + $0x628] sm:$0xff] }
 0x1b0   : > { %2442 = vmatprep.subr.mxu1 %v6703_v49  ;;  %2356 = vmatpush1.msra.mxu0 %v6696_v33  ;;  %v6771_v49 = vld [vmem:[%s15089_s2 + $0x658] sm:$0xff]  ;;  %v6764_v33 = vld [vmem:[%s15089_s2 + $0x620] sm:$0xff] }
 0x1b1   : > { %2443 = vmatpush1.msra.mxu1 %v6702_v62  ;;  %2357 = vmatprep.subr.mxu0 %v6821_v37  ;;  %v6770_v62 = vld [vmem:[%s15089_s2 + $0x650] sm:$0xff]  ;;  %v6761_v37 = vld [vmem:[%s15089_s2 + $0x608] sm:$0xff] }
 0x1b2   : > { %2444 = vmatprep.subr.mxu1 %v6699_v6  ;;  %2358 = vmatpush2.msra.mxu0 %v6820_v7  ;;  %v6767_v6 = vld [vmem:[%s15089_s2 + $0x638] sm:$0xff]  ;;  %v6760_v7 = vld [vmem:[%s15089_s2 + $0x600] sm:$0xff] }
 0x1b3   : > { %2445 = vmatpush1.msra.mxu1 %v6698_v15  ;;  %2359 = vmatprep.subr.mxu0 %v6817_v31  ;;  %v6766_v15 = vld [vmem:[%s15089_s2 + $0x630] sm:$0xff]  ;;  %v2056_v31 = vld [vmem:[%s15089_s2 + $0x1e8] sm:$0xff] }
 0x1b4   : > { %2446 = vmatprep.subr.mxu1 %v6823_v43  ;;  %2360 = vmatpush2.msra.mxu0 %v6816_v23  ;;  %v6763_v43 = vld [vmem:[%s15089_s2 + $0x618] sm:$0xff] }
 0x1b5   : > { %2447 = vmatpush2.msra.mxu1 %v6822_v1  ;;  %2361 = vmatprep.subr.mxu0 %v6813_v25  ;;  %v6762_v1 = vld [vmem:[%s15089_s2 + $0x610] sm:$0xff] }
 0x1b6   : > { %2448 = vmatprep.subr.mxu1 %v6819_v5  ;;  %2362 = vmatpush2.msra.mxu0 %v6812_v63  ;;  %v2058_v5 = vld [vmem:[%s15089_s2 + $0x1f8] sm:$0xff] }
 0x1b7   : > { %2449 = vmatpush2.msra.mxu1 %v6818_v24  ;;  %2363 = vmatprep.subr.mxu0 %v6809_v14 }
 0x1b8   : > { %2450 = vmatprep.subr.mxu1 %v6815_v29  ;;  %2364 = vmatpush2.msra.mxu0 %v6808_v48 }
 0x1b9   : > { %2451 = vmatpush2.msra.mxu1 %v6814_v0  ;;  %2365 = vmatprep.subr.mxu0 %v6805_v20 }
 0x1ba   : > { %2452 = vmatprep.subr.mxu1 %v6811_v22  ;;  %2366 = vmatpush2.msra.mxu0 %v6804_v17 }
 0x1bb   : > { %2453 = vmatpush2.msra.mxu1 %v6810_v16  ;;  %2367 = vmatprep.subr.mxu0 %v6801_v35 }
 0x1bc   : > { %2454 = vmatprep.subr.mxu1 %v6807_v26  ;;  %2368 = vmatpush2.msra.mxu0 %v6800_v11 }
 0x1bd   : > { %2455 = vmatpush2.msra.mxu1 %v6806_v30  ;;  %2369 = vmatprep.subr.mxu0 %v6797_v46 }
 0x1be   : > { %2456 = vmatprep.subr.mxu1 %v6803_v39  ;;  %2370 = vmatpush2.msra.mxu0 %v6796_v44 }
 0x1bf   : > { %2457 = vmatpush2.msra.mxu1 %v6802_v42  ;;  %2371 = vmatprep.subr.mxu0 %v6793_v2 }
 0x1c0   : > { %2458 = vmatprep.subr.mxu1 %v6799_v52  ;;  %2372 = vmatpush2.msra.mxu0 %v6792_v8 }
 0x1c1   : > { %2459 = vmatpush2.msra.mxu1 %v6798_v61  ;;  %2373 = vmatprep.subr.mxu0 %v6789_v45 }
 0x1c2   : > { %2460 = vmatprep.subr.mxu1 %v6795_v3  ;;  %2374 = vmatpush2.msra.mxu0 %v6788_v56 }
 0x1c3   : > { %2461 = vmatpush2.msra.mxu1 %v6794_v53  ;;  %2375 = vmatprep.subr.mxu0 %v6785_v54 }
 0x1c4   : > { %2462 = vmatprep.subr.mxu1 %v6791_v34  ;;  %2376 = vmatpush2.msra.mxu0 %v6784_v9 }
 0x1c5   : > { %2463 = vmatpush2.msra.mxu1 %v6790_v10  ;;  %2377 = vmatprep.subr.mxu0 %v6781_v18 }
 0x1c6   : > { %2464 = vmatprep.subr.mxu1 %v6787_v13  ;;  %2378 = vmatpush2.msra.mxu0 %v6780_v12 }
 0x1c7   : > { %2465 = vmatpush2.msra.mxu1 %v6786_v59  ;;  %2379 = vmatprep.subr.mxu0 %v6777_v28 }
 0x1c8   : > { %2466 = vmatprep.subr.mxu1 %v6783_v60  ;;  %2380 = vmatpush2.msra.mxu0 %v6776_v32 }
 0x1c9   : > { %2467 = vmatpush2.msra.mxu1 %v6782_v27  ;;  %2381 = vmatprep.subr.mxu0 %v6773_v21 }
 0x1ca   : > { %2468 = vmatprep.subr.mxu1 %v6779_v50  ;;  %2382 = vmatpush2.msra.mxu0 %v6772_v51 }
 0x1cb   : > { %2469 = vmatpush2.msra.mxu1 %v6778_v36  ;;  %2383 = vmatprep.subr.mxu0 %v6769_v47 }
 0x1cc   : > { %2470 = vmatprep.subr.mxu1 %v6775_v19  ;;  %2384 = vmatpush2.msra.mxu0 %v6768_v58 }
 0x1cd   : > { %2471 = vmatpush2.msra.mxu1 %v6774_v40  ;;  %2385 = vmatprep.subr.mxu0 %v6765_v4 }
 0x1ce   : > { %2472 = vmatprep.subr.mxu1 %v6771_v49  ;;  %2386 = vmatpush2.msra.mxu0 %v6764_v33 }
 0x1cf   : > { %2473 = vmatpush2.msra.mxu1 %v6770_v62  ;;  %2387 = vmatprep.subr.mxu0 %v6761_v37 }
 0x1d0   : > { %2474 = vmatprep.subr.mxu1 %v6767_v6  ;;  %2388 = vmatpush2.msra.mxu0 %v6760_v7 }
 0x1d1   : > { %2475 = vmatpush2.msra.mxu1 %v6766_v15  ;;  %2503 = vmatprep.subr.mxu0 %v2056_v31 }
 0x1d2   : > { %2476 = vmatprep.subr.mxu1 %v6763_v43 }
 0x1d3   : > { %2477 = vmatpush2.msra.mxu1 %v6762_v1 }
 0x1d4   : > { %2592 = vmatprep.subr.mxu1 %v2058_v5 }
 0x1da   : > { %v1458_v23 = vpop.f32.mrf.mxu0 }
 0x1dc   : > { %v1460_v24 = vpop.f32.mrf.mxu0 }
 0x1de   : > { %v1464_v25 = vpop.f32.mrf.mxu0 }
 0x1e0   : > { %v1466_v29 = vpop.f32.mrf.mxu0 }
 0x1e2   : > { %v1470_v0 = vpop.f32.mrf.mxu0 }
 0x1e4   : > { %v1472_v22 = vpop.f32.mrf.mxu0 }
 0x1e6   : > { %v1476_v16 = vpop.f32.mrf.mxu0 }
 0x1e8   : > { %v1478_v26 = vpop.f32.mrf.mxu0 }
 0x209   : > { %v1547_v63 = vpop.f32.mrf.mxu1 }
 0x20a   : > { %v1548_v61 = vadd.f32 %v1547_v63, %v1458_v23 }
 0x20b   : > { %v1549_v14 = vpop.f32.mrf.mxu1 }
 0x20c   : > { %v1550_v53 = vadd.f32 %v1549_v14, %v1460_v24 }
 0x20f   : > { %v1553_v48 = vpop.f32.mrf.mxu1 }
 0x210   : > { %v1554_v10 = vadd.f32 %v1553_v48, %v1464_v25 }
 0x211   : > { %v1555_v20 = vpop.f32.mrf.mxu1 }
 0x212   : > { %v1556_v60 = vadd.f32 %v1555_v20, %v1466_v29 }
 0x214   : > { %v1559_v17 = vpop.f32.mrf.mxu1 }
 0x215   : > { %v1560_v32 = vadd.f32 %v1559_v17, %v1470_v0 }
 0x216   : > { %v1561_v35 = vpop.f32.mrf.mxu1 }
 0x217   : > { %v1562_v51 = vadd.f32 %v1561_v35, %v1472_v22 }
 0x219   : > { %v1565_v11 = vpop.f32.mrf.mxu1 }
 0x21a   : > { %v1566_v6 = vadd.f32 %v1565_v11, %v1476_v16 }
 0x21b   : > { %v1567_v46 = vpop.f32.mrf.mxu1 }
 0x21c   : > { %v1568_v1 = vadd.f32 %v1567_v46, %v1478_v26 }
 0x21d   : > { %v1765_v30 = vpop.f32.mrf.mxu0 }
 0x21f   : > { %v1767_v39 = vpop.f32.mrf.mxu0 }
 0x221   : > { %v1771_v42 = vpop.f32.mrf.mxu0 }
 0x223   : > { %v1773_v52 = vpop.f32.mrf.mxu0 }
 0x225   : > { %v1777_v3 = vpop.f32.mrf.mxu0 }
 0x227   : > { %v1779_v59 = vpop.f32.mrf.mxu0 }
 0x229   : > { %v1783_v40 = vpop.f32.mrf.mxu0 }
 0x22b   : > { %v1785_v31 = vpop.f32.mrf.mxu0 }
 0x24d   : > { %v1854_v44 = vpop.f32.mrf.mxu1 }
 0x24e   : > { %v1855_v2 = vadd.f32 %v1854_v44, %v1765_v30 }
 0x24f   : > { %v1856_v8 = vpop.f32.mrf.mxu1 }
 0x250   : > { %v1877_v45 = vmax.f32 %v1548_v61, %v1855_v2  ;;  %v1857_v34 = vadd.f32 %v1856_v8, %v1767_v39 }
 0x251   : > { %v1860_v56 = vpop.f32.mrf.mxu1 }
 0x252   : > { %v1896_v54 = vrot.slane %v1877_v45, 6  ;;  %v1878_v13 = vmax.f32 %v1550_v53, %v1857_v34  ;;  %v1861_v9 = vadd.f32 %v1860_v56, %v1771_v42 }
 0x253   : > { %v1862_v18 = vpop.f32.mrf.mxu1 }
 0x254   : > { %1920 = vst [vmem:[#allocation2 + $0x30] sm:$0xfc] %v1896_v54  ;;  %v1897_v12 = vrot.slane %v1878_v13, 6  ;;  %v1879_v27 = vmax.f32 %v1554_v10, %v1861_v9  ;;  %v1863_v28 = vadd.f32 %v1862_v18, %v1773_v52 }
 0x255   : > { %v1866_v50 = vpop.f32.mrf.mxu1 }
 0x256   : > { %1921 = vst [vmem:[#allocation2] sm:$0xfc] %v1897_v12  ;;  %v1898_v36 = vrot.slane %v1879_v27, 6  ;;  %v1880_v21 = vmax.f32 %v1556_v60, %v1863_v28  ;;  %v1867_v19 = vadd.f32 %v1866_v50, %v1777_v3  ;;  %v2055_v28 = vld [vmem:[%s15089_s2 + $0x1e0] sm:$0xff]  ;;  %v2057_v50 = vld [vmem:[%s15089_s2 + $0x1f0] sm:$0xff] }
 0x257   : > { %v1868_v47 = vpop.f32.mrf.mxu1 }
 0x258   : > { %v1899_v49 = vsel %vm1895_vm1, %v1896_v54, %v1898_v36  ;;  %v1900_v58 = vrot.slane %v1880_v21, 6  ;;  %v1881_v62 = vmax.f32 %v1560_v32, %v1867_v19  ;;  %v1869_v4 = vadd.f32 %v1868_v47, %v1779_v59  ;;  %v2052_v21 = vld [vmem:[%s15089_s2 + $0x1c8] sm:$0xff]  ;;  %v2054_v19 = vld [vmem:[%s15089_s2 + $0x1d8] sm:$0xff] }
 0x259   : > { %1922 = vst [vmem:[#allocation2 + $0x18] sm:$0xff] %v1899_v49  ;;  %v1872_v33 = vpop.f32.mrf.mxu1  ;;  %v10325_v22 = vrot.slane %v1899_v49, 1 }
 0x25a   : > { %v1901_v15 = vsel %vm1895_vm1, %v1897_v12, %v1900_v58  ;;  %v1902_v37 = vrot.slane %v1881_v62, 6  ;;  %v1882_v43 = vmax.f32 %v1562_v51, %v1869_v4  ;;  %v1873_v7 = vadd.f32 %v1872_v33, %v1783_v40  ;;  %v2051_v51 = vld [vmem:[%s15089_s2 + $0x1c0] sm:$0xff] }
 0x25b   : > { %v1874_v5 = vpop.f32.mrf.mxu1  ;;  %v2127_v23 = vld [vmem:[#allocation2 + $0x30] sm:$0xf8]  ;;  %v10323_v0 = vrot.slane %v1901_v15, 1 }
 0x25c   : > { %v1903_v24 = vsel %vm1895_vm1, %v1898_v36, %v1902_v37  ;;  %v1904_v25 = vrot.slane %v1882_v43, 6  ;;  %v1883_v29 = vmax.f32 %v1566_v6, %v1873_v7  ;;  %v1875_v63 = vadd.f32 %v1874_v5, %v1785_v31  ;;  %v2123_v11 = vld [vmem:[#allocation2 + $0x30] sm:$0xfc]  ;;  %v2048_v5 = vld [vmem:[%s15089_s2 + $0x1a8] sm:$0xff] }
 0x25d   : > { %1924 = vst [vmem:[#allocation2 + $0x48] sm:$0xff] %v1903_v24  ;;  %v2128_v14 = vld [vmem:[#allocation2] sm:$0xf8]  ;;  %v1967_v48 = vrot.slane %v1903_v24, 1  ;;  %v2135_v16 = vrot.slane %v2127_v23, 1  ;;  %v2050_v23 = vld [vmem:[%s15089_s2 + $0x1b8] sm:$0xff] }
 0x25e   : > { %v1905_v20 = vsel %vm1895_vm1, %v1900_v58, %v1904_v25  ;;  %v1906_v26 = vrot.slane %v1883_v29, 6  ;;  %v1884_v17 = vmax.f32 %v1568_v1, %v1875_v63  ;;  %v2137_v30 = vrot.slane %v2128_v14, 1  ;;  %v2124_v44 = vld [vmem:[#allocation2] sm:$0xfc]  ;;  %v1940_v34 = vld [vmem:[#allocation2 + $0x30] sm:$0xfe] }
 0x25f   : > { %v1969_v35 = vrot.slane %v1905_v20, 1  ;;  %v10330_v39 = vsel %vm1960_vm2, %v10325_v22, %v1967_v48  ;;  %v2136_v42 = vsel %vm1960_vm2, %v2135_v16, %v10325_v22  ;;  %v1961_v27 = vrot.slane %v1940_v34, 1  ;;  %v2053_v58 = vld [vmem:[%s15089_s2 + $0x1d0] sm:$0xff]  ;;  %v2686_v43 = vld [vmem:[#allocation2] sm:$0xe0] }
 0x260   : > { %v10335_v46 = vsel %vm1895_vm1, %v1902_v37, %v1906_v26  ;;  %1928 = vst [vmem:[#allocation2 + $0x40] sm:$0x3] %v1906_v26  ;;  %v1908_v52 = vrot.slane %v1884_v17, 6  ;;  %v2138_v61 = vsel %vm1960_vm2, %v2137_v30, %v10323_v0  ;;  %v2149_v2 = vmax.f32 %v2123_v11, %v2136_v42  ;;  %v2047_v26 = vld [vmem:[%s15089_s2 + $0x1a0] sm:$0xff]  ;;  %v2049_v17 = vld [vmem:[%s15089_s2 + $0x1b0] sm:$0xff]  ;;  %v2044_v42 = vld [vmem:[%s15089_s2 + $0x188] sm:$0xff] }
 0x261   : > { %1926 = vst [vmem:[#allocation2 + $0x8] sm:$0xff] %v10335_v46  ;;  %v1970_v3 = vsel %vm1960_vm2, %v10323_v0, %v1969_v35  ;;  %v2150_v8 = vmax.f32 %v2124_v44, %v2138_v61  ;;  %v10343_v53 = vmax.f32 %v1899_v49, %v10330_v39  ;;  %v10346_v45 = vrot.slane %v10335_v46, 1 }
 0x262   : > { %v10349_v56 = vsel %vm1895_vm1, %v1904_v25, %v1908_v52  ;;  %1929 = vst [vmem:[#allocation2 + $0x38] sm:$0x3] %v1908_v52  ;;  %v10351_v10 = vmax.f32 %v1901_v15, %v1970_v3  ;;  %v2299_v54 = vrot.slane %v2149_v2, 2  ;;  %v10387_v47 = vsel %vm1960_vm2, %v1961_v27, %v10325_v22  ;;  %v2046_v52 = vld [vmem:[%s15089_s2 + $0x198] sm:$0xff]  ;;  %v2043_v2 = vld [vmem:[%s15089_s2 + $0x180] sm:$0xff]  ;;  %v2045_v3 = vld [vmem:[%s15089_s2 + $0x190] sm:$0xff] }
 0x263   : > { %v2302_v13 = vrot.slane %v2150_v8, 2  ;;  %v2300_v9 = vrot.slane %v10343_v53, 2  ;;  %v10355_v59 = vrot.slane %v10349_v56, 1  ;;  %v10359_v18 = vsel %vm1960_vm2, %v1967_v48, %v10346_v45 }
 0x264   : > { %v2303_v60 = vrot.slane %v10351_v10, 2  ;;  %v10363_v12 = vmax.f32 %v1903_v24, %v10359_v18  ;;  %v2695_v16 = vrot.slane %v2686_v43, 1  ;;  %v2036_v43 = vld [vmem:[%s15089_s2 + $0x148] sm:$0xff] }
 0x265   : > { %v1974_v32 = vsel %vm1960_vm2, %v1969_v35, %v10355_v59  ;;  %v2301_v49 = vsel %vm2298_vm3, %v2299_v54, %v2300_v9 }
 0x266   : > { %v2304_v36 = vsel %vm2298_vm3, %v2302_v13, %v2303_v60  ;;  %v10383_v40 = vmax.f32 %v1905_v20, %v1974_v32  ;;  %v2305_v33 = vrot.slane %v10363_v12, 2  ;;  %v10431_v61 = vsel %vm1960_vm2, %v2695_v16, %v10323_v0 }
 0x267   : > { %2389 = vmatprep.mubr.f32.mxu0 %v2304_v36  ;;  %2478 = vmatprep.mubr.f32.mxu1 %v2304_v36  ;;  %v2129_v62 = vld [vmem:[#allocation2 + $0x40] sm:$0x7]  ;;  %v2685_v36 = vld [vmem:[#allocation2 + $0x30] sm:$0xe0] }
 0x268   : > { %v1948_v4 = vld [vmem:[#allocation2 + $0x40] sm:$0x1]  ;;  %2390 = vmatmul.mubr.f32.vlgmr.msra.gmra.mxu0 %v2301_v49  ;;  %2479 = vmatmul.mubr.f32.vlgmr.msra.gmra.mxu1 %v2301_v49  ;;  %v2307_v6 = vrot.slane %v10383_v40, 2  ;;  %v2139_v15 = vrot.slane %v2129_v62, 1  ;;  %v2306_v20 = vsel %vm2298_vm3, %v2300_v9, %v2305_v33  ;;  %v2040_v9 = vld [vmem:[%s15089_s2 + $0x168] sm:$0xff]  ;;  %v2041_v49 = vld [vmem:[%s15089_s2 + $0x170] sm:$0xff] }
 0x269   : > { %v1975_v37 = vrot.slane %v1948_v4, 1  ;;  %2504 = vmatpush1.msra.mxu0 %v2055_v28  ;;  %2593 = vmatpush1.msra.mxu1 %v2057_v50  ;;  %v2130_v7 = vld [vmem:[#allocation2 + $0x38] sm:$0x7]  ;;  %v2125_v13 = vld [vmem:[#allocation2 + $0x40] sm:$0x3] }
 0x26a   : > { %v1949_v1 = vld [vmem:[#allocation2 + $0x38] sm:$0x1]  ;;  %2505 = vmatprep.subr.mxu0 %v2052_v21  ;;  %2594 = vmatprep.subr.mxu1 %v2054_v19  ;;  %v2308_v31 = vsel %vm2298_vm3, %v2303_v60, %v2307_v6  ;;  %v2141_v24 = vrot.slane %v2130_v7, 1  ;;  %v2140_v25 = vsel %vm1960_vm2, %v10346_v45, %v2139_v15  ;;  %v2157_v27 = vmax.f32 %v2125_v13, %v2139_v15  ;;  %v1941_v28 = vld [vmem:[#allocation2] sm:$0xfe] }
 0x26b   : > { %2506 = vmatpush1.msra.mxu0 %v2051_v51  ;;  %2595 = vmatpush1.msra.mxu1 %v2053_v58  ;;  %v2155_v29 = vmax.f32 %v10335_v46, %v2140_v25  ;;  %v2126_v63 = vld [vmem:[#allocation2 + $0x38] sm:$0x3]  ;;  %v1977_v14 = vrot.slane %v1949_v1, 1  ;;  %v10407_v48 = vsel %vm1960_vm2, %v10346_v45, %v1975_v37  ;;  %v2850_v21 = vrot.slane %v10343_v53, 4  ;;  %v2039_v51 = vld [vmem:[%s15089_s2 + $0x160] sm:$0xff] }
 0x26c   : > { %2395 = vmatprep.mubr.f32.mxu0 %v2308_v31  ;;  %2484 = vmatprep.mubr.f32.mxu1 %v2308_v31  ;;  %v2142_v30 = vsel %vm1960_vm2, %v10355_v59, %v2141_v24  ;;  %v2158_v35 = vmax.f32 %v2126_v63, %v2141_v24  ;;  %v2042_v60 = vld [vmem:[%s15089_s2 + $0x178] sm:$0xff]  ;;  %v2855_v19 = vrot.slane %v10363_v12, 4  ;;  %v2693_v58 = vrot.slane %v2685_v36, 1  ;;  %v10466_v37 = vld [vmem:[#allocation2 + $0x40] sm:$0x1f] }
 0x26d   : > { %2507 = vmatprep.subr.mxu0 %v2048_v5  ;;  %2596 = vmatprep.subr.mxu1 %v2050_v23  ;;  %v2156_v11 = vmax.f32 %v10349_v56, %v2142_v30  ;;  %v1978_v44 = vsel %vm1960_vm2, %v10355_v59, %v1977_v14  ;;  %v2309_v54 = vrot.slane %v2155_v29, 2  ;;  %v10457_v62 = vld [vmem:[#allocation2 + $0x38] sm:$0x1f]  ;;  %v1964_v4 = vrot.slane %v1941_v28, 1  ;;  %v2681_v7 = vld [vmem:[#allocation2 + $0x30] sm:$0xf0] }
 0x26e   : > { %2396 = vmatmul.mubr.f32.gmra.mxu0 %v2306_v20  ;;  %2485 = vmatmul.mubr.f32.gmra.mxu1 %v2306_v20  ;;  %v10440_v8 = vmax.f32 %v10349_v56, %v1978_v44  ;;  %v2315_v32 = vrot.slane %v2158_v35, 2  ;;  %v2699_v15 = vrot.slane %v10457_v62, 1  ;;  %v2038_v12 = vld [vmem:[%s15089_s2 + $0x158] sm:$0xff]  ;;  %v2697_v1 = vrot.slane %v10466_v37, 1  ;;  %v2035_v5 = vld [vmem:[%s15089_s2 + $0x140] sm:$0xff]  ;;  %v2037_v23 = vld [vmem:[%s15089_s2 + $0x150] sm:$0xff] }
 0x26f   : > { %2508 = vmatpush1.msra.mxu0 %v2047_v26  ;;  %2597 = vmatpush1.msra.mxu1 %v2049_v17  ;;  %v2311_v34 = vrot.slane %v2156_v11, 2  ;;  %v2310_v53 = vsel %vm2298_vm3, %v2305_v33, %v2309_v54  ;;  %v2694_v33 = vsel %vm1960_vm2, %v2693_v58, %v10325_v22  ;;  %v2313_v24 = vrot.slane %v2157_v27, 2  ;;  %v2032_v29 = vld [vmem:[%s15089_s2 + $0x128] sm:$0xff]  ;;  %v2034_v63 = vld [vmem:[%s15089_s2 + $0x138] sm:$0xff]  ;;  %v2031_v17 = vld [vmem:[%s15089_s2 + $0x120] sm:$0xff] }
 0x270   : > { %2509 = vmatprep.subr.mxu0 %v2044_v42  ;;  %2598 = vmatprep.subr.mxu1 %v2046_v52  ;;  %v2707_v25 = vmax.f32 %v2681_v7, %v2694_v33  ;;  %v10488_v22 = vsel %vm1960_vm2, %v10355_v59, %v2699_v15  ;;  %v2698_v16 = vsel %vm1960_vm2, %v10346_v45, %v2697_v1  ;;  %v2033_v30 = vld [vmem:[%s15089_s2 + $0x130] sm:$0xff]  ;;  %v1933_v35 = vld [vmem:[#allocation2] sm:$0xff]  ;;  %v2030_v52 = vld [vmem:[%s15089_s2 + $0x118] sm:$0xff] }
 0x271   : > { %v2312_v50 = vsel %vm2298_vm3, %v2307_v6, %v2311_v34  ;;  %2510 = vmatpush1.msra.mxu0 %v2043_v2  ;;  %2599 = vmatpush1.msra.mxu1 %v2045_v3  ;;  %v10463_v6 = vsel %vm2848_vm4, %v2850_v21, %v2855_v19  ;;  %v2316_v31 = vsel %vm2298_vm3, %v2311_v34, %v2315_v32  ;;  %v2027_v44 = vld [vmem:[%s15089_s2 + $0x100] sm:$0xff]  ;;  %v2029_v2 = vld [vmem:[%s15089_s2 + $0x110] sm:$0xff]  ;;  %v2024_v34 = vld [vmem:[%s15089_s2 + $0xe8] sm:$0xff] }
 0x272   : > { %2401 = vmatprep.mubr.f32.mxu0 %v2312_v50  ;;  %2490 = vmatprep.mubr.f32.mxu1 %v2312_v50  ;;  %v2710_v14 = vmax.f32 %v10349_v56, %v10488_v22  ;;  %v1966_v59 = vsel %vm1960_vm2, %v1964_v4, %v10323_v0  ;;  %v2849_v20 = vrot.slane %v2707_v25, 4  ;;  %v2709_v26 = vmax.f32 %v10335_v46, %v2698_v16  ;;  %v2028_v0 = vld [vmem:[%s15089_s2 + $0x108] sm:$0xff]  ;;  %v2023_v13 = vld [vmem:[%s15089_s2 + $0xe0] sm:$0xff]  ;;  %v2022_v27 = vld [vmem:[%s15089_s2 + $0xd8] sm:$0xff] }
 0x273   : > { %2511 = vmatprep.subr.mxu0 %v2040_v9  ;;  %2600 = vmatprep.subr.mxu1 %v2042_v60  ;;  %v2314_v45 = vsel %vm2298_vm3, %v2309_v54, %v2313_v24  ;;  %v1988_v42 = vmax.f32 %v1933_v35, %v1966_v59  ;;  %v2026_v54 = vld [vmem:[%s15089_s2 + $0xf8] sm:$0xff]  ;;  %v2025_v9 = vld [vmem:[%s15089_s2 + $0xf0] sm:$0xff]  ;;  %v2020_v60 = vld [vmem:[%s15089_s2 + $0xc8] sm:$0xff] }
 0x274   : > { %2402 = vmatmul.mubr.f32.gmra.mxu0 %v2310_v53  ;;  %2491 = vmatmul.mubr.f32.gmra.mxu1 %v2310_v53  ;;  %v10516_v46 = vsel %vm2848_vm4, %v2849_v20, %v2850_v21  ;;  %v10518_v11 = vrot.slane %v2709_v26, 4  ;;  %v2019_v28 = vld [vmem:[%s15089_s2 + $0xc0] sm:$0xff]  ;;  %v2021_v50 = vld [vmem:[%s15089_s2 + $0xd0] sm:$0xff]  ;;  %v2016_v32 = vld [vmem:[%s15089_s2 + $0xa8] sm:$0xff] }
 0x275   : > { %2512 = vmatpush1.msra.mxu0 %v2039_v51  ;;  %2601 = vmatpush1.msra.mxu1 %v2041_v49  ;;  %v2018_v36 = vld [vmem:[%s15089_s2 + $0xb8] sm:$0xff]  ;;  %v2015_v21 = vld [vmem:[%s15089_s2 + $0xa0] sm:$0xff]  ;;  %v2012_v51 = vld [vmem:[%s15089_s2 + $0x88] sm:$0xff] }
 0x276   : > { %2407 = vmatprep.mubr.f32.mxu0 %v2316_v31  ;;  %2496 = vmatprep.mubr.f32.mxu1 %v2316_v31  ;;  %v10531_v3 = vsel %vm2848_vm4, %v2855_v19, %v10518_v11  ;;  %v2017_v19 = vld [vmem:[%s15089_s2 + $0xb0] sm:$0xff]  ;;  %v2014_v49 = vld [vmem:[%s15089_s2 + $0x98] sm:$0xff]  ;;  %v2011_v58 = vld [vmem:[%s15089_s2 + $0x80] sm:$0xff] }
 0x277   : > { %2513 = vmatprep.subr.mxu0 %v2036_v43  ;;  %2602 = vmatprep.subr.mxu1 %v2038_v12  ;;  %v2013_v53 = vld [vmem:[%s15089_s2 + $0x90] sm:$0xff]  ;;  %v2008_v4 = vld [vmem:[%s15089_s2 + $0x68] sm:$0xff]  ;;  %v2010_v43 = vld [vmem:[%s15089_s2 + $0x78] sm:$0xff] }
 0x278   : > { %2514 = vmatpush1.msra.mxu0 %v2035_v5  ;;  %2603 = vmatpush1.msra.mxu1 %v2037_v23  ;;  %v2007_v12 = vld [vmem:[%s15089_s2 + $0x60] sm:$0xff]  ;;  %v2009_v7 = vld [vmem:[%s15089_s2 + $0x70] sm:$0xff]  ;;  %v2004_v33 = vld [vmem:[%s15089_s2 + $0x48] sm:$0xff] }
 0x279   : > { %2515 = vmatprep.subr.mxu0 %v2032_v29  ;;  %2604 = vmatprep.subr.mxu1 %v2034_v63  ;;  %v2006_v31 = vld [vmem:[%s15089_s2 + $0x58] sm:$0xff]  ;;  %v2003_v5 = vld [vmem:[%s15089_s2 + $0x40] sm:$0xff]  ;;  %v2005_v23 = vld [vmem:[%s15089_s2 + $0x50] sm:$0xff] }
 0x27a   : > { %2408 = vmatmul.mubr.f32.gmra.mxu0 %v2314_v45  ;;  %2497 = vmatmul.mubr.f32.gmra.mxu1 %v2314_v45  ;;  %v2000_v24 = vld [vmem:[%s15089_s2 + $0x28] sm:$0xff]  ;;  %v2002_v25 = vld [vmem:[%s15089_s2 + $0x38] sm:$0xff]  ;;  %v1999_v29 = vld [vmem:[%s15089_s2 + $0x20] sm:$0xff] }
 0x27b   : > { %2516 = vmatpush1.msra.mxu0 %v2031_v17  ;;  %2605 = vmatpush1.msra.mxu1 %v2033_v30  ;;  %v2001_v63 = vld [vmem:[%s15089_s2 + $0x30] sm:$0xff]  ;;  %v1996_v16 = vld [vmem:[%s15089_s2 + $0x8] sm:$0xff]  ;;  %v1998_v59 = vld [vmem:[%s15089_s2 + $0x18] sm:$0xff] }
 0x27c   : > { %2517 = vmatprep.subr.mxu0 %v2028_v0  ;;  %2567 = vmatprep.mubr.f32.mxu0 %v1988_v42  ;;  %v1995_v20 = vld [vmem:[%s15089_s2] sm:$0xff]  ;;  %v1997_v26 = vld [vmem:[%s15089_s2 + $0x10] sm:$0xff]  ;;  %v2120_v17 = vld [vmem:[%s15089_s2 + $0x3e8] sm:$0xff] }
 0x27d   : > { %2606 = vmatprep.subr.mxu1 %v2030_v52  ;;  %2656 = vmatprep.mubr.f32.mxu1 %v1988_v42  ;;  %v2122_v30 = vld [vmem:[%s15089_s2 + $0x3f8] sm:$0xff]  ;;  %v2119_v45 = vld [vmem:[%s15089_s2 + $0x3e0] sm:$0xff]  ;;  %v2121_v0 = vld [vmem:[%s15089_s2 + $0x3f0] sm:$0xff] }
 0x27e   : > { %2518 = vmatpush1.msra.mxu0 %v2027_v44  ;;  %2607 = vmatpush1.msra.mxu1 %v2029_v2  ;;  %v2116_v35 = vld [vmem:[%s15089_s2 + $0x3c8] sm:$0xff]  ;;  %v2118_v42 = vld [vmem:[%s15089_s2 + $0x3d8] sm:$0xff]  ;;  %v2115_v52 = vld [vmem:[%s15089_s2 + $0x3c0] sm:$0xff] }
 0x27f   : > { %2519 = vmatprep.subr.mxu0 %v2024_v34  ;;  %2608 = vmatprep.subr.mxu1 %v2026_v54  ;;  %v2117_v44 = vld [vmem:[%s15089_s2 + $0x3d0] sm:$0xff]  ;;  %v2112_v2 = vld [vmem:[%s15089_s2 + $0x3a8] sm:$0xff]  ;;  %v2114_v34 = vld [vmem:[%s15089_s2 + $0x3b8] sm:$0xff] }
 0x280   : > { %2520 = vmatpush1.msra.mxu0 %v2023_v13  ;;  %2609 = vmatpush1.msra.mxu1 %v2025_v9  ;;  %v2111_v54 = vld [vmem:[%s15089_s2 + $0x3a0] sm:$0xff]  ;;  %v2113_v13 = vld [vmem:[%s15089_s2 + $0x3b0] sm:$0xff]  ;;  %v2108_v9 = vld [vmem:[%s15089_s2 + $0x388] sm:$0xff] }
 0x281   : > { %2521 = vmatprep.subr.mxu0 %v2020_v60  ;;  %2610 = vmatprep.subr.mxu1 %v2022_v27  ;;  %v2110_v60 = vld [vmem:[%s15089_s2 + $0x398] sm:$0xff]  ;;  %v2107_v27 = vld [vmem:[%s15089_s2 + $0x380] sm:$0xff]  ;;  %v7046_v37 = vld [vmem:[%s15091_s4 + $0xaf0] sm:$0xff] }
 0x282   : > { %2522 = vmatpush1.msra.mxu0 %v2019_v28  ;;  %2611 = vmatpush1.msra.mxu1 %v2021_v50  ;;  %v2109_v28 = vld [vmem:[%s15089_s2 + $0x390] sm:$0xff]  ;;  %v2104_v50 = vld [vmem:[%s15089_s2 + $0x368] sm:$0xff]  ;;  %v6983_v56 = vld [vmem:[%s15091_s4 + $0x8f8] sm:$0xff] }
 0x283   : > { %2523 = vmatprep.subr.mxu0 %v2016_v32  ;;  %2612 = vmatprep.subr.mxu1 %v2018_v36  ;;  %v2106_v32 = vld [vmem:[%s15089_s2 + $0x378] sm:$0xff]  ;;  %v2103_v36 = vld [vmem:[%s15089_s2 + $0x360] sm:$0xff]  ;;  %v6981_v22 = vld [vmem:[%s15091_s4 + $0x8e8] sm:$0xff] }
 0x284   : > { %2524 = vmatpush1.msra.mxu0 %v2015_v21  ;;  %2613 = vmatpush1.msra.mxu1 %v2017_v19  ;;  %v2105_v21 = vld [vmem:[%s15089_s2 + $0x370] sm:$0xff]  ;;  %v2100_v19 = vld [vmem:[%s15089_s2 + $0x348] sm:$0xff]  ;;  %v7047_v62 = vld [vmem:[%s15091_s4 + $0xaf8] sm:$0xff] }
 0x285   : > { %2525 = vmatprep.subr.mxu0 %v2012_v51  ;;  %2614 = vmatprep.subr.mxu1 %v2014_v49  ;;  %v2102_v51 = vld [vmem:[%s15089_s2 + $0x358] sm:$0xff]  ;;  %v2099_v49 = vld [vmem:[%s15089_s2 + $0x340] sm:$0xff] }
 0x286   : > { %2526 = vmatpush1.msra.mxu0 %v2011_v58  ;;  %2615 = vmatpush1.msra.mxu1 %v2013_v53  ;;  %v2101_v58 = vld [vmem:[%s15089_s2 + $0x350] sm:$0xff]  ;;  %v2096_v53 = vld [vmem:[%s15089_s2 + $0x328] sm:$0xff] }
 0x287   : > { %2527 = vmatprep.subr.mxu0 %v2008_v4  ;;  %2616 = vmatprep.subr.mxu1 %v2010_v43  ;;  %v2098_v4 = vld [vmem:[%s15089_s2 + $0x338] sm:$0xff]  ;;  %v2095_v43 = vld [vmem:[%s15089_s2 + $0x320] sm:$0xff] }
 0x288   : > { %2528 = vmatpush1.msra.mxu0 %v2007_v12  ;;  %2617 = vmatpush1.msra.mxu1 %v2009_v7  ;;  %v2097_v12 = vld [vmem:[%s15089_s2 + $0x330] sm:$0xff]  ;;  %v2092_v7 = vld [vmem:[%s15089_s2 + $0x308] sm:$0xff] }
 0x289   : > { %2529 = vmatprep.subr.mxu0 %v2004_v33  ;;  %2618 = vmatprep.subr.mxu1 %v2006_v31  ;;  %v2094_v33 = vld [vmem:[%s15089_s2 + $0x318] sm:$0xff]  ;;  %v2091_v31 = vld [vmem:[%s15089_s2 + $0x300] sm:$0xff] }
 0x28a   : > { %2530 = vmatpush1.msra.mxu0 %v2003_v5  ;;  %2619 = vmatpush1.msra.mxu1 %v2005_v23  ;;  %v2093_v5 = vld [vmem:[%s15089_s2 + $0x310] sm:$0xff]  ;;  %v2088_v23 = vld [vmem:[%s15089_s2 + $0x2e8] sm:$0xff] }
 0x28b   : > { %2531 = vmatprep.subr.mxu0 %v2000_v24  ;;  %2620 = vmatprep.subr.mxu1 %v2002_v25  ;;  %v2090_v24 = vld [vmem:[%s15089_s2 + $0x2f8] sm:$0xff]  ;;  %v2087_v25 = vld [vmem:[%s15089_s2 + $0x2e0] sm:$0xff] }
 0x28c   : > { %2532 = vmatpush1.msra.mxu0 %v1999_v29  ;;  %2621 = vmatpush1.msra.mxu1 %v2001_v63  ;;  %v2089_v29 = vld [vmem:[%s15089_s2 + $0x2f0] sm:$0xff]  ;;  %v2084_v63 = vld [vmem:[%s15089_s2 + $0x2c8] sm:$0xff] }
 0x28d   : > { %2533 = vmatprep.subr.mxu0 %v1996_v16  ;;  %2622 = vmatprep.subr.mxu1 %v1998_v59  ;;  %v2086_v16 = vld [vmem:[%s15089_s2 + $0x2d8] sm:$0xff]  ;;  %v2083_v59 = vld [vmem:[%s15089_s2 + $0x2c0] sm:$0xff] }
 0x28e   : > { %2534 = vmatpush1.msra.mxu0 %v1995_v20  ;;  %2623 = vmatpush1.msra.mxu1 %v1997_v26  ;;  %v2085_v20 = vld [vmem:[%s15089_s2 + $0x2d0] sm:$0xff]  ;;  %v2080_v26 = vld [vmem:[%s15089_s2 + $0x2a8] sm:$0xff] }
 0x28f   : > { %2535 = vmatprep.subr.mxu0 %v2120_v17  ;;  %2624 = vmatprep.subr.mxu1 %v2122_v30  ;;  %v2082_v17 = vld [vmem:[%s15089_s2 + $0x2b8] sm:$0xff]  ;;  %v2079_v30 = vld [vmem:[%s15089_s2 + $0x2a0] sm:$0xff] }
 0x290   : > { %2536 = vmatpush2.msra.mxu0 %v2119_v45  ;;  %2625 = vmatpush2.msra.mxu1 %v2121_v0  ;;  %v2081_v45 = vld [vmem:[%s15089_s2 + $0x2b0] sm:$0xff]  ;;  %v2076_v0 = vld [vmem:[%s15089_s2 + $0x288] sm:$0xff] }
 0x291   : > { %2537 = vmatprep.subr.mxu0 %v2116_v35  ;;  %2626 = vmatprep.subr.mxu1 %v2118_v42  ;;  %v2078_v35 = vld [vmem:[%s15089_s2 + $0x298] sm:$0xff]  ;;  %v2075_v42 = vld [vmem:[%s15089_s2 + $0x280] sm:$0xff] }
 0x292   : > { %2538 = vmatpush2.msra.mxu0 %v2115_v52  ;;  %2627 = vmatpush2.msra.mxu1 %v2117_v44  ;;  %v2077_v52 = vld [vmem:[%s15089_s2 + $0x290] sm:$0xff]  ;;  %v2072_v44 = vld [vmem:[%s15089_s2 + $0x268] sm:$0xff] }
 0x293   : > { %2539 = vmatprep.subr.mxu0 %v2112_v2  ;;  %2628 = vmatprep.subr.mxu1 %v2114_v34  ;;  %v2074_v2 = vld [vmem:[%s15089_s2 + $0x278] sm:$0xff]  ;;  %v2071_v34 = vld [vmem:[%s15089_s2 + $0x260] sm:$0xff] }
 0x294   : > { %2540 = vmatpush2.msra.mxu0 %v2111_v54  ;;  %2629 = vmatpush2.msra.mxu1 %v2113_v13  ;;  %v2073_v54 = vld [vmem:[%s15089_s2 + $0x270] sm:$0xff]  ;;  %v2068_v13 = vld [vmem:[%s15089_s2 + $0x248] sm:$0xff] }
 0x295   : > { %2541 = vmatprep.subr.mxu0 %v2108_v9  ;;  %2630 = vmatprep.subr.mxu1 %v2110_v60  ;;  %v2070_v9 = vld [vmem:[%s15089_s2 + $0x258] sm:$0xff]  ;;  %v2067_v60 = vld [vmem:[%s15089_s2 + $0x240] sm:$0xff] }
 0x296   : > { %2542 = vmatpush2.msra.mxu0 %v2107_v27  ;;  %2631 = vmatpush2.msra.mxu1 %v2109_v28  ;;  %v2069_v27 = vld [vmem:[%s15089_s2 + $0x250] sm:$0xff]  ;;  %v2064_v28 = vld [vmem:[%s15089_s2 + $0x228] sm:$0xff] }
 0x297   : > { %2543 = vmatprep.subr.mxu0 %v2104_v50  ;;  %2632 = vmatprep.subr.mxu1 %v2106_v32  ;;  %v2066_v50 = vld [vmem:[%s15089_s2 + $0x238] sm:$0xff]  ;;  %v2063_v32 = vld [vmem:[%s15089_s2 + $0x220] sm:$0xff] }
 0x298   : > { %2544 = vmatpush2.msra.mxu0 %v2103_v36  ;;  %2633 = vmatpush2.msra.mxu1 %v2105_v21  ;;  %v2065_v36 = vld [vmem:[%s15089_s2 + $0x230] sm:$0xff]  ;;  %v2060_v21 = vld [vmem:[%s15089_s2 + $0x208] sm:$0xff] }
 0x299   : > { %2545 = vmatprep.subr.mxu0 %v2100_v19  ;;  %2634 = vmatprep.subr.mxu1 %v2102_v51  ;;  %v2062_v19 = vld [vmem:[%s15089_s2 + $0x218] sm:$0xff]  ;;  %v2059_v51 = vld [vmem:[%s15089_s2 + $0x200] sm:$0xff] }
 0x29a   : > { %2546 = vmatpush2.msra.mxu0 %v2099_v49  ;;  %2635 = vmatpush2.msra.mxu1 %v2101_v58  ;;  %v2061_v49 = vld [vmem:[%s15089_s2 + $0x210] sm:$0xff] }
 0x29b   : > { %2547 = vmatprep.subr.mxu0 %v2096_v53  ;;  %2636 = vmatprep.subr.mxu1 %v2098_v4  ;;  %v1932_v58 = vld [vmem:[#allocation2 + $0x30] sm:$0xff]  ;;  %v6885_v4 = vld [vmem:[%s15089_s2 + $0x9e8] sm:$0xff] }
 0x29c   : > { %2548 = vmatpush2.msra.mxu0 %v2095_v43  ;;  %2637 = vmatpush2.msra.mxu1 %v2097_v12  ;;  %v1987_v53 = vmax.f32 %v1932_v58, %v10387_v47  ;;  %v6887_v43 = vld [vmem:[%s15089_s2 + $0x9f8] sm:$0xff]  ;;  %v6884_v12 = vld [vmem:[%s15089_s2 + $0x9e0] sm:$0xff]  ;;  %v6886_v47 = vld [vmem:[%s15089_s2 + $0x9f0] sm:$0xff] }
 0x29d   : > { %2549 = vmatprep.subr.mxu0 %v2092_v7  ;;  %2638 = vmatprep.subr.mxu1 %v2094_v33  ;;  %v6881_v7 = vld [vmem:[%s15089_s2 + $0x9c8] sm:$0xff]  ;;  %v6883_v33 = vld [vmem:[%s15089_s2 + $0x9d8] sm:$0xff]  ;;  %v6852_v58 = vld [vmem:[%s15089_s2 + $0x8e0] sm:$0xff] }
 0x29e   : > { %2550 = vmatpush2.msra.mxu0 %v2091_v31  ;;  %2639 = vmatpush2.msra.mxu1 %v2093_v5  ;;  %v1934_v31 = vld [vmem:[#allocation2 + $0x18] sm:$0xff]  ;;  %v6880_v5 = vld [vmem:[%s15089_s2 + $0x9c0] sm:$0xff] }
 0x29f   : > { %2551 = vmatprep.subr.mxu0 %v2088_v23  ;;  %2640 = vmatprep.subr.mxu1 %v2090_v24  ;;  %v6882_v23 = vld [vmem:[%s15089_s2 + $0x9d0] sm:$0xff]  ;;  %v1989_v24 = vmax.f32 %v1934_v31, %v10330_v39  ;;  %v6844_v31 = vld [vmem:[%s15089_s2 + $0x8a0] sm:$0xff] }
 0x2a0   : > { %2552 = vmatpush2.msra.mxu0 %v2087_v25  ;;  %2641 = vmatpush2.msra.mxu1 %v2089_v29  ;;  %v6877_v25 = vld [vmem:[%s15089_s2 + $0x9a8] sm:$0xff]  ;;  %v6879_v29 = vld [vmem:[%s15089_s2 + $0x9b8] sm:$0xff]  ;;  %v6878_v39 = vld [vmem:[%s15089_s2 + $0x9b0] sm:$0xff] }
 0x2a1   : > { %2553 = vmatprep.subr.mxu0 %v2084_v63  ;;  %2642 = vmatprep.subr.mxu1 %v2086_v16  ;;  %v6876_v63 = vld [vmem:[%s15089_s2 + $0x9a0] sm:$0xff]  ;;  %v6873_v16 = vld [vmem:[%s15089_s2 + $0x988] sm:$0xff] }
 0x2a2   : > { %2554 = vmatpush2.msra.mxu0 %v2083_v59  ;;  %2643 = vmatpush2.msra.mxu1 %v2085_v20  ;;  %v6875_v59 = vld [vmem:[%s15089_s2 + $0x998] sm:$0xff]  ;;  %v1936_v20 = vld [vmem:[#allocation2 + $0x48] sm:$0xff] }
 0x2a3   : > { %2555 = vmatprep.subr.mxu0 %v2080_v26  ;;  %2644 = vmatprep.subr.mxu1 %v2082_v17  ;;  %v6872_v26 = vld [vmem:[%s15089_s2 + $0x980] sm:$0xff]  ;;  %v6874_v17 = vld [vmem:[%s15089_s2 + $0x990] sm:$0xff] }
 0x2a4   : > { %2556 = vmatpush2.msra.mxu0 %v2079_v30  ;;  %2645 = vmatpush2.msra.mxu1 %v2081_v45  ;;  %v1991_v30 = vmax.f32 %v1936_v20, %v10359_v18  ;;  %v6869_v45 = vld [vmem:[%s15089_s2 + $0x968] sm:$0xff]  ;;  %v6870_v18 = vld [vmem:[%s15089_s2 + $0x970] sm:$0xff] }
 0x2a5   : > { %2557 = vmatprep.subr.mxu0 %v2076_v0  ;;  %2646 = vmatprep.subr.mxu1 %v2078_v35  ;;  %v6871_v0 = vld [vmem:[%s15089_s2 + $0x978] sm:$0xff]  ;;  %v2682_v35 = vld [vmem:[#allocation2] sm:$0xf0]  ;;  %v6833_v20 = vld [vmem:[%s15089_s2 + $0x848] sm:$0xff] }
 0x2a6   : > { %2558 = vmatpush2.msra.mxu0 %v2075_v42  ;;  %2647 = vmatpush2.msra.mxu1 %v2077_v52  ;;  %v2708_v42 = vmax.f32 %v2682_v35, %v10431_v61  ;;  %v6868_v52 = vld [vmem:[%s15089_s2 + $0x960] sm:$0xff]  ;;  %v6867_v61 = vld [vmem:[%s15089_s2 + $0x958] sm:$0xff] }
 0x2a7   : > { %2559 = vmatprep.subr.mxu0 %v2072_v44  ;;  %2648 = vmatprep.subr.mxu1 %v2074_v2  ;;  %v6865_v44 = vld [vmem:[%s15089_s2 + $0x948] sm:$0xff]  ;;  %v6864_v2 = vld [vmem:[%s15089_s2 + $0x940] sm:$0xff] }
 0x2a8   : > { %2560 = vmatpush2.msra.mxu0 %v2071_v34  ;;  %2649 = vmatpush2.msra.mxu1 %v2073_v54  ;;  %v6866_v34 = vld [vmem:[%s15089_s2 + $0x950] sm:$0xff]  ;;  %v1938_v54 = vld [vmem:[#allocation2 + $0x8] sm:$0xff]  ;;  %v6828_v35 = vld [vmem:[%s15089_s2 + $0x820] sm:$0xff] }
 0x2a9   : > { %2561 = vmatprep.subr.mxu0 %v2068_v13  ;;  %2650 = vmatprep.subr.mxu1 %v2070_v9  ;;  %v2852_v13 = vrot.slane %v2708_v42, 4  ;;  %v2853_v9 = vrot.slane %v10351_v10, 4  ;;  %v6830_v42 = vld [vmem:[%s15089_s2 + $0x830] sm:$0xff] }
 0x2aa   : > { %2562 = vmatpush2.msra.mxu0 %v2067_v60  ;;  %2651 = vmatpush2.msra.mxu1 %v2069_v27  ;;  %v1993_v60 = vmax.f32 %v1938_v54, %v10407_v48  ;;  %v6863_v27 = vld [vmem:[%s15089_s2 + $0x938] sm:$0xff]  ;;  %v6862_v48 = vld [vmem:[%s15089_s2 + $0x930] sm:$0xff]  ;;  %v6948_v54 = vld [vmem:[%s15089_s2 + $0xbe0] sm:$0xff] }
 0x2ab   : > { %2563 = vmatprep.subr.mxu0 %v2064_v28  ;;  %2652 = vmatprep.subr.mxu1 %v2066_v50  ;;  %v6860_v28 = vld [vmem:[%s15089_s2 + $0x920] sm:$0xff]  ;;  %v2854_v50 = vsel %vm2848_vm4, %v2852_v13, %v2853_v9  ;;  %v6950_v13 = vld [vmem:[%s15089_s2 + $0xbf0] sm:$0xff] }
 0x2ac   : > { %2564 = vmatpush2.msra.mxu0 %v2063_v32  ;;  %2653 = vmatpush2.msra.mxu1 %v2065_v36  ;;  %v6857_v32 = vld [vmem:[%s15089_s2 + $0x908] sm:$0xff]  ;;  %v6859_v36 = vld [vmem:[%s15089_s2 + $0x918] sm:$0xff] }
 0x2ad   : > { %2565 = vmatprep.subr.mxu0 %v2060_v21  ;;  %2654 = vmatprep.subr.mxu1 %v2062_v19  ;;  %v6856_v21 = vld [vmem:[%s15089_s2 + $0x900] sm:$0xff]  ;;  %v6858_v19 = vld [vmem:[%s15089_s2 + $0x910] sm:$0xff] }
 0x2ae   : > { %2566 = vmatpush2.msra.mxu0 %v2059_v51  ;;  %2655 = vmatpush2.msra.mxu1 %v2061_v49  ;;  %v6853_v51 = vld [vmem:[%s15089_s2 + $0x8e8] sm:$0xff]  ;;  %v6855_v49 = vld [vmem:[%s15089_s2 + $0x8f8] sm:$0xff] }
 0x2af   : > { %2568 = vmatmul.mubr.f32.vlgmr.msra.gmra.mxu0 %v1987_v53  ;;  %2657 = vmatmul.mubr.f32.vlgmr.msra.gmra.mxu1 %v1987_v53  ;;  %v6854_v53 = vld [vmem:[%s15089_s2 + $0x8f0] sm:$0xff] }
 0x2b0   : > { %2875 = vmatprep.subr.mxu0 %v6885_v4  ;;  %2964 = vmatprep.subr.mxu1 %v6887_v43  ;;  %v6849_v4 = vld [vmem:[%s15089_s2 + $0x8c8] sm:$0xff]  ;;  %v6851_v43 = vld [vmem:[%s15089_s2 + $0x8d8] sm:$0xff] }
 0x2b1   : > { %2573 = vmatprep.mubr.f32.mxu0 %v10351_v10  ;;  %2662 = vmatprep.mubr.f32.mxu1 %v10351_v10 }
 0x2b2   : > { %2876 = vmatpush1.msra.mxu0 %v6884_v12  ;;  %2965 = vmatpush1.msra.mxu1 %v6886_v47  ;;  %v6848_v12 = vld [vmem:[%s15089_s2 + $0x8c0] sm:$0xff]  ;;  %v6850_v47 = vld [vmem:[%s15089_s2 + $0x8d0] sm:$0xff] }
 0x2b3   : > { %2877 = vmatprep.subr.mxu0 %v6881_v7  ;;  %2966 = vmatprep.subr.mxu1 %v6883_v33  ;;  %v6845_v7 = vld [vmem:[%s15089_s2 + $0x8a8] sm:$0xff]  ;;  %v6847_v33 = vld [vmem:[%s15089_s2 + $0x8b8] sm:$0xff] }
 0x2b4   : > { %2878 = vmatpush1.msra.mxu0 %v6880_v5  ;;  %2967 = vmatpush1.msra.mxu1 %v6882_v23  ;;  %v6846_v5 = vld [vmem:[%s15089_s2 + $0x8b0] sm:$0xff]  ;;  %v6841_v23 = vld [vmem:[%s15089_s2 + $0x888] sm:$0xff] }
 0x2b5   : > { %2574 = vmatmul.mubr.f32.gmra.mxu0 %v1989_v24  ;;  %2663 = vmatmul.mubr.f32.gmra.mxu1 %v1989_v24  ;;  %v6843_v24 = vld [vmem:[%s15089_s2 + $0x898] sm:$0xff] }
 0x2b6   : > { %2879 = vmatprep.subr.mxu0 %v6877_v25  ;;  %2968 = vmatprep.subr.mxu1 %v6879_v29  ;;  %v6840_v25 = vld [vmem:[%s15089_s2 + $0x880] sm:$0xff]  ;;  %v6842_v29 = vld [vmem:[%s15089_s2 + $0x890] sm:$0xff] }
 0x2b7   : > { %2579 = vmatprep.mubr.f32.mxu0 %v10383_v40  ;;  %2668 = vmatprep.mubr.f32.mxu1 %v10383_v40 }
 0x2b8   : > { %2880 = vmatpush1.msra.mxu0 %v6876_v63  ;;  %2969 = vmatpush1.msra.mxu1 %v6878_v39  ;;  %v6837_v63 = vld [vmem:[%s15089_s2 + $0x868] sm:$0xff]  ;;  %v6839_v39 = vld [vmem:[%s15089_s2 + $0x878] sm:$0xff] }
 0x2b9   : > { %2881 = vmatprep.subr.mxu0 %v6873_v16  ;;  %2970 = vmatprep.subr.mxu1 %v6875_v59  ;;  %v6836_v16 = vld [vmem:[%s15089_s2 + $0x860] sm:$0xff]  ;;  %v6838_v59 = vld [vmem:[%s15089_s2 + $0x870] sm:$0xff] }
 0x2ba   : > { %2882 = vmatpush1.msra.mxu0 %v6872_v26  ;;  %2971 = vmatpush1.msra.mxu1 %v6874_v17  ;;  %v6835_v26 = vld [vmem:[%s15089_s2 + $0x858] sm:$0xff]  ;;  %v6832_v17 = vld [vmem:[%s15089_s2 + $0x840] sm:$0xff] }
 0x2bb   : > { %2580 = vmatmul.mubr.f32.gmra.mxu0 %v1991_v30  ;;  %2669 = vmatmul.mubr.f32.gmra.mxu1 %v1991_v30  ;;  %v6834_v30 = vld [vmem:[%s15089_s2 + $0x850] sm:$0xff] }
 0x2bc   : > { %2883 = vmatprep.subr.mxu0 %v6869_v45  ;;  %2972 = vmatprep.subr.mxu1 %v6871_v0  ;;  %v6829_v45 = vld [vmem:[%s15089_s2 + $0x828] sm:$0xff]  ;;  %v6831_v0 = vld [vmem:[%s15089_s2 + $0x838] sm:$0xff] }
 0x2bd   : > { %2585 = vmatprep.mubr.f32.mxu0 %v10440_v8  ;;  %2674 = vmatprep.mubr.f32.mxu1 %v10440_v8  ;;  %v6861_v8 = vld [vmem:[%s15089_s2 + $0x928] sm:$0xff] }
 0x2be   : > { %2884 = vmatpush1.msra.mxu0 %v6868_v52  ;;  %2973 = vmatpush1.msra.mxu1 %v6870_v18  ;;  %v6825_v52 = vld [vmem:[%s15089_s2 + $0x808] sm:$0xff]  ;;  %v6827_v18 = vld [vmem:[%s15089_s2 + $0x818] sm:$0xff] }
 0x2bf   : > { %2885 = vmatprep.subr.mxu0 %v6865_v44  ;;  %2974 = vmatprep.subr.mxu1 %v6867_v61  ;;  %v6824_v44 = vld [vmem:[%s15089_s2 + $0x800] sm:$0xff]  ;;  %v6826_v61 = vld [vmem:[%s15089_s2 + $0x810] sm:$0xff] }
 0x2c0   : > { %2886 = vmatpush1.msra.mxu0 %v6864_v2  ;;  %2975 = vmatpush1.msra.mxu1 %v6866_v34  ;;  %v6949_v2 = vld [vmem:[%s15089_s2 + $0xbe8] sm:$0xff]  ;;  %v6951_v34 = vld [vmem:[%s15089_s2 + $0xbf8] sm:$0xff] }
 0x2c1   : > { %2586 = vmatmul.mubr.f32.gmra.mxu0 %v1993_v60  ;;  %2675 = vmatmul.mubr.f32.gmra.mxu1 %v1993_v60  ;;  %v6945_v60 = vld [vmem:[%s15089_s2 + $0xbc8] sm:$0xff] }
 0x2c2   : > { %2887 = vmatprep.subr.mxu0 %v6861_v8  ;;  %2976 = vmatprep.subr.mxu1 %v6863_v27  ;;  %v6947_v8 = vld [vmem:[%s15089_s2 + $0xbd8] sm:$0xff]  ;;  %v6944_v27 = vld [vmem:[%s15089_s2 + $0xbc0] sm:$0xff] }
 0x2c3   : > { %2888 = vmatpush1.msra.mxu0 %v6860_v28  ;;  %2939 = vmatprep.mubr.f32.mxu0 %v2854_v50  ;;  %v6946_v28 = vld [vmem:[%s15089_s2 + $0xbd0] sm:$0xff] }
 0x2c4   : > { %2977 = vmatpush1.msra.mxu1 %v6862_v48  ;;  %3028 = vmatprep.mubr.f32.mxu1 %v2854_v50  ;;  %v6941_v48 = vld [vmem:[%s15089_s2 + $0xba8] sm:$0xff]  ;;  %v6943_v50 = vld [vmem:[%s15089_s2 + $0xbb8] sm:$0xff] }
 0x2c5   : > { %2889 = vmatprep.subr.mxu0 %v6857_v32  ;;  %2978 = vmatprep.subr.mxu1 %v6859_v36  ;;  %v6940_v32 = vld [vmem:[%s15089_s2 + $0xba0] sm:$0xff]  ;;  %v6942_v36 = vld [vmem:[%s15089_s2 + $0xbb0] sm:$0xff] }
 0x2c6   : > { %2890 = vmatpush1.msra.mxu0 %v6856_v21  ;;  %2979 = vmatpush1.msra.mxu1 %v6858_v19  ;;  %v6937_v21 = vld [vmem:[%s15089_s2 + $0xb88] sm:$0xff]  ;;  %v6939_v19 = vld [vmem:[%s15089_s2 + $0xb98] sm:$0xff] }
 0x2c7   : > { %2891 = vmatprep.subr.mxu0 %v6853_v51  ;;  %2980 = vmatprep.subr.mxu1 %v6855_v49  ;;  %v6936_v51 = vld [vmem:[%s15089_s2 + $0xb80] sm:$0xff]  ;;  %v6938_v49 = vld [vmem:[%s15089_s2 + $0xb90] sm:$0xff] }
 0x2c8   : > { %2892 = vmatpush1.msra.mxu0 %v6852_v58  ;;  %2981 = vmatpush1.msra.mxu1 %v6854_v53  ;;  %v6933_v58 = vld [vmem:[%s15089_s2 + $0xb68] sm:$0xff]  ;;  %v6935_v53 = vld [vmem:[%s15089_s2 + $0xb78] sm:$0xff] }
 0x2c9   : > { %2893 = vmatprep.subr.mxu0 %v6849_v4  ;;  %2982 = vmatprep.subr.mxu1 %v6851_v43  ;;  %v6932_v4 = vld [vmem:[%s15089_s2 + $0xb60] sm:$0xff]  ;;  %v6934_v43 = vld [vmem:[%s15089_s2 + $0xb70] sm:$0xff] }
 0x2ca   : > { %2894 = vmatpush1.msra.mxu0 %v6848_v12  ;;  %2983 = vmatpush1.msra.mxu1 %v6850_v47  ;;  %v6929_v12 = vld [vmem:[%s15089_s2 + $0xb48] sm:$0xff]  ;;  %v6931_v47 = vld [vmem:[%s15089_s2 + $0xb58] sm:$0xff] }
 0x2cb   : > { %2895 = vmatprep.subr.mxu0 %v6845_v7  ;;  %2984 = vmatprep.subr.mxu1 %v6847_v33  ;;  %v6928_v7 = vld [vmem:[%s15089_s2 + $0xb40] sm:$0xff]  ;;  %v6930_v33 = vld [vmem:[%s15089_s2 + $0xb50] sm:$0xff] }
 0x2cc   : > { %2896 = vmatpush1.msra.mxu0 %v6844_v31  ;;  %2985 = vmatpush1.msra.mxu1 %v6846_v5  ;;  %v6925_v31 = vld [vmem:[%s15089_s2 + $0xb28] sm:$0xff]  ;;  %v6927_v5 = vld [vmem:[%s15089_s2 + $0xb38] sm:$0xff] }
 0x2cd   : > { %2897 = vmatprep.subr.mxu0 %v6841_v23  ;;  %2986 = vmatprep.subr.mxu1 %v6843_v24  ;;  %v6924_v23 = vld [vmem:[%s15089_s2 + $0xb20] sm:$0xff]  ;;  %v6926_v24 = vld [vmem:[%s15089_s2 + $0xb30] sm:$0xff] }
 0x2ce   : > { %2898 = vmatpush1.msra.mxu0 %v6840_v25  ;;  %2987 = vmatpush1.msra.mxu1 %v6842_v29  ;;  %v6921_v25 = vld [vmem:[%s15089_s2 + $0xb08] sm:$0xff]  ;;  %v6923_v29 = vld [vmem:[%s15089_s2 + $0xb18] sm:$0xff] }
 0x2cf   : > { %2899 = vmatprep.subr.mxu0 %v6837_v63  ;;  %2988 = vmatprep.subr.mxu1 %v6839_v39  ;;  %v6920_v63 = vld [vmem:[%s15089_s2 + $0xb00] sm:$0xff]  ;;  %v6922_v39 = vld [vmem:[%s15089_s2 + $0xb10] sm:$0xff] }
 0x2d0   : > { %2900 = vmatpush1.msra.mxu0 %v6836_v16  ;;  %2989 = vmatpush1.msra.mxu1 %v6838_v59  ;;  %v6917_v16 = vld [vmem:[%s15089_s2 + $0xae8] sm:$0xff]  ;;  %v6919_v59 = vld [vmem:[%s15089_s2 + $0xaf8] sm:$0xff] }
 0x2d1   : > { %2901 = vmatprep.subr.mxu0 %v6833_v20  ;;  %2990 = vmatprep.subr.mxu1 %v6835_v26  ;;  %v6916_v20 = vld [vmem:[%s15089_s2 + $0xae0] sm:$0xff]  ;;  %v6918_v26 = vld [vmem:[%s15089_s2 + $0xaf0] sm:$0xff] }
 0x2d2   : > { %2902 = vmatpush1.msra.mxu0 %v6832_v17  ;;  %2991 = vmatpush1.msra.mxu1 %v6834_v30  ;;  %v6913_v17 = vld [vmem:[%s15089_s2 + $0xac8] sm:$0xff]  ;;  %v6915_v30 = vld [vmem:[%s15089_s2 + $0xad8] sm:$0xff] }
 0x2d3   : > { %2903 = vmatprep.subr.mxu0 %v6829_v45  ;;  %2992 = vmatprep.subr.mxu1 %v6831_v0  ;;  %v6912_v45 = vld [vmem:[%s15089_s2 + $0xac0] sm:$0xff]  ;;  %v6914_v0 = vld [vmem:[%s15089_s2 + $0xad0] sm:$0xff] }
 0x2d4   : > { %2904 = vmatpush1.msra.mxu0 %v6828_v35  ;;  %2993 = vmatpush1.msra.mxu1 %v6830_v42  ;;  %v6909_v35 = vld [vmem:[%s15089_s2 + $0xaa8] sm:$0xff]  ;;  %v6911_v42 = vld [vmem:[%s15089_s2 + $0xab8] sm:$0xff] }
 0x2d5   : > { %2905 = vmatprep.subr.mxu0 %v6825_v52  ;;  %2994 = vmatprep.subr.mxu1 %v6827_v18  ;;  %v6908_v52 = vld [vmem:[%s15089_s2 + $0xaa0] sm:$0xff]  ;;  %v6910_v18 = vld [vmem:[%s15089_s2 + $0xab0] sm:$0xff] }
 0x2d6   : > { %2906 = vmatpush1.msra.mxu0 %v6824_v44  ;;  %2995 = vmatpush1.msra.mxu1 %v6826_v61  ;;  %v6905_v44 = vld [vmem:[%s15089_s2 + $0xa88] sm:$0xff]  ;;  %v6907_v61 = vld [vmem:[%s15089_s2 + $0xa98] sm:$0xff] }
 0x2d7   : > { %2907 = vmatprep.subr.mxu0 %v6949_v2  ;;  %2996 = vmatprep.subr.mxu1 %v6951_v34  ;;  %v6904_v2 = vld [vmem:[%s15089_s2 + $0xa80] sm:$0xff]  ;;  %v6906_v34 = vld [vmem:[%s15089_s2 + $0xa90] sm:$0xff] }
 0x2d8   : > { %2908 = vmatpush2.msra.mxu0 %v6948_v54  ;;  %2997 = vmatpush2.msra.mxu1 %v6950_v13  ;;  %v6901_v54 = vld [vmem:[%s15089_s2 + $0xa68] sm:$0xff]  ;;  %v6903_v13 = vld [vmem:[%s15089_s2 + $0xa78] sm:$0xff] }
 0x2d9   : > { %2909 = vmatprep.subr.mxu0 %v6945_v60  ;;  %2998 = vmatprep.subr.mxu1 %v6947_v8  ;;  %v6900_v60 = vld [vmem:[%s15089_s2 + $0xa60] sm:$0xff]  ;;  %v6902_v8 = vld [vmem:[%s15089_s2 + $0xa70] sm:$0xff] }
 0x2da   : > { %2910 = vmatpush2.msra.mxu0 %v6944_v27  ;;  %2999 = vmatpush2.msra.mxu1 %v6946_v28  ;;  %v6897_v27 = vld [vmem:[%s15089_s2 + $0xa48] sm:$0xff]  ;;  %v6899_v28 = vld [vmem:[%s15089_s2 + $0xa58] sm:$0xff] }
 0x2db   : > { %2911 = vmatprep.subr.mxu0 %v6941_v48  ;;  %3000 = vmatprep.subr.mxu1 %v6943_v50  ;;  %v6896_v48 = vld [vmem:[%s15089_s2 + $0xa40] sm:$0xff]  ;;  %v6898_v50 = vld [vmem:[%s15089_s2 + $0xa50] sm:$0xff] }
 0x2dc   : > { %2912 = vmatpush2.msra.mxu0 %v6940_v32  ;;  %3001 = vmatpush2.msra.mxu1 %v6942_v36  ;;  %v6893_v32 = vld [vmem:[%s15089_s2 + $0xa28] sm:$0xff]  ;;  %v6895_v36 = vld [vmem:[%s15089_s2 + $0xa38] sm:$0xff] }
 0x2dd   : > { %2913 = vmatprep.subr.mxu0 %v6937_v21  ;;  %3002 = vmatprep.subr.mxu1 %v6939_v19  ;;  %v6892_v21 = vld [vmem:[%s15089_s2 + $0xa20] sm:$0xff]  ;;  %v6894_v19 = vld [vmem:[%s15089_s2 + $0xa30] sm:$0xff] }
 0x2de   : > { %2914 = vmatpush2.msra.mxu0 %v6936_v51  ;;  %3003 = vmatpush2.msra.mxu1 %v6938_v49  ;;  %v6889_v51 = vld [vmem:[%s15089_s2 + $0xa08] sm:$0xff]  ;;  %v6891_v49 = vld [vmem:[%s15089_s2 + $0xa18] sm:$0xff] }
 0x2df   : > { %2915 = vmatprep.subr.mxu0 %v6933_v58  ;;  %3004 = vmatprep.subr.mxu1 %v6935_v53  ;;  %v6888_v58 = vld [vmem:[%s15089_s2 + $0xa00] sm:$0xff]  ;;  %v6890_v53 = vld [vmem:[%s15089_s2 + $0xa10] sm:$0xff] }
 0x2e0   : > { %2916 = vmatpush2.msra.mxu0 %v6932_v4  ;;  %3005 = vmatpush2.msra.mxu1 %v6934_v43  ;;  %v2857_v4 = vrot.slane %v10383_v40, 4  ;;  %v2684_v43 = vld [vmem:[#allocation2 + $0x38] sm:$0xf] }
 0x2e1   : > { %2917 = vmatprep.subr.mxu0 %v6929_v12  ;;  %3006 = vmatprep.subr.mxu1 %v6931_v47  ;;  %v2861_v47 = vrot.slane %v2710_v14, 4  ;;  %v2712_v40 = vmax.f32 %v2684_v43, %v2699_v15  ;;  %v7045_v14 = vld [vmem:[%s15091_s4 + $0xae8] sm:$0xff]  ;;  %v7023_v43 = vld [vmem:[%s15091_s4 + $0xa38] sm:$0xff] }
 0x2e2   : > { %2918 = vmatpush2.msra.mxu0 %v6928_v7  ;;  %3007 = vmatpush2.msra.mxu1 %v6930_v33  ;;  %v2858_v12 = vsel %vm2848_vm4, %v2853_v9, %v2857_v4  ;;  %v2683_v7 = vld [vmem:[#allocation2 + $0x40] sm:$0xf] }
 0x2e3   : > { %2919 = vmatprep.subr.mxu0 %v6925_v31  ;;  %3008 = vmatprep.subr.mxu1 %v6927_v5  ;;  %v2711_v33 = vmax.f32 %v2683_v7, %v2697_v1  ;;  %v2862_v10 = vsel %vm2848_vm4, %v2857_v4, %v2861_v47  ;;  %v7044_v31 = vld [vmem:[%s15091_s4 + $0xae0] sm:$0xff]  ;;  %v6979_v5 = vld [vmem:[%s15091_s4 + $0x8d8] sm:$0xff]  ;;  %v7021_v7 = vld [vmem:[%s15091_s4 + $0xa28] sm:$0xff] }
 0x2e4   : > { %2920 = vmatpush2.msra.mxu0 %v6924_v23  ;;  %3009 = vmatpush2.msra.mxu1 %v6926_v24  ;;  %v6978_v23 = vld [vmem:[%s15091_s4 + $0x8d0] sm:$0xff]  ;;  %v6959_v4 = vld [vmem:[%s15091_s4 + $0x838] sm:$0xff] }
 0x2e5   : > { %2921 = vmatprep.subr.mxu0 %v6921_v25  ;;  %3010 = vmatprep.subr.mxu1 %v6923_v29  ;;  %v2863_v15 = vrot.slane %v2711_v33, 4  ;;  %v7042_v24 = vld [vmem:[%s15091_s4 + $0xad0] sm:$0xff]  ;;  %v6977_v25 = vld [vmem:[%s15091_s4 + $0x8c8] sm:$0xff]  ;;  %v6956_v33 = vld [vmem:[%s15091_s4 + $0x820] sm:$0xff] }
 0x2e6   : > { %2922 = vmatpush2.msra.mxu0 %v6920_v63  ;;  %3011 = vmatpush2.msra.mxu1 %v6922_v39  ;;  %v7041_v29 = vld [vmem:[%s15091_s4 + $0xac8] sm:$0xff]  ;;  %v6976_v63 = vld [vmem:[%s15091_s4 + $0x8c0] sm:$0xff] }
 0x2e7   : > { %2923 = vmatprep.subr.mxu0 %v6917_v16  ;;  %3012 = vmatprep.subr.mxu1 %v6919_v59  ;;  %v2864_v9 = vsel %vm2848_vm4, %v10518_v11, %v2863_v15  ;;  %v7043_v11 = vld [vmem:[%s15091_s4 + $0xad8] sm:$0xff]  ;;  %v7040_v39 = vld [vmem:[%s15091_s4 + $0xac0] sm:$0xff]  ;;  %v7018_v15 = vld [vmem:[%s15091_s4 + $0xa10] sm:$0xff] }
 0x2e8   : > { %2924 = vmatpush2.msra.mxu0 %v6916_v20  ;;  %3013 = vmatpush2.msra.mxu1 %v6918_v26  ;;  %v6975_v16 = vld [vmem:[%s15091_s4 + $0x8b8] sm:$0xff]  ;;  %v6974_v20 = vld [vmem:[%s15091_s4 + $0x8b0] sm:$0xff] }
 0x2e9   : > { %2925 = vmatprep.subr.mxu0 %v6913_v17  ;;  %3014 = vmatprep.subr.mxu1 %v6915_v30  ;;  %v7039_v59 = vld [vmem:[%s15091_s4 + $0xab8] sm:$0xff]  ;;  %v7038_v26 = vld [vmem:[%s15091_s4 + $0xab0] sm:$0xff]  ;;  %v6973_v17 = vld [vmem:[%s15091_s4 + $0x8a8] sm:$0xff] }
 0x2ea   : > { %2926 = vmatpush2.msra.mxu0 %v6912_v45  ;;  %3015 = vmatpush2.msra.mxu1 %v6914_v0  ;;  %v7037_v30 = vld [vmem:[%s15091_s4 + $0xaa8] sm:$0xff]  ;;  %v6972_v45 = vld [vmem:[%s15091_s4 + $0x8a0] sm:$0xff] }
 0x2eb   : > { %2927 = vmatprep.subr.mxu0 %v6909_v35  ;;  %3016 = vmatprep.subr.mxu1 %v6911_v42  ;;  %v7036_v0 = vld [vmem:[%s15091_s4 + $0xaa0] sm:$0xff]  ;;  %v6971_v35 = vld [vmem:[%s15091_s4 + $0x898] sm:$0xff] }
 0x2ec   : > { %2928 = vmatpush2.msra.mxu0 %v6908_v52  ;;  %3017 = vmatpush2.msra.mxu1 %v6910_v18  ;;  %v7035_v42 = vld [vmem:[%s15091_s4 + $0xa98] sm:$0xff]  ;;  %v6970_v52 = vld [vmem:[%s15091_s4 + $0x890] sm:$0xff] }
 0x2ed   : > { %2929 = vmatprep.subr.mxu0 %v6905_v44  ;;  %3018 = vmatprep.subr.mxu1 %v6907_v61  ;;  %v7034_v18 = vld [vmem:[%s15091_s4 + $0xa90] sm:$0xff]  ;;  %v6969_v44 = vld [vmem:[%s15091_s4 + $0x888] sm:$0xff] }
 0x2ee   : > { %2930 = vmatpush2.msra.mxu0 %v6904_v2  ;;  %3019 = vmatpush2.msra.mxu1 %v6906_v34  ;;  %v7033_v61 = vld [vmem:[%s15091_s4 + $0xa88] sm:$0xff]  ;;  %v6968_v2 = vld [vmem:[%s15091_s4 + $0x880] sm:$0xff] }
 0x2ef   : > { %2931 = vmatprep.subr.mxu0 %v6901_v54  ;;  %3020 = vmatprep.subr.mxu1 %v6903_v13  ;;  %v7032_v34 = vld [vmem:[%s15091_s4 + $0xa80] sm:$0xff]  ;;  %v6967_v54 = vld [vmem:[%s15091_s4 + $0x878] sm:$0xff] }
 0x2f0   : > { %2932 = vmatpush2.msra.mxu0 %v6900_v60  ;;  %3021 = vmatpush2.msra.mxu1 %v6902_v8  ;;  %v7031_v13 = vld [vmem:[%s15091_s4 + $0xa78] sm:$0xff]  ;;  %v6966_v60 = vld [vmem:[%s15091_s4 + $0x870] sm:$0xff] }
 0x2f1   : > { %2933 = vmatprep.subr.mxu0 %v6897_v27  ;;  %3022 = vmatprep.subr.mxu1 %v6899_v28  ;;  %v7030_v8 = vld [vmem:[%s15091_s4 + $0xa70] sm:$0xff]  ;;  %v6965_v27 = vld [vmem:[%s15091_s4 + $0x868] sm:$0xff] }
 0x2f2   : > { %2934 = vmatpush2.msra.mxu0 %v6896_v48  ;;  %3023 = vmatpush2.msra.mxu1 %v6898_v50  ;;  %v7029_v28 = vld [vmem:[%s15091_s4 + $0xa68] sm:$0xff]  ;;  %v6964_v48 = vld [vmem:[%s15091_s4 + $0x860] sm:$0xff] }
 0x2f3   : > { %2935 = vmatprep.subr.mxu0 %v6893_v32  ;;  %3024 = vmatprep.subr.mxu1 %v6895_v36  ;;  %v7028_v50 = vld [vmem:[%s15091_s4 + $0xa60] sm:$0xff]  ;;  %v6963_v32 = vld [vmem:[%s15091_s4 + $0x858] sm:$0xff] }
 0x2f4   : > { %2936 = vmatpush2.msra.mxu0 %v6892_v21  ;;  %3025 = vmatpush2.msra.mxu1 %v6894_v19  ;;  %v7027_v36 = vld [vmem:[%s15091_s4 + $0xa58] sm:$0xff]  ;;  %v6962_v21 = vld [vmem:[%s15091_s4 + $0x850] sm:$0xff] }
 0x2f5   : > { %2937 = vmatprep.subr.mxu0 %v6889_v51  ;;  %3026 = vmatprep.subr.mxu1 %v6891_v49  ;;  %v7026_v19 = vld [vmem:[%s15091_s4 + $0xa50] sm:$0xff]  ;;  %v6961_v51 = vld [vmem:[%s15091_s4 + $0x848] sm:$0xff] }
 0x2f6   : > { %2938 = vmatpush2.msra.mxu0 %v6888_v58  ;;  %3027 = vmatpush2.msra.mxu1 %v6890_v53  ;;  %v7025_v49 = vld [vmem:[%s15091_s4 + $0xa48] sm:$0xff]  ;;  %v6960_v58 = vld [vmem:[%s15091_s4 + $0x840] sm:$0xff] }
 0x2f7   : > { %2940 = vmatmul.mubr.f32.vlgmr.msra.gmra.mxu0 %v10516_v46  ;;  %3029 = vmatmul.mubr.f32.vlgmr.msra.gmra.mxu1 %v10516_v46  ;;  %v2865_v46 = vrot.slane %v2712_v40, 4  ;;  %v7024_v53 = vld [vmem:[%s15091_s4 + $0xa40] sm:$0xff]  ;;  %v6957_v40 = vld [vmem:[%s15091_s4 + $0x828] sm:$0xff] }
 0x2f8   : > { %2945 = vmatprep.mubr.f32.mxu0 %v2858_v12  ;;  %3034 = vmatprep.mubr.f32.mxu1 %v2858_v12  ;;  %v6958_v12 = vld [vmem:[%s15091_s4 + $0x830] sm:$0xff] }
 0x2f9   : > { %3252 = vmatprep.subr.mxu0 %v6983_v56  ;;  %3341 = vmatprep.subr.mxu1 %v7047_v62  ;;  %v2866_v1 = vsel %vm2848_vm4, %v2861_v47, %v2865_v46  ;;  %v7022_v47 = vld [vmem:[%s15091_s4 + $0xa30] sm:$0xff]  ;;  %v6955_v46 = vld [vmem:[%s15091_s4 + $0x818] sm:$0xff] }
 0x2fa   : > { %3342 = vmatpush1.msra.mxu1 %v7046_v37  ;;  %v7019_v56 = vld [vmem:[%s15091_s4 + $0xa18] sm:$0xff]  ;;  %v6954_v62 = vld [vmem:[%s15091_s4 + $0x810] sm:$0xff]  ;;  %v7017_v37 = vld [vmem:[%s15091_s4 + $0xa08] sm:$0xff] }
 0x2fb   : > { %2946 = vmatmul.mubr.f32.gmra.mxu0 %v10463_v6  ;;  %3035 = vmatmul.mubr.f32.gmra.mxu1 %v10463_v6  ;;  %v6982_v6 = vld [vmem:[%s15091_s4 + $0x8f0] sm:$0xff] }
 0x2fc   : > { %2951 = vmatprep.mubr.f32.mxu0 %v2862_v10  ;;  %3040 = vmatprep.mubr.f32.mxu1 %v2862_v10  ;;  %v7020_v10 = vld [vmem:[%s15091_s4 + $0xa20] sm:$0xff] }
 0x2fd   : > { %3253 = vmatpush1.msra.mxu0 %v6982_v6  ;;  %3343 = vmatprep.subr.mxu1 %v7045_v14  ;;  %v6953_v6 = vld [vmem:[%s15091_s4 + $0x808] sm:$0xff]  ;;  %v7015_v14 = vld [vmem:[%s15091_s4 + $0x9f8] sm:$0xff] }
 0x2fe   : > { %3254 = vmatprep.subr.mxu0 %v6981_v22  ;;  %3344 = vmatpush1.msra.mxu1 %v7044_v31  ;;  %v7016_v22 = vld [vmem:[%s15091_s4 + $0xa00] sm:$0xff]  ;;  %v7078_v31 = vld [vmem:[%s15091_s4 + $0xbf0] sm:$0xff] }
 0x2ff   : > { %2952 = vmatmul.mubr.f32.gmra.mxu0 %v10531_v3  ;;  %3041 = vmatmul.mubr.f32.gmra.mxu1 %v10531_v3  ;;  %v6980_v3 = vld [vmem:[%s15091_s4 + $0x8e0] sm:$0xff] }
 0x300   : > { %2957 = vmatprep.mubr.f32.mxu0 %v2866_v1  ;;  %3046 = vmatprep.mubr.f32.mxu1 %v2866_v1  ;;  %v6952_v1 = vld [vmem:[%s15091_s4 + $0x800] sm:$0xff] }
 0x301   : > { %3255 = vmatpush1.msra.mxu0 %v6980_v3  ;;  %3345 = vmatprep.subr.mxu1 %v7043_v11  ;;  %v7014_v3 = vld [vmem:[%s15091_s4 + $0x9f0] sm:$0xff]  ;;  %v7077_v11 = vld [vmem:[%s15091_s4 + $0xbe8] sm:$0xff] }
 0x302   : > { %3256 = vmatprep.subr.mxu0 %v6979_v5  ;;  %3346 = vmatpush1.msra.mxu1 %v7042_v24  ;;  %v7013_v5 = vld [vmem:[%s15091_s4 + $0x9e8] sm:$0xff]  ;;  %v7076_v24 = vld [vmem:[%s15091_s4 + $0xbe0] sm:$0xff] }
 0x303   : > { %2958 = vmatmul.mubr.f32.gmra.mxu0 %v2864_v9  ;;  %3047 = vmatmul.mubr.f32.gmra.mxu1 %v2864_v9  ;;  %v7079_v9 = vld [vmem:[%s15091_s4 + $0xbf8] sm:$0xff] }
 0x304   : > { %3257 = vmatpush1.msra.mxu0 %v6978_v23  ;;  %3347 = vmatprep.subr.mxu1 %v7041_v29  ;;  %v7012_v23 = vld [vmem:[%s15091_s4 + $0x9e0] sm:$0xff]  ;;  %v7075_v29 = vld [vmem:[%s15091_s4 + $0xbd8] sm:$0xff] }
 0x305   : > { %3258 = vmatprep.subr.mxu0 %v6977_v25  ;;  %3348 = vmatpush1.msra.mxu1 %v7040_v39  ;;  %v7011_v25 = vld [vmem:[%s15091_s4 + $0x9d8] sm:$0xff]  ;;  %v7074_v39 = vld [vmem:[%s15091_s4 + $0xbd0] sm:$0xff] }
 0x306   : > { %3259 = vmatpush1.msra.mxu0 %v6976_v63  ;;  %3349 = vmatprep.subr.mxu1 %v7039_v59  ;;  %v7010_v63 = vld [vmem:[%s15091_s4 + $0x9d0] sm:$0xff]  ;;  %v7073_v59 = vld [vmem:[%s15091_s4 + $0xbc8] sm:$0xff] }
 0x307   : > { %3260 = vmatprep.subr.mxu0 %v6975_v16  ;;  %3350 = vmatpush1.msra.mxu1 %v7038_v26  ;;  %v7009_v16 = vld [vmem:[%s15091_s4 + $0x9c8] sm:$0xff]  ;;  %v7072_v26 = vld [vmem:[%s15091_s4 + $0xbc0] sm:$0xff] }
 0x308   : > { %3261 = vmatpush1.msra.mxu0 %v6974_v20  ;;  %3351 = vmatprep.subr.mxu1 %v7037_v30  ;;  %v7008_v20 = vld [vmem:[%s15091_s4 + $0x9c0] sm:$0xff]  ;;  %v7071_v30 = vld [vmem:[%s15091_s4 + $0xbb8] sm:$0xff] }
 0x309   : > { %3262 = vmatprep.subr.mxu0 %v6973_v17  ;;  %3352 = vmatpush1.msra.mxu1 %v7036_v0  ;;  %v7007_v17 = vld [vmem:[%s15091_s4 + $0x9b8] sm:$0xff]  ;;  %v7070_v0 = vld [vmem:[%s15091_s4 + $0xbb0] sm:$0xff] }
 0x30a   : > { %3263 = vmatpush1.msra.mxu0 %v6972_v45  ;;  %3353 = vmatprep.subr.mxu1 %v7035_v42  ;;  %v7006_v45 = vld [vmem:[%s15091_s4 + $0x9b0] sm:$0xff]  ;;  %v7069_v42 = vld [vmem:[%s15091_s4 + $0xba8] sm:$0xff] }
 0x30b   : > { %3264 = vmatprep.subr.mxu0 %v6971_v35  ;;  %3354 = vmatpush1.msra.mxu1 %v7034_v18  ;;  %v7005_v35 = vld [vmem:[%s15091_s4 + $0x9a8] sm:$0xff]  ;;  %v7068_v18 = vld [vmem:[%s15091_s4 + $0xba0] sm:$0xff] }
 0x30c   : > { %3265 = vmatpush1.msra.mxu0 %v6970_v52  ;;  %3355 = vmatprep.subr.mxu1 %v7033_v61  ;;  %v7004_v52 = vld [vmem:[%s15091_s4 + $0x9a0] sm:$0xff]  ;;  %v7067_v61 = vld [vmem:[%s15091_s4 + $0xb98] sm:$0xff] }
 0x30d   : > { %3266 = vmatprep.subr.mxu0 %v6969_v44  ;;  %3356 = vmatpush1.msra.mxu1 %v7032_v34  ;;  %v7003_v44 = vld [vmem:[%s15091_s4 + $0x998] sm:$0xff]  ;;  %v7066_v34 = vld [vmem:[%s15091_s4 + $0xb90] sm:$0xff] }
 0x30e   : > { %3267 = vmatpush1.msra.mxu0 %v6968_v2  ;;  %3357 = vmatprep.subr.mxu1 %v7031_v13  ;;  %v7002_v2 = vld [vmem:[%s15091_s4 + $0x990] sm:$0xff]  ;;  %v7065_v13 = vld [vmem:[%s15091_s4 + $0xb88] sm:$0xff] }
 0x30f   : > { %3268 = vmatprep.subr.mxu0 %v6967_v54  ;;  %3358 = vmatpush1.msra.mxu1 %v7030_v8  ;;  %v7001_v54 = vld [vmem:[%s15091_s4 + $0x988] sm:$0xff]  ;;  %v7064_v8 = vld [vmem:[%s15091_s4 + $0xb80] sm:$0xff] }
 0x310   : > { %3269 = vmatpush1.msra.mxu0 %v6966_v60  ;;  %3359 = vmatprep.subr.mxu1 %v7029_v28  ;;  %v7000_v60 = vld [vmem:[%s15091_s4 + $0x980] sm:$0xff]  ;;  %v7063_v28 = vld [vmem:[%s15091_s4 + $0xb78] sm:$0xff] }
 0x311   : > { %3270 = vmatprep.subr.mxu0 %v6965_v27  ;;  %3360 = vmatpush1.msra.mxu1 %v7028_v50  ;;  %v6999_v27 = vld [vmem:[%s15091_s4 + $0x978] sm:$0xff]  ;;  %v7062_v50 = vld [vmem:[%s15091_s4 + $0xb70] sm:$0xff] }
 0x312   : > { %3271 = vmatpush1.msra.mxu0 %v6964_v48  ;;  %3361 = vmatprep.subr.mxu1 %v7027_v36  ;;  %v6998_v48 = vld [vmem:[%s15091_s4 + $0x970] sm:$0xff]  ;;  %v7061_v36 = vld [vmem:[%s15091_s4 + $0xb68] sm:$0xff] }
 0x313   : > { %3272 = vmatprep.subr.mxu0 %v6963_v32  ;;  %3362 = vmatpush1.msra.mxu1 %v7026_v19  ;;  %v6997_v32 = vld [vmem:[%s15091_s4 + $0x968] sm:$0xff]  ;;  %v7060_v19 = vld [vmem:[%s15091_s4 + $0xb60] sm:$0xff] }
 0x314   : > { %3273 = vmatpush1.msra.mxu0 %v6962_v21  ;;  %3363 = vmatprep.subr.mxu1 %v7025_v49  ;;  %v6996_v21 = vld [vmem:[%s15091_s4 + $0x960] sm:$0xff]  ;;  %v7059_v49 = vld [vmem:[%s15091_s4 + $0xb58] sm:$0xff] }
 0x315   : > { %3274 = vmatprep.subr.mxu0 %v6961_v51  ;;  %3364 = vmatpush1.msra.mxu1 %v7024_v53  ;;  %v6995_v51 = vld [vmem:[%s15091_s4 + $0x958] sm:$0xff]  ;;  %v7058_v53 = vld [vmem:[%s15091_s4 + $0xb50] sm:$0xff] }
 0x316   : > { %3275 = vmatpush1.msra.mxu0 %v6960_v58  ;;  %3365 = vmatprep.subr.mxu1 %v7023_v43  ;;  %v6994_v58 = vld [vmem:[%s15091_s4 + $0x950] sm:$0xff]  ;;  %v7057_v43 = vld [vmem:[%s15091_s4 + $0xb48] sm:$0xff] }
 0x317   : > { %3276 = vmatprep.subr.mxu0 %v6959_v4  ;;  %3366 = vmatpush1.msra.mxu1 %v7022_v47  ;;  %v6993_v4 = vld [vmem:[%s15091_s4 + $0x948] sm:$0xff]  ;;  %v7056_v47 = vld [vmem:[%s15091_s4 + $0xb40] sm:$0xff] }
 0x318   : > { %3277 = vmatpush1.msra.mxu0 %v6958_v12  ;;  %3367 = vmatprep.subr.mxu1 %v7021_v7  ;;  %v6992_v12 = vld [vmem:[%s15091_s4 + $0x940] sm:$0xff]  ;;  %v7055_v7 = vld [vmem:[%s15091_s4 + $0xb38] sm:$0xff] }
 0x319   : > { %3278 = vmatprep.subr.mxu0 %v6957_v40  ;;  %3368 = vmatpush1.msra.mxu1 %v7020_v10  ;;  %v6991_v40 = vld [vmem:[%s15091_s4 + $0x938] sm:$0xff]  ;;  %v7054_v10 = vld [vmem:[%s15091_s4 + $0xb30] sm:$0xff] }
 0x31a   : > { %3279 = vmatpush1.msra.mxu0 %v6956_v33  ;;  %3369 = vmatprep.subr.mxu1 %v7019_v56  ;;  %v6990_v33 = vld [vmem:[%s15091_s4 + $0x930] sm:$0xff]  ;;  %v7053_v56 = vld [vmem:[%s15091_s4 + $0xb28] sm:$0xff] }
 0x31b   : > { %3280 = vmatprep.subr.mxu0 %v6955_v46  ;;  %3370 = vmatpush1.msra.mxu1 %v7018_v15  ;;  %v6989_v46 = vld [vmem:[%s15091_s4 + $0x928] sm:$0xff]  ;;  %v7052_v15 = vld [vmem:[%s15091_s4 + $0xb20] sm:$0xff] }
 0x31c   : > { %3281 = vmatpush1.msra.mxu0 %v6954_v62  ;;  %3371 = vmatprep.subr.mxu1 %v7017_v37  ;;  %v6988_v62 = vld [vmem:[%s15091_s4 + $0x920] sm:$0xff]  ;;  %v7051_v37 = vld [vmem:[%s15091_s4 + $0xb18] sm:$0xff] }
 0x31d   : > { %3282 = vmatprep.subr.mxu0 %v6953_v6  ;;  %3372 = vmatpush1.msra.mxu1 %v7016_v22  ;;  %v6987_v6 = vld [vmem:[%s15091_s4 + $0x918] sm:$0xff]  ;;  %v7050_v22 = vld [vmem:[%s15091_s4 + $0xb10] sm:$0xff] }
 0x31e   : > { %3283 = vmatpush1.msra.mxu0 %v6952_v1  ;;  %3373 = vmatprep.subr.mxu1 %v7079_v9  ;;  %v6986_v1 = vld [vmem:[%s15091_s4 + $0x910] sm:$0xff]  ;;  %v7049_v9 = vld [vmem:[%s15091_s4 + $0xb08] sm:$0xff] }
 0x31f   : > { %3284 = vmatprep.subr.mxu0 %v7015_v14  ;;  %3374 = vmatpush2.msra.mxu1 %v7078_v31  ;;  %v6985_v14 = vld [vmem:[%s15091_s4 + $0x908] sm:$0xff]  ;;  %v7048_v31 = vld [vmem:[%s15091_s4 + $0xb00] sm:$0xff] }
 0x320   : > { %3285 = vmatpush2.msra.mxu0 %v7014_v3  ;;  %3375 = vmatprep.subr.mxu1 %v7077_v11  ;;  %v6984_v3 = vld [vmem:[%s15091_s4 + $0x900] sm:$0xff]  ;;  %v7175_v11 = vld [vmem:[%s15091_s4 + $0xef8] sm:$0xff] }
 0x321   : > { %3286 = vmatprep.subr.mxu0 %v7013_v5  ;;  %3376 = vmatpush2.msra.mxu1 %v7076_v24  ;;  %v7111_v5 = vld [vmem:[%s15091_s4 + $0xcf8] sm:$0xff] }
 0x322   : > { %3287 = vmatpush2.msra.mxu0 %v7012_v23  ;;  %3377 = vmatprep.subr.mxu1 %v7075_v29 }
 0x323   : > { %3288 = vmatprep.subr.mxu0 %v7011_v25  ;;  %3378 = vmatpush2.msra.mxu1 %v7074_v39 }
 0x324   : > { %3289 = vmatpush2.msra.mxu0 %v7010_v63  ;;  %3379 = vmatprep.subr.mxu1 %v7073_v59 }
 0x325   : > { %3290 = vmatprep.subr.mxu0 %v7009_v16  ;;  %3380 = vmatpush2.msra.mxu1 %v7072_v26 }
 0x326   : > { %3291 = vmatpush2.msra.mxu0 %v7008_v20  ;;  %3381 = vmatprep.subr.mxu1 %v7071_v30 }
 0x327   : > { %3292 = vmatprep.subr.mxu0 %v7007_v17  ;;  %3382 = vmatpush2.msra.mxu1 %v7070_v0 }
 0x328   : > { %3293 = vmatpush2.msra.mxu0 %v7006_v45  ;;  %3383 = vmatprep.subr.mxu1 %v7069_v42  ;;  %v2391_v23 = vpop.f32.mrf.mxu0  ;;  %v2480_v24 = vpop.f32.mrf.mxu1 }
 0x329   : > { %3294 = vmatprep.subr.mxu0 %v7005_v35  ;;  %3384 = vmatpush2.msra.mxu1 %v7068_v18 }
 0x32a   : > { %3295 = vmatpush2.msra.mxu0 %v7004_v52  ;;  %3385 = vmatprep.subr.mxu1 %v7067_v61  ;;  %v2393_v25 = vpop.f32.mrf.mxu0  ;;  %v2482_v29 = vpop.f32.mrf.mxu1 }
 0x32b   : > { %3296 = vmatprep.subr.mxu0 %v7003_v44  ;;  %3386 = vmatpush2.msra.mxu1 %v7066_v34 }
 0x32c   : > { %3297 = vmatpush2.msra.mxu0 %v7002_v2  ;;  %3387 = vmatprep.subr.mxu1 %v7065_v13 }
 0x32d   : > { %3298 = vmatprep.subr.mxu0 %v7001_v54  ;;  %3388 = vmatpush2.msra.mxu1 %v7064_v8 }
 0x32e   : > { %3299 = vmatpush2.msra.mxu0 %v7000_v60  ;;  %3389 = vmatprep.subr.mxu1 %v7063_v28  ;;  %v2397_v63 = vpop.f32.mrf.mxu0  ;;  %v2486_v39 = vpop.f32.mrf.mxu1 }
 0x32f   : > { %3300 = vmatprep.subr.mxu0 %v6999_v27  ;;  %3390 = vmatpush2.msra.mxu1 %v7062_v50 }
 0x330   : > { %3301 = vmatpush2.msra.mxu0 %v6998_v48  ;;  %3391 = vmatprep.subr.mxu1 %v7061_v36  ;;  %v2399_v16 = vpop.f32.mrf.mxu0  ;;  %v2488_v59 = vpop.f32.mrf.mxu1 }
 0x331   : > { %3302 = vmatprep.subr.mxu0 %v6997_v32  ;;  %3392 = vmatpush2.msra.mxu1 %v7060_v19  ;;  %v3069_v32 = vld [vmem:[%s15093_s6] sm:$0xf] }
 0x332   : > { %3303 = vmatpush2.msra.mxu0 %v6996_v21  ;;  %3393 = vmatprep.subr.mxu1 %v7059_v49 }
 0x333   : > { %3304 = vmatprep.subr.mxu0 %v6995_v51  ;;  %3394 = vmatpush2.msra.mxu1 %v7058_v53 }
 0x334   : > { %3305 = vmatpush2.msra.mxu0 %v6994_v58  ;;  %3395 = vmatprep.subr.mxu1 %v7057_v43  ;;  %v11631_v20 = vpop.f32.mrf.mxu0  ;;  %v11633_v26 = vpop.f32.mrf.mxu1  ;;  %v11659_v58 = vrot.slane %v3069_v32, %v9362_v55  ;;  %v11665_v43 = vrot.slane %v3069_v32, %v9370_v57 }
 0x335   : > { %3306 = vmatprep.subr.mxu0 %v6993_v4  ;;  %3396 = vmatpush2.msra.mxu1 %v7056_v47  ;;  %v11662_v4 = vrot.slane %v3069_v32, %v9553_v38 }
 0x336   : > { %3307 = vmatpush2.msra.mxu0 %v6992_v12  ;;  %3397 = vmatprep.subr.mxu1 %v7055_v7  ;;  %v11635_v17 = vpop.f32.mrf.mxu0  ;;  %v11637_v30 = vpop.f32.mrf.mxu1  ;;  %v11668_v12 = vrot.slane %v3069_v32, %v9559_v41  ;;  %v7109_v32 = vld [vmem:[%s15091_s4 + $0xce8] sm:$0xff] }
 0x337   : > { %3308 = vmatprep.subr.mxu0 %v6991_v40  ;;  %3398 = vmatpush2.msra.mxu1 %v7054_v10 }
 0x338   : > { %3309 = vmatpush2.msra.mxu0 %v6990_v33  ;;  %3399 = vmatprep.subr.mxu1 %v7053_v56 }
 0x339   : > { %3310 = vmatprep.subr.mxu0 %v6989_v46  ;;  %3400 = vmatpush2.msra.mxu1 %v7052_v15 }
 0x33a   : > { %3311 = vmatpush2.msra.mxu0 %v6988_v62  ;;  %3401 = vmatprep.subr.mxu1 %v7051_v37  ;;  %v11639_v45 = vpop.f32.mrf.mxu0  ;;  %v11641_v0 = vpop.f32.mrf.mxu1 }
 0x33b   : > { %3312 = vmatprep.subr.mxu0 %v6987_v6  ;;  %3402 = vmatpush2.msra.mxu1 %v7050_v22 }
 0x33c   : > { %3313 = vmatpush2.msra.mxu0 %v6986_v1  ;;  %3403 = vmatprep.subr.mxu1 %v7049_v9  ;;  %v11643_v35 = vpop.f32.mrf.mxu0  ;;  %v11645_v42 = vpop.f32.mrf.mxu1 }
 0x33d   : > { %3314 = vmatprep.subr.mxu0 %v6985_v14  ;;  %3404 = vmatpush2.msra.mxu1 %v7048_v31 }
 0x33e   : > { %3315 = vmatpush2.msra.mxu0 %v6984_v3  ;;  %3648 = vmatprep.subr.mxu1 %v7175_v11 }
 0x33f   : > { %3559 = vmatprep.subr.mxu0 %v7111_v5 }
 0x36f   : > { %v2569_v52 = vpop.f32.mrf.mxu0  ;;  %v2658_v18 = vpop.f32.mrf.mxu1 }
 0x370   : > { %v2570_v19 = vadd.f32 %v2569_v52, %v2391_v23  ;;  %v2659_v51 = vadd.f32 %v2658_v18, %v2480_v24 }
 0x371   : > { %v2571_v44 = vpop.f32.mrf.mxu0  ;;  %v2660_v61 = vpop.f32.mrf.mxu1 }
 0x372   : > { %v2572_v47 = vadd.f32 %v2571_v44, %v2393_v25  ;;  %v2661_v40 = vadd.f32 %v2660_v61, %v2482_v29  ;;  %v7110_v44 = vld [vmem:[%s15091_s4 + $0xcf0] sm:$0xff] }
 0x375   : > { %v2575_v2 = vpop.f32.mrf.mxu0  ;;  %v2664_v34 = vpop.f32.mrf.mxu1 }
 0x376   : > { %v2576_v15 = vadd.f32 %v2575_v2, %v2397_v63  ;;  %v2665_v6 = vadd.f32 %v2664_v34, %v2486_v39 }
 0x377   : > { %v2577_v54 = vpop.f32.mrf.mxu0  ;;  %v2666_v13 = vpop.f32.mrf.mxu1 }
 0x378   : > { %v2578_v37 = vadd.f32 %v2577_v54, %v2399_v16  ;;  %v2667_v9 = vadd.f32 %v2666_v13, %v2488_v59  ;;  %v7174_v13 = vld [vmem:[%s15091_s4 + $0xef0] sm:$0xff] }
 0x37b   : > { %v2581_v60 = vpop.f32.mrf.mxu0  ;;  %v2670_v8 = vpop.f32.mrf.mxu1 }
 0x37c   : > { %v2582_v61 = vadd.f32 %v2581_v60, %v11631_v20 }
 0x37d   : > { %v2583_v27 = vpop.f32.mrf.mxu0  ;;  %v2672_v28 = vpop.f32.mrf.mxu1 }
 0x37e   : > { %v2584_v20 = vadd.f32 %v2583_v27, %v11635_v17  ;;  %v2673_v60 = vadd.f32 %v2672_v28, %v11637_v30  ;;  %v7108_v17 = vld [vmem:[%s15091_s4 + $0xce0] sm:$0xff]  ;;  %v2671_v30 = vadd.f32 %v2670_v8, %v11633_v26 }
 0x381   : > { %v11647_v48 = vpop.f32.mrf.mxu0  ;;  %v11649_v50 = vpop.f32.mrf.mxu1 }
 0x383   : > { %v11654_v36 = vpop.f32.mrf.mxu0  ;;  %v11656_v21 = vpop.f32.mrf.mxu1 }
 0x3b7   : > { %v2941_v49 = vpop.f32.mrf.mxu0  ;;  %v3030_v53 = vpop.f32.mrf.mxu1 }
 0x3b8   : > { %v3053_v7 = vadd.f32 %v2941_v49, %v2570_v19  ;;  %v3055_v33 = vadd.f32 %v3030_v53, %v2659_v51  ;;  %v7173_v53 = vld [vmem:[%s15091_s4 + $0xee8] sm:$0xff] }
 0x3b9   : > { %v2943_v10 = vpop.f32.mrf.mxu0  ;;  %v3032_v46 = vpop.f32.mrf.mxu1 }
 0x3ba   : > { %v3054_v56 = vadd.f32 %v2943_v10, %v2572_v47  ;;  %v3056_v62 = vadd.f32 %v3032_v46, %v2661_v40  ;;  %v11671_v1 = vadd.f32 %v11659_v58, %v3053_v7  ;;  %v11674_v3 = vadd.f32 %v11662_v4, %v3055_v33  ;;  %v7172_v40 = vld [vmem:[%s15091_s4 + $0xee0] sm:$0xff]  ;;  %v7107_v46 = vld [vmem:[%s15091_s4 + $0xcd8] sm:$0xff] }
 0x3bb   : > { %v2947_v22 = vpop.f32.mrf.mxu0  ;;  %v3036_v14 = vpop.f32.mrf.mxu1 }
 0x3bc   : > { %v11677_v31 = vadd.f32 %v11665_v43, %v3054_v56  ;;  %v11680_v5 = vadd.f32 %v11668_v12, %v3056_v62  ;;  %v3057_v11 = vadd.f32 %v2947_v22, %v2576_v15  ;;  %v3059_v23 = vadd.f32 %v3036_v14, %v2665_v6  ;;  %v7171_v15 = vld [vmem:[%s15091_s4 + $0xed8] sm:$0xff] }
 0x3bd   : > { %v2949_v24 = vpop.f32.mrf.mxu0  ;;  %v3038_v25 = vpop.f32.mrf.mxu1  ;;  %v3107_v59 = vmax.f32 %v11671_v1, 0.0  ;;  %v3109_v2 = vmax.f32 %v11674_v3, 0.0  ;;  %v2590_v56 = vadd.f32 %v11654_v36, %v11643_v35  ;;  %v2679_v6 = vadd.f32 %v11656_v21, %v11645_v42  ;;  %v7269_v1 = vld [vmem:[%s15090_s3 + $0x5e8] sm:$0xff]  ;;  %v7271_v3 = vld [vmem:[%s15090_s3 + $0x5f8] sm:$0xff] }
 0x3be   : > { %v3108_v29 = vmax.f32 %v11677_v31, 0.0  ;;  %v3110_v63 = vmax.f32 %v11680_v5, 0.0  ;;  %v3058_v39 = vadd.f32 %v2949_v24, %v2578_v37  ;;  %v3060_v16 = vadd.f32 %v3038_v25, %v2667_v9  ;;  %v7106_v9 = vld [vmem:[%s15091_s4 + $0xcd0] sm:$0xff]  ;;  %v7093_v31 = vld [vmem:[%s15091_s4 + $0xc68] sm:$0xff]  ;;  %v7092_v5 = vld [vmem:[%s15091_s4 + $0xc60] sm:$0xff] }
 0x3bf   : > { %v2953_v52 = vpop.f32.mrf.mxu0  ;;  %v3042_v18 = vpop.f32.mrf.mxu1  ;;  %v11707_v19 = vadd.f32 %v11659_v58, %v3057_v11  ;;  %v11721_v27 = vadd.f32 %v11662_v4, %v3059_v23  ;;  %v7170_v11 = vld [vmem:[%s15091_s4 + $0xed0] sm:$0xff]  ;;  %v7105_v23 = vld [vmem:[%s15091_s4 + $0xcc8] sm:$0xff]  ;;  %v2588_v24 = vadd.f32 %v11647_v48, %v11639_v45  ;;  %v2677_v45 = vadd.f32 %v11649_v50, %v11641_v0  ;;  %v7103_v0 = vld [vmem:[%s15091_s4 + $0xcb8] sm:$0xff] }
 0x3c0   : > { %v11691_v34 = vadd.f32 %v11665_v43, %v3058_v39  ;;  %v11694_v54 = vadd.f32 %v11668_v12, %v3060_v16  ;;  %3316 = vmatprep.mubr.f32.mxu0 %v3108_v29  ;;  %3405 = vmatprep.mubr.f32.mxu1 %v3110_v63  ;;  %v3061_v7 = vadd.f32 %v2953_v52, %v2582_v61  ;;  %v7169_v52 = vld [vmem:[%s15091_s4 + $0xec8] sm:$0xff]  ;;  %v7168_v61 = vld [vmem:[%s15091_s4 + $0xec0] sm:$0xff] }
 0x3c1   : > { %v2955_v51 = vpop.f32.mrf.mxu0  ;;  %v3044_v49 = vpop.f32.mrf.mxu1  ;;  %3317 = vmatmul.mubr.f32.vlgmr.msra.gmra.mxu0 %v3107_v59  ;;  %3406 = vmatmul.mubr.f32.vlgmr.msra.gmra.mxu1 %v3109_v2  ;;  %v3063_v62 = vadd.f32 %v3042_v18, %v2671_v30  ;;  %v3111_v37 = vmax.f32 %v11707_v19, 0.0  ;;  %v3113_v42 = vmax.f32 %v11721_v27, 0.0  ;;  %v7104_v18 = vld [vmem:[%s15091_s4 + $0xcc0] sm:$0xff]  ;;  %v7266_v27 = vld [vmem:[%s15090_s3 + $0x5d0] sm:$0xff] }
 0x3c2   : > { %v3112_v28 = vmax.f32 %v11691_v34, 0.0  ;;  %v3114_v47 = vmax.f32 %v11694_v54, 0.0  ;;  %3560 = vmatpush1.msra.mxu0 %v7110_v44  ;;  %v3062_v33 = vadd.f32 %v2955_v51, %v2584_v20  ;;  %v3064_v10 = vadd.f32 %v3044_v49, %v2673_v60  ;;  %3649 = vmatpush1.msra.mxu1 %v7174_v13  ;;  %v7167_v60 = vld [vmem:[%s15091_s4 + $0xeb8] sm:$0xff]  ;;  %v7265_v34 = vld [vmem:[%s15090_s3 + $0x5c8] sm:$0xff]  ;;  %v7264_v19 = vld [vmem:[%s15090_s3 + $0x5c0] sm:$0xff] }
 0x3c3   : > { %3561 = vmatprep.subr.mxu0 %v7109_v32  ;;  %v2959_v26 = vpop.f32.mrf.mxu0  ;;  %v3048_v8 = vpop.f32.mrf.mxu1  ;;  %3650 = vmatprep.subr.mxu1 %v7173_v53  ;;  %v11764_v25 = vadd.f32 %v11659_v58, %v3061_v7  ;;  %v11778_v48 = vadd.f32 %v11662_v4, %v3063_v62  ;;  %v7101_v53 = vld [vmem:[%s15091_s4 + $0xca8] sm:$0xff]  ;;  %v7100_v7 = vld [vmem:[%s15091_s4 + $0xca0] sm:$0xff]  ;;  %v7162_v62 = vld [vmem:[%s15091_s4 + $0xe90] sm:$0xff] }
 0x3c4   : > { %3562 = vmatpush1.msra.mxu0 %v7108_v17  ;;  %v11742_v22 = vadd.f32 %v11665_v43, %v3062_v33  ;;  %v11745_v14 = vadd.f32 %v11668_v12, %v3064_v10  ;;  %3651 = vmatpush1.msra.mxu1 %v7172_v40  ;;  %v3065_v13 = vadd.f32 %v2959_v26, %v2588_v24  ;;  %v7165_v40 = vld [vmem:[%s15091_s4 + $0xea8] sm:$0xff]  ;;  %v7164_v10 = vld [vmem:[%s15091_s4 + $0xea0] sm:$0xff]  ;;  %v7099_v26 = vld [vmem:[%s15091_s4 + $0xc98] sm:$0xff] }
 0x3c5   : > { %3322 = vmatprep.mubr.f32.mxu0 %v3112_v28  ;;  %v2961_v35 = vpop.f32.mrf.mxu0  ;;  %v3050_v36 = vpop.f32.mrf.mxu1  ;;  %3411 = vmatprep.mubr.f32.mxu1 %v3114_v47  ;;  %v3067_v50 = vadd.f32 %v3048_v8, %v2677_v45  ;;  %v3115_v51 = vmax.f32 %v11764_v25, 0.0  ;;  %v3117_v49 = vmax.f32 %v11778_v48, 0.0  ;;  %v7091_v24 = vld [vmem:[%s15091_s4 + $0xc58] sm:$0xff]  ;;  %v7089_v45 = vld [vmem:[%s15091_s4 + $0xc48] sm:$0xff]  ;;  %v7256_v25 = vld [vmem:[%s15090_s3 + $0x580] sm:$0xff] }
 0x3c6   : > { %3563 = vmatprep.subr.mxu0 %v7107_v46  ;;  %v3066_v21 = vadd.f32 %v2961_v35, %v2590_v56  ;;  %v3116_v39 = vmax.f32 %v11742_v22, 0.0  ;;  %3652 = vmatprep.subr.mxu1 %v7171_v15  ;;  %v3068_v16 = vadd.f32 %v3050_v36, %v2679_v6  ;;  %v3118_v44 = vmax.f32 %v11745_v14, 0.0  ;;  %v7098_v46 = vld [vmem:[%s15091_s4 + $0xc90] sm:$0xff]  ;;  %v7097_v15 = vld [vmem:[%s15091_s4 + $0xc88] sm:$0xff]  ;;  %v7096_v35 = vld [vmem:[%s15091_s4 + $0xc80] sm:$0xff] }
 0x3c7   : > { %3323 = vmatmul.mubr.f32.gmra.mxu0 %v3111_v37  ;;  %3412 = vmatmul.mubr.f32.gmra.mxu1 %v3113_v42  ;;  %v11814_v17 = vadd.f32 %v11659_v58, %v3065_v13  ;;  %v11826_v33 = vadd.f32 %v11662_v4, %v3067_v50  ;;  %v7163_v4 = vld [vmem:[%s15091_s4 + $0xe98] sm:$0xff]  ;;  %v7161_v6 = vld [vmem:[%s15091_s4 + $0xe88] sm:$0xff]  ;;  %v7160_v36 = vld [vmem:[%s15091_s4 + $0xe80] sm:$0xff] }
 0x3c8   : > { %3564 = vmatpush1.msra.mxu0 %v7106_v9  ;;  %v11787_v32 = vadd.f32 %v11665_v43, %v3066_v21  ;;  %3653 = vmatpush1.msra.mxu1 %v7170_v11  ;;  %v11793_v20 = vadd.f32 %v11668_v12, %v3068_v16  ;;  %v7102_v43 = vld [vmem:[%s15091_s4 + $0xcb0] sm:$0xff]  ;;  %v7095_v9 = vld [vmem:[%s15091_s4 + $0xc78] sm:$0xff]  ;;  %v7088_v13 = vld [vmem:[%s15091_s4 + $0xc40] sm:$0xff] }
 0x3c9   : > { %3565 = vmatprep.subr.mxu0 %v7105_v23  ;;  %3654 = vmatprep.subr.mxu1 %v7169_v52  ;;  %v7166_v12 = vld [vmem:[%s15091_s4 + $0xeb0] sm:$0xff]  ;;  %v3119_v8 = vmax.f32 %v11814_v17, 0.0  ;;  %v3121_v56 = vmax.f32 %v11826_v33, 0.0  ;;  %v7159_v21 = vld [vmem:[%s15091_s4 + $0xe78] sm:$0xff]  ;;  %v7257_v14 = vld [vmem:[%s15090_s3 + $0x588] sm:$0xff] }
 0x3ca   : > { %3566 = vmatpush1.msra.mxu0 %v7104_v18  ;;  %3655 = vmatpush1.msra.mxu1 %v7168_v61  ;;  %v3120_v30 = vmax.f32 %v11787_v32, 0.0  ;;  %v3122_v58 = vmax.f32 %v11793_v20, 0.0  ;;  %v7094_v11 = vld [vmem:[%s15091_s4 + $0xc70] sm:$0xff]  ;;  %v7155_v16 = vld [vmem:[%s15091_s4 + $0xe58] sm:$0xff]  ;;  %v7153_v61 = vld [vmem:[%s15091_s4 + $0xe48] sm:$0xff] }
 0x3cb   : > { %3328 = vmatprep.mubr.f32.mxu0 %v3116_v39  ;;  %3417 = vmatprep.mubr.f32.mxu1 %v3118_v44  ;;  %v7158_v23 = vld [vmem:[%s15091_s4 + $0xe70] sm:$0xff]  ;;  %v7087_v50 = vld [vmem:[%s15091_s4 + $0xc38] sm:$0xff]  ;;  %v7253_v48 = vld [vmem:[%s15090_s3 + $0x568] sm:$0xff] }
 0x3cc   : > { %3567 = vmatprep.subr.mxu0 %v7103_v0  ;;  %3656 = vmatprep.subr.mxu1 %v7167_v60  ;;  %v7090_v52 = vld [vmem:[%s15091_s4 + $0xc50] sm:$0xff]  ;;  %v7152_v0 = vld [vmem:[%s15091_s4 + $0xe40] sm:$0xff]  ;;  %v7151_v60 = vld [vmem:[%s15091_s4 + $0xe38] sm:$0xff] }
 0x3cd   : > { %3329 = vmatmul.mubr.f32.gmra.mxu0 %v3115_v51  ;;  %3418 = vmatmul.mubr.f32.gmra.mxu1 %v3117_v49  ;;  %v7154_v18 = vld [vmem:[%s15091_s4 + $0xe50] sm:$0xff]  ;;  %v7267_v54 = vld [vmem:[%s15090_s3 + $0x5d8] sm:$0xff]  ;;  %v7252_v32 = vld [vmem:[%s15090_s3 + $0x560] sm:$0xff] }
 0x3ce   : > { %3568 = vmatpush1.msra.mxu0 %v7102_v43  ;;  %3657 = vmatpush1.msra.mxu1 %v7166_v12  ;;  %v7086_v43 = vld [vmem:[%s15091_s4 + $0xc30] sm:$0xff]  ;;  %v7248_v17 = vld [vmem:[%s15090_s3 + $0x540] sm:$0xff]  ;;  %v7245_v33 = vld [vmem:[%s15090_s3 + $0x528] sm:$0xff] }
 0x3cf   : > { %3569 = vmatprep.subr.mxu0 %v7101_v53  ;;  %3658 = vmatprep.subr.mxu1 %v7165_v40  ;;  %v7150_v12 = vld [vmem:[%s15091_s4 + $0xe30] sm:$0xff]  ;;  %v7085_v53 = vld [vmem:[%s15091_s4 + $0xc28] sm:$0xff] }
 0x3d0   : > { %3570 = vmatpush1.msra.mxu0 %v7100_v7  ;;  %3659 = vmatpush1.msra.mxu1 %v7164_v10  ;;  %v7149_v40 = vld [vmem:[%s15091_s4 + $0xe28] sm:$0xff]  ;;  %v7084_v7 = vld [vmem:[%s15091_s4 + $0xc20] sm:$0xff]  ;;  %v7262_v22 = vld [vmem:[%s15090_s3 + $0x5b0] sm:$0xff] }
 0x3d1   : > { %3334 = vmatprep.mubr.f32.mxu0 %v3120_v30  ;;  %3423 = vmatprep.mubr.f32.mxu1 %v3122_v58  ;;  %v7148_v10 = vld [vmem:[%s15091_s4 + $0xe20] sm:$0xff]  ;;  %v7254_v20 = vld [vmem:[%s15090_s3 + $0x570] sm:$0xff] }
 0x3d2   : > { %3571 = vmatprep.subr.mxu0 %v7099_v26  ;;  %3660 = vmatprep.subr.mxu1 %v7163_v4  ;;  %v7083_v26 = vld [vmem:[%s15091_s4 + $0xc18] sm:$0xff] }
 0x3d3   : > { %3335 = vmatmul.mubr.f32.gmra.mxu0 %v3119_v8  ;;  %3424 = vmatmul.mubr.f32.gmra.mxu1 %v3121_v56  ;;  %v7147_v4 = vld [vmem:[%s15091_s4 + $0xe18] sm:$0xff] }
 0x3d4   : > { %3572 = vmatpush1.msra.mxu0 %v7098_v46  ;;  %3661 = vmatpush1.msra.mxu1 %v7162_v62  ;;  %v7082_v46 = vld [vmem:[%s15091_s4 + $0xc10] sm:$0xff] }
 0x3d5   : > { %3573 = vmatprep.subr.mxu0 %v7097_v15  ;;  %3623 = vmatprep.mubr.f32.mxu0 %v3108_v29  ;;  %v7157_v29 = vld [vmem:[%s15091_s4 + $0xe68] sm:$0xff]  ;;  %v7146_v62 = vld [vmem:[%s15091_s4 + $0xe10] sm:$0xff] }
 0x3d6   : > { %3662 = vmatprep.subr.mxu1 %v7161_v6  ;;  %3712 = vmatprep.mubr.f32.mxu1 %v3110_v63  ;;  %v7156_v63 = vld [vmem:[%s15091_s4 + $0xe60] sm:$0xff]  ;;  %v7081_v15 = vld [vmem:[%s15091_s4 + $0xc08] sm:$0xff] }
 0x3d7   : > { %3574 = vmatpush1.msra.mxu0 %v7096_v35  ;;  %3663 = vmatpush1.msra.mxu1 %v7160_v36  ;;  %v7145_v6 = vld [vmem:[%s15091_s4 + $0xe08] sm:$0xff]  ;;  %v7080_v35 = vld [vmem:[%s15091_s4 + $0xc00] sm:$0xff] }
 0x3d8   : > { %3575 = vmatprep.subr.mxu0 %v7095_v9  ;;  %3664 = vmatprep.subr.mxu1 %v7159_v21  ;;  %v7144_v36 = vld [vmem:[%s15091_s4 + $0xe00] sm:$0xff]  ;;  %v7143_v9 = vld [vmem:[%s15091_s4 + $0xdf8] sm:$0xff] }
 0x3d9   : > { %3576 = vmatpush1.msra.mxu0 %v7094_v11  ;;  %3665 = vmatpush1.msra.mxu1 %v7158_v23  ;;  %v7207_v21 = vld [vmem:[%s15091_s4 + $0xff8] sm:$0xff]  ;;  %v7142_v11 = vld [vmem:[%s15091_s4 + $0xdf0] sm:$0xff] }
 0x3da   : > { %3577 = vmatprep.subr.mxu0 %v7093_v31  ;;  %3666 = vmatprep.subr.mxu1 %v7157_v29  ;;  %v7206_v23 = vld [vmem:[%s15091_s4 + $0xff0] sm:$0xff]  ;;  %v7141_v31 = vld [vmem:[%s15091_s4 + $0xde8] sm:$0xff] }
 0x3db   : > { %3578 = vmatpush1.msra.mxu0 %v7092_v5  ;;  %3667 = vmatpush1.msra.mxu1 %v7156_v63  ;;  %v7205_v29 = vld [vmem:[%s15091_s4 + $0xfe8] sm:$0xff]  ;;  %v7140_v5 = vld [vmem:[%s15091_s4 + $0xde0] sm:$0xff] }
 0x3dc   : > { %3579 = vmatprep.subr.mxu0 %v7091_v24  ;;  %3668 = vmatprep.subr.mxu1 %v7155_v16  ;;  %v7204_v63 = vld [vmem:[%s15091_s4 + $0xfe0] sm:$0xff]  ;;  %v7139_v24 = vld [vmem:[%s15091_s4 + $0xdd8] sm:$0xff] }
 0x3dd   : > { %3580 = vmatpush1.msra.mxu0 %v7090_v52  ;;  %3669 = vmatpush1.msra.mxu1 %v7154_v18  ;;  %v7203_v16 = vld [vmem:[%s15091_s4 + $0xfd8] sm:$0xff]  ;;  %v7138_v52 = vld [vmem:[%s15091_s4 + $0xdd0] sm:$0xff] }
 0x3de   : > { %3581 = vmatprep.subr.mxu0 %v7089_v45  ;;  %3670 = vmatprep.subr.mxu1 %v7153_v61  ;;  %v7202_v18 = vld [vmem:[%s15091_s4 + $0xfd0] sm:$0xff]  ;;  %v7137_v45 = vld [vmem:[%s15091_s4 + $0xdc8] sm:$0xff] }
 0x3df   : > { %3582 = vmatpush1.msra.mxu0 %v7088_v13  ;;  %3671 = vmatpush1.msra.mxu1 %v7152_v0  ;;  %v7201_v61 = vld [vmem:[%s15091_s4 + $0xfc8] sm:$0xff]  ;;  %v7136_v13 = vld [vmem:[%s15091_s4 + $0xdc0] sm:$0xff] }
 0x3e0   : > { %3583 = vmatprep.subr.mxu0 %v7087_v50  ;;  %3672 = vmatprep.subr.mxu1 %v7151_v60  ;;  %v7200_v0 = vld [vmem:[%s15091_s4 + $0xfc0] sm:$0xff]  ;;  %v7135_v50 = vld [vmem:[%s15091_s4 + $0xdb8] sm:$0xff] }
 0x3e1   : > { %3584 = vmatpush1.msra.mxu0 %v7086_v43  ;;  %3673 = vmatpush1.msra.mxu1 %v7150_v12  ;;  %v7199_v60 = vld [vmem:[%s15091_s4 + $0xfb8] sm:$0xff]  ;;  %v7134_v43 = vld [vmem:[%s15091_s4 + $0xdb0] sm:$0xff] }
 0x3e2   : > { %3585 = vmatprep.subr.mxu0 %v7085_v53  ;;  %3674 = vmatprep.subr.mxu1 %v7149_v40  ;;  %v7198_v12 = vld [vmem:[%s15091_s4 + $0xfb0] sm:$0xff]  ;;  %v7133_v53 = vld [vmem:[%s15091_s4 + $0xda8] sm:$0xff] }
 0x3e3   : > { %3586 = vmatpush1.msra.mxu0 %v7084_v7  ;;  %3675 = vmatpush1.msra.mxu1 %v7148_v10  ;;  %v7197_v40 = vld [vmem:[%s15091_s4 + $0xfa8] sm:$0xff]  ;;  %v7132_v7 = vld [vmem:[%s15091_s4 + $0xda0] sm:$0xff] }
 0x3e4   : > { %3587 = vmatprep.subr.mxu0 %v7083_v26  ;;  %3676 = vmatprep.subr.mxu1 %v7147_v4  ;;  %v7196_v10 = vld [vmem:[%s15091_s4 + $0xfa0] sm:$0xff]  ;;  %v7131_v26 = vld [vmem:[%s15091_s4 + $0xd98] sm:$0xff] }
 0x3e5   : > { %3588 = vmatpush1.msra.mxu0 %v7082_v46  ;;  %3677 = vmatpush1.msra.mxu1 %v7146_v62  ;;  %v7195_v4 = vld [vmem:[%s15091_s4 + $0xf98] sm:$0xff]  ;;  %v7130_v46 = vld [vmem:[%s15091_s4 + $0xd90] sm:$0xff] }
 0x3e6   : > { %3589 = vmatprep.subr.mxu0 %v7081_v15  ;;  %3678 = vmatprep.subr.mxu1 %v7145_v6  ;;  %v7194_v62 = vld [vmem:[%s15091_s4 + $0xf90] sm:$0xff]  ;;  %v7129_v15 = vld [vmem:[%s15091_s4 + $0xd88] sm:$0xff] }
 0x3e7   : > { %3590 = vmatpush1.msra.mxu0 %v7080_v35  ;;  %3679 = vmatpush1.msra.mxu1 %v7144_v36  ;;  %v7193_v6 = vld [vmem:[%s15091_s4 + $0xf88] sm:$0xff]  ;;  %v7128_v35 = vld [vmem:[%s15091_s4 + $0xd80] sm:$0xff] }
 0x3e8   : > { %3591 = vmatprep.subr.mxu0 %v7143_v9  ;;  %3680 = vmatprep.subr.mxu1 %v7207_v21  ;;  %v7192_v36 = vld [vmem:[%s15091_s4 + $0xf80] sm:$0xff]  ;;  %v7127_v9 = vld [vmem:[%s15091_s4 + $0xd78] sm:$0xff] }
 0x3e9   : > { %3592 = vmatpush2.msra.mxu0 %v7142_v11  ;;  %3681 = vmatpush2.msra.mxu1 %v7206_v23  ;;  %v7191_v21 = vld [vmem:[%s15091_s4 + $0xf78] sm:$0xff]  ;;  %v7126_v11 = vld [vmem:[%s15091_s4 + $0xd70] sm:$0xff] }
 0x3ea   : > { %3593 = vmatprep.subr.mxu0 %v7141_v31  ;;  %3682 = vmatprep.subr.mxu1 %v7205_v29  ;;  %v7190_v23 = vld [vmem:[%s15091_s4 + $0xf70] sm:$0xff]  ;;  %v7125_v31 = vld [vmem:[%s15091_s4 + $0xd68] sm:$0xff] }
 0x3eb   : > { %3594 = vmatpush2.msra.mxu0 %v7140_v5  ;;  %3683 = vmatpush2.msra.mxu1 %v7204_v63  ;;  %v7189_v29 = vld [vmem:[%s15091_s4 + $0xf68] sm:$0xff]  ;;  %v7124_v5 = vld [vmem:[%s15091_s4 + $0xd60] sm:$0xff] }
 0x3ec   : > { %3595 = vmatprep.subr.mxu0 %v7139_v24  ;;  %3684 = vmatprep.subr.mxu1 %v7203_v16  ;;  %v7188_v63 = vld [vmem:[%s15091_s4 + $0xf60] sm:$0xff]  ;;  %v7123_v24 = vld [vmem:[%s15091_s4 + $0xd58] sm:$0xff] }
 0x3ed   : > { %3596 = vmatpush2.msra.mxu0 %v7138_v52  ;;  %3685 = vmatpush2.msra.mxu1 %v7202_v18  ;;  %v7187_v16 = vld [vmem:[%s15091_s4 + $0xf58] sm:$0xff]  ;;  %v7122_v52 = vld [vmem:[%s15091_s4 + $0xd50] sm:$0xff] }
 0x3ee   : > { %3597 = vmatprep.subr.mxu0 %v7137_v45  ;;  %3686 = vmatprep.subr.mxu1 %v7201_v61  ;;  %v7186_v18 = vld [vmem:[%s15091_s4 + $0xf50] sm:$0xff]  ;;  %v7121_v45 = vld [vmem:[%s15091_s4 + $0xd48] sm:$0xff] }
 0x3ef   : > { %3598 = vmatpush2.msra.mxu0 %v7136_v13  ;;  %3687 = vmatpush2.msra.mxu1 %v7200_v0  ;;  %v7185_v61 = vld [vmem:[%s15091_s4 + $0xf48] sm:$0xff]  ;;  %v7120_v13 = vld [vmem:[%s15091_s4 + $0xd40] sm:$0xff] }
 0x3f0   : > { %3599 = vmatprep.subr.mxu0 %v7135_v50  ;;  %3688 = vmatprep.subr.mxu1 %v7199_v60  ;;  %v7184_v0 = vld [vmem:[%s15091_s4 + $0xf40] sm:$0xff]  ;;  %v7119_v50 = vld [vmem:[%s15091_s4 + $0xd38] sm:$0xff] }
 0x3f1   : > { %3600 = vmatpush2.msra.mxu0 %v7134_v43  ;;  %3689 = vmatpush2.msra.mxu1 %v7198_v12  ;;  %v7183_v60 = vld [vmem:[%s15091_s4 + $0xf38] sm:$0xff]  ;;  %v7118_v43 = vld [vmem:[%s15091_s4 + $0xd30] sm:$0xff] }
 0x3f2   : > { %3601 = vmatprep.subr.mxu0 %v7133_v53  ;;  %3690 = vmatprep.subr.mxu1 %v7197_v40  ;;  %v7182_v12 = vld [vmem:[%s15091_s4 + $0xf30] sm:$0xff]  ;;  %v7117_v53 = vld [vmem:[%s15091_s4 + $0xd28] sm:$0xff] }
 0x3f3   : > { %3602 = vmatpush2.msra.mxu0 %v7132_v7  ;;  %3691 = vmatpush2.msra.mxu1 %v7196_v10  ;;  %v7181_v40 = vld [vmem:[%s15091_s4 + $0xf28] sm:$0xff]  ;;  %v7116_v7 = vld [vmem:[%s15091_s4 + $0xd20] sm:$0xff] }
 0x3f4   : > { %3603 = vmatprep.subr.mxu0 %v7131_v26  ;;  %3692 = vmatprep.subr.mxu1 %v7195_v4  ;;  %v7180_v10 = vld [vmem:[%s15091_s4 + $0xf20] sm:$0xff]  ;;  %v7115_v26 = vld [vmem:[%s15091_s4 + $0xd18] sm:$0xff] }
 0x3f5   : > { %3604 = vmatpush2.msra.mxu0 %v7130_v46  ;;  %3693 = vmatpush2.msra.mxu1 %v7194_v62  ;;  %v7179_v4 = vld [vmem:[%s15091_s4 + $0xf18] sm:$0xff]  ;;  %v7114_v46 = vld [vmem:[%s15091_s4 + $0xd10] sm:$0xff] }
 0x3f6   : > { %3605 = vmatprep.subr.mxu0 %v7129_v15  ;;  %3694 = vmatprep.subr.mxu1 %v7193_v6  ;;  %v7178_v62 = vld [vmem:[%s15091_s4 + $0xf10] sm:$0xff]  ;;  %v7113_v15 = vld [vmem:[%s15091_s4 + $0xd08] sm:$0xff] }
 0x3f7   : > { %3606 = vmatpush2.msra.mxu0 %v7128_v35  ;;  %3695 = vmatpush2.msra.mxu1 %v7192_v36  ;;  %v7177_v6 = vld [vmem:[%s15091_s4 + $0xf08] sm:$0xff]  ;;  %v7112_v35 = vld [vmem:[%s15091_s4 + $0xd00] sm:$0xff] }
 0x3f8   : > { %3607 = vmatprep.subr.mxu0 %v7127_v9  ;;  %3696 = vmatprep.subr.mxu1 %v7191_v21  ;;  %v7176_v36 = vld [vmem:[%s15091_s4 + $0xf00] sm:$0xff]  ;;  %v7241_v9 = vld [vmem:[%s15090_s3 + $0x508] sm:$0xff]  ;;  %v7243_v21 = vld [vmem:[%s15090_s3 + $0x518] sm:$0xff] }
 0x3f9   : > { %3608 = vmatpush2.msra.mxu0 %v7126_v11  ;;  %3697 = vmatpush2.msra.mxu1 %v7190_v23  ;;  %v7240_v11 = vld [vmem:[%s15090_s3 + $0x500] sm:$0xff]  ;;  %v7242_v23 = vld [vmem:[%s15090_s3 + $0x510] sm:$0xff] }
 0x3fa   : > { %3609 = vmatprep.subr.mxu0 %v7125_v31  ;;  %3698 = vmatprep.subr.mxu1 %v7189_v29  ;;  %v7237_v31 = vld [vmem:[%s15090_s3 + $0x4e8] sm:$0xff]  ;;  %v7239_v29 = vld [vmem:[%s15090_s3 + $0x4f8] sm:$0xff] }
 0x3fb   : > { %3610 = vmatpush2.msra.mxu0 %v7124_v5  ;;  %3699 = vmatpush2.msra.mxu1 %v7188_v63  ;;  %v7236_v5 = vld [vmem:[%s15090_s3 + $0x4e0] sm:$0xff]  ;;  %v7238_v63 = vld [vmem:[%s15090_s3 + $0x4f0] sm:$0xff] }
 0x3fc   : > { %3611 = vmatprep.subr.mxu0 %v7123_v24  ;;  %3700 = vmatprep.subr.mxu1 %v7187_v16  ;;  %v7233_v24 = vld [vmem:[%s15090_s3 + $0x4c8] sm:$0xff]  ;;  %v7235_v16 = vld [vmem:[%s15090_s3 + $0x4d8] sm:$0xff] }
 0x3fd   : > { %3612 = vmatpush2.msra.mxu0 %v7122_v52  ;;  %3701 = vmatpush2.msra.mxu1 %v7186_v18  ;;  %v7232_v52 = vld [vmem:[%s15090_s3 + $0x4c0] sm:$0xff]  ;;  %v7234_v18 = vld [vmem:[%s15090_s3 + $0x4d0] sm:$0xff] }
 0x3fe   : > { %3613 = vmatprep.subr.mxu0 %v7121_v45  ;;  %3702 = vmatprep.subr.mxu1 %v7185_v61  ;;  %v7229_v45 = vld [vmem:[%s15090_s3 + $0x4a8] sm:$0xff]  ;;  %v7231_v61 = vld [vmem:[%s15090_s3 + $0x4b8] sm:$0xff] }
 0x3ff   : > { %3614 = vmatpush2.msra.mxu0 %v7120_v13  ;;  %3703 = vmatpush2.msra.mxu1 %v7184_v0  ;;  %v7228_v13 = vld [vmem:[%s15090_s3 + $0x4a0] sm:$0xff]  ;;  %v7230_v0 = vld [vmem:[%s15090_s3 + $0x4b0] sm:$0xff] }
 0x400   : > { %3615 = vmatprep.subr.mxu0 %v7119_v50  ;;  %3704 = vmatprep.subr.mxu1 %v7183_v60  ;;  %v7225_v50 = vld [vmem:[%s15090_s3 + $0x488] sm:$0xff]  ;;  %v7227_v60 = vld [vmem:[%s15090_s3 + $0x498] sm:$0xff] }
 0x401   : > { %3616 = vmatpush2.msra.mxu0 %v7118_v43  ;;  %3705 = vmatpush2.msra.mxu1 %v7182_v12  ;;  %v7224_v43 = vld [vmem:[%s15090_s3 + $0x480] sm:$0xff]  ;;  %v7226_v12 = vld [vmem:[%s15090_s3 + $0x490] sm:$0xff] }
 0x402   : > { %3617 = vmatprep.subr.mxu0 %v7117_v53  ;;  %3706 = vmatprep.subr.mxu1 %v7181_v40  ;;  %v7221_v53 = vld [vmem:[%s15090_s3 + $0x468] sm:$0xff]  ;;  %v7223_v40 = vld [vmem:[%s15090_s3 + $0x478] sm:$0xff] }
 0x403   : > { %3618 = vmatpush2.msra.mxu0 %v7116_v7  ;;  %3707 = vmatpush2.msra.mxu1 %v7180_v10  ;;  %v7220_v7 = vld [vmem:[%s15090_s3 + $0x460] sm:$0xff]  ;;  %v7222_v10 = vld [vmem:[%s15090_s3 + $0x470] sm:$0xff] }
 0x404   : > { %3619 = vmatprep.subr.mxu0 %v7115_v26  ;;  %3708 = vmatprep.subr.mxu1 %v7179_v4  ;;  %v7217_v26 = vld [vmem:[%s15090_s3 + $0x448] sm:$0xff]  ;;  %v7219_v4 = vld [vmem:[%s15090_s3 + $0x458] sm:$0xff] }
 0x405   : > { %3620 = vmatpush2.msra.mxu0 %v7114_v46  ;;  %3709 = vmatpush2.msra.mxu1 %v7178_v62  ;;  %v7216_v46 = vld [vmem:[%s15090_s3 + $0x440] sm:$0xff]  ;;  %v7218_v62 = vld [vmem:[%s15090_s3 + $0x450] sm:$0xff] }
 0x406   : > { %3621 = vmatprep.subr.mxu0 %v7113_v15  ;;  %3710 = vmatprep.subr.mxu1 %v7177_v6  ;;  %v7213_v15 = vld [vmem:[%s15090_s3 + $0x428] sm:$0xff]  ;;  %v7215_v6 = vld [vmem:[%s15090_s3 + $0x438] sm:$0xff] }
 0x407   : > { %3622 = vmatpush2.msra.mxu0 %v7112_v35  ;;  %3711 = vmatpush2.msra.mxu1 %v7176_v36  ;;  %v7212_v35 = vld [vmem:[%s15090_s3 + $0x420] sm:$0xff]  ;;  %v7214_v36 = vld [vmem:[%s15090_s3 + $0x430] sm:$0xff] }
 0x408   : > { %3624 = vmatmul.mubr.f32.vlgmr.msra.gmra.mxu0 %v3107_v59  ;;  %3713 = vmatmul.mubr.f32.vlgmr.msra.gmra.mxu1 %v3109_v2  ;;  %v7268_v59 = vld [vmem:[%s15090_s3 + $0x5e0] sm:$0xff]  ;;  %v7270_v2 = vld [vmem:[%s15090_s3 + $0x5f0] sm:$0xff] }
 0x409   : > { %3629 = vmatprep.mubr.f32.mxu0 %v3112_v28  ;;  %3718 = vmatprep.mubr.f32.mxu1 %v3114_v47  ;;  %v7261_v28 = vld [vmem:[%s15090_s3 + $0x5a8] sm:$0xff]  ;;  %v7263_v47 = vld [vmem:[%s15090_s3 + $0x5b8] sm:$0xff] }
 0x40a   : > { %4174 = vmatprep.subr.mxu0 %v7269_v1  ;;  %4263 = vmatprep.subr.mxu1 %v7271_v3  ;;  %v7209_v1 = vld [vmem:[%s15090_s3 + $0x408] sm:$0xff]  ;;  %v7211_v3 = vld [vmem:[%s15090_s3 + $0x418] sm:$0xff] }
 0x40b   : > { %4175 = vmatpush1.msra.mxu0 %v7268_v59  ;;  %4264 = vmatpush1.msra.mxu1 %v7270_v2  ;;  %v7208_v59 = vld [vmem:[%s15090_s3 + $0x400] sm:$0xff]  ;;  %v7210_v2 = vld [vmem:[%s15090_s3 + $0x410] sm:$0xff] }
 0x40c   : > { %3630 = vmatmul.mubr.f32.gmra.mxu0 %v3111_v37  ;;  %3719 = vmatmul.mubr.f32.gmra.mxu1 %v3113_v42  ;;  %v7260_v37 = vld [vmem:[%s15090_s3 + $0x5a0] sm:$0xff]  ;;  %v7259_v42 = vld [vmem:[%s15090_s3 + $0x598] sm:$0xff] }
 0x40d   : > { %3635 = vmatprep.mubr.f32.mxu0 %v3116_v39  ;;  %3724 = vmatprep.mubr.f32.mxu1 %v3118_v44  ;;  %v7258_v39 = vld [vmem:[%s15090_s3 + $0x590] sm:$0xff]  ;;  %v7255_v44 = vld [vmem:[%s15090_s3 + $0x578] sm:$0xff] }
 0x40e   : > { %4176 = vmatprep.subr.mxu0 %v7265_v34  ;;  %4265 = vmatprep.subr.mxu1 %v7267_v54  ;;  %v7333_v34 = vld [vmem:[%s15090_s3 + $0x7e8] sm:$0xff]  ;;  %v7335_v54 = vld [vmem:[%s15090_s3 + $0x7f8] sm:$0xff] }
 0x40f   : > { %4177 = vmatpush1.msra.mxu0 %v7264_v19  ;;  %4266 = vmatpush1.msra.mxu1 %v7266_v27  ;;  %v7332_v19 = vld [vmem:[%s15090_s3 + $0x7e0] sm:$0xff]  ;;  %v7334_v27 = vld [vmem:[%s15090_s3 + $0x7f0] sm:$0xff] }
 0x410   : > { %3636 = vmatmul.mubr.f32.gmra.mxu0 %v3115_v51  ;;  %3725 = vmatmul.mubr.f32.gmra.mxu1 %v3117_v49  ;;  %v7249_v51 = vld [vmem:[%s15090_s3 + $0x548] sm:$0xff]  ;;  %v7251_v49 = vld [vmem:[%s15090_s3 + $0x558] sm:$0xff] }
 0x411   : > { %3641 = vmatprep.mubr.f32.mxu0 %v3120_v30  ;;  %3730 = vmatprep.mubr.f32.mxu1 %v3122_v58  ;;  %v7250_v30 = vld [vmem:[%s15090_s3 + $0x550] sm:$0xff]  ;;  %v7247_v58 = vld [vmem:[%s15090_s3 + $0x538] sm:$0xff] }
 0x412   : > { %4178 = vmatprep.subr.mxu0 %v7261_v28  ;;  %4267 = vmatprep.subr.mxu1 %v7263_v47  ;;  %v7329_v28 = vld [vmem:[%s15090_s3 + $0x7c8] sm:$0xff]  ;;  %v7331_v47 = vld [vmem:[%s15090_s3 + $0x7d8] sm:$0xff] }
 0x413   : > { %4179 = vmatpush1.msra.mxu0 %v7260_v37  ;;  %4268 = vmatpush1.msra.mxu1 %v7262_v22  ;;  %v7328_v37 = vld [vmem:[%s15090_s3 + $0x7c0] sm:$0xff]  ;;  %v7330_v22 = vld [vmem:[%s15090_s3 + $0x7d0] sm:$0xff] }
 0x414   : > { %3642 = vmatmul.mubr.f32.gmra.mxu0 %v3119_v8  ;;  %3731 = vmatmul.mubr.f32.gmra.mxu1 %v3121_v56  ;;  %v7244_v8 = vld [vmem:[%s15090_s3 + $0x520] sm:$0xff]  ;;  %v7246_v56 = vld [vmem:[%s15090_s3 + $0x530] sm:$0xff] }
 0x415   : > { %4180 = vmatprep.subr.mxu0 %v7257_v14  ;;  %4269 = vmatprep.subr.mxu1 %v7259_v42  ;;  %v7325_v14 = vld [vmem:[%s15090_s3 + $0x7a8] sm:$0xff]  ;;  %v7327_v42 = vld [vmem:[%s15090_s3 + $0x7b8] sm:$0xff] }
 0x416   : > { %4181 = vmatpush1.msra.mxu0 %v7256_v25  ;;  %4270 = vmatpush1.msra.mxu1 %v7258_v39  ;;  %v7324_v25 = vld [vmem:[%s15090_s3 + $0x7a0] sm:$0xff]  ;;  %v7326_v39 = vld [vmem:[%s15090_s3 + $0x7b0] sm:$0xff] }
 0x417   : > { %4182 = vmatprep.subr.mxu0 %v7253_v48  ;;  %4271 = vmatprep.subr.mxu1 %v7255_v44  ;;  %v7321_v48 = vld [vmem:[%s15090_s3 + $0x788] sm:$0xff]  ;;  %v7323_v44 = vld [vmem:[%s15090_s3 + $0x798] sm:$0xff] }
 0x418   : > { %4183 = vmatpush1.msra.mxu0 %v7252_v32  ;;  %4272 = vmatpush1.msra.mxu1 %v7254_v20  ;;  %v7320_v32 = vld [vmem:[%s15090_s3 + $0x780] sm:$0xff]  ;;  %v7322_v20 = vld [vmem:[%s15090_s3 + $0x790] sm:$0xff] }
 0x419   : > { %4184 = vmatprep.subr.mxu0 %v7249_v51  ;;  %4273 = vmatprep.subr.mxu1 %v7251_v49  ;;  %v7317_v51 = vld [vmem:[%s15090_s3 + $0x768] sm:$0xff]  ;;  %v7319_v49 = vld [vmem:[%s15090_s3 + $0x778] sm:$0xff] }
 0x41a   : > { %4185 = vmatpush1.msra.mxu0 %v7248_v17  ;;  %4274 = vmatpush1.msra.mxu1 %v7250_v30  ;;  %v7316_v17 = vld [vmem:[%s15090_s3 + $0x760] sm:$0xff]  ;;  %v7318_v30 = vld [vmem:[%s15090_s3 + $0x770] sm:$0xff] }
 0x41b   : > { %4186 = vmatprep.subr.mxu0 %v7245_v33  ;;  %4275 = vmatprep.subr.mxu1 %v7247_v58  ;;  %v7313_v33 = vld [vmem:[%s15090_s3 + $0x748] sm:$0xff]  ;;  %v7315_v58 = vld [vmem:[%s15090_s3 + $0x758] sm:$0xff] }
 0x41c   : > { %4187 = vmatpush1.msra.mxu0 %v7244_v8  ;;  %4276 = vmatpush1.msra.mxu1 %v7246_v56  ;;  %v7312_v8 = vld [vmem:[%s15090_s3 + $0x740] sm:$0xff]  ;;  %v7314_v56 = vld [vmem:[%s15090_s3 + $0x750] sm:$0xff] }
 0x41d   : > { %4188 = vmatprep.subr.mxu0 %v7241_v9  ;;  %4277 = vmatprep.subr.mxu1 %v7243_v21  ;;  %v7309_v9 = vld [vmem:[%s15090_s3 + $0x728] sm:$0xff]  ;;  %v7311_v21 = vld [vmem:[%s15090_s3 + $0x738] sm:$0xff] }
 0x41e   : > { %4189 = vmatpush1.msra.mxu0 %v7240_v11  ;;  %4278 = vmatpush1.msra.mxu1 %v7242_v23  ;;  %v7308_v11 = vld [vmem:[%s15090_s3 + $0x720] sm:$0xff]  ;;  %v7310_v23 = vld [vmem:[%s15090_s3 + $0x730] sm:$0xff] }
 0x41f   : > { %4190 = vmatprep.subr.mxu0 %v7237_v31  ;;  %4279 = vmatprep.subr.mxu1 %v7239_v29  ;;  %v7305_v31 = vld [vmem:[%s15090_s3 + $0x708] sm:$0xff]  ;;  %v7307_v29 = vld [vmem:[%s15090_s3 + $0x718] sm:$0xff] }
 0x420   : > { %4191 = vmatpush1.msra.mxu0 %v7236_v5  ;;  %4280 = vmatpush1.msra.mxu1 %v7238_v63  ;;  %v7304_v5 = vld [vmem:[%s15090_s3 + $0x700] sm:$0xff]  ;;  %v7306_v63 = vld [vmem:[%s15090_s3 + $0x710] sm:$0xff] }
 0x421   : > { %4192 = vmatprep.subr.mxu0 %v7233_v24  ;;  %4281 = vmatprep.subr.mxu1 %v7235_v16  ;;  %v7301_v24 = vld [vmem:[%s15090_s3 + $0x6e8] sm:$0xff]  ;;  %v7303_v16 = vld [vmem:[%s15090_s3 + $0x6f8] sm:$0xff] }
 0x422   : > { %4193 = vmatpush1.msra.mxu0 %v7232_v52  ;;  %4282 = vmatpush1.msra.mxu1 %v7234_v18  ;;  %v7300_v52 = vld [vmem:[%s15090_s3 + $0x6e0] sm:$0xff]  ;;  %v7302_v18 = vld [vmem:[%s15090_s3 + $0x6f0] sm:$0xff] }
 0x423   : > { %4194 = vmatprep.subr.mxu0 %v7229_v45  ;;  %4283 = vmatprep.subr.mxu1 %v7231_v61  ;;  %v7297_v45 = vld [vmem:[%s15090_s3 + $0x6c8] sm:$0xff]  ;;  %v7299_v61 = vld [vmem:[%s15090_s3 + $0x6d8] sm:$0xff] }
 0x424   : > { %4195 = vmatpush1.msra.mxu0 %v7228_v13  ;;  %4284 = vmatpush1.msra.mxu1 %v7230_v0  ;;  %v7296_v13 = vld [vmem:[%s15090_s3 + $0x6c0] sm:$0xff]  ;;  %v7298_v0 = vld [vmem:[%s15090_s3 + $0x6d0] sm:$0xff] }
 0x425   : > { %4196 = vmatprep.subr.mxu0 %v7225_v50  ;;  %4285 = vmatprep.subr.mxu1 %v7227_v60  ;;  %v7293_v50 = vld [vmem:[%s15090_s3 + $0x6a8] sm:$0xff]  ;;  %v7295_v60 = vld [vmem:[%s15090_s3 + $0x6b8] sm:$0xff] }
 0x426   : > { %4197 = vmatpush1.msra.mxu0 %v7224_v43  ;;  %4286 = vmatpush1.msra.mxu1 %v7226_v12  ;;  %v7292_v43 = vld [vmem:[%s15090_s3 + $0x6a0] sm:$0xff]  ;;  %v7294_v12 = vld [vmem:[%s15090_s3 + $0x6b0] sm:$0xff] }
 0x427   : > { %4198 = vmatprep.subr.mxu0 %v7221_v53  ;;  %4287 = vmatprep.subr.mxu1 %v7223_v40  ;;  %v7289_v53 = vld [vmem:[%s15090_s3 + $0x688] sm:$0xff]  ;;  %v7291_v40 = vld [vmem:[%s15090_s3 + $0x698] sm:$0xff] }
 0x428   : > { %4199 = vmatpush1.msra.mxu0 %v7220_v7  ;;  %4288 = vmatpush1.msra.mxu1 %v7222_v10  ;;  %v7288_v7 = vld [vmem:[%s15090_s3 + $0x680] sm:$0xff]  ;;  %v7290_v10 = vld [vmem:[%s15090_s3 + $0x690] sm:$0xff] }
 0x429   : > { %4200 = vmatprep.subr.mxu0 %v7217_v26  ;;  %4289 = vmatprep.subr.mxu1 %v7219_v4  ;;  %v7285_v26 = vld [vmem:[%s15090_s3 + $0x668] sm:$0xff]  ;;  %v7287_v4 = vld [vmem:[%s15090_s3 + $0x678] sm:$0xff] }
 0x42a   : > { %4201 = vmatpush1.msra.mxu0 %v7216_v46  ;;  %4290 = vmatpush1.msra.mxu1 %v7218_v62  ;;  %v7284_v46 = vld [vmem:[%s15090_s3 + $0x660] sm:$0xff]  ;;  %v7286_v62 = vld [vmem:[%s15090_s3 + $0x670] sm:$0xff] }
 0x42b   : > { %4202 = vmatprep.subr.mxu0 %v7213_v15  ;;  %4291 = vmatprep.subr.mxu1 %v7215_v6  ;;  %v7281_v15 = vld [vmem:[%s15090_s3 + $0x648] sm:$0xff]  ;;  %v7283_v6 = vld [vmem:[%s15090_s3 + $0x658] sm:$0xff] }
 0x42c   : > { %4203 = vmatpush1.msra.mxu0 %v7212_v35  ;;  %4292 = vmatpush1.msra.mxu1 %v7214_v36  ;;  %v7280_v35 = vld [vmem:[%s15090_s3 + $0x640] sm:$0xff]  ;;  %v7282_v36 = vld [vmem:[%s15090_s3 + $0x650] sm:$0xff] }
 0x42d   : > { %4204 = vmatprep.subr.mxu0 %v7209_v1  ;;  %4293 = vmatprep.subr.mxu1 %v7211_v3  ;;  %v7277_v1 = vld [vmem:[%s15090_s3 + $0x628] sm:$0xff]  ;;  %v7279_v3 = vld [vmem:[%s15090_s3 + $0x638] sm:$0xff] }
 0x42e   : > { %4205 = vmatpush1.msra.mxu0 %v7208_v59  ;;  %4294 = vmatpush1.msra.mxu1 %v7210_v2  ;;  %v7276_v59 = vld [vmem:[%s15090_s3 + $0x620] sm:$0xff]  ;;  %v7278_v2 = vld [vmem:[%s15090_s3 + $0x630] sm:$0xff] }
 0x42f   : > { %4206 = vmatprep.subr.mxu0 %v7333_v34  ;;  %4295 = vmatprep.subr.mxu1 %v7335_v54  ;;  %v7273_v34 = vld [vmem:[%s15090_s3 + $0x608] sm:$0xff]  ;;  %v7275_v54 = vld [vmem:[%s15090_s3 + $0x618] sm:$0xff] }
 0x430   : > { %4207 = vmatpush2.msra.mxu0 %v7332_v19  ;;  %4296 = vmatpush2.msra.mxu1 %v7334_v27  ;;  %v7272_v19 = vld [vmem:[%s15090_s3 + $0x600] sm:$0xff]  ;;  %v7274_v27 = vld [vmem:[%s15090_s3 + $0x610] sm:$0xff] }
 0x431   : > { %4208 = vmatprep.subr.mxu0 %v7329_v28  ;;  %4297 = vmatprep.subr.mxu1 %v7331_v47  ;;  %v3910_v28 = vld [vmem:[%s15090_s3 + $0x1e8] sm:$0xff]  ;;  %v3912_v47 = vld [vmem:[%s15090_s3 + $0x1f8] sm:$0xff] }
 0x432   : > { %4209 = vmatpush2.msra.mxu0 %v7328_v37  ;;  %4298 = vmatpush2.msra.mxu1 %v7330_v22 }
 0x433   : > { %4210 = vmatprep.subr.mxu0 %v7325_v14  ;;  %4299 = vmatprep.subr.mxu1 %v7327_v42 }
 0x434   : > { %4211 = vmatpush2.msra.mxu0 %v7324_v25  ;;  %4300 = vmatpush2.msra.mxu1 %v7326_v39 }
 0x435   : > { %4212 = vmatprep.subr.mxu0 %v7321_v48  ;;  %4301 = vmatprep.subr.mxu1 %v7323_v44 }
 0x436   : > { %4213 = vmatpush2.msra.mxu0 %v7320_v32  ;;  %4302 = vmatpush2.msra.mxu1 %v7322_v20 }
 0x437   : > { %4214 = vmatprep.subr.mxu0 %v7317_v51  ;;  %4303 = vmatprep.subr.mxu1 %v7319_v49 }
 0x438   : > { %4215 = vmatpush2.msra.mxu0 %v7316_v17  ;;  %4304 = vmatpush2.msra.mxu1 %v7318_v30 }
 0x439   : > { %4216 = vmatprep.subr.mxu0 %v7313_v33  ;;  %4305 = vmatprep.subr.mxu1 %v7315_v58 }
 0x43a   : > { %4217 = vmatpush2.msra.mxu0 %v7312_v8  ;;  %4306 = vmatpush2.msra.mxu1 %v7314_v56 }
 0x43b   : > { %4218 = vmatprep.subr.mxu0 %v7309_v9  ;;  %4307 = vmatprep.subr.mxu1 %v7311_v21 }
 0x43c   : > { %4219 = vmatpush2.msra.mxu0 %v7308_v11  ;;  %4308 = vmatpush2.msra.mxu1 %v7310_v23 }
 0x43d   : > { %4220 = vmatprep.subr.mxu0 %v7305_v31  ;;  %4309 = vmatprep.subr.mxu1 %v7307_v29 }
 0x43e   : > { %4221 = vmatpush2.msra.mxu0 %v7304_v5  ;;  %4310 = vmatpush2.msra.mxu1 %v7306_v63 }
 0x43f   : > { %4222 = vmatprep.subr.mxu0 %v7301_v24  ;;  %4311 = vmatprep.subr.mxu1 %v7303_v16 }
 0x440   : > { %4223 = vmatpush2.msra.mxu0 %v7300_v52  ;;  %4312 = vmatpush2.msra.mxu1 %v7302_v18 }
 0x441   : > { %4224 = vmatprep.subr.mxu0 %v7297_v45  ;;  %4313 = vmatprep.subr.mxu1 %v7299_v61 }
 0x442   : > { %4225 = vmatpush2.msra.mxu0 %v7296_v13  ;;  %4314 = vmatpush2.msra.mxu1 %v7298_v0 }
 0x443   : > { %4226 = vmatprep.subr.mxu0 %v7293_v50  ;;  %4315 = vmatprep.subr.mxu1 %v7295_v60 }
 0x444   : > { %4227 = vmatpush2.msra.mxu0 %v7292_v43  ;;  %4316 = vmatpush2.msra.mxu1 %v7294_v12 }
 0x445   : > { %4228 = vmatprep.subr.mxu0 %v7289_v53  ;;  %4317 = vmatprep.subr.mxu1 %v7291_v40 }
 0x446   : > { %4229 = vmatpush2.msra.mxu0 %v7288_v7  ;;  %4318 = vmatpush2.msra.mxu1 %v7290_v10 }
 0x447   : > { %4230 = vmatprep.subr.mxu0 %v7285_v26  ;;  %4319 = vmatprep.subr.mxu1 %v7287_v4 }
 0x448   : > { %4231 = vmatpush2.msra.mxu0 %v7284_v46  ;;  %4320 = vmatpush2.msra.mxu1 %v7286_v62 }
 0x449   : > { %4232 = vmatprep.subr.mxu0 %v7281_v15  ;;  %4321 = vmatprep.subr.mxu1 %v7283_v6 }
 0x44a   : > { %4233 = vmatpush2.msra.mxu0 %v7280_v35  ;;  %4322 = vmatpush2.msra.mxu1 %v7282_v36 }
 0x44b   : > { %4234 = vmatprep.subr.mxu0 %v7277_v1  ;;  %4323 = vmatprep.subr.mxu1 %v7279_v3 }
 0x44c   : > { %4235 = vmatpush2.msra.mxu0 %v7276_v59  ;;  %4324 = vmatpush2.msra.mxu1 %v7278_v2 }
 0x44d   : > { %4236 = vmatprep.subr.mxu0 %v7273_v34  ;;  %4325 = vmatprep.subr.mxu1 %v7275_v54 }
 0x44e   : > { %4237 = vmatpush2.msra.mxu0 %v7272_v19  ;;  %4326 = vmatpush2.msra.mxu1 %v7274_v27 }
 0x44f   : > { %4352 = vmatprep.subr.mxu0 %v3910_v28  ;;  %4441 = vmatprep.subr.mxu1 %v3912_v47 }
 0x481   : > { %v3318_v37 = vpop.f32.mrf.mxu0  ;;  %v3407_v22 = vpop.f32.mrf.mxu1 }
 0x482   : > { %v3408_v9 = vadd.f32 %v3407_v22, %v3318_v37 }
 0x483   : > { %v3320_v14 = vpop.f32.mrf.mxu0  ;;  %v3409_v42 = vpop.f32.mrf.mxu1 }
 0x484   : > { %v3410_v31 = vadd.f32 %v3409_v42, %v3320_v14 }
 0x487   : > { %v3324_v25 = vpop.f32.mrf.mxu0  ;;  %v3413_v39 = vpop.f32.mrf.mxu1 }
 0x488   : > { %v3414_v16 = vadd.f32 %v3413_v39, %v3324_v25 }
 0x489   : > { %v3326_v48 = vpop.f32.mrf.mxu0  ;;  %v3415_v44 = vpop.f32.mrf.mxu1 }
 0x48a   : > { %v3416_v0 = vadd.f32 %v3415_v44, %v3326_v48 }
 0x48d   : > { %v3330_v32 = vpop.f32.mrf.mxu0  ;;  %v3419_v20 = vpop.f32.mrf.mxu1 }
 0x48e   : > { %v3420_v40 = vadd.f32 %v3419_v20, %v3330_v32 }
 0x48f   : > { %v3332_v51 = vpop.f32.mrf.mxu0  ;;  %v3421_v49 = vpop.f32.mrf.mxu1 }
 0x490   : > { %v3422_v46 = vadd.f32 %v3421_v49, %v3332_v51 }
 0x493   : > { %v3336_v17 = vpop.f32.mrf.mxu0  ;;  %v3425_v30 = vpop.f32.mrf.mxu1 }
 0x494   : > { %v3426_v3 = vadd.f32 %v3425_v30, %v3336_v17 }
 0x495   : > { %v3338_v33 = vpop.f32.mrf.mxu0  ;;  %v3427_v58 = vpop.f32.mrf.mxu1 }
 0x496   : > { %v3428_v28 = vadd.f32 %v3427_v58, %v3338_v33 }
 0x4c8   : > { %v3625_v8 = vpop.f32.mrf.mxu0  ;;  %v3714_v56 = vpop.f32.mrf.mxu1 }
 0x4c9   : > { %v3715_v21 = vadd.f32 %v3714_v56, %v3625_v8 }
 0x4ca   : > { %v3627_v11 = vpop.f32.mrf.mxu0  ;;  %v3716_v23 = vpop.f32.mrf.mxu1 }
 0x4cb   : > { %v3737_v29 = vmax.f32 %v3408_v9, %v3715_v21  ;;  %v3717_v5 = vadd.f32 %v3716_v23, %v3627_v11 }
 0x4cc   : > { %v3631_v63 = vpop.f32.mrf.mxu0  ;;  %v3720_v24 = vpop.f32.mrf.mxu1 }
 0x4cd   : > { %v3755_v52 = vrot.slane %v3737_v29, 4  ;;  %v3738_v18 = vmax.f32 %v3410_v31, %v3717_v5  ;;  %v3721_v45 = vadd.f32 %v3720_v24, %v3631_v63 }
 0x4ce   : > { %v3633_v61 = vpop.f32.mrf.mxu0  ;;  %v3722_v13 = vpop.f32.mrf.mxu1 }
 0x4cf   : > { %3779 = vst [vmem:[#allocation3 + $0x48] sm:$0xf0] %v3755_v52  ;;  %v3756_v50 = vrot.slane %v3738_v18, 4  ;;  %v3739_v60 = vmax.f32 %v3414_v16, %v3721_v45  ;;  %v3723_v43 = vadd.f32 %v3722_v13, %v3633_v61 }
 0x4d0   : > { %v3637_v12 = vpop.f32.mrf.mxu0  ;;  %v3726_v53 = vpop.f32.mrf.mxu1 }
 0x4d1   : > { %3780 = vst [vmem:[#allocation3 + $0x50] sm:$0xf0] %v3756_v50  ;;  %v3757_v7 = vrot.slane %v3739_v60, 4  ;;  %v3740_v10 = vmax.f32 %v3416_v0, %v3723_v43  ;;  %v3727_v26 = vadd.f32 %v3726_v53, %v3637_v12  ;;  %v3909_v53 = vld [vmem:[%s15090_s3 + $0x1e0] sm:$0xff] }
 0x4d2   : > { %v3639_v4 = vpop.f32.mrf.mxu0  ;;  %v3728_v62 = vpop.f32.mrf.mxu1 }
 0x4d3   : > { %v3758_v15 = vsel %vm2848_vm4, %v3755_v52, %v3757_v7  ;;  %v3759_v6 = vrot.slane %v3740_v10, 4  ;;  %v3741_v35 = vmax.f32 %v3420_v40, %v3727_v26  ;;  %v3729_v36 = vadd.f32 %v3728_v62, %v3639_v4  ;;  %v3911_v40 = vld [vmem:[%s15090_s3 + $0x1f0] sm:$0xff]  ;;  %v3908_v4 = vld [vmem:[%s15090_s3 + $0x1d8] sm:$0xff] }
 0x4d4   : > { %v3643_v1 = vpop.f32.mrf.mxu0  ;;  %3781 = vst [vmem:[#allocation3 + $0x8] sm:$0xff] %v3758_v15  ;;  %v3732_v59 = vpop.f32.mrf.mxu1  ;;  %v12587_v44 = vrot.slane %v3758_v15, 2 }
 0x4d5   : > { %v12580_v2 = vsel %vm2848_vm4, %v3756_v50, %v3759_v6  ;;  %v3761_v34 = vrot.slane %v3741_v35, 4  ;;  %v3742_v54 = vmax.f32 %v3422_v46, %v3729_v36  ;;  %v3733_v19 = vadd.f32 %v3732_v59, %v3643_v1 }
 0x4d6   : > { %v3645_v27 = vpop.f32.mrf.mxu0  ;;  %3782 = vst [vmem:[#allocation3 + $0x58] sm:$0xff] %v12580_v2  ;;  %v3734_v47 = vpop.f32.mrf.mxu1  ;;  %v3981_v37 = vld [vmem:[#allocation3 + $0x48] sm:$0xc0]  ;;  %v12585_v39 = vrot.slane %v12580_v2, 2 }
 0x4d7   : > { %v3762_v22 = vsel %vm2848_vm4, %v3757_v7, %v3761_v34  ;;  %v3763_v14 = vrot.slane %v3742_v54, 4  ;;  %v3743_v42 = vmax.f32 %v3426_v3, %v3733_v19  ;;  %v3735_v25 = vadd.f32 %v3734_v47, %v3645_v27  ;;  %v3977_v31 = vld [vmem:[#allocation3 + $0x48] sm:$0xf0]  ;;  %v3906_v7 = vld [vmem:[%s15090_s3 + $0x1c8] sm:$0xff] }
 0x4d8   : > { %3783 = vst [vmem:[#allocation3] sm:$0xff] %v3762_v22  ;;  %v3982_v48 = vld [vmem:[#allocation3 + $0x50] sm:$0xc0]  ;;  %v3821_v32 = vrot.slane %v3762_v22, 2  ;;  %v3989_v20 = vrot.slane %v3981_v37, 2  ;;  %v3902_v19 = vld [vmem:[%s15090_s3 + $0x1a8] sm:$0xff] }
 0x4d9   : > { %v3764_v51 = vsel %vm2848_vm4, %v3759_v6, %v3763_v14  ;;  %v3765_v49 = vrot.slane %v3743_v42, 4  ;;  %v3744_v17 = vmax.f32 %v3428_v28, %v3735_v25  ;;  %v3991_v30 = vrot.slane %v3982_v48, 2  ;;  %v3978_v21 = vld [vmem:[#allocation3 + $0x50] sm:$0xf0]  ;;  %v3907_v6 = vld [vmem:[%s15090_s3 + $0x1d0] sm:$0xff]  ;;  %v3904_v27 = vld [vmem:[%s15090_s3 + $0x1b8] sm:$0xff] }
 0x4da   : > { %3784 = vst [vmem:[#allocation3 + $0x40] sm:$0xff] %v3764_v51  ;;  %v3823_v33 = vrot.slane %v3764_v51, 2  ;;  %v3822_v58 = vsel %vm2298_vm3, %v12587_v44, %v3821_v32  ;;  %v3990_v8 = vsel %vm2298_vm3, %v3989_v20, %v12587_v44  ;;  %v3901_v25 = vld [vmem:[%s15090_s3 + $0x1a0] sm:$0xff]  ;;  %v3903_v48 = vld [vmem:[%s15090_s3 + $0x1b0] sm:$0xff] }
 0x4db   : > { %v12595_v56 = vsel %vm2848_vm4, %v3761_v34, %v3765_v49  ;;  %3787 = vst [vmem:[#allocation3 + $0x28] sm:$0xf] %v3765_v49  ;;  %v3767_v9 = vrot.slane %v3744_v17, 4  ;;  %v3992_v11 = vsel %vm2298_vm3, %v3991_v30, %v12585_v39  ;;  %v12599_v23 = vmax.f32 %v3758_v15, %v3822_v58  ;;  %v3905_v15 = vld [vmem:[%s15090_s3 + $0x1c0] sm:$0xff]  ;;  %v3898_v17 = vld [vmem:[%s15090_s3 + $0x188] sm:$0xff]  ;;  %v3900_v30 = vld [vmem:[%s15090_s3 + $0x198] sm:$0xff] }
 0x4dc   : > { %3785 = vst [vmem:[#allocation3 + $0x18] sm:$0xff] %v12595_v56  ;;  %v3824_v29 = vsel %vm2298_vm3, %v12585_v39, %v3823_v33  ;;  %v4004_v5 = vmax.f32 %v3978_v21, %v3992_v11  ;;  %v4003_v63 = vmax.f32 %v3977_v31, %v3990_v8  ;;  %v3825_v24 = vrot.slane %v12595_v56, 2  ;;  %v3897_v8 = vld [vmem:[%s15090_s3 + $0x180] sm:$0xff]  ;;  %v3894_v11 = vld [vmem:[%s15090_s3 + $0x168] sm:$0xff] }
 0x4dd   : > { %v12606_v16 = vsel %vm2848_vm4, %v3763_v14, %v3767_v9  ;;  %3788 = vst [vmem:[#allocation3 + $0x10] sm:$0xf] %v3767_v9  ;;  %v12609_v52 = vmax.f32 %v12580_v2, %v3824_v29  ;;  %v4149_v18 = vrot.slane %v12599_v23, 4  ;;  %v3896_v29 = vld [vmem:[%s15090_s3 + $0x178] sm:$0xff] }
 0x4de   : > { %3786 = vst [vmem:[#allocation3 + $0x30] sm:$0xff] %v12606_v16  ;;  %v4151_v45 = vrot.slane %v4004_v5, 4  ;;  %v4148_v61 = vrot.slane %v4003_v63, 4  ;;  %v3827_v13 = vrot.slane %v12606_v16, 2  ;;  %v3826_v0 = vsel %vm2298_vm3, %v3821_v32, %v3825_v24  ;;  %v3802_v63 = vld [vmem:[#allocation3 + $0x50] sm:$0xfc] }
 0x4df   : > { %v4152_v50 = vrot.slane %v12609_v52, 4  ;;  %v12616_v60 = vmax.f32 %v3762_v22, %v3826_v0  ;;  %v3818_v0 = vrot.slane %v3802_v63, 2  ;;  %v3853_v63 = vld [vmem:[%s15090_s3 + $0x20] sm:$0xff] }
 0x4e0   : > { %v3828_v43 = vsel %vm2298_vm3, %v3823_v33, %v3827_v13  ;;  %v4150_v26 = vsel %vm2848_vm4, %v4148_v61, %v4149_v18  ;;  %v3895_v61 = vld [vmem:[%s15090_s3 + $0x170] sm:$0xff] }
 0x4e1   : > { %v4153_v12 = vsel %vm2848_vm4, %v4151_v45, %v4152_v50  ;;  %v12629_v10 = vmax.f32 %v3764_v51, %v3828_v43  ;;  %v4154_v36 = vrot.slane %v12616_v60, 4  ;;  %v3893_v45 = vld [vmem:[%s15090_s3 + $0x160] sm:$0xff]  ;;  %v3892_v43 = vld [vmem:[%s15090_s3 + $0x158] sm:$0xff] }
 0x4e2   : > { %4238 = vmatprep.mubr.f32.mxu0 %v4153_v12  ;;  %4327 = vmatprep.mubr.f32.mxu1 %v4153_v12  ;;  %v3983_v46 = vld [vmem:[#allocation3 + $0x28] sm:$0x3f] }
 0x4e3   : > { %v3803_v62 = vld [vmem:[#allocation3 + $0x28] sm:$0x3]  ;;  %4239 = vmatmul.mubr.f32.vlgmr.msra.gmra.mxu0 %v4150_v26  ;;  %4328 = vmatmul.mubr.f32.vlgmr.msra.gmra.mxu1 %v4150_v26  ;;  %v4156_v35 = vrot.slane %v12629_v10, 4  ;;  %v3993_v1 = vrot.slane %v3983_v46, 2  ;;  %v4155_v42 = vsel %vm2848_vm4, %v4149_v18, %v4154_v36  ;;  %v3886_v26 = vld [vmem:[%s15090_s3 + $0x128] sm:$0xff]  ;;  %v3820_v46 = vsel %vm2298_vm3, %v3818_v0, %v12585_v39 }
 0x4e4   : > { %v3829_v3 = vrot.slane %v3803_v62, 2  ;;  %4353 = vmatpush1.msra.mxu0 %v3909_v53  ;;  %4442 = vmatpush1.msra.mxu1 %v3911_v40  ;;  %v3984_v59 = vld [vmem:[#allocation3 + $0x10] sm:$0x3f]  ;;  %v3979_v5 = vld [vmem:[#allocation3 + $0x28] sm:$0xf]  ;;  %v3891_v40 = vld [vmem:[%s15090_s3 + $0x150] sm:$0xff] }
 0x4e5   : > { %v3804_v34 = vld [vmem:[#allocation3 + $0x10] sm:$0x3]  ;;  %4354 = vmatprep.subr.mxu0 %v3906_v7  ;;  %4443 = vmatprep.subr.mxu1 %v3908_v4  ;;  %v4157_v54 = vsel %vm2848_vm4, %v4152_v50, %v4156_v35  ;;  %v3995_v28 = vrot.slane %v3984_v59, 2  ;;  %v3994_v47 = vsel %vm2298_vm3, %v3825_v24, %v3993_v1  ;;  %v4007_v18 = vmax.f32 %v3979_v5, %v3993_v1  ;;  %v3890_v50 = vld [vmem:[%s15090_s3 + $0x148] sm:$0xff]  ;;  %v3888_v4 = vld [vmem:[%s15090_s3 + $0x138] sm:$0xff] }
 0x4e6   : > { %4355 = vmatpush1.msra.mxu0 %v3905_v15  ;;  %4444 = vmatpush1.msra.mxu1 %v3907_v6  ;;  %v4005_v37 = vmax.f32 %v12595_v56, %v3994_v47  ;;  %v3831_v22 = vrot.slane %v3804_v34, 2  ;;  %v3830_v14 = vsel %vm2298_vm3, %v3825_v24, %v3829_v3  ;;  %v3980_v20 = vld [vmem:[#allocation3 + $0x10] sm:$0xf]  ;;  %v3887_v15 = vld [vmem:[%s15090_s3 + $0x130] sm:$0xff]  ;;  %v3884_v1 = vld [vmem:[%s15090_s3 + $0x118] sm:$0xff] }
 0x4e7   : > { %4244 = vmatprep.mubr.f32.mxu0 %v4157_v54  ;;  %4333 = vmatprep.mubr.f32.mxu1 %v4157_v54  ;;  %v3996_v32 = vsel %vm2298_vm3, %v3827_v13, %v3995_v28  ;;  %v12662_v51 = vmax.f32 %v12595_v56, %v3830_v14  ;;  %v4008_v33 = vmax.f32 %v3980_v20, %v3995_v28  ;;  %v3899_v56 = vld [vmem:[%s15090_s3 + $0x190] sm:$0xff]  ;;  %v3889_v53 = vld [vmem:[%s15090_s3 + $0x140] sm:$0xff]  ;;  %v4162_v7 = vrot.slane %v4007_v18, 4  ;;  %v3878_v34 = vld [vmem:[%s15090_s3 + $0xe8] sm:$0xff] }
 0x4e8   : > { %4356 = vmatprep.subr.mxu0 %v3902_v19  ;;  %4445 = vmatprep.subr.mxu1 %v3904_v27  ;;  %v4006_v49 = vmax.f32 %v12606_v16, %v3996_v32  ;;  %v3832_v58 = vsel %vm2298_vm3, %v3827_v13, %v3831_v22  ;;  %v4158_v31 = vrot.slane %v4005_v37, 4  ;;  %v3885_v62 = vld [vmem:[%s15090_s3 + $0x120] sm:$0xff]  ;;  %v3883_v59 = vld [vmem:[%s15090_s3 + $0x110] sm:$0xff]  ;;  %v3880_v54 = vld [vmem:[%s15090_s3 + $0xf8] sm:$0xff] }
 0x4e9   : > { %4245 = vmatmul.mubr.f32.gmra.mxu0 %v4155_v42  ;;  %4334 = vmatmul.mubr.f32.gmra.mxu1 %v4155_v42  ;;  %v12679_v9 = vmax.f32 %v12606_v16, %v3832_v58  ;;  %v4164_v16 = vrot.slane %v4008_v33, 4  ;;  %v3881_v3 = vld [vmem:[%s15090_s3 + $0x100] sm:$0xff]  ;;  %v3879_v27 = vld [vmem:[%s15090_s3 + $0xf0] sm:$0xff]  ;;  %v3874_v28 = vld [vmem:[%s15090_s3 + $0xc8] sm:$0xff] }
 0x4ea   : > { %4357 = vmatpush1.msra.mxu0 %v3901_v25  ;;  %4446 = vmatpush1.msra.mxu1 %v3903_v48  ;;  %v4160_v21 = vrot.slane %v4006_v49, 4  ;;  %v4159_v13 = vsel %vm2848_vm4, %v4154_v36, %v4158_v31  ;;  %v4163_v6 = vsel %vm2848_vm4, %v4158_v31, %v4162_v7  ;;  %v3794_v36 = vld [vmem:[#allocation3 + $0x50] sm:$0xff]  ;;  %v3876_v47 = vld [vmem:[%s15090_s3 + $0xd8] sm:$0xff]  ;;  %v3875_v22 = vld [vmem:[%s15090_s3 + $0xd0] sm:$0xff] }
 0x4eb   : > { %4358 = vmatprep.subr.mxu0 %v3898_v17  ;;  %4447 = vmatprep.subr.mxu1 %v3900_v30  ;;  %v3842_v39 = vmax.f32 %v3794_v36, %v3820_v46  ;;  %v3877_v19 = vld [vmem:[%s15090_s3 + $0xe0] sm:$0xff]  ;;  %v3870_v14 = vld [vmem:[%s15090_s3 + $0xa8] sm:$0xff]  ;;  %v3872_v42 = vld [vmem:[%s15090_s3 + $0xb8] sm:$0xff] }
 0x4ec   : > { %v4161_v24 = vsel %vm2848_vm4, %v4156_v35, %v4160_v21  ;;  %4359 = vmatpush1.msra.mxu0 %v3897_v8  ;;  %4448 = vmatpush1.msra.mxu1 %v3899_v56  ;;  %v4165_v12 = vsel %vm2848_vm4, %v4160_v21, %v4164_v16  ;;  %v3882_v35 = vld [vmem:[%s15090_s3 + $0x108] sm:$0xff]  ;;  %v3873_v37 = vld [vmem:[%s15090_s3 + $0xc0] sm:$0xff]  ;;  %v3871_v48 = vld [vmem:[%s15090_s3 + $0xb0] sm:$0xff] }
 0x4ed   : > { %4250 = vmatprep.mubr.f32.mxu0 %v4161_v24  ;;  %4339 = vmatprep.mubr.f32.mxu1 %v4161_v24  ;;  %v3869_v25 = vld [vmem:[%s15090_s3 + $0xa0] sm:$0xff]  ;;  %v3866_v32 = vld [vmem:[%s15090_s3 + $0x88] sm:$0xff]  ;;  %v3868_v20 = vld [vmem:[%s15090_s3 + $0x98] sm:$0xff] }
 0x4ee   : > { %4360 = vmatprep.subr.mxu0 %v3894_v11  ;;  %4449 = vmatprep.subr.mxu1 %v3896_v29  ;;  %v3865_v49 = vld [vmem:[%s15090_s3 + $0x80] sm:$0xff]  ;;  %v3867_v17 = vld [vmem:[%s15090_s3 + $0x90] sm:$0xff]  ;;  %v3862_v30 = vld [vmem:[%s15090_s3 + $0x68] sm:$0xff] }
 0x4ef   : > { %4251 = vmatmul.mubr.f32.gmra.mxu0 %v4159_v13  ;;  %4340 = vmatmul.mubr.f32.gmra.mxu1 %v4159_v13  ;;  %v3864_v33 = vld [vmem:[%s15090_s3 + $0x78] sm:$0xff]  ;;  %v3861_v58 = vld [vmem:[%s15090_s3 + $0x60] sm:$0xff]  ;;  %v3863_v8 = vld [vmem:[%s15090_s3 + $0x70] sm:$0xff] }
 0x4f0   : > { %4361 = vmatpush1.msra.mxu0 %v3893_v45  ;;  %4450 = vmatpush1.msra.mxu1 %v3895_v61  ;;  %v3858_v56 = vld [vmem:[%s15090_s3 + $0x48] sm:$0xff]  ;;  %v3860_v21 = vld [vmem:[%s15090_s3 + $0x58] sm:$0xff]  ;;  %v3857_v11 = vld [vmem:[%s15090_s3 + $0x40] sm:$0xff] }
 0x4f1   : > { %4256 = vmatprep.mubr.f32.mxu0 %v4165_v12  ;;  %4345 = vmatprep.mubr.f32.mxu1 %v4165_v12  ;;  %v3859_v31 = vld [vmem:[%s15090_s3 + $0x50] sm:$0xff]  ;;  %v3854_v29 = vld [vmem:[%s15090_s3 + $0x28] sm:$0xff]  ;;  %v3856_v5 = vld [vmem:[%s15090_s3 + $0x38] sm:$0xff] }
 0x4f2   : > { %4362 = vmatprep.subr.mxu0 %v3890_v50  ;;  %4451 = vmatprep.subr.mxu1 %v3892_v43  ;;  %v3855_v24 = vld [vmem:[%s15090_s3 + $0x30] sm:$0xff]  ;;  %v3850_v16 = vld [vmem:[%s15090_s3 + $0x8] sm:$0xff]  ;;  %v3852_v18 = vld [vmem:[%s15090_s3 + $0x18] sm:$0xff] }
 0x4f3   : > { %4363 = vmatpush1.msra.mxu0 %v3889_v53  ;;  %4452 = vmatpush1.msra.mxu1 %v3891_v40  ;;  %v3849_v45 = vld [vmem:[%s15090_s3] sm:$0xff]  ;;  %v3851_v61 = vld [vmem:[%s15090_s3 + $0x10] sm:$0xff]  ;;  %v3974_v13 = vld [vmem:[%s15090_s3 + $0x3e8] sm:$0xff] }
 0x4f4   : > { %4364 = vmatprep.subr.mxu0 %v3886_v26  ;;  %4453 = vmatprep.subr.mxu1 %v3888_v4  ;;  %v3976_v0 = vld [vmem:[%s15090_s3 + $0x3f8] sm:$0xff]  ;;  %v3973_v50 = vld [vmem:[%s15090_s3 + $0x3e0] sm:$0xff]  ;;  %v3975_v43 = vld [vmem:[%s15090_s3 + $0x3f0] sm:$0xff] }
 0x4f5   : > { %4257 = vmatmul.mubr.f32.gmra.mxu0 %v4163_v6  ;;  %4346 = vmatmul.mubr.f32.gmra.mxu1 %v4163_v6  ;;  %v3970_v12 = vld [vmem:[%s15090_s3 + $0x3c8] sm:$0xff]  ;;  %v3972_v53 = vld [vmem:[%s15090_s3 + $0x3d8] sm:$0xff]  ;;  %v3969_v40 = vld [vmem:[%s15090_s3 + $0x3c0] sm:$0xff] }
 0x4f6   : > { %4365 = vmatpush1.msra.mxu0 %v3885_v62  ;;  %4454 = vmatpush1.msra.mxu1 %v3887_v15  ;;  %v3971_v7 = vld [vmem:[%s15090_s3 + $0x3d0] sm:$0xff]  ;;  %v3966_v26 = vld [vmem:[%s15090_s3 + $0x3a8] sm:$0xff]  ;;  %v3968_v4 = vld [vmem:[%s15090_s3 + $0x3b8] sm:$0xff] }
 0x4f7   : > { %4366 = vmatprep.subr.mxu0 %v3882_v35  ;;  %4416 = vmatprep.mubr.f32.mxu0 %v3842_v39  ;;  %v3965_v46 = vld [vmem:[%s15090_s3 + $0x3a0] sm:$0xff]  ;;  %v3967_v62 = vld [vmem:[%s15090_s3 + $0x3b0] sm:$0xff]  ;;  %v3962_v15 = vld [vmem:[%s15090_s3 + $0x388] sm:$0xff] }
 0x4f8   : > { %4455 = vmatprep.subr.mxu1 %v3884_v1  ;;  %4505 = vmatprep.mubr.f32.mxu1 %v3842_v39  ;;  %v3964_v6 = vld [vmem:[%s15090_s3 + $0x398] sm:$0xff]  ;;  %v3961_v35 = vld [vmem:[%s15090_s3 + $0x380] sm:$0xff]  ;;  %v3963_v36 = vld [vmem:[%s15090_s3 + $0x390] sm:$0xff] }
 0x4f9   : > { %4367 = vmatpush1.msra.mxu0 %v3881_v3  ;;  %4456 = vmatpush1.msra.mxu1 %v3883_v59  ;;  %v3958_v39 = vld [vmem:[%s15090_s3 + $0x368] sm:$0xff]  ;;  %v3960_v1 = vld [vmem:[%s15090_s3 + $0x378] sm:$0xff]  ;;  %v3957_v3 = vld [vmem:[%s15090_s3 + $0x360] sm:$0xff] }
 0x4fa   : > { %4368 = vmatprep.subr.mxu0 %v3878_v34  ;;  %4457 = vmatprep.subr.mxu1 %v3880_v54  ;;  %v3959_v59 = vld [vmem:[%s15090_s3 + $0x370] sm:$0xff]  ;;  %v3954_v34 = vld [vmem:[%s15090_s3 + $0x348] sm:$0xff]  ;;  %v3956_v54 = vld [vmem:[%s15090_s3 + $0x358] sm:$0xff] }
 0x4fb   : > { %4369 = vmatpush1.msra.mxu0 %v3877_v19  ;;  %4458 = vmatpush1.msra.mxu1 %v3879_v27  ;;  %v3953_v19 = vld [vmem:[%s15090_s3 + $0x340] sm:$0xff]  ;;  %v3955_v27 = vld [vmem:[%s15090_s3 + $0x350] sm:$0xff] }
 0x4fc   : > { %4370 = vmatprep.subr.mxu0 %v3874_v28  ;;  %4459 = vmatprep.subr.mxu1 %v3876_v47  ;;  %v3950_v28 = vld [vmem:[%s15090_s3 + $0x328] sm:$0xff]  ;;  %v3952_v47 = vld [vmem:[%s15090_s3 + $0x338] sm:$0xff] }
 0x4fd   : > { %4371 = vmatpush1.msra.mxu0 %v3873_v37  ;;  %4460 = vmatpush1.msra.mxu1 %v3875_v22  ;;  %v3949_v37 = vld [vmem:[%s15090_s3 + $0x320] sm:$0xff]  ;;  %v3951_v22 = vld [vmem:[%s15090_s3 + $0x330] sm:$0xff] }
 0x4fe   : > { %4372 = vmatprep.subr.mxu0 %v3870_v14  ;;  %4461 = vmatprep.subr.mxu1 %v3872_v42  ;;  %v3946_v14 = vld [vmem:[%s15090_s3 + $0x308] sm:$0xff]  ;;  %v3948_v42 = vld [vmem:[%s15090_s3 + $0x318] sm:$0xff] }
 0x4ff   : > { %4373 = vmatpush1.msra.mxu0 %v3869_v25  ;;  %4462 = vmatpush1.msra.mxu1 %v3871_v48  ;;  %v3945_v25 = vld [vmem:[%s15090_s3 + $0x300] sm:$0xff]  ;;  %v3947_v48 = vld [vmem:[%s15090_s3 + $0x310] sm:$0xff] }
 0x500   : > { %4374 = vmatprep.subr.mxu0 %v3866_v32  ;;  %4463 = vmatprep.subr.mxu1 %v3868_v20  ;;  %v3942_v32 = vld [vmem:[%s15090_s3 + $0x2e8] sm:$0xff]  ;;  %v3944_v20 = vld [vmem:[%s15090_s3 + $0x2f8] sm:$0xff] }
 0x501   : > { %4375 = vmatpush1.msra.mxu0 %v3865_v49  ;;  %4464 = vmatpush1.msra.mxu1 %v3867_v17  ;;  %v3941_v49 = vld [vmem:[%s15090_s3 + $0x2e0] sm:$0xff]  ;;  %v3943_v17 = vld [vmem:[%s15090_s3 + $0x2f0] sm:$0xff] }
 0x502   : > { %4376 = vmatprep.subr.mxu0 %v3862_v30  ;;  %4465 = vmatprep.subr.mxu1 %v3864_v33  ;;  %v3938_v30 = vld [vmem:[%s15090_s3 + $0x2c8] sm:$0xff]  ;;  %v3940_v33 = vld [vmem:[%s15090_s3 + $0x2d8] sm:$0xff] }
 0x503   : > { %4377 = vmatpush1.msra.mxu0 %v3861_v58  ;;  %4466 = vmatpush1.msra.mxu1 %v3863_v8  ;;  %v3937_v58 = vld [vmem:[%s15090_s3 + $0x2c0] sm:$0xff]  ;;  %v3939_v8 = vld [vmem:[%s15090_s3 + $0x2d0] sm:$0xff] }
 0x504   : > { %4378 = vmatprep.subr.mxu0 %v3858_v56  ;;  %4467 = vmatprep.subr.mxu1 %v3860_v21  ;;  %v3934_v56 = vld [vmem:[%s15090_s3 + $0x2a8] sm:$0xff]  ;;  %v3936_v21 = vld [vmem:[%s15090_s3 + $0x2b8] sm:$0xff] }
 0x505   : > { %4379 = vmatpush1.msra.mxu0 %v3857_v11  ;;  %4468 = vmatpush1.msra.mxu1 %v3859_v31  ;;  %v3933_v11 = vld [vmem:[%s15090_s3 + $0x2a0] sm:$0xff]  ;;  %v3935_v31 = vld [vmem:[%s15090_s3 + $0x2b0] sm:$0xff] }
 0x506   : > { %4380 = vmatprep.subr.mxu0 %v3854_v29  ;;  %4469 = vmatprep.subr.mxu1 %v3856_v5  ;;  %v3930_v29 = vld [vmem:[%s15090_s3 + $0x288] sm:$0xff]  ;;  %v3932_v5 = vld [vmem:[%s15090_s3 + $0x298] sm:$0xff] }
 0x507   : > { %4381 = vmatpush1.msra.mxu0 %v3853_v63  ;;  %4470 = vmatpush1.msra.mxu1 %v3855_v24  ;;  %v3929_v63 = vld [vmem:[%s15090_s3 + $0x280] sm:$0xff]  ;;  %v3931_v24 = vld [vmem:[%s15090_s3 + $0x290] sm:$0xff] }
 0x508   : > { %4382 = vmatprep.subr.mxu0 %v3850_v16  ;;  %4471 = vmatprep.subr.mxu1 %v3852_v18  ;;  %v3801_v16 = vld [vmem:[#allocation3 + $0x48] sm:$0xfc]  ;;  %v3926_v18 = vld [vmem:[%s15090_s3 + $0x268] sm:$0xff] }
 0x509   : > { %4383 = vmatpush1.msra.mxu0 %v3849_v45  ;;  %4472 = vmatpush1.msra.mxu1 %v3851_v61  ;;  %v3928_v45 = vld [vmem:[%s15090_s3 + $0x278] sm:$0xff]  ;;  %v3925_v61 = vld [vmem:[%s15090_s3 + $0x260] sm:$0xff] }
 0x50a   : > { %4384 = vmatprep.subr.mxu0 %v3974_v13  ;;  %4473 = vmatprep.subr.mxu1 %v3976_v0  ;;  %v3927_v13 = vld [vmem:[%s15090_s3 + $0x270] sm:$0xff]  ;;  %v3922_v0 = vld [vmem:[%s15090_s3 + $0x248] sm:$0xff] }
 0x50b   : > { %4385 = vmatpush2.msra.mxu0 %v3973_v50  ;;  %4474 = vmatpush2.msra.mxu1 %v3975_v43  ;;  %v3924_v50 = vld [vmem:[%s15090_s3 + $0x258] sm:$0xff]  ;;  %v3815_v43 = vrot.slane %v3801_v16, 2 }
 0x50c   : > { %4386 = vmatprep.subr.mxu0 %v3970_v12  ;;  %4475 = vmatprep.subr.mxu1 %v3972_v53  ;;  %v3921_v12 = vld [vmem:[%s15090_s3 + $0x240] sm:$0xff]  ;;  %v3923_v53 = vld [vmem:[%s15090_s3 + $0x250] sm:$0xff]  ;;  %v7367_v16 = vld [vmem:[%s15090_s3 + $0x8f8] sm:$0xff] }
 0x50d   : > { %4387 = vmatpush2.msra.mxu0 %v3969_v40  ;;  %4476 = vmatpush2.msra.mxu1 %v3971_v7  ;;  %v3918_v40 = vld [vmem:[%s15090_s3 + $0x228] sm:$0xff]  ;;  %v3920_v7 = vld [vmem:[%s15090_s3 + $0x238] sm:$0xff] }
 0x50e   : > { %4388 = vmatprep.subr.mxu0 %v3966_v26  ;;  %4477 = vmatprep.subr.mxu1 %v3968_v4  ;;  %v3917_v26 = vld [vmem:[%s15090_s3 + $0x220] sm:$0xff]  ;;  %v3919_v4 = vld [vmem:[%s15090_s3 + $0x230] sm:$0xff] }
 0x50f   : > { %4389 = vmatpush2.msra.mxu0 %v3965_v46  ;;  %4478 = vmatpush2.msra.mxu1 %v3967_v62  ;;  %v3914_v46 = vld [vmem:[%s15090_s3 + $0x208] sm:$0xff]  ;;  %v3916_v62 = vld [vmem:[%s15090_s3 + $0x218] sm:$0xff] }
 0x510   : > { %4390 = vmatprep.subr.mxu0 %v3962_v15  ;;  %4479 = vmatprep.subr.mxu1 %v3964_v6  ;;  %v3817_v15 = vsel %vm2298_vm3, %v3815_v43, %v12587_v44  ;;  %v3913_v6 = vld [vmem:[%s15090_s3 + $0x200] sm:$0xff]  ;;  %v7397_v44 = vld [vmem:[%s15090_s3 + $0x9e8] sm:$0xff] }
 0x511   : > { %4391 = vmatpush2.msra.mxu0 %v3961_v35  ;;  %4480 = vmatpush2.msra.mxu1 %v3963_v36  ;;  %v3915_v35 = vld [vmem:[%s15090_s3 + $0x210] sm:$0xff]  ;;  %v3793_v36 = vld [vmem:[#allocation3 + $0x48] sm:$0xff]  ;;  %v7357_v43 = vld [vmem:[%s15090_s3 + $0x8a8] sm:$0xff] }
 0x512   : > { %4392 = vmatprep.subr.mxu0 %v3958_v39  ;;  %4481 = vmatprep.subr.mxu1 %v3960_v1  ;;  %v3841_v39 = vmax.f32 %v3793_v36, %v3817_v15  ;;  %v7399_v1 = vld [vmem:[%s15090_s3 + $0x9f8] sm:$0xff]  ;;  %v7345_v36 = vld [vmem:[%s15090_s3 + $0x848] sm:$0xff] }
 0x513   : > { %4393 = vmatpush2.msra.mxu0 %v3957_v3  ;;  %4482 = vmatpush2.msra.mxu1 %v3959_v59  ;;  %v7396_v3 = vld [vmem:[%s15090_s3 + $0x9e0] sm:$0xff]  ;;  %v7398_v59 = vld [vmem:[%s15090_s3 + $0x9f0] sm:$0xff]  ;;  %v7351_v15 = vld [vmem:[%s15090_s3 + $0x878] sm:$0xff] }
 0x514   : > { %4394 = vmatprep.subr.mxu0 %v3954_v34  ;;  %4483 = vmatprep.subr.mxu1 %v3956_v54  ;;  %v7393_v34 = vld [vmem:[%s15090_s3 + $0x9c8] sm:$0xff]  ;;  %v7395_v54 = vld [vmem:[%s15090_s3 + $0x9d8] sm:$0xff] }
 0x515   : > { %4395 = vmatpush2.msra.mxu0 %v3953_v19  ;;  %4484 = vmatpush2.msra.mxu1 %v3955_v27  ;;  %v7392_v19 = vld [vmem:[%s15090_s3 + $0x9c0] sm:$0xff]  ;;  %v7394_v27 = vld [vmem:[%s15090_s3 + $0x9d0] sm:$0xff] }
 0x516   : > { %4396 = vmatprep.subr.mxu0 %v3950_v28  ;;  %4485 = vmatprep.subr.mxu1 %v3952_v47  ;;  %v7389_v28 = vld [vmem:[%s15090_s3 + $0x9a8] sm:$0xff]  ;;  %v7388_v47 = vld [vmem:[%s15090_s3 + $0x9a0] sm:$0xff] }
 0x517   : > { %4397 = vmatpush2.msra.mxu0 %v3949_v37  ;;  %4486 = vmatpush2.msra.mxu1 %v3951_v22  ;;  %v7390_v37 = vld [vmem:[%s15090_s3 + $0x9b0] sm:$0xff]  ;;  %v7385_v22 = vld [vmem:[%s15090_s3 + $0x988] sm:$0xff] }
 0x518   : > { %4398 = vmatprep.subr.mxu0 %v3946_v14  ;;  %4487 = vmatprep.subr.mxu1 %v3948_v42  ;;  %v7387_v14 = vld [vmem:[%s15090_s3 + $0x998] sm:$0xff]  ;;  %v7386_v42 = vld [vmem:[%s15090_s3 + $0x990] sm:$0xff] }
 0x519   : > { %4399 = vmatpush2.msra.mxu0 %v3945_v25  ;;  %4488 = vmatpush2.msra.mxu1 %v3947_v48  ;;  %v13079_v25 = vld [vmem:[#allocation3 + $0x40] sm:$0xff]  ;;  %v7381_v48 = vld [vmem:[%s15090_s3 + $0x968] sm:$0xff] }
 0x51a   : > { %4400 = vmatprep.subr.mxu0 %v3942_v32  ;;  %4489 = vmatprep.subr.mxu1 %v3944_v20  ;;  %v4533_v32 = vld [vmem:[#allocation3 + $0x58] sm:$0xfc]  ;;  %v4556_v20 = vrot.slane %v13079_v25, 2 }
 0x51b   : > { %4401 = vmatpush2.msra.mxu0 %v3941_v49  ;;  %4490 = vmatpush2.msra.mxu1 %v3943_v17  ;;  %v7380_v49 = vld [vmem:[%s15090_s3 + $0x960] sm:$0xff]  ;;  %v7382_v17 = vld [vmem:[%s15090_s3 + $0x970] sm:$0xff] }
 0x51c   : > { %4402 = vmatprep.subr.mxu0 %v3938_v30  ;;  %4491 = vmatprep.subr.mxu1 %v3940_v33  ;;  %v7377_v30 = vld [vmem:[%s15090_s3 + $0x948] sm:$0xff]  ;;  %v7379_v33 = vld [vmem:[%s15090_s3 + $0x958] sm:$0xff] }
 0x51d   : > { %4403 = vmatpush2.msra.mxu0 %v3937_v58  ;;  %4492 = vmatpush2.msra.mxu1 %v3939_v8  ;;  %v4555_v58 = vrot.slane %v4533_v32, 2  ;;  %v7378_v8 = vld [vmem:[%s15090_s3 + $0x950] sm:$0xff]  ;;  %v7453_v32 = vld [vmem:[%s15090_s3 + $0xba8] sm:$0xff] }
 0x51e   : > { %4404 = vmatprep.subr.mxu0 %v3934_v56  ;;  %4493 = vmatprep.subr.mxu1 %v3936_v21  ;;  %v7375_v21 = vld [vmem:[%s15090_s3 + $0x938] sm:$0xff] }
 0x51f   : > { %4405 = vmatpush2.msra.mxu0 %v3933_v11  ;;  %4494 = vmatpush2.msra.mxu1 %v3935_v31  ;;  %v4557_v56 = vsel %vm2298_vm3, %v4555_v58, %v4556_v20  ;;  %v7372_v11 = vld [vmem:[%s15090_s3 + $0x920] sm:$0xff]  ;;  %v7451_v58 = vld [vmem:[%s15090_s3 + $0xb98] sm:$0xff] }
 0x520   : > { %4406 = vmatprep.subr.mxu0 %v3930_v29  ;;  %4495 = vmatprep.subr.mxu1 %v3932_v5  ;;  %v4579_v31 = vmax.f32 %v12580_v2, %v4557_v56  ;;  %v7374_v29 = vld [vmem:[%s15090_s3 + $0x930] sm:$0xff]  ;;  %v7369_v5 = vld [vmem:[%s15090_s3 + $0x908] sm:$0xff]  ;;  %v7368_v2 = vld [vmem:[%s15090_s3 + $0x900] sm:$0xff] }
 0x521   : > { %4407 = vmatpush2.msra.mxu0 %v3929_v63  ;;  %4496 = vmatpush2.msra.mxu1 %v3931_v24  ;;  %v7371_v63 = vld [vmem:[%s15090_s3 + $0x918] sm:$0xff]  ;;  %v7365_v24 = vld [vmem:[%s15090_s3 + $0x8e8] sm:$0xff] }
 0x522   : > { %4408 = vmatprep.subr.mxu0 %v3926_v18  ;;  %4497 = vmatprep.subr.mxu1 %v3928_v45  ;;  %v7364_v18 = vld [vmem:[%s15090_s3 + $0x8e0] sm:$0xff]  ;;  %v7366_v45 = vld [vmem:[%s15090_s3 + $0x8f0] sm:$0xff]  ;;  %v7445_v56 = vld [vmem:[%s15090_s3 + $0xb68] sm:$0xff] }
 0x523   : > { %4409 = vmatpush2.msra.mxu0 %v3925_v61  ;;  %4498 = vmatpush2.msra.mxu1 %v3927_v13  ;;  %v7361_v61 = vld [vmem:[%s15090_s3 + $0x8c8] sm:$0xff]  ;;  %v7363_v13 = vld [vmem:[%s15090_s3 + $0x8d8] sm:$0xff] }
 0x524   : > { %4410 = vmatprep.subr.mxu0 %v3922_v0  ;;  %4499 = vmatprep.subr.mxu1 %v3924_v50  ;;  %v7360_v0 = vld [vmem:[%s15090_s3 + $0x8c0] sm:$0xff]  ;;  %v7362_v50 = vld [vmem:[%s15090_s3 + $0x8d0] sm:$0xff] }
 0x525   : > { %4411 = vmatpush2.msra.mxu0 %v3921_v12  ;;  %4500 = vmatpush2.msra.mxu1 %v3923_v53  ;;  %v7359_v12 = vld [vmem:[%s15090_s3 + $0x8b8] sm:$0xff]  ;;  %v7356_v53 = vld [vmem:[%s15090_s3 + $0x8a0] sm:$0xff] }
 0x526   : > { %4412 = vmatprep.subr.mxu0 %v3918_v40  ;;  %4501 = vmatprep.subr.mxu1 %v3920_v7  ;;  %v7358_v40 = vld [vmem:[%s15090_s3 + $0x8b0] sm:$0xff]  ;;  %v7353_v7 = vld [vmem:[%s15090_s3 + $0x888] sm:$0xff] }
 0x527   : > { %4413 = vmatpush2.msra.mxu0 %v3917_v26  ;;  %4502 = vmatpush2.msra.mxu1 %v3919_v4  ;;  %v7355_v26 = vld [vmem:[%s15090_s3 + $0x898] sm:$0xff]  ;;  %v7352_v4 = vld [vmem:[%s15090_s3 + $0x880] sm:$0xff] }
 0x528   : > { %4414 = vmatprep.subr.mxu0 %v3914_v46  ;;  %4503 = vmatprep.subr.mxu1 %v3916_v62  ;;  %v7354_v46 = vld [vmem:[%s15090_s3 + $0x890] sm:$0xff]  ;;  %v7349_v62 = vld [vmem:[%s15090_s3 + $0x868] sm:$0xff] }
 0x529   : > { %4415 = vmatpush2.msra.mxu0 %v3913_v6  ;;  %4504 = vmatpush2.msra.mxu1 %v3915_v35  ;;  %v7348_v6 = vld [vmem:[%s15090_s3 + $0x860] sm:$0xff]  ;;  %v7350_v35 = vld [vmem:[%s15090_s3 + $0x870] sm:$0xff] }
 0x52a   : > { %4417 = vmatmul.mubr.f32.vlgmr.msra.gmra.mxu0 %v3841_v39  ;;  %4506 = vmatmul.mubr.f32.vlgmr.msra.gmra.mxu1 %v3841_v39  ;;  %v7347_v39 = vld [vmem:[%s15090_s3 + $0x858] sm:$0xff] }
 0x52b   : > { %4715 = vmatprep.subr.mxu0 %v7397_v44  ;;  %4804 = vmatprep.subr.mxu1 %v7399_v1  ;;  %v7344_v44 = vld [vmem:[%s15090_s3 + $0x840] sm:$0xff]  ;;  %v7346_v1 = vld [vmem:[%s15090_s3 + $0x850] sm:$0xff] }
 0x52c   : > { %4422 = vmatprep.mubr.f32.mxu0 %v12609_v52  ;;  %4511 = vmatprep.mubr.f32.mxu1 %v12609_v52  ;;  %v7391_v52 = vld [vmem:[%s15090_s3 + $0x9b8] sm:$0xff] }
 0x52d   : > { %4716 = vmatpush1.msra.mxu0 %v7396_v3  ;;  %4805 = vmatpush1.msra.mxu1 %v7398_v59  ;;  %v7341_v3 = vld [vmem:[%s15090_s3 + $0x828] sm:$0xff]  ;;  %v7343_v59 = vld [vmem:[%s15090_s3 + $0x838] sm:$0xff] }
 0x52e   : > { %4717 = vmatprep.subr.mxu0 %v7393_v34  ;;  %4806 = vmatprep.subr.mxu1 %v7395_v54  ;;  %v7340_v34 = vld [vmem:[%s15090_s3 + $0x820] sm:$0xff]  ;;  %v7342_v54 = vld [vmem:[%s15090_s3 + $0x830] sm:$0xff] }
 0x52f   : > { %4718 = vmatpush1.msra.mxu0 %v7392_v19  ;;  %4807 = vmatpush1.msra.mxu1 %v7394_v27  ;;  %v7337_v19 = vld [vmem:[%s15090_s3 + $0x808] sm:$0xff]  ;;  %v7339_v27 = vld [vmem:[%s15090_s3 + $0x818] sm:$0xff] }
 0x530   : > { %4423 = vmatmul.mubr.f32.gmra.mxu0 %v12599_v23  ;;  %4512 = vmatmul.mubr.f32.gmra.mxu1 %v12599_v23  ;;  %v7384_v23 = vld [vmem:[%s15090_s3 + $0x980] sm:$0xff] }
 0x531   : > { %4719 = vmatprep.subr.mxu0 %v7389_v28  ;;  %4808 = vmatprep.subr.mxu1 %v7391_v52  ;;  %v7336_v28 = vld [vmem:[%s15090_s3 + $0x800] sm:$0xff]  ;;  %v7338_v52 = vld [vmem:[%s15090_s3 + $0x810] sm:$0xff] }
 0x532   : > { %4428 = vmatprep.mubr.f32.mxu0 %v12629_v10  ;;  %4517 = vmatprep.mubr.f32.mxu1 %v12629_v10  ;;  %v7383_v10 = vld [vmem:[%s15090_s3 + $0x978] sm:$0xff] }
 0x533   : > { %4720 = vmatpush1.msra.mxu0 %v7388_v47  ;;  %4809 = vmatpush1.msra.mxu1 %v7390_v37  ;;  %v7461_v47 = vld [vmem:[%s15090_s3 + $0xbe8] sm:$0xff]  ;;  %v7463_v37 = vld [vmem:[%s15090_s3 + $0xbf8] sm:$0xff] }
 0x534   : > { %4721 = vmatprep.subr.mxu0 %v7385_v22  ;;  %4810 = vmatprep.subr.mxu1 %v7387_v14  ;;  %v7460_v22 = vld [vmem:[%s15090_s3 + $0xbe0] sm:$0xff]  ;;  %v7462_v14 = vld [vmem:[%s15090_s3 + $0xbf0] sm:$0xff] }
 0x535   : > { %4722 = vmatpush1.msra.mxu0 %v7384_v23  ;;  %4811 = vmatpush1.msra.mxu1 %v7386_v42  ;;  %v7457_v23 = vld [vmem:[%s15090_s3 + $0xbc8] sm:$0xff]  ;;  %v7459_v42 = vld [vmem:[%s15090_s3 + $0xbd8] sm:$0xff] }
 0x536   : > { %4429 = vmatmul.mubr.f32.gmra.mxu0 %v12616_v60  ;;  %4518 = vmatmul.mubr.f32.gmra.mxu1 %v12616_v60  ;;  %v7376_v60 = vld [vmem:[%s15090_s3 + $0x940] sm:$0xff] }
 0x537   : > { %4723 = vmatprep.subr.mxu0 %v7381_v48  ;;  %4812 = vmatprep.subr.mxu1 %v7383_v10  ;;  %v7456_v48 = vld [vmem:[%s15090_s3 + $0xbc0] sm:$0xff]  ;;  %v7458_v10 = vld [vmem:[%s15090_s3 + $0xbd0] sm:$0xff] }
 0x538   : > { %4434 = vmatprep.mubr.f32.mxu0 %v12679_v9  ;;  %4523 = vmatprep.mubr.f32.mxu1 %v12679_v9  ;;  %v7373_v9 = vld [vmem:[%s15090_s3 + $0x928] sm:$0xff] }
 0x539   : > { %4724 = vmatpush1.msra.mxu0 %v7380_v49  ;;  %4813 = vmatpush1.msra.mxu1 %v7382_v17  ;;  %v7455_v49 = vld [vmem:[%s15090_s3 + $0xbb8] sm:$0xff]  ;;  %v7452_v17 = vld [vmem:[%s15090_s3 + $0xba0] sm:$0xff] }
 0x53a   : > { %4725 = vmatprep.subr.mxu0 %v7377_v30  ;;  %4814 = vmatprep.subr.mxu1 %v7379_v33  ;;  %v7454_v30 = vld [vmem:[%s15090_s3 + $0xbb0] sm:$0xff]  ;;  %v7449_v33 = vld [vmem:[%s15090_s3 + $0xb88] sm:$0xff] }
 0x53b   : > { %4726 = vmatpush1.msra.mxu0 %v7376_v60  ;;  %4815 = vmatpush1.msra.mxu1 %v7378_v8  ;;  %v7448_v60 = vld [vmem:[%s15090_s3 + $0xb80] sm:$0xff]  ;;  %v7450_v8 = vld [vmem:[%s15090_s3 + $0xb90] sm:$0xff] }
 0x53c   : > { %4435 = vmatmul.mubr.f32.gmra.mxu0 %v12662_v51  ;;  %4524 = vmatmul.mubr.f32.gmra.mxu1 %v12662_v51  ;;  %v7370_v51 = vld [vmem:[%s15090_s3 + $0x910] sm:$0xff] }
 0x53d   : > { %4727 = vmatprep.subr.mxu0 %v7373_v9  ;;  %4816 = vmatprep.subr.mxu1 %v7375_v21  ;;  %v7447_v9 = vld [vmem:[%s15090_s3 + $0xb78] sm:$0xff]  ;;  %v7444_v21 = vld [vmem:[%s15090_s3 + $0xb60] sm:$0xff] }
 0x53e   : > { %4728 = vmatpush1.msra.mxu0 %v7372_v11  ;;  %4779 = vmatprep.mubr.f32.mxu0 %v4579_v31  ;;  %v7446_v11 = vld [vmem:[%s15090_s3 + $0xb70] sm:$0xff] }
 0x53f   : > { %4817 = vmatpush1.msra.mxu1 %v7374_v29  ;;  %4868 = vmatprep.mubr.f32.mxu1 %v4579_v31  ;;  %v7441_v31 = vld [vmem:[%s15090_s3 + $0xb48] sm:$0xff]  ;;  %v7443_v29 = vld [vmem:[%s15090_s3 + $0xb58] sm:$0xff] }
 0x540   : > { %4729 = vmatprep.subr.mxu0 %v7369_v5  ;;  %4818 = vmatprep.subr.mxu1 %v7371_v63  ;;  %v7440_v5 = vld [vmem:[%s15090_s3 + $0xb40] sm:$0xff]  ;;  %v7442_v63 = vld [vmem:[%s15090_s3 + $0xb50] sm:$0xff] }
 0x541   : > { %4730 = vmatpush1.msra.mxu0 %v7368_v2  ;;  %4819 = vmatpush1.msra.mxu1 %v7370_v51  ;;  %v7437_v2 = vld [vmem:[%s15090_s3 + $0xb28] sm:$0xff]  ;;  %v7439_v51 = vld [vmem:[%s15090_s3 + $0xb38] sm:$0xff] }
 0x542   : > { %4731 = vmatprep.subr.mxu0 %v7365_v24  ;;  %4820 = vmatprep.subr.mxu1 %v7367_v16  ;;  %v7436_v24 = vld [vmem:[%s15090_s3 + $0xb20] sm:$0xff]  ;;  %v7438_v16 = vld [vmem:[%s15090_s3 + $0xb30] sm:$0xff] }
 0x543   : > { %4732 = vmatpush1.msra.mxu0 %v7364_v18  ;;  %4821 = vmatpush1.msra.mxu1 %v7366_v45  ;;  %v7433_v18 = vld [vmem:[%s15090_s3 + $0xb08] sm:$0xff]  ;;  %v7435_v45 = vld [vmem:[%s15090_s3 + $0xb18] sm:$0xff] }
 0x544   : > { %4733 = vmatprep.subr.mxu0 %v7361_v61  ;;  %4822 = vmatprep.subr.mxu1 %v7363_v13  ;;  %v7432_v61 = vld [vmem:[%s15090_s3 + $0xb00] sm:$0xff]  ;;  %v7434_v13 = vld [vmem:[%s15090_s3 + $0xb10] sm:$0xff] }
 0x545   : > { %4734 = vmatpush1.msra.mxu0 %v7360_v0  ;;  %4823 = vmatpush1.msra.mxu1 %v7362_v50  ;;  %v7429_v0 = vld [vmem:[%s15090_s3 + $0xae8] sm:$0xff]  ;;  %v7431_v50 = vld [vmem:[%s15090_s3 + $0xaf8] sm:$0xff] }
 0x546   : > { %4735 = vmatprep.subr.mxu0 %v7357_v43  ;;  %4824 = vmatprep.subr.mxu1 %v7359_v12  ;;  %v7428_v43 = vld [vmem:[%s15090_s3 + $0xae0] sm:$0xff]  ;;  %v7430_v12 = vld [vmem:[%s15090_s3 + $0xaf0] sm:$0xff] }
 0x547   : > { %4736 = vmatpush1.msra.mxu0 %v7356_v53  ;;  %4825 = vmatpush1.msra.mxu1 %v7358_v40  ;;  %v7425_v53 = vld [vmem:[%s15090_s3 + $0xac8] sm:$0xff]  ;;  %v7427_v40 = vld [vmem:[%s15090_s3 + $0xad8] sm:$0xff] }
 0x548   : > { %4737 = vmatprep.subr.mxu0 %v7353_v7  ;;  %4826 = vmatprep.subr.mxu1 %v7355_v26  ;;  %v7424_v7 = vld [vmem:[%s15090_s3 + $0xac0] sm:$0xff]  ;;  %v7426_v26 = vld [vmem:[%s15090_s3 + $0xad0] sm:$0xff] }
 0x549   : > { %4738 = vmatpush1.msra.mxu0 %v7352_v4  ;;  %4827 = vmatpush1.msra.mxu1 %v7354_v46  ;;  %v7421_v4 = vld [vmem:[%s15090_s3 + $0xaa8] sm:$0xff]  ;;  %v7423_v46 = vld [vmem:[%s15090_s3 + $0xab8] sm:$0xff] }
 0x54a   : > { %4739 = vmatprep.subr.mxu0 %v7349_v62  ;;  %4828 = vmatprep.subr.mxu1 %v7351_v15  ;;  %v7420_v62 = vld [vmem:[%s15090_s3 + $0xaa0] sm:$0xff]  ;;  %v7422_v15 = vld [vmem:[%s15090_s3 + $0xab0] sm:$0xff] }
 0x54b   : > { %4740 = vmatpush1.msra.mxu0 %v7348_v6  ;;  %4829 = vmatpush1.msra.mxu1 %v7350_v35  ;;  %v7417_v6 = vld [vmem:[%s15090_s3 + $0xa88] sm:$0xff]  ;;  %v7419_v35 = vld [vmem:[%s15090_s3 + $0xa98] sm:$0xff] }
 0x54c   : > { %4741 = vmatprep.subr.mxu0 %v7345_v36  ;;  %4830 = vmatprep.subr.mxu1 %v7347_v39  ;;  %v7416_v36 = vld [vmem:[%s15090_s3 + $0xa80] sm:$0xff]  ;;  %v7418_v39 = vld [vmem:[%s15090_s3 + $0xa90] sm:$0xff] }
 0x54d   : > { %4742 = vmatpush1.msra.mxu0 %v7344_v44  ;;  %4831 = vmatpush1.msra.mxu1 %v7346_v1  ;;  %v4534_v44 = vld [vmem:[#allocation3] sm:$0xff]  ;;  %v7413_v1 = vld [vmem:[%s15090_s3 + $0xa68] sm:$0xff] }
 0x54e   : > { %4743 = vmatprep.subr.mxu0 %v7341_v3  ;;  %4832 = vmatprep.subr.mxu1 %v7343_v59  ;;  %v7415_v3 = vld [vmem:[%s15090_s3 + $0xa78] sm:$0xff]  ;;  %v4537_v59 = vld [vmem:[#allocation3 + $0x30] sm:$0xff] }
 0x54f   : > { %4744 = vmatpush1.msra.mxu0 %v7340_v34  ;;  %4833 = vmatpush1.msra.mxu1 %v7342_v54  ;;  %v7412_v34 = vld [vmem:[%s15090_s3 + $0xa60] sm:$0xff]  ;;  %v7414_v54 = vld [vmem:[%s15090_s3 + $0xa70] sm:$0xff] }
 0x550   : > { %4745 = vmatprep.subr.mxu0 %v7337_v19  ;;  %4834 = vmatprep.subr.mxu1 %v7339_v27  ;;  %v4532_v19 = vld [vmem:[#allocation3 + $0x8] sm:$0xfc]  ;;  %v7409_v27 = vld [vmem:[%s15090_s3 + $0xa48] sm:$0xff] }
 0x551   : > { %4746 = vmatpush1.msra.mxu0 %v7336_v28  ;;  %4835 = vmatpush1.msra.mxu1 %v7338_v52  ;;  %v7411_v28 = vld [vmem:[%s15090_s3 + $0xa58] sm:$0xff]  ;;  %v4553_v52 = vrot.slane %v4534_v44, 2 }
 0x552   : > { %4747 = vmatprep.subr.mxu0 %v7461_v47  ;;  %4836 = vmatprep.subr.mxu1 %v7463_v37  ;;  %v7408_v47 = vld [vmem:[%s15090_s3 + $0xa40] sm:$0xff]  ;;  %v7410_v37 = vld [vmem:[%s15090_s3 + $0xa50] sm:$0xff]  ;;  %v7555_v44 = vld [vmem:[%s15091_s4 + $0x12d8] sm:$0xff] }
 0x553   : > { %4748 = vmatpush2.msra.mxu0 %v7460_v22  ;;  %4837 = vmatpush2.msra.mxu1 %v7462_v14  ;;  %v4560_v22 = vrot.slane %v4537_v59, 2  ;;  %v4536_v14 = vld [vmem:[#allocation3 + $0x18] sm:$0xff] }
 0x554   : > { %4749 = vmatprep.subr.mxu0 %v7457_v23  ;;  %4838 = vmatprep.subr.mxu1 %v7459_v42  ;;  %v7405_v23 = vld [vmem:[%s15090_s3 + $0xa28] sm:$0xff]  ;;  %v7407_v42 = vld [vmem:[%s15090_s3 + $0xa38] sm:$0xff] }
 0x555   : > { %4750 = vmatpush2.msra.mxu0 %v7456_v48  ;;  %4839 = vmatpush2.msra.mxu1 %v7458_v10  ;;  %v4552_v48 = vrot.slane %v4532_v19, 2  ;;  %v4539_v10 = vld [vmem:[#allocation3 + $0x10] sm:$0xff]  ;;  %v7489_v59 = vld [vmem:[%s15091_s4 + $0x10c8] sm:$0xff] }
 0x556   : > { %4751 = vmatprep.subr.mxu0 %v7453_v32  ;;  %4840 = vmatprep.subr.mxu1 %v7455_v49  ;;  %v7404_v32 = vld [vmem:[%s15090_s3 + $0xa20] sm:$0xff]  ;;  %v7406_v49 = vld [vmem:[%s15090_s3 + $0xa30] sm:$0xff] }
 0x557   : > { %4752 = vmatpush2.msra.mxu0 %v7452_v17  ;;  %4841 = vmatpush2.msra.mxu1 %v7454_v30  ;;  %v7401_v17 = vld [vmem:[%s15090_s3 + $0xa08] sm:$0xff]  ;;  %v7403_v30 = vld [vmem:[%s15090_s3 + $0xa18] sm:$0xff]  ;;  %v7552_v19 = vld [vmem:[%s15091_s4 + $0x12c0] sm:$0xff] }
 0x558   : > { %4753 = vmatprep.subr.mxu0 %v7449_v33  ;;  %4842 = vmatprep.subr.mxu1 %v7451_v58  ;;  %v4554_v33 = vsel %vm2298_vm3, %v4552_v48, %v4553_v52  ;;  %v4558_v58 = vrot.slane %v4536_v14, 2  ;;  %v7484_v14 = vld [vmem:[%s15091_s4 + $0x10a0] sm:$0xff]  ;;  %v7547_v48 = vld [vmem:[%s15091_s4 + $0x1298] sm:$0xff] }
 0x559   : > { %4754 = vmatpush2.msra.mxu0 %v7448_v60  ;;  %4843 = vmatpush2.msra.mxu1 %v7450_v8  ;;  %v7400_v60 = vld [vmem:[%s15090_s3 + $0xa00] sm:$0xff]  ;;  %v7402_v8 = vld [vmem:[%s15090_s3 + $0xa10] sm:$0xff] }
 0x55a   : > { %4755 = vmatprep.subr.mxu0 %v7445_v56  ;;  %4844 = vmatprep.subr.mxu1 %v7447_v9  ;;  %v4561_v56 = vsel %vm2298_vm3, %v4556_v20, %v4560_v22  ;;  %v4564_v9 = vrot.slane %v4539_v10, 2 }
 0x55b   : > { %4756 = vmatpush2.msra.mxu0 %v7444_v21  ;;  %4845 = vmatpush2.msra.mxu1 %v7446_v11  ;;  %v4538_v21 = vld [vmem:[#allocation3 + $0x28] sm:$0xff]  ;;  %v4541_v11 = vld [vmem:[#allocation3 + $0x20] sm:$0x3] }
 0x55c   : > { %4757 = vmatprep.subr.mxu0 %v7441_v31  ;;  %4846 = vmatprep.subr.mxu1 %v7443_v29  ;;  %v8213_v31 = vld [vmem:[#allocation3 + $0x8] sm:$0xff]  ;;  %v4565_v25 = vsel %vm2298_vm3, %v4560_v22, %v4564_v9  ;;  %v4568_v20 = vrot.slane %v4541_v11, 2  ;;  %v7549_v22 = vld [vmem:[%s15091_s4 + $0x12a8] sm:$0xff]  ;;  %v7476_v11 = vld [vmem:[%s15091_s4 + $0x1060] sm:$0xff] }
 0x55d   : > { %4758 = vmatpush2.msra.mxu0 %v7440_v5  ;;  %4847 = vmatpush2.msra.mxu1 %v7442_v63  ;;  %v4578_v29 = vmax.f32 %v8213_v31, %v4554_v33  ;;  %v8214_v5 = vld [vmem:[#allocation3 + $0x40] sm:$0xff]  ;;  %v7544_v33 = vld [vmem:[%s15091_s4 + $0x1280] sm:$0xff] }
 0x55e   : > { %4759 = vmatprep.subr.mxu0 %v7437_v2  ;;  %4848 = vmatprep.subr.mxu1 %v7439_v51  ;;  %v4581_v63 = vmax.f32 %v8214_v5, %v4561_v56  ;;  %v4559_v2 = vsel %vm2298_vm3, %v4553_v52, %v4558_v58  ;;  %v4562_v51 = vrot.slane %v4538_v21, 2  ;;  %v7486_v52 = vld [vmem:[%s15091_s4 + $0x10b0] sm:$0xff]  ;;  %v7540_v31 = vld [vmem:[%s15091_s4 + $0x1260] sm:$0xff]  ;;  %v7539_v5 = vld [vmem:[%s15091_s4 + $0x1258] sm:$0xff] }
 0x55f   : > { %4760 = vmatpush2.msra.mxu0 %v7436_v24  ;;  %4849 = vmatpush2.msra.mxu1 %v7438_v16  ;;  %v4540_v24 = vld [vmem:[#allocation3 + $0x38] sm:$0x3]  ;;  %v8215_v16 = vld [vmem:[#allocation3] sm:$0xff] }
 0x560   : > { %4761 = vmatprep.subr.mxu0 %v7433_v18  ;;  %4850 = vmatprep.subr.mxu1 %v7435_v45  ;;  %v4580_v18 = vmax.f32 %v8215_v16, %v4559_v2  ;;  %v8216_v45 = vld [vmem:[#allocation3 + $0x30] sm:$0xff]  ;;  %v7542_v56 = vld [vmem:[%s15091_s4 + $0x1270] sm:$0xff]  ;;  %v7471_v16 = vld [vmem:[%s15091_s4 + $0x1038] sm:$0xff] }
 0x561   : > { %4762 = vmatpush2.msra.mxu0 %v7432_v61  ;;  %4851 = vmatpush2.msra.mxu1 %v7434_v13  ;;  %v4583_v61 = vmax.f32 %v8216_v45, %v4565_v25  ;;  %v4563_v13 = vsel %vm2298_vm3, %v4558_v58, %v4562_v51  ;;  %v7479_v58 = vld [vmem:[%s15091_s4 + $0x1078] sm:$0xff]  ;;  %v7538_v2 = vld [vmem:[%s15091_s4 + $0x1250] sm:$0xff]  ;;  %v7537_v25 = vld [vmem:[%s15091_s4 + $0x1248] sm:$0xff] }
 0x562   : > { %4763 = vmatprep.subr.mxu0 %v7429_v0  ;;  %4852 = vmatprep.subr.mxu1 %v7431_v50  ;;  %v4566_v0 = vrot.slane %v4540_v24, 2  ;;  %v4569_v50 = vsel %vm2298_vm3, %v4564_v9, %v4568_v20  ;;  %v7477_v9 = vld [vmem:[%s15091_s4 + $0x1068] sm:$0xff]  ;;  %v7472_v20 = vld [vmem:[%s15091_s4 + $0x1040] sm:$0xff]  ;;  %v7470_v45 = vld [vmem:[%s15091_s4 + $0x1030] sm:$0xff] }
 0x563   : > { %4764 = vmatpush2.msra.mxu0 %v7428_v43  ;;  %4853 = vmatpush2.msra.mxu1 %v7430_v12  ;;  %v7495_v43 = vld [vmem:[%s15091_s4 + $0x10f8] sm:$0xff]  ;;  %v7536_v24 = vld [vmem:[%s15091_s4 + $0x1240] sm:$0xff] }
 0x564   : > { %4765 = vmatprep.subr.mxu0 %v7425_v53  ;;  %4854 = vmatprep.subr.mxu1 %v7427_v40  ;;  %v7559_v12 = vld [vmem:[%s15091_s4 + $0x12f8] sm:$0xff]  ;;  %v8217_v53 = vld [vmem:[#allocation3 + $0x18] sm:$0xff] }
 0x565   : > { %4766 = vmatpush2.msra.mxu0 %v7424_v7  ;;  %4855 = vmatpush2.msra.mxu1 %v7426_v26  ;;  %v4582_v40 = vmax.f32 %v8217_v53, %v4563_v13  ;;  %v4585_v7 = vmax.f32 %v4539_v10, %v4569_v50  ;;  %v4567_v26 = vsel %vm2298_vm3, %v4562_v51, %v4566_v0  ;;  %v7482_v10 = vld [vmem:[%s15091_s4 + $0x1090] sm:$0xff]  ;;  %v7473_v51 = vld [vmem:[%s15091_s4 + $0x1048] sm:$0xff]  ;;  %v7468_v50 = vld [vmem:[%s15091_s4 + $0x1020] sm:$0xff] }
 0x566   : > { %4767 = vmatprep.subr.mxu0 %v7421_v4  ;;  %4856 = vmatprep.subr.mxu1 %v7423_v46  ;;  %v7494_v4 = vld [vmem:[%s15091_s4 + $0x10f0] sm:$0xff]  ;;  %v7469_v13 = vld [vmem:[%s15091_s4 + $0x1028] sm:$0xff]  ;;  %v7531_v53 = vld [vmem:[%s15091_s4 + $0x1218] sm:$0xff] }
 0x567   : > { %4768 = vmatpush2.msra.mxu0 %v7420_v62  ;;  %4857 = vmatpush2.msra.mxu1 %v7422_v15  ;;  %v7558_v46 = vld [vmem:[%s15091_s4 + $0x12f0] sm:$0xff]  ;;  %v7493_v62 = vld [vmem:[%s15091_s4 + $0x10e8] sm:$0xff] }
 0x568   : > { %4769 = vmatprep.subr.mxu0 %v7417_v6  ;;  %4858 = vmatprep.subr.mxu1 %v7419_v35  ;;  %v7557_v15 = vld [vmem:[%s15091_s4 + $0x12e8] sm:$0xff]  ;;  %v4584_v6 = vmax.f32 %v4538_v21, %v4567_v26  ;;  %v7492_v35 = vld [vmem:[%s15091_s4 + $0x10e0] sm:$0xff] }
 0x569   : > { %4770 = vmatpush2.msra.mxu0 %v7416_v36  ;;  %4859 = vmatpush2.msra.mxu1 %v7418_v39  ;;  %v7556_v36 = vld [vmem:[%s15091_s4 + $0x12e0] sm:$0xff]  ;;  %v7491_v39 = vld [vmem:[%s15091_s4 + $0x10d8] sm:$0xff]  ;;  %v7541_v21 = vld [vmem:[%s15091_s4 + $0x1268] sm:$0xff] }
 0x56a   : > { %4771 = vmatprep.subr.mxu0 %v7413_v1  ;;  %4860 = vmatprep.subr.mxu1 %v7415_v3  ;;  %v7490_v1 = vld [vmem:[%s15091_s4 + $0x10d0] sm:$0xff]  ;;  %v7533_v0 = vld [vmem:[%s15091_s4 + $0x1228] sm:$0xff] }
 0x56b   : > { %4772 = vmatpush2.msra.mxu0 %v7412_v34  ;;  %4861 = vmatpush2.msra.mxu1 %v7414_v54  ;;  %v7554_v3 = vld [vmem:[%s15091_s4 + $0x12d0] sm:$0xff]  ;;  %v7553_v34 = vld [vmem:[%s15091_s4 + $0x12c8] sm:$0xff]  ;;  %v7488_v54 = vld [vmem:[%s15091_s4 + $0x10c0] sm:$0xff] }
 0x56c   : > { %4773 = vmatprep.subr.mxu0 %v7409_v27  ;;  %4862 = vmatprep.subr.mxu1 %v7411_v28  ;;  %v7487_v27 = vld [vmem:[%s15091_s4 + $0x10b8] sm:$0xff]  ;;  %v7465_v26 = vld [vmem:[%s15091_s4 + $0x1008] sm:$0xff] }
 0x56d   : > { %4774 = vmatpush2.msra.mxu0 %v7408_v47  ;;  %4863 = vmatpush2.msra.mxu1 %v7410_v37  ;;  %v7551_v28 = vld [vmem:[%s15091_s4 + $0x12b8] sm:$0xff]  ;;  %v7550_v47 = vld [vmem:[%s15091_s4 + $0x12b0] sm:$0xff]  ;;  %v7485_v37 = vld [vmem:[%s15091_s4 + $0x10a8] sm:$0xff] }
 0x56e   : > { %4775 = vmatprep.subr.mxu0 %v7405_v23  ;;  %4864 = vmatprep.subr.mxu1 %v7407_v42  ;;  %v7548_v23 = vld [vmem:[%s15091_s4 + $0x12a0] sm:$0xff]  ;;  %v7483_v42 = vld [vmem:[%s15091_s4 + $0x1098] sm:$0xff] }
 0x56f   : > { %4776 = vmatpush2.msra.mxu0 %v7404_v32  ;;  %4865 = vmatpush2.msra.mxu1 %v7406_v49  ;;  %v7546_v32 = vld [vmem:[%s15091_s4 + $0x1290] sm:$0xff]  ;;  %v7481_v49 = vld [vmem:[%s15091_s4 + $0x1088] sm:$0xff] }
 0x570   : > { %4777 = vmatprep.subr.mxu0 %v7401_v17  ;;  %4866 = vmatprep.subr.mxu1 %v7403_v30  ;;  %v7545_v17 = vld [vmem:[%s15091_s4 + $0x1288] sm:$0xff]  ;;  %v7480_v30 = vld [vmem:[%s15091_s4 + $0x1080] sm:$0xff] }
 0x571   : > { %4778 = vmatpush2.msra.mxu0 %v7400_v60  ;;  %4867 = vmatpush2.msra.mxu1 %v7402_v8  ;;  %v7543_v60 = vld [vmem:[%s15091_s4 + $0x1278] sm:$0xff]  ;;  %v7478_v8 = vld [vmem:[%s15091_s4 + $0x1070] sm:$0xff] }
 0x572   : > { %4780 = vmatmul.mubr.f32.vlgmr.msra.gmra.mxu0 %v4578_v29  ;;  %4869 = vmatmul.mubr.f32.vlgmr.msra.gmra.mxu1 %v4578_v29  ;;  %v7475_v29 = vld [vmem:[%s15091_s4 + $0x1058] sm:$0xff] }
 0x573   : > { %4785 = vmatprep.mubr.f32.mxu0 %v4581_v63  ;;  %4874 = vmatprep.mubr.f32.mxu1 %v4581_v63  ;;  %v7474_v63 = vld [vmem:[%s15091_s4 + $0x1050] sm:$0xff] }
 0x574   : > { %5092 = vmatprep.subr.mxu0 %v7495_v43  ;;  %5181 = vmatprep.subr.mxu1 %v7559_v12  ;;  %v7532_v43 = vld [vmem:[%s15091_s4 + $0x1220] sm:$0xff]  ;;  %v7467_v12 = vld [vmem:[%s15091_s4 + $0x1018] sm:$0xff] }
 0x575   : > { %5093 = vmatpush1.msra.mxu0 %v7494_v4  ;;  %5182 = vmatpush1.msra.mxu1 %v7558_v46  ;;  %v7529_v4 = vld [vmem:[%s15091_s4 + $0x1208] sm:$0xff]  ;;  %v7464_v46 = vld [vmem:[%s15091_s4 + $0x1000] sm:$0xff] }
 0x576   : > { %4786 = vmatmul.mubr.f32.gmra.mxu0 %v4580_v18  ;;  %4875 = vmatmul.mubr.f32.gmra.mxu1 %v4580_v18  ;;  %v7535_v18 = vld [vmem:[%s15091_s4 + $0x1238] sm:$0xff] }
 0x577   : > { %4791 = vmatprep.mubr.f32.mxu0 %v4583_v61  ;;  %4880 = vmatprep.mubr.f32.mxu1 %v4583_v61  ;;  %v7534_v61 = vld [vmem:[%s15091_s4 + $0x1230] sm:$0xff] }
 0x578   : > { %5094 = vmatprep.subr.mxu0 %v7493_v62  ;;  %5183 = vmatprep.subr.mxu1 %v7557_v15  ;;  %v7528_v62 = vld [vmem:[%s15091_s4 + $0x1200] sm:$0xff]  ;;  %v7527_v15 = vld [vmem:[%s15091_s4 + $0x11f8] sm:$0xff] }
 0x579   : > { %5095 = vmatpush1.msra.mxu0 %v7492_v35  ;;  %5184 = vmatpush1.msra.mxu1 %v7556_v36  ;;  %v7526_v35 = vld [vmem:[%s15091_s4 + $0x11f0] sm:$0xff] }
 0x57a   : > { %4792 = vmatmul.mubr.f32.gmra.mxu0 %v4582_v40  ;;  %4881 = vmatmul.mubr.f32.gmra.mxu1 %v4582_v40  ;;  %v7466_v40 = vld [vmem:[%s15091_s4 + $0x1010] sm:$0xff] }
 0x57b   : > { %4797 = vmatprep.mubr.f32.mxu0 %v4585_v7  ;;  %4886 = vmatprep.mubr.f32.mxu1 %v4585_v7  ;;  %v7530_v7 = vld [vmem:[%s15091_s4 + $0x1210] sm:$0xff] }
 0x57c   : > { %5096 = vmatprep.subr.mxu0 %v7491_v39  ;;  %5185 = vmatprep.subr.mxu1 %v7555_v44  ;;  %v7590_v36 = vld [vmem:[%s15091_s4 + $0x13f0] sm:$0xff]  ;;  %v7525_v39 = vld [vmem:[%s15091_s4 + $0x11e8] sm:$0xff] }
 0x57d   : > { %5097 = vmatpush1.msra.mxu0 %v7490_v1  ;;  %5186 = vmatpush1.msra.mxu1 %v7554_v3  ;;  %v7589_v44 = vld [vmem:[%s15091_s4 + $0x13e8] sm:$0xff]  ;;  %v7524_v1 = vld [vmem:[%s15091_s4 + $0x11e0] sm:$0xff] }
 0x57e   : > { %4798 = vmatmul.mubr.f32.gmra.mxu0 %v4584_v6  ;;  %4887 = vmatmul.mubr.f32.gmra.mxu1 %v4584_v6  ;;  %v7591_v6 = vld [vmem:[%s15091_s4 + $0x13f8] sm:$0xff]  ;;  %v7588_v3 = vld [vmem:[%s15091_s4 + $0x13e0] sm:$0xff] }
 0x57f   : > { %5098 = vmatprep.subr.mxu0 %v7489_v59  ;;  %5187 = vmatprep.subr.mxu1 %v7553_v34  ;;  %v7523_v59 = vld [vmem:[%s15091_s4 + $0x11d8] sm:$0xff] }
 0x580   : > { %5099 = vmatpush1.msra.mxu0 %v7488_v54  ;;  %5188 = vmatpush1.msra.mxu1 %v7552_v19  ;;  %v7587_v34 = vld [vmem:[%s15091_s4 + $0x13d8] sm:$0xff]  ;;  %v7522_v54 = vld [vmem:[%s15091_s4 + $0x11d0] sm:$0xff] }
 0x581   : > { %5100 = vmatprep.subr.mxu0 %v7487_v27  ;;  %5189 = vmatprep.subr.mxu1 %v7551_v28  ;;  %v7586_v19 = vld [vmem:[%s15091_s4 + $0x13d0] sm:$0xff]  ;;  %v7521_v27 = vld [vmem:[%s15091_s4 + $0x11c8] sm:$0xff] }
 0x582   : > { %5101 = vmatpush1.msra.mxu0 %v7486_v52  ;;  %5190 = vmatpush1.msra.mxu1 %v7550_v47  ;;  %v7585_v28 = vld [vmem:[%s15091_s4 + $0x13c8] sm:$0xff]  ;;  %v7520_v52 = vld [vmem:[%s15091_s4 + $0x11c0] sm:$0xff] }
 0x583   : > { %5102 = vmatprep.subr.mxu0 %v7485_v37  ;;  %5191 = vmatprep.subr.mxu1 %v7549_v22  ;;  %v7584_v47 = vld [vmem:[%s15091_s4 + $0x13c0] sm:$0xff]  ;;  %v7519_v37 = vld [vmem:[%s15091_s4 + $0x11b8] sm:$0xff] }
 0x584   : > { %5103 = vmatpush1.msra.mxu0 %v7484_v14  ;;  %5192 = vmatpush1.msra.mxu1 %v7548_v23  ;;  %v7583_v22 = vld [vmem:[%s15091_s4 + $0x13b8] sm:$0xff]  ;;  %v7518_v14 = vld [vmem:[%s15091_s4 + $0x11b0] sm:$0xff] }
 0x585   : > { %5104 = vmatprep.subr.mxu0 %v7483_v42  ;;  %5193 = vmatprep.subr.mxu1 %v7547_v48  ;;  %v7582_v23 = vld [vmem:[%s15091_s4 + $0x13b0] sm:$0xff]  ;;  %v7517_v42 = vld [vmem:[%s15091_s4 + $0x11a8] sm:$0xff] }
 0x586   : > { %5105 = vmatpush1.msra.mxu0 %v7482_v10  ;;  %5194 = vmatpush1.msra.mxu1 %v7546_v32  ;;  %v7581_v48 = vld [vmem:[%s15091_s4 + $0x13a8] sm:$0xff]  ;;  %v7516_v10 = vld [vmem:[%s15091_s4 + $0x11a0] sm:$0xff] }
 0x587   : > { %5106 = vmatprep.subr.mxu0 %v7481_v49  ;;  %5195 = vmatprep.subr.mxu1 %v7545_v17  ;;  %v7580_v32 = vld [vmem:[%s15091_s4 + $0x13a0] sm:$0xff]  ;;  %v7515_v49 = vld [vmem:[%s15091_s4 + $0x1198] sm:$0xff] }
 0x588   : > { %5107 = vmatpush1.msra.mxu0 %v7480_v30  ;;  %5196 = vmatpush1.msra.mxu1 %v7544_v33  ;;  %v7579_v17 = vld [vmem:[%s15091_s4 + $0x1398] sm:$0xff]  ;;  %v7514_v30 = vld [vmem:[%s15091_s4 + $0x1190] sm:$0xff] }
 0x589   : > { %5108 = vmatprep.subr.mxu0 %v7479_v58  ;;  %5197 = vmatprep.subr.mxu1 %v7543_v60  ;;  %v7578_v33 = vld [vmem:[%s15091_s4 + $0x1390] sm:$0xff]  ;;  %v7513_v58 = vld [vmem:[%s15091_s4 + $0x1188] sm:$0xff] }
 0x58a   : > { %5109 = vmatpush1.msra.mxu0 %v7478_v8  ;;  %5198 = vmatpush1.msra.mxu1 %v7542_v56  ;;  %v7577_v60 = vld [vmem:[%s15091_s4 + $0x1388] sm:$0xff]  ;;  %v7512_v8 = vld [vmem:[%s15091_s4 + $0x1180] sm:$0xff] }
 0x58b   : > { %5110 = vmatprep.subr.mxu0 %v7477_v9  ;;  %5199 = vmatprep.subr.mxu1 %v7541_v21  ;;  %v7576_v56 = vld [vmem:[%s15091_s4 + $0x1380] sm:$0xff]  ;;  %v7511_v9 = vld [vmem:[%s15091_s4 + $0x1178] sm:$0xff] }
 0x58c   : > { %5111 = vmatpush1.msra.mxu0 %v7476_v11  ;;  %5200 = vmatpush1.msra.mxu1 %v7540_v31  ;;  %v7575_v21 = vld [vmem:[%s15091_s4 + $0x1378] sm:$0xff]  ;;  %v7510_v11 = vld [vmem:[%s15091_s4 + $0x1170] sm:$0xff] }
 0x58d   : > { %5112 = vmatprep.subr.mxu0 %v7475_v29  ;;  %5201 = vmatprep.subr.mxu1 %v7539_v5  ;;  %v7574_v31 = vld [vmem:[%s15091_s4 + $0x1370] sm:$0xff]  ;;  %v7509_v29 = vld [vmem:[%s15091_s4 + $0x1168] sm:$0xff] }
 0x58e   : > { %5113 = vmatpush1.msra.mxu0 %v7474_v63  ;;  %5202 = vmatpush1.msra.mxu1 %v7538_v2  ;;  %v7573_v5 = vld [vmem:[%s15091_s4 + $0x1368] sm:$0xff]  ;;  %v7508_v63 = vld [vmem:[%s15091_s4 + $0x1160] sm:$0xff] }
 0x58f   : > { %5114 = vmatprep.subr.mxu0 %v7473_v51  ;;  %5203 = vmatprep.subr.mxu1 %v7537_v25  ;;  %v7572_v2 = vld [vmem:[%s15091_s4 + $0x1360] sm:$0xff]  ;;  %v7507_v51 = vld [vmem:[%s15091_s4 + $0x1158] sm:$0xff] }
 0x590   : > { %5115 = vmatpush1.msra.mxu0 %v7472_v20  ;;  %5204 = vmatpush1.msra.mxu1 %v7536_v24  ;;  %v7571_v25 = vld [vmem:[%s15091_s4 + $0x1358] sm:$0xff]  ;;  %v7506_v20 = vld [vmem:[%s15091_s4 + $0x1150] sm:$0xff] }
 0x591   : > { %5116 = vmatprep.subr.mxu0 %v7471_v16  ;;  %5205 = vmatprep.subr.mxu1 %v7535_v18  ;;  %v7570_v24 = vld [vmem:[%s15091_s4 + $0x1350] sm:$0xff]  ;;  %v7505_v16 = vld [vmem:[%s15091_s4 + $0x1148] sm:$0xff] }
 0x592   : > { %5117 = vmatpush1.msra.mxu0 %v7470_v45  ;;  %5206 = vmatpush1.msra.mxu1 %v7534_v61  ;;  %v7569_v18 = vld [vmem:[%s15091_s4 + $0x1348] sm:$0xff]  ;;  %v7504_v45 = vld [vmem:[%s15091_s4 + $0x1140] sm:$0xff] }
 0x593   : > { %5118 = vmatprep.subr.mxu0 %v7469_v13  ;;  %5207 = vmatprep.subr.mxu1 %v7533_v0  ;;  %v7568_v61 = vld [vmem:[%s15091_s4 + $0x1340] sm:$0xff]  ;;  %v7503_v13 = vld [vmem:[%s15091_s4 + $0x1138] sm:$0xff] }
 0x594   : > { %5119 = vmatpush1.msra.mxu0 %v7468_v50  ;;  %5208 = vmatpush1.msra.mxu1 %v7532_v43  ;;  %v7567_v0 = vld [vmem:[%s15091_s4 + $0x1338] sm:$0xff]  ;;  %v7502_v50 = vld [vmem:[%s15091_s4 + $0x1130] sm:$0xff] }
 0x595   : > { %5120 = vmatprep.subr.mxu0 %v7467_v12  ;;  %5209 = vmatprep.subr.mxu1 %v7531_v53  ;;  %v7566_v43 = vld [vmem:[%s15091_s4 + $0x1330] sm:$0xff]  ;;  %v7501_v12 = vld [vmem:[%s15091_s4 + $0x1128] sm:$0xff] }
 0x596   : > { %5121 = vmatpush1.msra.mxu0 %v7466_v40  ;;  %5210 = vmatpush1.msra.mxu1 %v7530_v7  ;;  %v7565_v53 = vld [vmem:[%s15091_s4 + $0x1328] sm:$0xff]  ;;  %v7500_v40 = vld [vmem:[%s15091_s4 + $0x1120] sm:$0xff] }
 0x597   : > { %5122 = vmatprep.subr.mxu0 %v7465_v26  ;;  %5211 = vmatprep.subr.mxu1 %v7529_v4  ;;  %v7564_v7 = vld [vmem:[%s15091_s4 + $0x1320] sm:$0xff]  ;;  %v7499_v26 = vld [vmem:[%s15091_s4 + $0x1118] sm:$0xff] }
 0x598   : > { %5123 = vmatpush1.msra.mxu0 %v7464_v46  ;;  %5212 = vmatpush1.msra.mxu1 %v7528_v62  ;;  %v7563_v4 = vld [vmem:[%s15091_s4 + $0x1318] sm:$0xff]  ;;  %v7498_v46 = vld [vmem:[%s15091_s4 + $0x1110] sm:$0xff] }
 0x599   : > { %5124 = vmatprep.subr.mxu0 %v7527_v15  ;;  %5213 = vmatprep.subr.mxu1 %v7591_v6  ;;  %v7562_v62 = vld [vmem:[%s15091_s4 + $0x1310] sm:$0xff]  ;;  %v7497_v15 = vld [vmem:[%s15091_s4 + $0x1108] sm:$0xff] }
 0x59a   : > { %5125 = vmatpush2.msra.mxu0 %v7526_v35  ;;  %5214 = vmatpush2.msra.mxu1 %v7590_v36  ;;  %v7561_v6 = vld [vmem:[%s15091_s4 + $0x1308] sm:$0xff]  ;;  %v7496_v35 = vld [vmem:[%s15091_s4 + $0x1100] sm:$0xff] }
 0x59b   : > { %5126 = vmatprep.subr.mxu0 %v7525_v39  ;;  %5215 = vmatprep.subr.mxu1 %v7589_v44  ;;  %v7560_v36 = vld [vmem:[%s15091_s4 + $0x1300] sm:$0xff]  ;;  %v7623_v39 = vld [vmem:[%s15091_s4 + $0x14f8] sm:$0xff] }
 0x59c   : > { %5127 = vmatpush2.msra.mxu0 %v7524_v1  ;;  %5216 = vmatpush2.msra.mxu1 %v7588_v3  ;;  %v7687_v44 = vld [vmem:[%s15091_s4 + $0x16f8] sm:$0xff] }
 0x59d   : > { %5128 = vmatprep.subr.mxu0 %v7523_v59  ;;  %5217 = vmatprep.subr.mxu1 %v7587_v34 }
 0x59e   : > { %5129 = vmatpush2.msra.mxu0 %v7522_v54  ;;  %5218 = vmatpush2.msra.mxu1 %v7586_v19 }
 0x59f   : > { %5130 = vmatprep.subr.mxu0 %v7521_v27  ;;  %5219 = vmatprep.subr.mxu1 %v7585_v28 }
 0x5a0   : > { %5131 = vmatpush2.msra.mxu0 %v7520_v52  ;;  %5220 = vmatpush2.msra.mxu1 %v7584_v47 }
 0x5a1   : > { %5132 = vmatprep.subr.mxu0 %v7519_v37  ;;  %5221 = vmatprep.subr.mxu1 %v7583_v22 }
 0x5a2   : > { %5133 = vmatpush2.msra.mxu0 %v7518_v14  ;;  %5222 = vmatpush2.msra.mxu1 %v7582_v23 }
 0x5a3   : > { %5134 = vmatprep.subr.mxu0 %v7517_v42  ;;  %5223 = vmatprep.subr.mxu1 %v7581_v48  ;;  %v4240_v1 = vpop.f32.mrf.mxu0  ;;  %v4329_v3 = vpop.f32.mrf.mxu1 }
 0x5a4   : > { %5135 = vmatpush2.msra.mxu0 %v7516_v10  ;;  %5224 = vmatpush2.msra.mxu1 %v7580_v32 }
 0x5a5   : > { %5136 = vmatprep.subr.mxu0 %v7515_v49  ;;  %5225 = vmatprep.subr.mxu1 %v7579_v17  ;;  %v4242_v59 = vpop.f32.mrf.mxu0  ;;  %v4331_v34 = vpop.f32.mrf.mxu1 }
 0x5a6   : > { %5137 = vmatpush2.msra.mxu0 %v7514_v30  ;;  %5226 = vmatpush2.msra.mxu1 %v7578_v33 }
 0x5a7   : > { %5138 = vmatprep.subr.mxu0 %v7513_v58  ;;  %5227 = vmatprep.subr.mxu1 %v7577_v60 }
 0x5a8   : > { %5139 = vmatpush2.msra.mxu0 %v7512_v8  ;;  %5228 = vmatpush2.msra.mxu1 %v7576_v56 }
 0x5a9   : > { %5140 = vmatprep.subr.mxu0 %v7511_v9  ;;  %5229 = vmatprep.subr.mxu1 %v7575_v21  ;;  %v4246_v54 = vpop.f32.mrf.mxu0  ;;  %v4335_v19 = vpop.f32.mrf.mxu1 }
 0x5aa   : > { %5141 = vmatpush2.msra.mxu0 %v7510_v11  ;;  %5230 = vmatpush2.msra.mxu1 %v7574_v31 }
 0x5ab   : > { %5142 = vmatprep.subr.mxu0 %v7509_v29  ;;  %5231 = vmatprep.subr.mxu1 %v7573_v5  ;;  %v4248_v27 = vpop.f32.mrf.mxu0  ;;  %v4337_v28 = vpop.f32.mrf.mxu1  ;;  %v4909_v29 = vld [vmem:[%s15094_s7] sm:$0xf] }
 0x5ac   : > { %5143 = vmatpush2.msra.mxu0 %v7508_v63  ;;  %5232 = vmatpush2.msra.mxu1 %v7572_v2 }
 0x5ad   : > { %5144 = vmatprep.subr.mxu0 %v7507_v51  ;;  %5233 = vmatprep.subr.mxu1 %v7571_v25 }
 0x5ae   : > { %5145 = vmatpush2.msra.mxu0 %v7506_v20  ;;  %5234 = vmatpush2.msra.mxu1 %v7570_v24  ;;  %v13855_v20 = vrot.slane %v4909_v29, %v9362_v55 }
 0x5af   : > { %5146 = vmatprep.subr.mxu0 %v7505_v16  ;;  %5235 = vmatprep.subr.mxu1 %v7569_v18  ;;  %v13827_v52 = vpop.f32.mrf.mxu0  ;;  %v13829_v47 = vpop.f32.mrf.mxu1  ;;  %v13858_v16 = vrot.slane %v4909_v29, %v9553_v38  ;;  %v13861_v18 = vrot.slane %v4909_v29, %v9370_v57 }
 0x5b0   : > { %5147 = vmatpush2.msra.mxu0 %v7504_v45  ;;  %5236 = vmatpush2.msra.mxu1 %v7568_v61  ;;  %v13864_v45 = vrot.slane %v4909_v29, %v9559_v41  ;;  %v7685_v29 = vld [vmem:[%s15091_s4 + $0x16e8] sm:$0xff] }
 0x5b1   : > { %5148 = vmatprep.subr.mxu0 %v7503_v13  ;;  %5237 = vmatprep.subr.mxu1 %v7567_v0  ;;  %v13831_v37 = vpop.f32.mrf.mxu0  ;;  %v13833_v22 = vpop.f32.mrf.mxu1 }
 0x5b2   : > { %5149 = vmatpush2.msra.mxu0 %v7502_v50  ;;  %5238 = vmatpush2.msra.mxu1 %v7566_v43 }
 0x5b3   : > { %5150 = vmatprep.subr.mxu0 %v7501_v12  ;;  %5239 = vmatprep.subr.mxu1 %v7565_v53 }
 0x5b4   : > { %5151 = vmatpush2.msra.mxu0 %v7500_v40  ;;  %5240 = vmatpush2.msra.mxu1 %v7564_v7 }
 0x5b5   : > { %5152 = vmatprep.subr.mxu0 %v7499_v26  ;;  %5241 = vmatprep.subr.mxu1 %v7563_v4  ;;  %v13835_v14 = vpop.f32.mrf.mxu0  ;;  %v13837_v23 = vpop.f32.mrf.mxu1 }
 0x5b6   : > { %5153 = vmatpush2.msra.mxu0 %v7498_v46  ;;  %5242 = vmatpush2.msra.mxu1 %v7562_v62 }
 0x5b7   : > { %5154 = vmatprep.subr.mxu0 %v7497_v15  ;;  %5243 = vmatprep.subr.mxu1 %v7561_v6  ;;  %v13839_v42 = vpop.f32.mrf.mxu0  ;;  %v13841_v48 = vpop.f32.mrf.mxu1 }
 0x5b8   : > { %5155 = vmatpush2.msra.mxu0 %v7496_v35  ;;  %5244 = vmatpush2.msra.mxu1 %v7560_v36 }
 0x5b9   : > { %5399 = vmatprep.subr.mxu0 %v7623_v39  ;;  %5488 = vmatprep.subr.mxu1 %v7687_v44 }
 0x5ea   : > { %v4418_v10 = vpop.f32.mrf.mxu0  ;;  %v4507_v32 = vpop.f32.mrf.mxu1 }
 0x5eb   : > { %v4419_v2 = vadd.f32 %v4418_v10, %v4240_v1  ;;  %v4508_v51 = vadd.f32 %v4507_v32, %v4329_v3 }
 0x5ec   : > { %v4420_v49 = vpop.f32.mrf.mxu0  ;;  %v4509_v17 = vpop.f32.mrf.mxu1 }
 0x5ed   : > { %v4421_v61 = vadd.f32 %v4420_v49, %v4242_v59  ;;  %v4510_v13 = vadd.f32 %v4509_v17, %v4331_v34  ;;  %v7686_v17 = vld [vmem:[%s15091_s4 + $0x16f0] sm:$0xff] }
 0x5f0   : > { %v4424_v30 = vpop.f32.mrf.mxu0  ;;  %v4513_v33 = vpop.f32.mrf.mxu1 }
 0x5f1   : > { %v4425_v55 = vadd.f32 %v4424_v30, %v4246_v54  ;;  %v4514_v7 = vadd.f32 %v4513_v33, %v4335_v19  ;;  %v7621_v30 = vld [vmem:[%s15091_s4 + $0x14e8] sm:$0xff] }
 0x5f2   : > { %v4426_v58 = vpop.f32.mrf.mxu0  ;;  %v4515_v60 = vpop.f32.mrf.mxu1 }
 0x5f3   : > { %v4427_v26 = vadd.f32 %v4426_v58, %v4248_v27  ;;  %v4516_v46 = vadd.f32 %v4515_v60, %v4337_v28  ;;  %v7622_v27 = vld [vmem:[%s15091_s4 + $0x14f0] sm:$0xff] }
 0x5f6   : > { %v4430_v8 = vpop.f32.mrf.mxu0  ;;  %v4519_v56 = vpop.f32.mrf.mxu1 }
 0x5f7   : > { %v4431_v28 = vadd.f32 %v4430_v8, %v13827_v52 }
 0x5f8   : > { %v4432_v9 = vpop.f32.mrf.mxu0  ;;  %v4521_v21 = vpop.f32.mrf.mxu1 }
 0x5f9   : > { %v4433_v52 = vadd.f32 %v4432_v9, %v13831_v37  ;;  %v4522_v33 = vadd.f32 %v4521_v21, %v13833_v22  ;;  %v7620_v37 = vld [vmem:[%s15091_s4 + $0x14e0] sm:$0xff]  ;;  %v4520_v22 = vadd.f32 %v4519_v56, %v13829_v47 }
 0x5fc   : > { %v13843_v11 = vpop.f32.mrf.mxu0  ;;  %v13845_v31 = vpop.f32.mrf.mxu1 }
 0x5fe   : > { %v13850_v5 = vpop.f32.mrf.mxu0  ;;  %v13852_v63 = vpop.f32.mrf.mxu1 }
 0x632   : > { %v4781_v25 = vpop.f32.mrf.mxu0  ;;  %v4870_v24 = vpop.f32.mrf.mxu1 }
 0x633   : > { %v4893_v0 = vadd.f32 %v4781_v25, %v4419_v2  ;;  %v4895_v50 = vadd.f32 %v4870_v24, %v4508_v51  ;;  %v7684_v51 = vld [vmem:[%s15091_s4 + $0x16e0] sm:$0xff] }
 0x634   : > { %v4783_v43 = vpop.f32.mrf.mxu0  ;;  %v4872_v12 = vpop.f32.mrf.mxu1 }
 0x635   : > { %v4894_v53 = vadd.f32 %v4783_v43, %v4421_v61  ;;  %v4896_v40 = vadd.f32 %v4872_v12, %v4510_v13  ;;  %v13867_v38 = vadd.f32 %v13855_v20, %v4893_v0  ;;  %v13870_v41 = vadd.f32 %v13858_v16, %v4895_v50  ;;  %v7619_v13 = vld [vmem:[%s15091_s4 + $0x14d8] sm:$0xff] }
 0x636   : > { %v4787_v4 = vpop.f32.mrf.mxu0  ;;  %v4876_v57 = vpop.f32.mrf.mxu1  ;;  %v4439_v0 = vadd.f32 %v13850_v5, %v13839_v42  ;;  %v7683_v43 = vld [vmem:[%s15091_s4 + $0x16d8] sm:$0xff]  ;;  %v4528_v12 = vadd.f32 %v13852_v63, %v13841_v48 }
 0x637   : > { %v13873_v62 = vadd.f32 %v13861_v18, %v4894_v53  ;;  %v13876_v15 = vadd.f32 %v13864_v45, %v4896_v40  ;;  %v4897_v6 = vadd.f32 %v4787_v4, %v4425_v55  ;;  %v4899_v35 = vadd.f32 %v4876_v57, %v4514_v7  ;;  %v7618_v7 = vld [vmem:[%s15091_s4 + $0x14d0] sm:$0xff]  ;;  %v7617_v4 = vld [vmem:[%s15091_s4 + $0x14c8] sm:$0xff] }
 0x638   : > { %v4789_v36 = vpop.f32.mrf.mxu0  ;;  %v4878_v39 = vpop.f32.mrf.mxu1  ;;  %v4947_v34 = vmax.f32 %v13867_v38, 0.0  ;;  %v4949_v10 = vmax.f32 %v13870_v41, 0.0  ;;  %v4437_v57 = vadd.f32 %v13843_v11, %v13835_v14  ;;  %v4526_v14 = vadd.f32 %v13845_v31, %v13837_v23  ;;  %v7615_v23 = vld [vmem:[%s15091_s4 + $0x14b8] sm:$0xff] }
 0x639   : > { %v4948_v44 = vmax.f32 %v13873_v62, 0.0  ;;  %v4950_v1 = vmax.f32 %v13876_v15, 0.0  ;;  %v4898_v3 = vadd.f32 %v4789_v36, %v4427_v26  ;;  %v4900_v59 = vadd.f32 %v4878_v39, %v4516_v46  ;;  %v7682_v26 = vld [vmem:[%s15091_s4 + $0x16d0] sm:$0xff]  ;;  %v7681_v36 = vld [vmem:[%s15091_s4 + $0x16c8] sm:$0xff]  ;;  %v7616_v39 = vld [vmem:[%s15091_s4 + $0x14c0] sm:$0xff] }
 0x63a   : > { %v4793_v54 = vpop.f32.mrf.mxu0  ;;  %v4882_v19 = vpop.f32.mrf.mxu1  ;;  %v13903_v58 = vadd.f32 %v13855_v20, %v4897_v6  ;;  %v13917_v9 = vadd.f32 %v13858_v16, %v4899_v35  ;;  %v7605_v62 = vld [vmem:[%s15091_s4 + $0x1468] sm:$0xff]  ;;  %v7604_v15 = vld [vmem:[%s15091_s4 + $0x1460] sm:$0xff]  ;;  %v14387_v38 = vld [vmem:[%s15095_s8 + $0xf8] sm:$0xff] }
 0x63b   : > { %v13887_v32 = vadd.f32 %v13861_v18, %v4898_v3  ;;  %v13890_v49 = vadd.f32 %v13864_v45, %v4900_v59  ;;  %5156 = vmatprep.mubr.f32.mxu0 %v4948_v44  ;;  %5245 = vmatprep.mubr.f32.mxu1 %v4950_v1  ;;  %v4901_v25 = vadd.f32 %v4793_v54, %v4431_v28  ;;  %v7680_v59 = vld [vmem:[%s15091_s4 + $0x16c0] sm:$0xff]  ;;  %v7679_v28 = vld [vmem:[%s15091_s4 + $0x16b8] sm:$0xff] }
 0x63c   : > { %v4795_v60 = vpop.f32.mrf.mxu0  ;;  %v4884_v8 = vpop.f32.mrf.mxu1  ;;  %5157 = vmatmul.mubr.f32.vlgmr.msra.gmra.mxu0 %v4947_v34  ;;  %5246 = vmatmul.mubr.f32.vlgmr.msra.gmra.mxu1 %v4949_v10  ;;  %v4903_v50 = vadd.f32 %v4882_v19, %v4520_v22  ;;  %v4951_v53 = vmax.f32 %v13903_v58, 0.0  ;;  %v4953_v48 = vmax.f32 %v13917_v9, 0.0  ;;  %v7676_v22 = vld [vmem:[%s15091_s4 + $0x16a0] sm:$0xff]  ;;  %v14392_v41 = vld [vmem:[%s15095_s8 + $0x78] sm:$0xff] }
 0x63d   : > { %v4952_v21 = vmax.f32 %v13887_v32, 0.0  ;;  %v4954_v2 = vmax.f32 %v13890_v49, 0.0  ;;  %5400 = vmatpush1.msra.mxu0 %v7622_v27  ;;  %v4902_v24 = vadd.f32 %v4795_v60, %v4433_v52  ;;  %v4904_v61 = vadd.f32 %v4884_v8, %v4522_v33  ;;  %5489 = vmatpush1.msra.mxu1 %v7686_v17  ;;  %v7613_v52 = vld [vmem:[%s15091_s4 + $0x14a8] sm:$0xff]  ;;  %v14424_v58 = vld [vmem:[%s15095_s8 + $0xe0] sm:$0xff] }
 0x63e   : > { %5401 = vmatprep.subr.mxu0 %v7621_v30  ;;  %v4799_v47 = vpop.f32.mrf.mxu0  ;;  %v4888_v56 = vpop.f32.mrf.mxu1  ;;  %5490 = vmatprep.subr.mxu1 %v7685_v29  ;;  %v13960_v46 = vadd.f32 %v13855_v20, %v4901_v25  ;;  %v13974_v11 = vadd.f32 %v13858_v16, %v4903_v50  ;;  %v7677_v8 = vld [vmem:[%s15091_s4 + $0x16a8] sm:$0xff]  ;;  %v7612_v29 = vld [vmem:[%s15091_s4 + $0x14a0] sm:$0xff] }
 0x63f   : > { %5402 = vmatpush1.msra.mxu0 %v7620_v37  ;;  %v13938_v40 = vadd.f32 %v13861_v18, %v4902_v24  ;;  %v13941_v55 = vadd.f32 %v13864_v45, %v4904_v61  ;;  %5491 = vmatpush1.msra.mxu1 %v7684_v51  ;;  %v4905_v54 = vadd.f32 %v4799_v47, %v4437_v57  ;;  %v7611_v51 = vld [vmem:[%s15091_s4 + $0x1498] sm:$0xff]  ;;  %v7610_v24 = vld [vmem:[%s15091_s4 + $0x1490] sm:$0xff]  ;;  %v7672_v50 = vld [vmem:[%s15091_s4 + $0x1680] sm:$0xff] }
 0x640   : > { %5162 = vmatprep.mubr.f32.mxu0 %v4952_v21  ;;  %v4801_v42 = vpop.f32.mrf.mxu0  ;;  %v4890_v5 = vpop.f32.mrf.mxu1  ;;  %5251 = vmatprep.mubr.f32.mxu1 %v4954_v2  ;;  %v4907_v31 = vadd.f32 %v4888_v56, %v4526_v14  ;;  %v4955_v17 = vmax.f32 %v13960_v46, 0.0  ;;  %v4957_v30 = vmax.f32 %v13974_v11, 0.0  ;;  %v7674_v47 = vld [vmem:[%s15091_s4 + $0x1690] sm:$0xff]  ;;  %v7609_v56 = vld [vmem:[%s15091_s4 + $0x1488] sm:$0xff]  ;;  %v7599_v14 = vld [vmem:[%s15091_s4 + $0x1438] sm:$0xff] }
 0x641   : > { %5403 = vmatprep.subr.mxu0 %v7619_v13  ;;  %v4906_v63 = vadd.f32 %v4801_v42, %v4439_v0  ;;  %v4956_v6 = vmax.f32 %v13938_v40, 0.0  ;;  %5492 = vmatprep.subr.mxu1 %v7683_v43  ;;  %v4908_v35 = vadd.f32 %v4890_v5, %v4528_v12  ;;  %v4958_v3 = vmax.f32 %v13941_v55, 0.0  ;;  %v7673_v13 = vld [vmem:[%s15091_s4 + $0x1688] sm:$0xff]  ;;  %v7608_v0 = vld [vmem:[%s15091_s4 + $0x1480] sm:$0xff]  ;;  %v7607_v43 = vld [vmem:[%s15091_s4 + $0x1478] sm:$0xff] }
 0x642   : > { %5163 = vmatmul.mubr.f32.gmra.mxu0 %v4951_v53  ;;  %5252 = vmatmul.mubr.f32.gmra.mxu1 %v4953_v48  ;;  %v14010_v33 = vadd.f32 %v13855_v20, %v4905_v54  ;;  %v14022_v37 = vadd.f32 %v13858_v16, %v4907_v31  ;;  %v7675_v16 = vld [vmem:[%s15091_s4 + $0x1698] sm:$0xff]  ;;  %v7606_v42 = vld [vmem:[%s15091_s4 + $0x1470] sm:$0xff]  ;;  %v7601_v57 = vld [vmem:[%s15091_s4 + $0x1448] sm:$0xff] }
 0x643   : > { %5404 = vmatpush1.msra.mxu0 %v7618_v7  ;;  %v13983_v19 = vadd.f32 %v13861_v18, %v4906_v63  ;;  %5493 = vmatpush1.msra.mxu1 %v7682_v26  ;;  %v13989_v27 = vadd.f32 %v13864_v45, %v4908_v35  ;;  %v7614_v18 = vld [vmem:[%s15091_s4 + $0x14b0] sm:$0xff]  ;;  %v7671_v12 = vld [vmem:[%s15091_s4 + $0x1678] sm:$0xff]  ;;  %v7665_v35 = vld [vmem:[%s15091_s4 + $0x1648] sm:$0xff] }
 0x644   : > { %5405 = vmatprep.subr.mxu0 %v7617_v4  ;;  %5494 = vmatprep.subr.mxu1 %v7681_v36  ;;  %v7678_v45 = vld [vmem:[%s15091_s4 + $0x16b0] sm:$0xff]  ;;  %v4959_v25 = vmax.f32 %v14010_v33, 0.0  ;;  %v4961_v61 = vmax.f32 %v14022_v37, 0.0  ;;  %v7603_v7 = vld [vmem:[%s15091_s4 + $0x1458] sm:$0xff]  ;;  %v7600_v36 = vld [vmem:[%s15091_s4 + $0x1440] sm:$0xff] }
 0x645   : > { %5406 = vmatpush1.msra.mxu0 %v7616_v39  ;;  %5495 = vmatpush1.msra.mxu1 %v7680_v59  ;;  %v4960_v60 = vmax.f32 %v13983_v19, 0.0  ;;  %v4962_v20 = vmax.f32 %v13989_v27, 0.0  ;;  %v7670_v5 = vld [vmem:[%s15091_s4 + $0x1670] sm:$0xff]  ;;  %v7667_v63 = vld [vmem:[%s15091_s4 + $0x1658] sm:$0xff]  ;;  %v7664_v39 = vld [vmem:[%s15091_s4 + $0x1640] sm:$0xff] }
 0x646   : > { %5168 = vmatprep.mubr.f32.mxu0 %v4956_v6  ;;  %5257 = vmatprep.mubr.f32.mxu1 %v4958_v3  ;;  %v7602_v26 = vld [vmem:[%s15091_s4 + $0x1450] sm:$0xff]  ;;  %v7663_v59 = vld [vmem:[%s15091_s4 + $0x1638] sm:$0xff]  ;;  %v7597_v31 = vld [vmem:[%s15091_s4 + $0x1428] sm:$0xff] }
 0x647   : > { %5407 = vmatprep.subr.mxu0 %v7615_v23  ;;  %5496 = vmatprep.subr.mxu1 %v7679_v28  ;;  %v7666_v4 = vld [vmem:[%s15091_s4 + $0x1650] sm:$0xff]  ;;  %v7661_v28 = vld [vmem:[%s15091_s4 + $0x1628] sm:$0xff]  ;;  %v14431_v9 = vld [vmem:[%s15095_s8 + $0x60] sm:$0xff] }
 0x648   : > { %5169 = vmatmul.mubr.f32.gmra.mxu0 %v4955_v17  ;;  %5258 = vmatmul.mubr.f32.gmra.mxu1 %v4957_v30  ;;  %v7598_v54 = vld [vmem:[%s15091_s4 + $0x1430] sm:$0xff]  ;;  %v14410_v32 = vld [vmem:[%s15095_s8 + $0xe8] sm:$0xff]  ;;  %v14480_v46 = vld [vmem:[%s15095_s8 + $0xc0] sm:$0xff] }
 0x649   : > { %5408 = vmatpush1.msra.mxu0 %v7614_v18  ;;  %5497 = vmatpush1.msra.mxu1 %v7678_v45  ;;  %v7662_v23 = vld [vmem:[%s15091_s4 + $0x1630] sm:$0xff]  ;;  %v7596_v18 = vld [vmem:[%s15091_s4 + $0x1420] sm:$0xff]  ;;  %v14417_v49 = vld [vmem:[%s15095_s8 + $0x68] sm:$0xff] }
 0x64a   : > { %5409 = vmatprep.subr.mxu0 %v7613_v52  ;;  %5498 = vmatprep.subr.mxu1 %v7677_v8  ;;  %v7660_v45 = vld [vmem:[%s15091_s4 + $0x1620] sm:$0xff]  ;;  %v7595_v52 = vld [vmem:[%s15091_s4 + $0x1418] sm:$0xff]  ;;  %v14459_v40 = vld [vmem:[%s15095_s8 + $0x50] sm:$0xff] }
 0x64b   : > { %5410 = vmatpush1.msra.mxu0 %v7612_v29  ;;  %5499 = vmatpush1.msra.mxu1 %v7676_v22  ;;  %v7659_v8 = vld [vmem:[%s15091_s4 + $0x1618] sm:$0xff]  ;;  %v7594_v29 = vld [vmem:[%s15091_s4 + $0x1410] sm:$0xff]  ;;  %v14466_v55 = vld [vmem:[%s15095_s8 + $0xc8] sm:$0xff] }
 0x64c   : > { %5174 = vmatprep.mubr.f32.mxu0 %v4960_v60  ;;  %5263 = vmatprep.mubr.f32.mxu1 %v4962_v20  ;;  %v7658_v22 = vld [vmem:[%s15091_s4 + $0x1610] sm:$0xff]  ;;  %v14494_v11 = vld [vmem:[%s15095_s8 + $0xb8] sm:$0xff]  ;;  %v14540_v33 = vld [vmem:[%s15095_s8 + $0xa0] sm:$0xff] }
 0x64d   : > { %5411 = vmatprep.subr.mxu0 %v7611_v51  ;;  %5500 = vmatprep.subr.mxu1 %v7675_v16  ;;  %v7593_v51 = vld [vmem:[%s15091_s4 + $0x1408] sm:$0xff]  ;;  %v14508_v19 = vld [vmem:[%s15095_s8 + $0xb0] sm:$0xff]  ;;  %v14554_v37 = vld [vmem:[%s15095_s8 + $0x98] sm:$0xff] }
 0x64e   : > { %5175 = vmatmul.mubr.f32.gmra.mxu0 %v4959_v25  ;;  %5264 = vmatmul.mubr.f32.gmra.mxu1 %v4961_v61  ;;  %v7657_v16 = vld [vmem:[%s15091_s4 + $0x1608] sm:$0xff]  ;;  %v14515_v27 = vld [vmem:[%s15095_s8 + $0x30] sm:$0xff] }
 0x64f   : > { %5412 = vmatpush1.msra.mxu0 %v7610_v24  ;;  %5501 = vmatpush1.msra.mxu1 %v7674_v47  ;;  %v7592_v24 = vld [vmem:[%s15091_s4 + $0x1400] sm:$0xff] }
 0x650   : > { %5413 = vmatprep.subr.mxu0 %v7609_v56  ;;  %5463 = vmatprep.mubr.f32.mxu0 %v4948_v44  ;;  %v7669_v44 = vld [vmem:[%s15091_s4 + $0x1668] sm:$0xff]  ;;  %v7656_v47 = vld [vmem:[%s15091_s4 + $0x1600] sm:$0xff]  ;;  %v7655_v56 = vld [vmem:[%s15091_s4 + $0x15f8] sm:$0xff] }
 0x651   : > { %5502 = vmatprep.subr.mxu1 %v7673_v13  ;;  %5552 = vmatprep.mubr.f32.mxu1 %v4950_v1  ;;  %v7668_v1 = vld [vmem:[%s15091_s4 + $0x1660] sm:$0xff]  ;;  %v7719_v13 = vld [vmem:[%s15091_s4 + $0x17f8] sm:$0xff] }
 0x652   : > { %5414 = vmatpush1.msra.mxu0 %v7608_v0  ;;  %5503 = vmatpush1.msra.mxu1 %v7672_v50  ;;  %v7654_v0 = vld [vmem:[%s15091_s4 + $0x15f0] sm:$0xff] }
 0x653   : > { %5415 = vmatprep.subr.mxu0 %v7607_v43  ;;  %5504 = vmatprep.subr.mxu1 %v7671_v12  ;;  %v7718_v50 = vld [vmem:[%s15091_s4 + $0x17f0] sm:$0xff]  ;;  %v7653_v43 = vld [vmem:[%s15091_s4 + $0x15e8] sm:$0xff] }
 0x654   : > { %5416 = vmatpush1.msra.mxu0 %v7606_v42  ;;  %5505 = vmatpush1.msra.mxu1 %v7670_v5  ;;  %v7717_v12 = vld [vmem:[%s15091_s4 + $0x17e8] sm:$0xff]  ;;  %v7652_v42 = vld [vmem:[%s15091_s4 + $0x15e0] sm:$0xff] }
 0x655   : > { %5417 = vmatprep.subr.mxu0 %v7605_v62  ;;  %5506 = vmatprep.subr.mxu1 %v7669_v44  ;;  %v7716_v5 = vld [vmem:[%s15091_s4 + $0x17e0] sm:$0xff]  ;;  %v7651_v62 = vld [vmem:[%s15091_s4 + $0x15d8] sm:$0xff] }
 0x656   : > { %5418 = vmatpush1.msra.mxu0 %v7604_v15  ;;  %5507 = vmatpush1.msra.mxu1 %v7668_v1  ;;  %v7715_v44 = vld [vmem:[%s15091_s4 + $0x17d8] sm:$0xff]  ;;  %v7650_v15 = vld [vmem:[%s15091_s4 + $0x15d0] sm:$0xff] }
 0x657   : > { %5419 = vmatprep.subr.mxu0 %v7603_v7  ;;  %5508 = vmatprep.subr.mxu1 %v7667_v63  ;;  %v7714_v1 = vld [vmem:[%s15091_s4 + $0x17d0] sm:$0xff]  ;;  %v7649_v7 = vld [vmem:[%s15091_s4 + $0x15c8] sm:$0xff] }
 0x658   : > { %5420 = vmatpush1.msra.mxu0 %v7602_v26  ;;  %5509 = vmatpush1.msra.mxu1 %v7666_v4  ;;  %v7713_v63 = vld [vmem:[%s15091_s4 + $0x17c8] sm:$0xff]  ;;  %v7648_v26 = vld [vmem:[%s15091_s4 + $0x15c0] sm:$0xff] }
 0x659   : > { %5421 = vmatprep.subr.mxu0 %v7601_v57  ;;  %5510 = vmatprep.subr.mxu1 %v7665_v35  ;;  %v7712_v4 = vld [vmem:[%s15091_s4 + $0x17c0] sm:$0xff]  ;;  %v7647_v57 = vld [vmem:[%s15091_s4 + $0x15b8] sm:$0xff] }
 0x65a   : > { %5422 = vmatpush1.msra.mxu0 %v7600_v36  ;;  %5511 = vmatpush1.msra.mxu1 %v7664_v39  ;;  %v7711_v35 = vld [vmem:[%s15091_s4 + $0x17b8] sm:$0xff]  ;;  %v7646_v36 = vld [vmem:[%s15091_s4 + $0x15b0] sm:$0xff] }
 0x65b   : > { %5423 = vmatprep.subr.mxu0 %v7599_v14  ;;  %5512 = vmatprep.subr.mxu1 %v7663_v59  ;;  %v7710_v39 = vld [vmem:[%s15091_s4 + $0x17b0] sm:$0xff]  ;;  %v7645_v14 = vld [vmem:[%s15091_s4 + $0x15a8] sm:$0xff] }
 0x65c   : > { %5424 = vmatpush1.msra.mxu0 %v7598_v54  ;;  %5513 = vmatpush1.msra.mxu1 %v7662_v23  ;;  %v7709_v59 = vld [vmem:[%s15091_s4 + $0x17a8] sm:$0xff]  ;;  %v7644_v54 = vld [vmem:[%s15091_s4 + $0x15a0] sm:$0xff] }
 0x65d   : > { %5425 = vmatprep.subr.mxu0 %v7597_v31  ;;  %5514 = vmatprep.subr.mxu1 %v7661_v28  ;;  %v7708_v23 = vld [vmem:[%s15091_s4 + $0x17a0] sm:$0xff]  ;;  %v7643_v31 = vld [vmem:[%s15091_s4 + $0x1598] sm:$0xff] }
 0x65e   : > { %5426 = vmatpush1.msra.mxu0 %v7596_v18  ;;  %5515 = vmatpush1.msra.mxu1 %v7660_v45  ;;  %v7707_v28 = vld [vmem:[%s15091_s4 + $0x1798] sm:$0xff]  ;;  %v7642_v18 = vld [vmem:[%s15091_s4 + $0x1590] sm:$0xff] }
 0x65f   : > { %5427 = vmatprep.subr.mxu0 %v7595_v52  ;;  %5516 = vmatprep.subr.mxu1 %v7659_v8  ;;  %v7706_v45 = vld [vmem:[%s15091_s4 + $0x1790] sm:$0xff]  ;;  %v7641_v52 = vld [vmem:[%s15091_s4 + $0x1588] sm:$0xff] }
 0x660   : > { %5428 = vmatpush1.msra.mxu0 %v7594_v29  ;;  %5517 = vmatpush1.msra.mxu1 %v7658_v22  ;;  %v7705_v8 = vld [vmem:[%s15091_s4 + $0x1788] sm:$0xff]  ;;  %v7640_v29 = vld [vmem:[%s15091_s4 + $0x1580] sm:$0xff] }
 0x661   : > { %5429 = vmatprep.subr.mxu0 %v7593_v51  ;;  %5518 = vmatprep.subr.mxu1 %v7657_v16  ;;  %v7704_v22 = vld [vmem:[%s15091_s4 + $0x1780] sm:$0xff]  ;;  %v7639_v51 = vld [vmem:[%s15091_s4 + $0x1578] sm:$0xff] }
 0x662   : > { %5430 = vmatpush1.msra.mxu0 %v7592_v24  ;;  %5519 = vmatpush1.msra.mxu1 %v7656_v47  ;;  %v7703_v16 = vld [vmem:[%s15091_s4 + $0x1778] sm:$0xff]  ;;  %v7638_v24 = vld [vmem:[%s15091_s4 + $0x1570] sm:$0xff] }
 0x663   : > { %5431 = vmatprep.subr.mxu0 %v7655_v56  ;;  %5520 = vmatprep.subr.mxu1 %v7719_v13  ;;  %v7702_v47 = vld [vmem:[%s15091_s4 + $0x1770] sm:$0xff]  ;;  %v7637_v56 = vld [vmem:[%s15091_s4 + $0x1568] sm:$0xff] }
 0x664   : > { %5432 = vmatpush2.msra.mxu0 %v7654_v0  ;;  %5521 = vmatpush2.msra.mxu1 %v7718_v50  ;;  %v7701_v13 = vld [vmem:[%s15091_s4 + $0x1768] sm:$0xff]  ;;  %v7636_v0 = vld [vmem:[%s15091_s4 + $0x1560] sm:$0xff] }
 0x665   : > { %5433 = vmatprep.subr.mxu0 %v7653_v43  ;;  %5522 = vmatprep.subr.mxu1 %v7717_v12  ;;  %v7700_v50 = vld [vmem:[%s15091_s4 + $0x1760] sm:$0xff]  ;;  %v7635_v43 = vld [vmem:[%s15091_s4 + $0x1558] sm:$0xff] }
 0x666   : > { %5434 = vmatpush2.msra.mxu0 %v7652_v42  ;;  %5523 = vmatpush2.msra.mxu1 %v7716_v5  ;;  %v7699_v12 = vld [vmem:[%s15091_s4 + $0x1758] sm:$0xff]  ;;  %v7634_v42 = vld [vmem:[%s15091_s4 + $0x1550] sm:$0xff] }
 0x667   : > { %5435 = vmatprep.subr.mxu0 %v7651_v62  ;;  %5524 = vmatprep.subr.mxu1 %v7715_v44  ;;  %v7698_v5 = vld [vmem:[%s15091_s4 + $0x1750] sm:$0xff]  ;;  %v7633_v62 = vld [vmem:[%s15091_s4 + $0x1548] sm:$0xff] }
 0x668   : > { %5436 = vmatpush2.msra.mxu0 %v7650_v15  ;;  %5525 = vmatpush2.msra.mxu1 %v7714_v1  ;;  %v7697_v44 = vld [vmem:[%s15091_s4 + $0x1748] sm:$0xff]  ;;  %v7632_v15 = vld [vmem:[%s15091_s4 + $0x1540] sm:$0xff] }
 0x669   : > { %5437 = vmatprep.subr.mxu0 %v7649_v7  ;;  %5526 = vmatprep.subr.mxu1 %v7713_v63  ;;  %v7696_v1 = vld [vmem:[%s15091_s4 + $0x1740] sm:$0xff]  ;;  %v7631_v7 = vld [vmem:[%s15091_s4 + $0x1538] sm:$0xff] }
 0x66a   : > { %5438 = vmatpush2.msra.mxu0 %v7648_v26  ;;  %5527 = vmatpush2.msra.mxu1 %v7712_v4  ;;  %v7695_v63 = vld [vmem:[%s15091_s4 + $0x1738] sm:$0xff]  ;;  %v7630_v26 = vld [vmem:[%s15091_s4 + $0x1530] sm:$0xff] }
 0x66b   : > { %5439 = vmatprep.subr.mxu0 %v7647_v57  ;;  %5528 = vmatprep.subr.mxu1 %v7711_v35  ;;  %v7694_v4 = vld [vmem:[%s15091_s4 + $0x1730] sm:$0xff]  ;;  %v7629_v57 = vld [vmem:[%s15091_s4 + $0x1528] sm:$0xff] }
 0x66c   : > { %5440 = vmatpush2.msra.mxu0 %v7646_v36  ;;  %5529 = vmatpush2.msra.mxu1 %v7710_v39  ;;  %v7693_v35 = vld [vmem:[%s15091_s4 + $0x1728] sm:$0xff]  ;;  %v7628_v36 = vld [vmem:[%s15091_s4 + $0x1520] sm:$0xff] }
 0x66d   : > { %5441 = vmatprep.subr.mxu0 %v7645_v14  ;;  %5530 = vmatprep.subr.mxu1 %v7709_v59  ;;  %v7692_v39 = vld [vmem:[%s15091_s4 + $0x1720] sm:$0xff]  ;;  %v7627_v14 = vld [vmem:[%s15091_s4 + $0x1518] sm:$0xff] }
 0x66e   : > { %5442 = vmatpush2.msra.mxu0 %v7644_v54  ;;  %5531 = vmatpush2.msra.mxu1 %v7708_v23  ;;  %v7691_v59 = vld [vmem:[%s15091_s4 + $0x1718] sm:$0xff]  ;;  %v7626_v54 = vld [vmem:[%s15091_s4 + $0x1510] sm:$0xff] }
 0x66f   : > { %5443 = vmatprep.subr.mxu0 %v7643_v31  ;;  %5532 = vmatprep.subr.mxu1 %v7707_v28  ;;  %v7690_v23 = vld [vmem:[%s15091_s4 + $0x1710] sm:$0xff]  ;;  %v7625_v31 = vld [vmem:[%s15091_s4 + $0x1508] sm:$0xff] }
 0x670   : > { %5444 = vmatpush2.msra.mxu0 %v7642_v18  ;;  %5533 = vmatpush2.msra.mxu1 %v7706_v45  ;;  %v7689_v28 = vld [vmem:[%s15091_s4 + $0x1708] sm:$0xff]  ;;  %v7624_v18 = vld [vmem:[%s15091_s4 + $0x1500] sm:$0xff] }
 0x671   : > { %5445 = vmatprep.subr.mxu0 %v7641_v52  ;;  %5534 = vmatprep.subr.mxu1 %v7705_v8  ;;  %v7688_v45 = vld [vmem:[%s15091_s4 + $0x1700] sm:$0xff]  ;;  %v14582_v52 = vld [vmem:[%s15095_s8 + $0x88] sm:$0xff] }
 0x672   : > { %5446 = vmatpush2.msra.mxu0 %v7640_v29  ;;  %5535 = vmatpush2.msra.mxu1 %v7704_v22  ;;  %v14589_v8 = vld [vmem:[%s15095_s8 + $0x8] sm:$0xff]  ;;  %v14596_v29 = vld [vmem:[%s15095_s8 + $0x80] sm:$0xff] }
 0x673   : > { %5447 = vmatprep.subr.mxu0 %v7639_v51  ;;  %5536 = vmatprep.subr.mxu1 %v7703_v16  ;;  %15120 = vst [vmem:[#allocation12_spill] sm:$0xff] %v14589_v8  ;;  %15121 = vst [vmem:[#allocation13_spill] sm:$0xff] %v14596_v29  ;;  %v14603_v22 = vld [vmem:[%s15095_s8] sm:$0xff]  ;;  %v14608_v51 = vld [vmem:[#allocation3 + $0x38] sm:$0xff] }
 0x674   : > { %5448 = vmatpush2.msra.mxu0 %v7638_v24  ;;  %5537 = vmatpush2.msra.mxu1 %v7702_v47  ;;  %15122 = vst [vmem:[#allocation14_spill] sm:$0xff] %v14603_v22 }
 0x675   : > { %5449 = vmatprep.subr.mxu0 %v7637_v56  ;;  %5538 = vmatprep.subr.mxu1 %v7701_v13 }
 0x676   : > { %5450 = vmatpush2.msra.mxu0 %v7636_v0  ;;  %5539 = vmatpush2.msra.mxu1 %v7700_v50 }
 0x677   : > { %5451 = vmatprep.subr.mxu0 %v7635_v43  ;;  %5540 = vmatprep.subr.mxu1 %v7699_v12 }
 0x678   : > { %5452 = vmatpush2.msra.mxu0 %v7634_v42  ;;  %5541 = vmatpush2.msra.mxu1 %v7698_v5 }
 0x679   : > { %5453 = vmatprep.subr.mxu0 %v7633_v62  ;;  %5542 = vmatprep.subr.mxu1 %v7697_v44 }
 0x67a   : > { %5454 = vmatpush2.msra.mxu0 %v7632_v15  ;;  %5543 = vmatpush2.msra.mxu1 %v7696_v1 }
 0x67b   : > { %5455 = vmatprep.subr.mxu0 %v7631_v7  ;;  %5544 = vmatprep.subr.mxu1 %v7695_v63 }
 0x67c   : > { %5456 = vmatpush2.msra.mxu0 %v7630_v26  ;;  %5545 = vmatpush2.msra.mxu1 %v7694_v4 }
 0x67d   : > { %5457 = vmatprep.subr.mxu0 %v7629_v57  ;;  %5546 = vmatprep.subr.mxu1 %v7693_v35 }
 0x67e   : > { %5458 = vmatpush2.msra.mxu0 %v7628_v36  ;;  %5547 = vmatpush2.msra.mxu1 %v7692_v39 }
 0x67f   : > { %5459 = vmatprep.subr.mxu0 %v7627_v14  ;;  %5548 = vmatprep.subr.mxu1 %v7691_v59 }
 0x680   : > { %5460 = vmatpush2.msra.mxu0 %v7626_v54  ;;  %5549 = vmatpush2.msra.mxu1 %v7690_v23 }
 0x681   : > { %5461 = vmatprep.subr.mxu0 %v7625_v31  ;;  %5550 = vmatprep.subr.mxu1 %v7689_v28 }
 0x682   : > { %5462 = vmatpush2.msra.mxu0 %v7624_v18  ;;  %5551 = vmatpush2.msra.mxu1 %v7688_v45 }
 0x683   : > { %5464 = vmatmul.mubr.f32.vlgmr.msra.gmra.mxu0 %v4947_v34  ;;  %5553 = vmatmul.mubr.f32.vlgmr.msra.gmra.mxu1 %v4949_v10  ;;  %v14397_v34 = vld [vmem:[%s15095_s8 + $0xf0] sm:$0xff] }
 0x684   : > { %5469 = vmatprep.mubr.f32.mxu0 %v4952_v21  ;;  %5558 = vmatprep.mubr.f32.mxu1 %v4954_v2  ;;  %v14403_v10 = vld [vmem:[%s15095_s8 + $0x70] sm:$0xff]  ;;  %v14438_v21 = vld [vmem:[%s15095_s8 + $0xd8] sm:$0xff] }
 0x685   : > { %7771 = vmatprep.subr.mxu0 %v14387_v38  ;;  %7806 = vmatprep.subr.mxu1 %v14387_v38  ;;  %v14445_v2 = vld [vmem:[%s15095_s8 + $0x58] sm:$0xff] }
 0x686   : > { %7772 = vmatpush3.msra.mxu0 %v14392_v41  ;;  %7807 = vmatpush3.msra.mxu1 %v14392_v41 }
 0x687   : > { %5470 = vmatmul.mubr.f32.gmra.mxu0 %v4951_v53  ;;  %5559 = vmatmul.mubr.f32.gmra.mxu1 %v4953_v48  ;;  %v14452_v53 = vld [vmem:[%s15095_s8 + $0xd0] sm:$0xff]  ;;  %v14473_v48 = vld [vmem:[%s15095_s8 + $0x48] sm:$0xff] }
 0x688   : > { %5475 = vmatprep.mubr.f32.mxu0 %v4956_v6  ;;  %5564 = vmatprep.mubr.f32.mxu1 %v4958_v3  ;;  %v14487_v6 = vld [vmem:[%s15095_s8 + $0x40] sm:$0xff]  ;;  %v14501_v3 = vld [vmem:[%s15095_s8 + $0x38] sm:$0xff] }
 0x689   : > { %7773 = vmatprep.subr.mxu0 %v14397_v34  ;;  %7808 = vmatprep.subr.mxu1 %v14397_v34 }
 0x68a   : > { %7774 = vmatpush3.msra.mxu0 %v14403_v10  ;;  %7809 = vmatpush3.msra.mxu1 %v14403_v10 }
 0x68b   : > { %5476 = vmatmul.mubr.f32.gmra.mxu0 %v4955_v17  ;;  %5565 = vmatmul.mubr.f32.gmra.mxu1 %v4957_v30  ;;  %v14527_v17 = vld [vmem:[%s15095_s8 + $0xa8] sm:$0xff] }
 0x68c   : > { %5481 = vmatprep.mubr.f32.mxu0 %v4960_v60  ;;  %5570 = vmatprep.mubr.f32.mxu1 %v4962_v20  ;;  %v14533_v30 = vld [vmem:[%s15095_s8 + $0x28] sm:$0xff]  ;;  %v14547_v60 = vld [vmem:[%s15095_s8 + $0x20] sm:$0xff]  ;;  %v14561_v20 = vld [vmem:[%s15095_s8 + $0x18] sm:$0xff] }
 0x68d   : > { %7775 = vmatprep.subr.mxu0 %v14410_v32  ;;  %7810 = vmatprep.subr.mxu1 %v14410_v32 }
 0x68e   : > { %7776 = vmatpush3.msra.mxu0 %v14417_v49  ;;  %7811 = vmatpush3.msra.mxu1 %v14417_v49 }
 0x68f   : > { %5482 = vmatmul.mubr.f32.gmra.mxu0 %v4959_v25  ;;  %5571 = vmatmul.mubr.f32.gmra.mxu1 %v4961_v61  ;;  %v14568_v25 = vld [vmem:[%s15095_s8 + $0x90] sm:$0xff] }
 0x690   : > { %7777 = vmatprep.subr.mxu0 %v14424_v58  ;;  %7812 = vmatprep.subr.mxu1 %v14424_v58  ;;  %v14575_v61 = vld [vmem:[%s15095_s8 + $0x10] sm:$0xff] }
 0x691   : > { %7778 = vmatpush3.msra.mxu0 %v14431_v9  ;;  %7813 = vmatpush3.msra.mxu1 %v14431_v9 }
 0x692   : > { %7779 = vmatprep.subr.mxu0 %v14438_v21  ;;  %7814 = vmatprep.subr.mxu1 %v14438_v21 }
 0x693   : > { %7780 = vmatpush3.msra.mxu0 %v14445_v2  ;;  %7815 = vmatpush3.msra.mxu1 %v14445_v2 }
 0x694   : > { %7781 = vmatprep.subr.mxu0 %v14452_v53  ;;  %7816 = vmatprep.subr.mxu1 %v14452_v53 }
 0x695   : > { %7782 = vmatpush3.msra.mxu0 %v14459_v40  ;;  %7817 = vmatpush3.msra.mxu1 %v14459_v40 }
 0x696   : > { %7783 = vmatprep.subr.mxu0 %v14466_v55  ;;  %7818 = vmatprep.subr.mxu1 %v14466_v55 }
 0x697   : > { %7784 = vmatpush3.msra.mxu0 %v14473_v48  ;;  %7819 = vmatpush3.msra.mxu1 %v14473_v48 }
 0x698   : > { %7785 = vmatprep.subr.mxu0 %v14480_v46  ;;  %7820 = vmatprep.subr.mxu1 %v14480_v46 }
 0x699   : > { %7786 = vmatpush3.msra.mxu0 %v14487_v6  ;;  %7821 = vmatpush3.msra.mxu1 %v14487_v6 }
 0x69a   : > { %7787 = vmatprep.subr.mxu0 %v14494_v11  ;;  %7822 = vmatprep.subr.mxu1 %v14494_v11 }
 0x69b   : > { %7788 = vmatpush3.msra.mxu0 %v14501_v3  ;;  %7823 = vmatpush3.msra.mxu1 %v14501_v3 }
 0x69c   : > { %7789 = vmatprep.subr.mxu0 %v14508_v19  ;;  %7824 = vmatprep.subr.mxu1 %v14508_v19 }
 0x69d   : > { %7790 = vmatpush3.msra.mxu0 %v14515_v27  ;;  %7825 = vmatpush3.msra.mxu1 %v14515_v27 }
 0x69e   : > { %7791 = vmatprep.subr.mxu0 %v14527_v17  ;;  %7826 = vmatprep.subr.mxu1 %v14527_v17 }
 0x69f   : > { %7792 = vmatpush3.msra.mxu0 %v14533_v30  ;;  %7827 = vmatpush3.msra.mxu1 %v14533_v30 }
 0x6a0   : > { %7793 = vmatprep.subr.mxu0 %v14540_v33  ;;  %7828 = vmatprep.subr.mxu1 %v14540_v33 }
 0x6a1   : > { %7794 = vmatpush3.msra.mxu0 %v14547_v60  ;;  %7829 = vmatpush3.msra.mxu1 %v14547_v60 }
 0x6a2   : > { %7795 = vmatprep.subr.mxu0 %v14554_v37  ;;  %7830 = vmatprep.subr.mxu1 %v14554_v37 }
 0x6a3   : > { %7796 = vmatpush3.msra.mxu0 %v14561_v20  ;;  %7831 = vmatpush3.msra.mxu1 %v14561_v20 }
 0x6a4   : > { %7797 = vmatprep.subr.mxu0 %v14568_v25  ;;  %7832 = vmatprep.subr.mxu1 %v14568_v25 }
 0x6a5   : > { %7798 = vmatpush3.msra.mxu0 %v14575_v61  ;;  %7833 = vmatpush3.msra.mxu1 %v14575_v61 }
 0x6a6   : > { %7799 = vmatprep.subr.mxu0 %v14582_v52  ;;  %7834 = vmatprep.subr.mxu1 %v14582_v52 }
 0x6a7   : > { %7800 = vmatpush3.msra.mxu0 %v14589_v8  ;;  %7835 = vmatpush3.msra.mxu1 %v14589_v8 }
 0x6a8   : > { %7801 = vmatprep.subr.mxu0 %v14596_v29  ;;  %7836 = vmatprep.subr.mxu1 %v14596_v29 }
 0x6a9   : > { %7802 = vmatpush3.msra.mxu0 %v14603_v22  ;;  %7837 = vmatpush3.msra.mxu1 %v14603_v22 }
 0x6aa   : > { %8031 = vmatprep.subr.mxu1 %v14608_v51  ;;  %7996 = vmatprep.subr.mxu0 %v14608_v51 }
 0x6fc   : > { %v5158_v16 = vpop.f32.mrf.mxu0  ;;  %v5247_v24 = vpop.f32.mrf.mxu1 }
 0x6fd   : > { %v5248_v39 = vadd.f32 %v5247_v24, %v5158_v16 }
 0x6fe   : > { %v5160_v47 = vpop.f32.mrf.mxu0  ;;  %v5249_v56 = vpop.f32.mrf.mxu1 }
 0x6ff   : > { %v5250_v23 = vadd.f32 %v5249_v56, %v5160_v47 }
 0x702   : > { %v5164_v13 = vpop.f32.mrf.mxu0  ;;  %v5253_v0 = vpop.f32.mrf.mxu1 }
 0x704   : > { %v5166_v50 = vpop.f32.mrf.mxu0  ;;  %v5255_v43 = vpop.f32.mrf.mxu1 }
 0x705   : > { %v5256_v22 = vadd.f32 %v5255_v43, %v5166_v50 }
 0x708   : > { %v5170_v12 = vpop.f32.mrf.mxu0  ;;  %v5259_v42 = vpop.f32.mrf.mxu1 }
 0x709   : > { %v14612_v5 = vadd.f32 %v5259_v42, %v5170_v12  ;;  %v5254_v12 = vadd.f32 %v5253_v0, %v5164_v13  ;;  %v7735_v0 = vld [vmem:[%s15097_s10 + $0xf8] sm:$0xff] }
 0x70a   : > { %v5172_v62 = vpop.f32.mrf.mxu0  ;;  %v5261_v44 = vpop.f32.mrf.mxu1 }
 0x70b   : > { %v14614_v15 = vadd.f32 %v5261_v44, %v5172_v62 }
 0x70e   : > { %v5176_v1 = vpop.f32.mrf.mxu0  ;;  %v5265_v7 = vpop.f32.mrf.mxu1 }
 0x70f   : > { %v5266_v63 = vadd.f32 %v5265_v7, %v5176_v1 }
 0x710   : > { %v5178_v26 = vpop.f32.mrf.mxu0  ;;  %v5267_v4 = vpop.f32.mrf.mxu1 }
 0x711   : > { %v14616_v57 = vadd.f32 %v5267_v4, %v5178_v26 }
 0x743   : > { %v5465_v35 = vpop.f32.mrf.mxu0  ;;  %v5554_v36 = vpop.f32.mrf.mxu1 }
 0x744   : > { %v5555_v14 = vadd.f32 %v5554_v36, %v5465_v35 }
 0x745   : > { %v5467_v59 = vpop.f32.mrf.mxu0  ;;  %v5556_v54 = vpop.f32.mrf.mxu1 }
 0x746   : > { %v5577_v31 = vmax.f32 %v5248_v39, %v5555_v14  ;;  %v5557_v28 = vadd.f32 %v5556_v54, %v5467_v59  ;;  %v5712_v54 = vld [vmem:[%s15097_s10 + $0x78] sm:$0xff] }
 0x747   : > { %v5471_v18 = vpop.f32.mrf.mxu0  ;;  %v5560_v45 = vpop.f32.mrf.mxu1 }
 0x748   : > { %v5578_v42 = vmax.f32 %v5250_v23, %v5557_v28  ;;  %v5561_v62 = vadd.f32 %v5560_v45, %v5471_v18  ;;  %v5587_v1 = vrot.slane %v5577_v31, 4  ;;  %v7733_v23 = vld [vmem:[%s15097_s10 + $0xe8] sm:$0xff]  ;;  %v5711_v28 = vld [vmem:[%s15097_s10 + $0x70] sm:$0xff]  ;;  %v7732_v18 = vld [vmem:[%s15097_s10 + $0xe0] sm:$0xff] }
 0x749   : > { %v5473_v44 = vpop.f32.mrf.mxu0  ;;  %v5562_v7 = vpop.f32.mrf.mxu1  ;;  %v7731_v45 = vld [vmem:[%s15097_s10 + $0xd8] sm:$0xff] }
 0x74a   : > { %v5588_v26 = vrot.slane %v5578_v42, 4  ;;  %v5579_v4 = vmax.f32 %v5254_v12, %v5561_v62  ;;  %v5563_v29 = vadd.f32 %v5562_v7, %v5473_v44  ;;  %v5591_v35 = vmax.f32 %v5577_v31, %v5587_v1  ;;  %v5709_v12 = vld [vmem:[%s15097_s10 + $0x60] sm:$0xff]  ;;  %v5708_v62 = vld [vmem:[%s15097_s10 + $0x58] sm:$0xff]  ;;  %v7729_v44 = vld [vmem:[%s15097_s10 + $0xc8] sm:$0xff] }
 0x74b   : > { %v14618_v8 = vpop.f32.mrf.mxu0  ;;  %v14620_v16 = vpop.f32.mrf.mxu1  ;;  %v5707_v1 = vld [vmem:[%s15097_s10 + $0x50] sm:$0xff]  ;;  %v7728_v7 = vld [vmem:[%s15097_s10 + $0xc0] sm:$0xff] }
 0x74c   : > { %v5580_v24 = vmax.f32 %v5256_v22, %v5563_v29  ;;  %v5592_v56 = vmax.f32 %v5578_v42, %v5588_v26  ;;  %v5715_v36 = vrot.slane %v5579_v4, 4  ;;  %v7734_v29 = vld [vmem:[%s15097_s10 + $0xf0] sm:$0xff]  ;;  %v5706_v26 = vld [vmem:[%s15097_s10 + $0x48] sm:$0xff] }
 0x74d   : > { %v14622_v47 = vpop.f32.mrf.mxu0  ;;  %v14624_v13 = vpop.f32.mrf.mxu1  ;;  %v7730_v42 = vld [vmem:[%s15097_s10 + $0xd0] sm:$0xff] }
 0x74e   : > { %v5716_v50 = vrot.slane %v5580_v24, 4  ;;  %5690 = vmatprep.mubr.f32.mxu0 %v5592_v56  ;;  %v5719_v59 = vmax.f32 %v5579_v4, %v5715_v36  ;;  %v7727_v4 = vld [vmem:[%s15097_s10 + $0xb8] sm:$0xff]  ;;  %v7726_v56 = vld [vmem:[%s15097_s10 + $0xb0] sm:$0xff] }
 0x74f   : > { %v5483_v43 = vpop.f32.mrf.mxu0  ;;  %v5572_v39 = vpop.f32.mrf.mxu1  ;;  %5691 = vmatmul.mubr.f32.vlgmr.msra.gmra.mxu0 %v5591_v35  ;;  %v5704_v35 = vld [vmem:[%s15097_s10 + $0x38] sm:$0xff]  ;;  %v5703_v36 = vld [vmem:[%s15097_s10 + $0x30] sm:$0xff] }
 0x750   : > { %v5573_v22 = vadd.f32 %v5572_v39, %v5483_v43  ;;  %v5720_v14 = vmax.f32 %v5580_v24, %v5716_v50  ;;  %7997 = vmatpush3.msra.mxu0 %v7735_v0  ;;  %v5705_v24 = vld [vmem:[%s15097_s10 + $0x40] sm:$0xff]  ;;  %v5702_v0 = vld [vmem:[%s15097_s10 + $0x28] sm:$0xff]  ;;  %v5700_v39 = vld [vmem:[%s15097_s10 + $0x18] sm:$0xff]  ;;  %8028 = vmatprep.mubr.msk.f32.mxu0 %vm8282_vm5, %v14608_v51 }
 0x751   : > { %7998 = vmatprep.subr.mxu0 %v14608_v51  ;;  %v5701_v50 = vld [vmem:[%s15097_s10 + $0x20] sm:$0xff]  ;;  %v7725_v43 = vld [vmem:[%s15097_s10 + $0xa8] sm:$0xff] }
 0x752   : > { %v14639_v31 = vmax.f32 %v5266_v63, %v5573_v22  ;;  %5785 = vmatprep.mubr.f32.mxu1 %v5720_v14  ;;  %7999 = vmatpush3.msra.mxu0 %v7734_v29  ;;  %v5710_v63 = vld [vmem:[%s15097_s10 + $0x68] sm:$0xff]  ;;  %v7724_v29 = vld [vmem:[%s15097_s10 + $0xa0] sm:$0xff]  ;;  %v5699_v22 = vld [vmem:[%s15097_s10 + $0x10] sm:$0xff] }
 0x753   : > { %5786 = vmatmul.mubr.f32.vlgmr.msra.gmra.mxu1 %v5719_v59  ;;  %8000 = vmatprep.subr.mxu0 %v14608_v51  ;;  %v7723_v14 = vld [vmem:[%s15097_s10 + $0x98] sm:$0xff]  ;;  %v5698_v59 = vld [vmem:[%s15097_s10 + $0x8] sm:$0xff] }
 0x754   : > { %8032 = vmatpush3.msra.mxu1 %v5712_v54  ;;  %8001 = vmatpush3.msra.mxu0 %v7733_v23  ;;  %v7722_v54 = vld [vmem:[%s15097_s10 + $0x90] sm:$0xff]  ;;  %v5697_v23 = vld [vmem:[%s15097_s10] sm:$0xff] }
 0x755   : > { %8033 = vmatprep.subr.mxu1 %v14608_v51  ;;  %8002 = vmatprep.subr.mxu0 %v14608_v51 }
 0x756   : > { %8034 = vmatpush3.msra.mxu1 %v5711_v28  ;;  %8003 = vmatpush3.msra.mxu0 %v7732_v18  ;;  %v7721_v28 = vld [vmem:[%s15097_s10 + $0x88] sm:$0xff]  ;;  %v7720_v18 = vld [vmem:[%s15097_s10 + $0x80] sm:$0xff] }
 0x757   : > { %8035 = vmatprep.subr.mxu1 %v14608_v51  ;;  %8004 = vmatprep.subr.mxu0 %v14608_v51 }
 0x758   : > { %8036 = vmatpush3.msra.mxu1 %v5710_v63  ;;  %8005 = vmatpush3.msra.mxu0 %v7731_v45  ;;  %v5485_v63 = vpop.f32.mrf.mxu0  ;;  %v5569_v45 = vadd.f32 %v14624_v13, %v14622_v47 }
 0x759   : > { %8037 = vmatprep.subr.mxu1 %v14608_v51  ;;  %8006 = vmatprep.subr.mxu0 %v14608_v51 }
 0x75a   : > { %8038 = vmatpush3.msra.mxu1 %v5709_v12  ;;  %8007 = vmatpush3.msra.mxu0 %v7730_v42  ;;  %v5574_v42 = vpop.f32.mrf.mxu1 }
 0x75b   : > { %8039 = vmatprep.subr.mxu1 %v14608_v51  ;;  %8008 = vmatprep.subr.mxu0 %v14608_v51 }
 0x75c   : > { %8040 = vmatpush3.msra.mxu1 %v5708_v62  ;;  %8009 = vmatpush3.msra.mxu0 %v7729_v44  ;;  %v14765_v62 = vld [vmem:[%s15096_s9] sm:$0x1] }
 0x75d   : > { %8041 = vmatprep.subr.mxu1 %v14608_v51  ;;  %8010 = vmatprep.subr.mxu0 %v14608_v51 }
 0x75e   : > { %8042 = vmatpush3.msra.mxu1 %v5707_v1  ;;  %8011 = vmatpush3.msra.mxu0 %v7728_v7  ;;  %v5582_v7 = vmax.f32 %v14614_v15, %v5569_v45  ;;  %v5567_v15 = vadd.f32 %v14620_v16, %v14618_v8  ;;  %v7759_v45 = vld [vmem:[%s15097_s10 + $0x1b8] sm:$0xff] }
 0x75f   : > { %8043 = vmatprep.subr.mxu1 %v14608_v51  ;;  %8012 = vmatprep.subr.mxu0 %v14608_v51 }
 0x760   : > { %8044 = vmatpush3.msra.mxu1 %v5706_v26  ;;  %8013 = vmatpush3.msra.mxu0 %v7727_v4 }
 0x761   : > { %8045 = vmatprep.subr.mxu1 %v14608_v51  ;;  %8014 = vmatprep.subr.mxu0 %v14608_v51 }
 0x762   : > { %8046 = vmatpush3.msra.mxu1 %v5705_v24  ;;  %8015 = vmatpush3.msra.mxu0 %v7726_v56 }
 0x763   : > { %8047 = vmatprep.subr.mxu1 %v14608_v51  ;;  %8016 = vmatprep.subr.mxu0 %v14608_v51 }
 0x764   : > { %8048 = vmatpush3.msra.mxu1 %v5704_v35  ;;  %8017 = vmatpush3.msra.mxu0 %v7725_v43  ;;  %v5581_v43 = vmax.f32 %v14612_v5, %v5567_v15  ;;  %v6298_v15 = vld [vmem:[%s15099_s12 + $0x60] sm:$0xff] }
 0x765   : > { %8049 = vmatprep.subr.mxu1 %v14608_v51  ;;  %8018 = vmatprep.subr.mxu0 %v14608_v51 }
 0x766   : > { %8050 = vmatpush3.msra.mxu1 %v5703_v36  ;;  %8019 = vmatpush3.msra.mxu0 %v7724_v29  ;;  %v5952_v36 = vrot.slane %v5582_v7, 4  ;;  %v5951_v8 = vrot.slane %v5581_v43, 4  ;;  %v15123_v29 = vld [vmem:[#allocation12_spill] sm:$0xff] }
 0x767   : > { %8051 = vmatprep.subr.mxu1 %v14608_v51  ;;  %8020 = vmatprep.subr.mxu0 %v14608_v51 }
 0x768   : > { %8052 = vmatpush3.msra.mxu1 %v5702_v0  ;;  %8021 = vmatpush3.msra.mxu0 %v7723_v14  ;;  %v5956_v0 = vmax.f32 %v5582_v7, %v5952_v36  ;;  %v5955_v5 = vmax.f32 %v5581_v43, %v5951_v8  ;;  %v7752_v36 = vld [vmem:[%s15097_s10 + $0x180] sm:$0xff]  ;;  %v6296_v43 = vld [vmem:[%s15099_s12 + $0x50] sm:$0xff] }
 0x769   : > { %8053 = vmatprep.subr.mxu1 %v14608_v51  ;;  %8022 = vmatprep.subr.mxu0 %v14608_v51  ;;  %v6294_v8 = vld [vmem:[%s15099_s12 + $0x40] sm:$0xff] }
 0x76a   : > { %8054 = vmatpush3.msra.mxu1 %v5701_v50  ;;  %8023 = vmatpush3.msra.mxu0 %v7722_v54  ;;  %v5575_v50 = vadd.f32 %v5574_v42, %v5485_v63  ;;  %v7764_v54 = vld [vmem:[%s15097_s10 + $0x1e0] sm:$0xff]  ;;  %v7757_v42 = vld [vmem:[%s15097_s10 + $0x1a8] sm:$0xff] }
 0x76b   : > { %8055 = vmatprep.subr.mxu1 %v14608_v51  ;;  %8024 = vmatprep.subr.mxu0 %v14608_v51  ;;  %v7760_v63 = vld [vmem:[%s15097_s10 + $0x1c0] sm:$0xff] }
 0x76c   : > { %8056 = vmatpush3.msra.mxu1 %v5700_v39  ;;  %8063 = vmatprep.mubr.msk.f32.mxu1 %vm8282_vm5, %v14608_v51  ;;  %v5584_v39 = vmax.f32 %v14616_v57, %v5575_v50  ;;  %v15125_v57 = vld [vmem:[#allocation14_spill] sm:$0xff]  ;;  %v6297_v50 = vld [vmem:[%s15099_s12 + $0x58] sm:$0xff] }
 0x76d   : > { %8057 = vmatprep.subr.mxu1 %v14608_v51  ;;  %8025 = vmatpush3.msra.mxu0 %v7721_v28  ;;  %v7762_v28 = vld [vmem:[%s15097_s10 + $0x1d0] sm:$0xff] }
 0x76e   : > { %8058 = vmatpush3.msra.mxu1 %v5699_v22  ;;  %8026 = vmatprep.subr.mxu0 %v14608_v51  ;;  %v6119_v16 = vrot.slane %v5584_v39, 4  ;;  %v15124_v22 = vld [vmem:[#allocation13_spill] sm:$0xff] }
 0x76f   : > { %8059 = vmatprep.subr.mxu1 %v14608_v51  ;;  %8027 = vmatpush3.msra.mxu0 %v7720_v18  ;;  %v7761_v18 = vld [vmem:[%s15097_s10 + $0x1c8] sm:$0xff] }
 0x770   : > { %8060 = vmatpush3.msra.mxu1 %v5698_v59  ;;  %7875 = vmatprep.subr.mxu0 %v14387_v38  ;;  %v6123_v14 = vmax.f32 %v5584_v39, %v6119_v16  ;;  %v7765_v59 = vld [vmem:[%s15097_s10 + $0x1e8] sm:$0xff]  ;;  %v6293_v16 = vld [vmem:[%s15099_s12 + $0x38] sm:$0xff] }
 0x771   : > { %8061 = vmatprep.subr.mxu1 %v14608_v51  ;;  %v6295_v39 = vld [vmem:[%s15099_s12 + $0x48] sm:$0xff] }
 0x772   : > { %8062 = vmatpush3.msra.mxu1 %v5697_v23  ;;  %v7763_v23 = vld [vmem:[%s15097_s10 + $0x1d8] sm:$0xff] }
 0x773   : > { %8066 = vmatprep.subr.mxu1 %v14608_v51 }
 0x80f   : > { %v7803_v12 = vpop.f32.mrf.mxu0 }
 0x811   : > { %v7804_v44 = vpop.f32.mrf.mxu0 }
 0x812   : > { %v7805_v1 = vadd.f32 %v7804_v44, %v7803_v12  ;;  %v7758_v12 = vld [vmem:[%s15097_s10 + $0x1b0] sm:$0xff]  ;;  %v7756_v44 = vld [vmem:[%s15097_s10 + $0x1a0] sm:$0xff] }
 0x813   : > { %v7838_v26 = vpop.f32.mrf.mxu1 }
 0x814   : > { %v5693_v4 = vadd.f32 %v7805_v1, %v14765_v62  ;;  %v7755_v1 = vld [vmem:[%s15097_s10 + $0x198] sm:$0xff] }
 0x815   : > { %v7839_v24 = vpop.f32.mrf.mxu1 }
 0x816   : > { %v5696_v56 = vmax.f32 %v5693_v4, 0.0  ;;  %v7840_v35 = vadd.f32 %v7839_v24, %v7838_v26  ;;  %v7754_v26 = vld [vmem:[%s15097_s10 + $0x190] sm:$0xff] }
 0x818   : > { %v5788_v47 = vadd.f32 %v7840_v35, %v14765_v62  ;;  %8064 = vmatmul.mubr.f32.vlgmr.msra.gmra.mxu1 %v5696_v56  ;;  %v7753_v56 = vld [vmem:[%s15097_s10 + $0x188] sm:$0xff] }
 0x819   : > { %8098 = vmatprep.mubr.msk.f32.mxu1 %vm8282_vm5, %v14608_v51 }
 0x81a   : > { %v5791_v13 = vmax.f32 %v5788_v47, 0.0 }
 0x81c   : > { %8029 = vmatmul.mubr.f32.vlgmr.msra.gmra.mxu0 %v5791_v13  ;;  %v6301_v13 = vld [vmem:[%s15099_s12 + $0x78] sm:$0xff] }
 0x81d   : > { %7876 = vmatpush3.msra.mxu0 %v14392_v41  ;;  %6021 = vmatprep.mubr.f32.mxu0 %v5956_v0  ;;  %v6299_v0 = vld [vmem:[%s15099_s12 + $0x68] sm:$0xff] }
 0x81e   : > { %7877 = vmatprep.subr.mxu0 %v14397_v34 }
 0x81f   : > { %7878 = vmatpush3.msra.mxu0 %v14403_v10 }
 0x820   : > { %7879 = vmatprep.subr.mxu0 %v14410_v32 }
 0x821   : > { %7880 = vmatpush3.msra.mxu0 %v14417_v49 }
 0x822   : > { %7881 = vmatprep.subr.mxu0 %v14424_v58 }
 0x823   : > { %7882 = vmatpush3.msra.mxu0 %v14431_v9 }
 0x824   : > { %7883 = vmatprep.subr.mxu0 %v14438_v21 }
 0x825   : > { %7884 = vmatpush3.msra.mxu0 %v14445_v2 }
 0x826   : > { %7885 = vmatprep.subr.mxu0 %v14452_v53 }
 0x827   : > { %7886 = vmatpush3.msra.mxu0 %v14459_v40 }
 0x828   : > { %7887 = vmatprep.subr.mxu0 %v14466_v55 }
 0x829   : > { %7888 = vmatpush3.msra.mxu0 %v14473_v48 }
 0x82a   : > { %7889 = vmatprep.subr.mxu0 %v14480_v46 }
 0x82b   : > { %7890 = vmatpush3.msra.mxu0 %v14487_v6 }
 0x82c   : > { %7891 = vmatprep.subr.mxu0 %v14494_v11 }
 0x82d   : > { %7892 = vmatpush3.msra.mxu0 %v14501_v3 }
 0x82e   : > { %7893 = vmatprep.subr.mxu0 %v14508_v19 }
 0x82f   : > { %7894 = vmatpush3.msra.mxu0 %v14515_v27 }
 0x830   : > { %7895 = vmatprep.subr.mxu0 %v14527_v17 }
 0x831   : > { %7896 = vmatpush3.msra.mxu0 %v14533_v30 }
 0x832   : > { %7897 = vmatprep.subr.mxu0 %v14540_v33 }
 0x833   : > { %7898 = vmatpush3.msra.mxu0 %v14547_v60 }
 0x834   : > { %7899 = vmatprep.subr.mxu0 %v14554_v37 }
 0x835   : > { %7900 = vmatpush3.msra.mxu0 %v14561_v20 }
 0x836   : > { %7901 = vmatprep.subr.mxu0 %v14568_v25 }
 0x837   : > { %7902 = vmatpush3.msra.mxu0 %v14575_v61 }
 0x838   : > { %7903 = vmatprep.subr.mxu0 %v14582_v52 }
 0x839   : > { %7904 = vmatpush3.msra.mxu0 %v15123_v29 }
 0x83a   : > { %7905 = vmatprep.subr.mxu0 %v15124_v22 }
 0x83b   : > { %7906 = vmatpush3.msra.mxu0 %v15125_v57 }
 0x83c   : > { %6022 = vmatmul.mubr.f32.vlgmr.msra.gmra.mxu0 %v5955_v5  ;;  %7927 = vmatprep.subr.mxu0 %v14387_v38  ;;  %v6118_v38 = vrot.slane %v14639_v31, 4  ;;  %v6291_v5 = vld [vmem:[%s15099_s12 + $0x28] sm:$0xff] }
 0x83d   : > { %7928 = vmatpush3.msra.mxu0 %v14392_v41  ;;  %6188 = vmatprep.mubr.f32.mxu0 %v6123_v14  ;;  %v6288_v14 = vld [vmem:[%s15099_s12 + $0x10] sm:$0xff] }
 0x83e   : > { %7929 = vmatprep.subr.mxu0 %v14397_v34  ;;  %v6122_v41 = vmax.f32 %v14639_v31, %v6118_v38  ;;  %v7751_v34 = vld [vmem:[%s15097_s10 + $0x178] sm:$0xff]  ;;  %v7766_v31 = vld [vmem:[%s15097_s10 + $0x1f0] sm:$0xff]  ;;  %v6287_v38 = vld [vmem:[%s15099_s12 + $0x8] sm:$0xff] }
 0x83f   : > { %7930 = vmatpush3.msra.mxu0 %v14403_v10  ;;  %v7750_v10 = vld [vmem:[%s15097_s10 + $0x170] sm:$0xff]  ;;  %8067 = vmatpush3.msra.mxu1 %v7751_v34 }
 0x840   : > { %7931 = vmatprep.subr.mxu0 %v14410_v32  ;;  %8068 = vmatprep.subr.mxu1 %v14608_v51  ;;  %v7749_v32 = vld [vmem:[%s15097_s10 + $0x168] sm:$0xff] }
 0x841   : > { %7932 = vmatpush3.msra.mxu0 %v14417_v49  ;;  %8069 = vmatpush3.msra.mxu1 %v7750_v10  ;;  %v7748_v49 = vld [vmem:[%s15097_s10 + $0x160] sm:$0xff] }
 0x842   : > { %7933 = vmatprep.subr.mxu0 %v14424_v58  ;;  %8070 = vmatprep.subr.mxu1 %v14608_v51  ;;  %v7747_v58 = vld [vmem:[%s15097_s10 + $0x158] sm:$0xff] }
 0x843   : > { %7934 = vmatpush3.msra.mxu0 %v14431_v9  ;;  %8071 = vmatpush3.msra.mxu1 %v7749_v32  ;;  %v7746_v9 = vld [vmem:[%s15097_s10 + $0x150] sm:$0xff] }
 0x844   : > { %7935 = vmatprep.subr.mxu0 %v14438_v21  ;;  %8072 = vmatprep.subr.mxu1 %v14608_v51  ;;  %v7745_v21 = vld [vmem:[%s15097_s10 + $0x148] sm:$0xff] }
 0x845   : > { %7936 = vmatpush3.msra.mxu0 %v14445_v2  ;;  %8073 = vmatpush3.msra.mxu1 %v7748_v49  ;;  %v7744_v2 = vld [vmem:[%s15097_s10 + $0x140] sm:$0xff] }
 0x846   : > { %7937 = vmatprep.subr.mxu0 %v14452_v53  ;;  %8074 = vmatprep.subr.mxu1 %v14608_v51  ;;  %v7743_v53 = vld [vmem:[%s15097_s10 + $0x138] sm:$0xff] }
 0x847   : > { %7938 = vmatpush3.msra.mxu0 %v14459_v40  ;;  %8075 = vmatpush3.msra.mxu1 %v7747_v58  ;;  %v7742_v40 = vld [vmem:[%s15097_s10 + $0x130] sm:$0xff]  ;;  %v6283_v58 = vld [vmem:[%s15098_s11] sm:$0x1] }
 0x848   : > { %7939 = vmatprep.subr.mxu0 %v14466_v55  ;;  %8076 = vmatprep.subr.mxu1 %v14608_v51  ;;  %v7741_v55 = vld [vmem:[%s15097_s10 + $0x128] sm:$0xff] }
 0x849   : > { %7940 = vmatpush3.msra.mxu0 %v14473_v48  ;;  %8077 = vmatpush3.msra.mxu1 %v7746_v9  ;;  %v7740_v48 = vld [vmem:[%s15097_s10 + $0x120] sm:$0xff] }
 0x84a   : > { %7941 = vmatprep.subr.mxu0 %v14480_v46  ;;  %8078 = vmatprep.subr.mxu1 %v14608_v51  ;;  %v7739_v46 = vld [vmem:[%s15097_s10 + $0x118] sm:$0xff] }
 0x84b   : > { %7942 = vmatpush3.msra.mxu0 %v14487_v6  ;;  %8079 = vmatpush3.msra.mxu1 %v7745_v21  ;;  %v7738_v6 = vld [vmem:[%s15097_s10 + $0x110] sm:$0xff] }
 0x84c   : > { %7943 = vmatprep.subr.mxu0 %v14494_v11  ;;  %8080 = vmatprep.subr.mxu1 %v14608_v51  ;;  %v7737_v11 = vld [vmem:[%s15097_s10 + $0x108] sm:$0xff] }
 0x84d   : > { %7944 = vmatpush3.msra.mxu0 %v14501_v3  ;;  %8081 = vmatpush3.msra.mxu1 %v7744_v2  ;;  %v7736_v3 = vld [vmem:[%s15097_s10 + $0x100] sm:$0xff] }
 0x84e   : > { %7945 = vmatprep.subr.mxu0 %v14508_v19  ;;  %8082 = vmatprep.subr.mxu1 %v14608_v51 }
 0x84f   : > { %7946 = vmatpush3.msra.mxu0 %v14515_v27  ;;  %8083 = vmatpush3.msra.mxu1 %v7743_v53 }
 0x850   : > { %7947 = vmatprep.subr.mxu0 %v14527_v17  ;;  %8084 = vmatprep.subr.mxu1 %v14608_v51 }
 0x851   : > { %7948 = vmatpush3.msra.mxu0 %v14533_v30  ;;  %8085 = vmatpush3.msra.mxu1 %v7742_v40 }
 0x852   : > { %7949 = vmatprep.subr.mxu0 %v14540_v33  ;;  %8086 = vmatprep.subr.mxu1 %v14608_v51 }
 0x853   : > { %7950 = vmatpush3.msra.mxu0 %v14547_v60  ;;  %8087 = vmatpush3.msra.mxu1 %v7741_v55 }
 0x854   : > { %7951 = vmatprep.subr.mxu0 %v14554_v37  ;;  %8088 = vmatprep.subr.mxu1 %v14608_v51 }
 0x855   : > { %7952 = vmatpush3.msra.mxu0 %v14561_v20  ;;  %8089 = vmatpush3.msra.mxu1 %v7740_v48 }
 0x856   : > { %7953 = vmatprep.subr.mxu0 %v14568_v25  ;;  %8090 = vmatprep.subr.mxu1 %v14608_v51 }
 0x857   : > { %7954 = vmatpush3.msra.mxu0 %v14575_v61  ;;  %8091 = vmatpush3.msra.mxu1 %v7739_v46 }
 0x858   : > { %7955 = vmatprep.subr.mxu0 %v14582_v52  ;;  %8092 = vmatprep.subr.mxu1 %v14608_v51  ;;  %v7767_v52 = vld [vmem:[%s15097_s10 + $0x1f8] sm:$0xff] }
 0x859   : > { %7956 = vmatpush3.msra.mxu0 %v15123_v29  ;;  %8093 = vmatpush3.msra.mxu1 %v7738_v6  ;;  %v6292_v29 = vld [vmem:[%s15099_s12 + $0x30] sm:$0xff] }
 0x85a   : > { %7957 = vmatprep.subr.mxu0 %v15124_v22  ;;  %8094 = vmatprep.subr.mxu1 %v14608_v51  ;;  %v6290_v22 = vld [vmem:[%s15099_s12 + $0x20] sm:$0xff] }
 0x85b   : > { %7958 = vmatpush3.msra.mxu0 %v15125_v57  ;;  %8095 = vmatpush3.msra.mxu1 %v7737_v11  ;;  %v6289_v57 = vld [vmem:[%s15099_s12 + $0x18] sm:$0xff] }
 0x85c   : > { %6189 = vmatmul.mubr.f32.vlgmr.msra.gmra.mxu0 %v6122_v41  ;;  %8136 = vmatprep.subr.mxu0 %v14608_v51  ;;  %v6286_v41 = vld [vmem:[%s15099_s12] sm:$0xff] }
 0x85d   : > { %8168 = vmatprep.mubr.msk.f32.mxu0 %vm8282_vm5, %v14608_v51  ;;  %8096 = vmatprep.subr.mxu1 %v14608_v51 }
 0x85e   : > { %8097 = vmatpush3.msra.mxu1 %v7736_v3  ;;  %8137 = vmatpush3.msra.mxu0 %v6301_v13 }
 0x85f   : > { %8101 = vmatprep.subr.mxu1 %v14608_v51  ;;  %8138 = vmatprep.subr.mxu0 %v14608_v51 }
 0x8d8   : > { %v5945_v19 = vpop.f32.mrf.mxu1 }
 0x8da   : > { %v8065_v27 = vpop.f32.mrf.mxu1 }
 0x8dc   : > { %v5875_v17 = vpop.f32.mrf.mxu0 }
 0x8dd   : > { %v14908_v30 = vadd.f32 %v5945_v19, %v5875_v17 }
 0x8de   : > { %v8030_v33 = vpop.f32.mrf.mxu0 }
 0x8fc   : > { %v7907_v60 = vpop.f32.mrf.mxu0 }
 0x8fe   : > { %v7908_v37 = vpop.f32.mrf.mxu0 }
 0x8ff   : > { %v7909_v20 = vadd.f32 %v7908_v37, %v7907_v60 }
 0x901   : > { %v6024_v25 = vadd.f32 %v7909_v20, %v14765_v62 }
 0x903   : > { %v6027_v61 = vmax.f32 %v6024_v25, 0.0 }
 0x905   : > { %8099 = vmatmul.mubr.f32.vlgmr.msra.gmra.mxu1 %v6027_v61 }
 0x906   : > { %8102 = vmatpush3.msra.mxu1 %v7767_v52  ;;  %8133 = vmatprep.mubr.msk.f32.mxu1 %vm8282_vm5, %v14608_v51 }
 0x907   : > { %8103 = vmatprep.subr.mxu1 %v14608_v51 }
 0x908   : > { %8104 = vmatpush3.msra.mxu1 %v7766_v31 }
 0x909   : > { %8105 = vmatprep.subr.mxu1 %v14608_v51 }
 0x90a   : > { %8106 = vmatpush3.msra.mxu1 %v7765_v59 }
 0x90b   : > { %8107 = vmatprep.subr.mxu1 %v14608_v51 }
 0x90c   : > { %8108 = vmatpush3.msra.mxu1 %v7764_v54 }
 0x90d   : > { %8109 = vmatprep.subr.mxu1 %v14608_v51 }
 0x90e   : > { %8110 = vmatpush3.msra.mxu1 %v7763_v23 }
 0x90f   : > { %8111 = vmatprep.subr.mxu1 %v14608_v51 }
 0x910   : > { %8112 = vmatpush3.msra.mxu1 %v7762_v28 }
 0x911   : > { %8113 = vmatprep.subr.mxu1 %v14608_v51 }
 0x912   : > { %8114 = vmatpush3.msra.mxu1 %v7761_v18 }
 0x913   : > { %8115 = vmatprep.subr.mxu1 %v14608_v51 }
 0x914   : > { %8116 = vmatpush3.msra.mxu1 %v7760_v63 }
 0x915   : > { %8117 = vmatprep.subr.mxu1 %v14608_v51 }
 0x916   : > { %8118 = vmatpush3.msra.mxu1 %v7759_v45 }
 0x917   : > { %8119 = vmatprep.subr.mxu1 %v14608_v51 }
 0x918   : > { %8120 = vmatpush3.msra.mxu1 %v7758_v12 }
 0x919   : > { %8121 = vmatprep.subr.mxu1 %v14608_v51 }
 0x91a   : > { %8122 = vmatpush3.msra.mxu1 %v7757_v42 }
 0x91b   : > { %8123 = vmatprep.subr.mxu1 %v14608_v51 }
 0x91c   : > { %v7959_v7 = vpop.f32.mrf.mxu0  ;;  %8124 = vmatpush3.msra.mxu1 %v7756_v44 }
 0x91d   : > { %8125 = vmatprep.subr.mxu1 %v14608_v51 }
 0x91e   : > { %v7960_v4 = vpop.f32.mrf.mxu0  ;;  %8126 = vmatpush3.msra.mxu1 %v7755_v1 }
 0x91f   : > { %v7961_v24 = vadd.f32 %v7960_v4, %v7959_v7  ;;  %8127 = vmatprep.subr.mxu1 %v14608_v51 }
 0x920   : > { %8128 = vmatpush3.msra.mxu1 %v7754_v26 }
 0x921   : > { %v6191_v35 = vadd.f32 %v7961_v24, %v14765_v62  ;;  %8129 = vmatprep.subr.mxu1 %v14608_v51  ;;  %v6300_v62 = vld [vmem:[%s15099_s12 + $0x70] sm:$0xff] }
 0x922   : > { %8130 = vmatpush3.msra.mxu1 %v7753_v56  ;;  %8139 = vmatpush3.msra.mxu0 %v6300_v62 }
 0x923   : > { %v6194_v47 = vmax.f32 %v6191_v35, 0.0  ;;  %8131 = vmatprep.subr.mxu1 %v14608_v51  ;;  %8140 = vmatprep.subr.mxu0 %v14608_v51 }
 0x924   : > { %8132 = vmatpush3.msra.mxu1 %v7752_v36  ;;  %8141 = vmatpush3.msra.mxu0 %v6299_v0 }
 0x925   : > { %8134 = vmatmul.mubr.f32.vlgmr.msra.gmra.mxu1 %v6194_v47  ;;  %8142 = vmatprep.subr.mxu0 %v14608_v51 }
 0x926   : > { %8143 = vmatpush3.msra.mxu0 %v6298_v15 }
 0x927   : > { %8144 = vmatprep.subr.mxu0 %v14608_v51 }
 0x928   : > { %8145 = vmatpush3.msra.mxu0 %v6297_v50 }
 0x929   : > { %8146 = vmatprep.subr.mxu0 %v14608_v51 }
 0x92a   : > { %8147 = vmatpush3.msra.mxu0 %v6296_v43 }
 0x92b   : > { %8148 = vmatprep.subr.mxu0 %v14608_v51 }
 0x92c   : > { %8149 = vmatpush3.msra.mxu0 %v6295_v39 }
 0x92d   : > { %8150 = vmatprep.subr.mxu0 %v14608_v51 }
 0x92e   : > { %8151 = vmatpush3.msra.mxu0 %v6294_v8 }
 0x92f   : > { %8152 = vmatprep.subr.mxu0 %v14608_v51 }
 0x930   : > { %8153 = vmatpush3.msra.mxu0 %v6293_v16 }
 0x931   : > { %8154 = vmatprep.subr.mxu0 %v14608_v51 }
 0x932   : > { %8155 = vmatpush3.msra.mxu0 %v6292_v29 }
 0x933   : > { %8156 = vmatprep.subr.mxu0 %v14608_v51 }
 0x934   : > { %8157 = vmatpush3.msra.mxu0 %v6291_v5 }
 0x935   : > { %8158 = vmatprep.subr.mxu0 %v14608_v51 }
 0x936   : > { %8159 = vmatpush3.msra.mxu0 %v6290_v22 }
 0x937   : > { %8160 = vmatprep.subr.mxu0 %v14608_v51 }
 0x938   : > { %8161 = vmatpush3.msra.mxu0 %v6289_v57 }
 0x939   : > { %8162 = vmatprep.subr.mxu0 %v14608_v51 }
 0x93a   : > { %8163 = vmatpush3.msra.mxu0 %v6288_v14 }
 0x93b   : > { %8164 = vmatprep.subr.mxu0 %v14608_v51 }
 0x93c   : > { %8165 = vmatpush3.msra.mxu0 %v6287_v38 }
 0x93d   : > { %8166 = vmatprep.subr.mxu0 %v14608_v51  ;;  %v6302_v51 = vld [vmem:[%s15100_s13] sm:$0x1] }
 0x93e   : > { %8167 = vmatpush3.msra.mxu0 %v6286_v41 }
 0x9c5   : > { %v6111_v34 = vpop.f32.mrf.mxu1 }
 0x9c6   : > { %v6115_v32 = vadd.f32 %v6111_v34, %v14908_v30 }
 0x9c7   : > { %v8100_v10 = vpop.f32.mrf.mxu1 }
 0x9e5   : > { %v6278_v49 = vpop.f32.mrf.mxu1 }
 0x9e6   : > { %v6282_v9 = vadd.f32 %v6278_v49, %v6115_v32 }
 0x9e7   : > { %v8135_v21 = vpop.f32.mrf.mxu1 }
 0x9e8   : > { %v6284_v2 = vadd.f32 %v6283_v58, %v6282_v9 }
 0x9ea   : > { %v6285_v53 = vmax.f32 %v6284_v2, 0.0 }
 0x9ec   : > { %8169 = vmatmul.mubr.f32.vlgmr.msra.gmra.mxu0 %v6285_v53 }
 0xaac   : > { %v6369_v40 = vpop.f32.mrf.mxu0 }
 0xaad   : > { %v6370_v55 = vadd.f32 %v6369_v40, %v6302_v51 }
 0xaae   : > { %v8170_v48 = vpop.f32.mrf.mxu0 }
 0xaaf   : > { %6374 = vst.msk [vmem:[%s459_s28] sm:$0x1] %vm6373_vm6, %v6370_v55 }
 0xab0   : > { %8232 = shalt.err (!%p8229_p3)
}
 0xab1   : > { %s8233_s29 = scalar_lea.hbm %s15052_s21, 16  ;;  %s8237_s28 = scalar_lea.hbm %s15101_s14, 32 }
 0xab2   : > { %p8234_p4 = scmp.ne.s32.totalorder %s15052_s21, %s8233_s29  ;;  %p8238_p9 = scmp.lt.s32.totalorder %s15052_s21, %s15101_s14 }
 0xab3   : > { %p8239_p10 = scmp.lt.s32.totalorder %s8237_s28, %s8233_s29 }
 0xab4   : > { %p8235_p7 = pnand %p8234_p4, %p8397_p5 }
 0xab5   : > { %p8240_p11 = por %p8239_p10, %p8238_p9 }
 0xab6   : > { %p8236_p8 = pneg %p8235_p7 }
 0xab8   : > { %p8241_p12 = pnand %p8240_p11, %p8236_p8 }
 0xaba   : > { %8244 = shalt.err (!%p8241_p12)
}
 0xabb   : > { %8172 = dma.vmem_to_hbm [thread:$0]  (%p8397_p5), %s6389_s20, 16, %s15052_s21, %s6376_s26  }
 0xabc PF: > { %s15126_s15 = sld [smem:[#allocation7_spill]]  ;;  %p8178_p13 = scmp.ge.s32.totalorder %s8279_s16, 2 }
 0xabe   : > { %p8175_p0 = pnand %p8178_p13, %p8401_p6 }
 0xac0   : > { %p8176_p1 = pneg %p8175_p0 }
 0xac2   : > { %s6400_s19 = sand.u32 1, %s15126_s15  }
 0xac3   : > { %s6401_s27 = scalar_lea.sflag [#allocation5], %s6400_s19 }
 0xac4   : > { %8262 = dma.done.wait (%p8176_p1), %s6401_s27, 16  }
 0xac5   : > { %8264 = vsyncadd (%p8176_p1), %s6401_s27, 4294967280  ;;  %s15128_s16 = sld [smem:[#allocation9_spill]]  ;;  %s15131_s29 = smov %s8271_s30 }
 0xac6   : > { %s15129_s22 = sld [smem:[#allocation8_spill]] }
 0xac7   : > { %s15130_s15 = sld [smem:[#allocation10_spill]] }
 0xacb   : > { %p24_p2 = scmp.ge.s32.totalorder %s15128_s16, 4  }
 0xacc   : > { %s15132_s30 = smov %s15129_s22 }
 0xacd   :  { %26 = sbr.rel (!%p24_p2) target bundleno = 3 (0x3), region = 125 }
 0xad2   :  { %6405 = vsyncpa [#allocation5], 1 }
 0xad3   :  { %6407 = vsyncpa [#allocation5 + $0x1], 1 }

</bundles_post_ra>
